<compile_context>
chip_gen: v6e
topology: v6e:2x2x1
jax: 0.10.0
libtpu: 0.0.40
codegen_flags: <defaults>
</compile_context>

<pallas_src>
import jax
import jax.numpy as jnp
import numpy as np
from jax import lax
from jax.experimental import pallas as pl
from jax.experimental.pallas import tpu as pltpu

C_IN = 512            # conv1 input channels
C_MID = 256           # conv1 output channels
C_SE = C_MID // 16    # SEModule(256, reduction=16)
NCLS_PAD = 128        # lane-dense padding for the classifier output


def _interp_matrix(in_size, out_size):
    """1-D align_corners=True linear-resize matrix, shape (out_size, in_size)."""
    if in_size == 1:
        return jnp.ones((out_size, 1), jnp.float32)
    pos = jnp.linspace(0.0, in_size - 1.0, out_size)
    lo = jnp.floor(pos).astype(jnp.int32)
    hi = jnp.minimum(lo + 1, in_size - 1)
    w = (pos - lo.astype(jnp.float32))[:, None]
    return (jax.nn.one_hot(lo, in_size, dtype=jnp.float32) * (1.0 - w)
            + jax.nn.one_hot(hi, in_size, dtype=jnp.float32) * w)


def _bilinear_align_corners(x, out_h, out_w):
    """F.interpolate(x, (out_h, out_w), 'bilinear', align_corners=True), NHWC,
    expressed as two small interpolation matmuls (no gathers; fuses with the
    downstream alpha-fuse / pad / bf16 cast under jit)."""
    _, h, w, _ = x.shape
    rm = _interp_matrix(h, out_h)          # (out_h, h)
    cm = _interp_matrix(w, out_w)          # (out_w, w)
    y = jnp.einsum("Hh,nhwc->nHwc", rm, x)
    return jnp.einsum("Ww,nHwc->nHWc", cm, y)


def _decoder_kernel(xfuse_ref, w1_ref, bn1s_ref, bn1b_ref,
                    w2_ref, bn2s_ref, bn2b_ref,
                    fc1w_ref, fc1b_ref, fc2w_ref, fc2b_ref,
                    w3_ref, b3_ref,
                    seg_ref, fea_ref,
                    xshift_ref):
    Hp, W, k3 = xshift_ref.shape
    H = Hp - 2
    HW = H * W
    c_in = k3 // 3

    # Materialize the 3 dx-shifted copies of the fused (already bf16, already
    # zero-padded) image ONCE, lane-concatenated -> (Hp, W, 3*C_IN).  After
    # this, every 3x3-conv operand below is a contiguous view.
    for dx in range(3):
        xshift_ref[:, :, dx * c_in:(dx + 1) * c_in] = xfuse_ref[0, :, dx:dx + W, :]

    # 3x3 / s1 / p1 conv (512 -> 256) as 3 back-to-back K=1536 MXU matmuls with
    # value-chained f32 accumulation (no accumulator VMEM round trips; lets
    # v7x accumulate in the MRB).
    acc = jnp.dot(xshift_ref[0:H].reshape(HW, k3), w1_ref[0],
                  preferred_element_type=jnp.float32)
    acc = acc + jnp.dot(xshift_ref[1:1 + H].reshape(HW, k3), w1_ref[1],
                        preferred_element_type=jnp.float32)
    acc = acc + jnp.dot(xshift_ref[2:2 + H].reshape(HW, k3), w1_ref[2],
                        preferred_element_type=jnp.float32)

    # TODO(synk): InPlaceABNSync train-mode (synced batch statistics) has no
    # clean kernel equivalent; implemented as inference-mode BN folded to
    # scale/bias (the module uses activation='none', ReLU is explicit).
    h1 = jnp.maximum(acc * bn1s_ref[...] + bn1b_ref[...], 0.0)

    # 1x1 conv (256 -> 256) + BN + ReLU (bf16 operands, f32 accumulate).
    h2 = jnp.dot(h1.astype(jnp.bfloat16), w2_ref[...],
                 preferred_element_type=jnp.float32)
    h2 = jnp.maximum(h2 * bn2s_ref[...] + bn2b_ref[...], 0.0)

    # SEModule(256, reduction=16): GAP -> fc1 -> ReLU -> fc2 -> sigmoid -> scale
    pooled = jnp.mean(h2, axis=0, keepdims=True)                              # (1, 256)
    s = jnp.dot(pooled, fc1w_ref[...], preferred_element_type=jnp.float32) + fc1b_ref[...]
    s = jnp.maximum(s, 0.0)
    s = jnp.dot(s, fc2w_ref[...], preferred_element_type=jnp.float32) + fc2b_ref[...]
    gate = pl.reciprocal(1.0 + jnp.exp(-s), approx=True)                      # sigmoid (EUP recip)
    fea = h2 * gate                                                           # (HW, 256) f32

    # fb_fea stored bf16 (halves the largest output's HBM bytes).
    fea_ref[0] = fea.astype(jnp.bfloat16)

    # conv2: 1x1 conv (256 -> fbody_cls) into a 128-lane-padded buffer for
    # unmasked lane-dense stores (wrapper slices [:, :ncls]).
    seg_ref[0] = jnp.dot(fea.astype(jnp.bfloat16), w3_ref[...],
                         preferred_element_type=jnp.float32) + b3_ref[...]


@jax.jit
def alpha_fb_decoder(x_nhwc, skip_nhwc, params):
    """Pallas forward.  x_nhwc: (N, h_in, w_in, 512), skip_nhwc: (N, H, W, 512)."""
    N, H, W, c_in = skip_nhwc.shape
    assert c_in == C_IN
    # bf16 packed-sublane tile: keeps every (H, W, C)->(HW, C) merge in the
    # kernel layout-free (otherwise each tap hides a relayout copy).
    assert W % 16 == 0, "W must be a multiple of 16"
    ncls = params["b3"].shape[-1]
    assert ncls <= NCLS_PAD

    Hp, Wp = H + 2, W + 2
    HW = H * W

    # Glue (single fused XLA computation under jit): matmul-based bilinear
    # upsample + alpha-fuse + zero pad + bf16 cast.  Exactly ONE bf16 full-res
    # tensor is materialized in HBM for the kernel to consume.
    xup = _bilinear_align_corners(x_nhwc, H, W)
    xfuse = xup + params["alpha"][0] * skip_nhwc
    xfuse_p = jnp.pad(xfuse, ((0, 0), (1, 1), (1, 1), (0, 0))).astype(jnp.bfloat16)

    # conv1 3x3 weight as 3 dy-slabs of K = 3*C_IN (matches the lane-
    # concatenated dx-shift layout built inside the kernel).
    w1c = params["w1"].reshape(3, 3 * C_IN, C_MID).astype(jnp.bfloat16)
    w2_bf = params["w2"].astype(jnp.bfloat16)
    w3_pad = jnp.zeros((C_MID, NCLS_PAD), jnp.bfloat16).at[:, :ncls].set(
        params["w3"].astype(jnp.bfloat16))
    b3_pad = jnp.zeros((1, NCLS_PAD), jnp.float32).at[:, :ncls].set(params["b3"])

    def full(shape):
        return pl.BlockSpec(shape, lambda n: (0,) * len(shape))

    grid_spec = pltpu.PrefetchScalarGridSpec(
        num_scalar_prefetch=0,
        grid=(N,),
        in_specs=[
            pl.BlockSpec((1, Hp, Wp, C_IN), lambda n: (n, 0, 0, 0)),   # fused bf16 input (padded)
            full((3, 3 * C_IN, C_MID)),                                # conv 3x3 weight (bf16)
            full((1, C_MID)), full((1, C_MID)),                        # BN1 scale / bias
            full((C_MID, C_MID)),                                      # conv 1x1 weight (bf16)
            full((1, C_MID)), full((1, C_MID)),                        # BN2 scale / bias
            full((C_MID, C_SE)), full((1, C_SE)),                      # SE fc1 w / b
            full((C_SE, C_MID)), full((1, C_MID)),                     # SE fc2 w / b
            full((C_MID, NCLS_PAD)), full((1, NCLS_PAD)),              # conv2 w / b (padded)
        ],
        out_specs=(
            pl.BlockSpec((1, HW, NCLS_PAD), lambda n: (n, 0, 0)),      # fb_seg (lane-dense, f32)
            pl.BlockSpec((1, HW, C_MID), lambda n: (n, 0, 0)),         # fb_fea (bf16)
        ),
        scratch_shapes=[
            pltpu.VMEM((Hp, W, 3 * C_IN), jnp.bfloat16),               # lane-concat dx shifts
        ],
    )

    seg_flat, fea_flat = pl.pallas_call(
        _decoder_kernel,
        out_shape=(jax.ShapeDtypeStruct((N, HW, NCLS_PAD), jnp.float32),
                   jax.ShapeDtypeStruct((N, HW, C_MID), jnp.bfloat16)),
        grid_spec=grid_spec,
        compiler_params=pltpu.CompilerParams(
            dimension_semantics=("parallel",),
            # v7x-safe (64 MiB physical VMEM); headroom exists to raise this
            # on v5e/v6e if spatial tiles grow.
            vmem_limit_bytes=48 * 1024 * 1024),
    )(xfuse_p, w1c,
      params["bn1_s"], params["bn1_b"],
      w2_bf, params["bn2_s"], params["bn2_b"],
      params["fc1_w"], params["fc1_b"], params["fc2_w"], params["fc2_b"],
      w3_pad, b3_pad)

    fb_seg = seg_flat[:, :, :ncls].reshape(N, H, W, ncls)
    fb_fea = fea_flat.astype(jnp.float32).reshape(N, H, W, C_MID)
    return fb_seg, fb_fea


def init_params(key, fbody_cls):
    """Deterministic synthetic parameters (shapes implied by AlphaFBDecoder.__init__)."""
    ks = jax.random.split(key, 16)

    def nrm(k, shape, s):
        return jax.random.normal(k, shape, jnp.float32) * s

    eps = 1e-5

    def bn_fold(kg, kb, km, kv, c):
        gamma = 1.0 + 0.1 * jax.random.normal(kg, (1, c), jnp.float32)
        beta = 0.1 * jax.random.normal(kb, (1, c), jnp.float32)
        mean = 0.1 * jax.random.normal(km, (1, c), jnp.float32)
        var = 1.0 + 0.1 * jax.random.uniform(kv, (1, c), jnp.float32)
        scale = gamma * lax.rsqrt(var + eps)
        return scale, beta - mean * scale

    bn1_s, bn1_b = bn_fold(ks[1], ks[2], ks[3], ks[4], C_MID)
    bn2_s, bn2_b = bn_fold(ks[6], ks[7], ks[8], ks[9], C_MID)

    return dict(
        alpha=jnp.ones((1,), jnp.float32),                # nn.Parameter(torch.ones(1))
        # conv 3x3 weight stored as (ky*3+kx, Cin, Cout) (torch (Cout,Cin,3,3) permuted)
        w1=nrm(ks[0], (9, C_IN, C_MID), 0.02),
        bn1_s=bn1_s, bn1_b=bn1_b,
        w2=nrm(ks[5], (C_MID, C_MID), 0.05),              # 1x1 conv as (Cin, Cout)
        bn2_s=bn2_s, bn2_b=bn2_b,
        fc1_w=nrm(ks[10], (C_MID, C_SE), 0.05),
        fc1_b=nrm(ks[11], (1, C_SE), 0.05),
        fc2_w=nrm(ks[12], (C_SE, C_MID), 0.05),
        fc2_b=nrm(ks[13], (1, C_MID), 0.05),
        w3=nrm(ks[14], (C_MID, fbody_cls), 0.05),
        b3=nrm(ks[15], (1, fbody_cls), 0.05),
    )


def reference_forward(x_nhwc, skip_nhwc, params):
    """Pure-JAX reference mirroring the PyTorch forward (NHWC).

    Matmul operands are cast to bf16 with f32 accumulation, mirroring the
    kernel's MXU precision choices; all other math is f32.
    """
    N, H, W, _ = skip_nhwc.shape
    xup = _bilinear_align_corners(x_nhwc, H, W)
    xf = (xup + params["alpha"][0] * skip_nhwc).astype(jnp.bfloat16)
    w1_hwio = params["w1"].reshape(3, 3, C_IN, C_MID).astype(jnp.bfloat16)
    y = lax.conv_general_dilated(xf, w1_hwio, (1, 1), "SAME",
                                 dimension_numbers=("NHWC", "HWIO", "NHWC"),
                                 preferred_element_type=jnp.float32)
    y = jnp.maximum(y * params["bn1_s"] + params["bn1_b"], 0.0)
    y = jnp.einsum("nhwc,cd->nhwd", y.astype(jnp.bfloat16),
                   params["w2"].astype(jnp.bfloat16),
                   preferred_element_type=jnp.float32)
    y = jnp.maximum(y * params["bn2_s"] + params["bn2_b"], 0.0)
    pooled = y.mean(axis=(1, 2))                                     # (N, 256)
    s = jnp.maximum(pooled @ params["fc1_w"] + params["fc1_b"], 0.0)
    g = jax.nn.sigmoid(s @ params["fc2_w"] + params["fc2_b"])
    fea = y * g[:, None, None, :]
    seg = jnp.einsum("nhwc,cd->nhwd", fea.astype(jnp.bfloat16),
                     params["w3"].astype(jnp.bfloat16),
                     preferred_element_type=jnp.float32) + params["b3"]
    return seg, fea


if __name__ == "__main__":
    key = jax.random.PRNGKey(0)
    k_x, k_s, k_p = jax.random.split(key, 3)

    N, HIN, WIN = 2, 8, 8         # low-res input x
    H, W = 16, 16                 # skip resolution (target of the upsample)
    FBODY_CLS = 3

    # PyTorch forward sees NCHW: x (2, 512, 8, 8), skip (2, 512, 16, 16);
    # here we build the data directly in the kernel's NHWC layout.
    x_nhwc = jax.random.normal(k_x, (N, HIN, WIN, C_IN), jnp.float32)
    skip_nhwc = jax.random.normal(k_s, (N, H, W, C_IN), jnp.float32)
    params = init_params(k_p, FBODY_CLS)

    fb_seg, fb_fea = jax.block_until_ready(alpha_fb_decoder(x_nhwc, skip_nhwc, params))

    seg_ref, fea_ref = reference_forward(x_nhwc, skip_nhwc, params)
    assert fb_seg.shape == (N, H, W, FBODY_CLS)
    assert fb_fea.shape == (N, H, W, C_MID)
    np.testing.assert_allclose(np.asarray(fb_fea), np.asarray(fea_ref), rtol=2e-2, atol=2e-2)
    np.testing.assert_allclose(np.asarray(fb_seg), np.asarray(seg_ref), rtol=2e-2, atol=2e-2)

    print("KERNEL_OK")
</pallas_src>

<mosaic_0001>
module attributes {stable_mosaic.version = 11 : i64} {
  func.func @_decoder_kernel(%arg0: i32, %arg1: memref<1x18x18x512xbf16, #tpu.memory_space<vmem>>, %arg2: memref<3x1536x256xbf16, #tpu.memory_space<vmem>>, %arg3: memref<1x256xf32, #tpu.memory_space<vmem>>, %arg4: memref<1x256xf32, #tpu.memory_space<vmem>>, %arg5: memref<256x256xbf16, #tpu.memory_space<vmem>>, %arg6: memref<1x256xf32, #tpu.memory_space<vmem>>, %arg7: memref<1x256xf32, #tpu.memory_space<vmem>>, %arg8: memref<256x16xf32, #tpu.memory_space<vmem>>, %arg9: memref<1x16xf32, #tpu.memory_space<vmem>>, %arg10: memref<16x256xf32, #tpu.memory_space<vmem>>, %arg11: memref<1x256xf32, #tpu.memory_space<vmem>>, %arg12: memref<256x128xbf16, #tpu.memory_space<vmem>>, %arg13: memref<1x128xf32, #tpu.memory_space<vmem>>, %arg14: memref<1x256x128xf32, #tpu.memory_space<vmem>>, %arg15: memref<1x256x256xbf16, #tpu.memory_space<vmem>>, %arg16: memref<18x16x1536xbf16, #tpu.memory_space<vmem>>) attributes {dimension_semantics = [#tpu.dimension_semantics<parallel>], iteration_bounds = array<i64: 2>, scalar_prefetch = 0 : i64, scratch_operands = 1 : i64, tpu.core_type = #tpu.core_type<tc>, window_params = [{transform_indices = @transform_0, window_bounds = array<i64: 1, 18, 18, 512>}, {pipeline_mode = #tpu.pipeline_mode<synchronous>, transform_indices = @transform_1, window_bounds = array<i64: 3, 1536, 256>}, {pipeline_mode = #tpu.pipeline_mode<synchronous>, transform_indices = @transform_2, window_bounds = array<i64: 1, 256>}, {pipeline_mode = #tpu.pipeline_mode<synchronous>, transform_indices = @transform_3, window_bounds = array<i64: 1, 256>}, {pipeline_mode = #tpu.pipeline_mode<synchronous>, transform_indices = @transform_4, window_bounds = array<i64: 256, 256>}, {pipeline_mode = #tpu.pipeline_mode<synchronous>, transform_indices = @transform_5, window_bounds = array<i64: 1, 256>}, {pipeline_mode = #tpu.pipeline_mode<synchronous>, transform_indices = @transform_6, window_bounds = array<i64: 1, 256>}, {pipeline_mode = #tpu.pipeline_mode<synchronous>, transform_indices = @transform_7, window_bounds = array<i64: 256, 16>}, {pipeline_mode = #tpu.pipeline_mode<synchronous>, transform_indices = @transform_8, window_bounds = array<i64: 1, 16>}, {pipeline_mode = #tpu.pipeline_mode<synchronous>, transform_indices = @transform_9, window_bounds = array<i64: 16, 256>}, {pipeline_mode = #tpu.pipeline_mode<synchronous>, transform_indices = @transform_10, window_bounds = array<i64: 1, 256>}, {pipeline_mode = #tpu.pipeline_mode<synchronous>, transform_indices = @transform_11, window_bounds = array<i64: 256, 128>}, {pipeline_mode = #tpu.pipeline_mode<synchronous>, transform_indices = @transform_12, window_bounds = array<i64: 1, 128>}, {transform_indices = @transform_13, window_bounds = array<i64: 1, 256, 128>}, {transform_indices = @transform_14, window_bounds = array<i64: 1, 256, 256>}]} {
    %c0 = arith.constant 0 : index
    %c0_0 = arith.constant 0 : index
    %c0_1 = arith.constant 0 : index
    %c0_2 = arith.constant 0 : index
    %0 = vector.load %arg1[%c0, %c0_0, %c0_1, %c0_2] : memref<1x18x18x512xbf16, #tpu.memory_space<vmem>>, vector<1x18x16x512xbf16>
    %1 = vector.shape_cast %0 : vector<1x18x16x512xbf16> to vector<18x16x512xbf16>
    %c0_3 = arith.constant 0 : index
    %c0_4 = arith.constant 0 : index
    %c0_5 = arith.constant 0 : index
    %2 = vector.load %arg16[%c0_3, %c0_4, %c0_5] : memref<18x16x1536xbf16, #tpu.memory_space<vmem>>, vector<18x16x512xbf16>
    tpu.vector_store %arg16[%c0_3, %c0_4, %c0_5], %1 {strides = array<i32>} : memref<18x16x1536xbf16, #tpu.memory_space<vmem>>, vector<18x16x512xbf16>,
    %c0_6 = arith.constant 0 : index
    %c0_7 = arith.constant 0 : index
    %c1 = arith.constant 1 : index
    %c0_8 = arith.constant 0 : index
    %3 = vector.load %arg1[%c0_6, %c0_7, %c1, %c0_8] : memref<1x18x18x512xbf16, #tpu.memory_space<vmem>>, vector<1x18x16x512xbf16>
    %4 = vector.shape_cast %3 : vector<1x18x16x512xbf16> to vector<18x16x512xbf16>
    %c0_9 = arith.constant 0 : index
    %c0_10 = arith.constant 0 : index
    %c512 = arith.constant 512 : index
    %5 = vector.load %arg16[%c0_9, %c0_10, %c512] : memref<18x16x1536xbf16, #tpu.memory_space<vmem>>, vector<18x16x512xbf16>
    tpu.vector_store %arg16[%c0_9, %c0_10, %c512], %4 {strides = array<i32>} : memref<18x16x1536xbf16, #tpu.memory_space<vmem>>, vector<18x16x512xbf16>,
    %c0_11 = arith.constant 0 : index
    %c0_12 = arith.constant 0 : index
    %c2 = arith.constant 2 : index
    %c0_13 = arith.constant 0 : index
    %6 = vector.load %arg1[%c0_11, %c0_12, %c2, %c0_13] : memref<1x18x18x512xbf16, #tpu.memory_space<vmem>>, vector<1x18x16x512xbf16>
    %7 = vector.shape_cast %6 : vector<1x18x16x512xbf16> to vector<18x16x512xbf16>
    %c0_14 = arith.constant 0 : index
    %c0_15 = arith.constant 0 : index
    %c1024 = arith.constant 1024 : index
    %8 = vector.load %arg16[%c0_14, %c0_15, %c1024] : memref<18x16x1536xbf16, #tpu.memory_space<vmem>>, vector<18x16x512xbf16>
    tpu.vector_store %arg16[%c0_14, %c0_15, %c1024], %7 {strides = array<i32>} : memref<18x16x1536xbf16, #tpu.memory_space<vmem>>, vector<18x16x512xbf16>,
    %c0_16 = arith.constant 0 : index
    %c0_17 = arith.constant 0 : index
    %c0_18 = arith.constant 0 : index
    %9 = vector.load %arg16[%c0_16, %c0_17, %c0_18] : memref<18x16x1536xbf16, #tpu.memory_space<vmem>>, vector<16x16x1536xbf16>
    %10 = vector.shape_cast %9 : vector<16x16x1536xbf16> to vector<256x1536xbf16>
    %c0_19 = arith.constant 0 : index
    %c0_20 = arith.constant 0 : index
    %c0_21 = arith.constant 0 : index
    %11 = vector.load %arg2[%c0_19, %c0_20, %c0_21] : memref<3x1536x256xbf16, #tpu.memory_space<vmem>>, vector<1x1536x256xbf16>
    %12 = vector.shape_cast %11 : vector<1x1536x256xbf16> to vector<1536x256xbf16>
    %cst = arith.constant dense<0.000000e+00> : vector<256x256xf32>
    %13 = tpu.matmul %10, %12, %cst {dimension_numbers = #tpu.dot_dimension_numbers<[1], [0], [0], [1], [0, 0, 1, 1], [], []>} : vector<256x1536xbf16>, vector<1536x256xbf16>, vector<256x256xf32> -> vector<256x256xf32>
    %c1_22 = arith.constant 1 : index
    %c0_23 = arith.constant 0 : index
    %c0_24 = arith.constant 0 : index
    %14 = vector.load %arg16[%c1_22, %c0_23, %c0_24] : memref<18x16x1536xbf16, #tpu.memory_space<vmem>>, vector<16x16x1536xbf16>
    %15 = vector.shape_cast %14 : vector<16x16x1536xbf16> to vector<256x1536xbf16>
    %c1_25 = arith.constant 1 : index
    %c0_26 = arith.constant 0 : index
    %c0_27 = arith.constant 0 : index
    %16 = vector.load %arg2[%c1_25, %c0_26, %c0_27] : memref<3x1536x256xbf16, #tpu.memory_space<vmem>>, vector<1x1536x256xbf16>
    %17 = vector.shape_cast %16 : vector<1x1536x256xbf16> to vector<1536x256xbf16>
    %cst_28 = arith.constant dense<0.000000e+00> : vector<256x256xf32>
    %18 = tpu.matmul %15, %17, %cst_28 {dimension_numbers = #tpu.dot_dimension_numbers<[1], [0], [0], [1], [0, 0, 1, 1], [], []>} : vector<256x1536xbf16>, vector<1536x256xbf16>, vector<256x256xf32> -> vector<256x256xf32>
    %19 = arith.addf %13, %18 : vector<256x256xf32>
    %c2_29 = arith.constant 2 : index
    %c0_30 = arith.constant 0 : index
    %c0_31 = arith.constant 0 : index
    %20 = vector.load %arg16[%c2_29, %c0_30, %c0_31] : memref<18x16x1536xbf16, #tpu.memory_space<vmem>>, vector<16x16x1536xbf16>
    %21 = vector.shape_cast %20 : vector<16x16x1536xbf16> to vector<256x1536xbf16>
    %c2_32 = arith.constant 2 : index
    %c0_33 = arith.constant 0 : index
    %c0_34 = arith.constant 0 : index
    %22 = vector.load %arg2[%c2_32, %c0_33, %c0_34] : memref<3x1536x256xbf16, #tpu.memory_space<vmem>>, vector<1x1536x256xbf16>
    %23 = vector.shape_cast %22 : vector<1x1536x256xbf16> to vector<1536x256xbf16>
    %cst_35 = arith.constant dense<0.000000e+00> : vector<256x256xf32>
    %24 = tpu.matmul %21, %23, %cst_35 {dimension_numbers = #tpu.dot_dimension_numbers<[1], [0], [0], [1], [0, 0, 1, 1], [], []>} : vector<256x1536xbf16>, vector<1536x256xbf16>, vector<256x256xf32> -> vector<256x256xf32>
    %25 = arith.addf %19, %24 : vector<256x256xf32>
    %c0_36 = arith.constant 0 : index
    %c0_37 = arith.constant 0 : index
    %26 = vector.load %arg3[%c0_36, %c0_37] : memref<1x256xf32, #tpu.memory_space<vmem>>, vector<1x256xf32>
    %27 = vector.broadcast %26 : vector<1x256xf32> to vector<256x256xf32>
    %28 = arith.mulf %25, %27 : vector<256x256xf32>
    %c0_38 = arith.constant 0 : index
    %c0_39 = arith.constant 0 : index
    %29 = vector.load %arg4[%c0_38, %c0_39] : memref<1x256xf32, #tpu.memory_space<vmem>>, vector<1x256xf32>
    %30 = vector.broadcast %29 : vector<1x256xf32> to vector<256x256xf32>
    %31 = arith.addf %28, %30 : vector<256x256xf32>
    %cst_40 = arith.constant 0.000000e+00 : f32
    %32 = vector.broadcast %cst_40 : f32 to vector<256x256xf32>
    %33 = arith.maximumf %31, %32 : vector<256x256xf32>
    %34 = arith.truncf %33 : vector<256x256xf32> to vector<256x256xbf16>
    %c0_41 = arith.constant 0 : index
    %c0_42 = arith.constant 0 : index
    %35 = vector.load %arg5[%c0_41, %c0_42] : memref<256x256xbf16, #tpu.memory_space<vmem>>, vector<256x256xbf16>
    %cst_43 = arith.constant dense<0.000000e+00> : vector<256x256xf32>
    %36 = tpu.matmul %34, %35, %cst_43 {dimension_numbers = #tpu.dot_dimension_numbers<[1], [0], [0], [1], [0, 0, 1, 1], [], []>} : vector<256x256xbf16>, vector<256x256xbf16>, vector<256x256xf32> -> vector<256x256xf32>
    %c0_44 = arith.constant 0 : index
    %c0_45 = arith.constant 0 : index
    %37 = vector.load %arg6[%c0_44, %c0_45] : memref<1x256xf32, #tpu.memory_space<vmem>>, vector<1x256xf32>
    %38 = vector.broadcast %37 : vector<1x256xf32> to vector<256x256xf32>
    %39 = arith.mulf %36, %38 : vector<256x256xf32>
    %c0_46 = arith.constant 0 : index
    %c0_47 = arith.constant 0 : index
    %40 = vector.load %arg7[%c0_46, %c0_47] : memref<1x256xf32, #tpu.memory_space<vmem>>, vector<1x256xf32>
    %41 = vector.broadcast %40 : vector<1x256xf32> to vector<256x256xf32>
    %42 = arith.addf %39, %41 : vector<256x256xf32>
    %cst_48 = arith.constant 0.000000e+00 : f32
    %43 = vector.broadcast %cst_48 : f32 to vector<256x256xf32>
    %44 = arith.maximumf %42, %43 : vector<256x256xf32>
    %cst_49 = arith.constant dense<0.000000e+00> : vector<256xf32>
    %45 = vector.multi_reduction <add>, %44, %cst_49 [0] : vector<256x256xf32> to vector<256xf32>
    %46 = vector.shape_cast %45 : vector<256xf32> to vector<1x256xf32>
    %cst_50 = arith.constant 2.560000e+02 : f32
    %47 = vector.broadcast %cst_50 : f32 to vector<1x256xf32>
    %48 = arith.divf %46, %47 : vector<1x256xf32>
    %c0_51 = arith.constant 0 : index
    %c0_52 = arith.constant 0 : index
    %49 = vector.load %arg8[%c0_51, %c0_52] : memref<256x16xf32, #tpu.memory_space<vmem>>, vector<256x16xf32>
    %cst_53 = arith.constant dense<0.000000e+00> : vector<1x16xf32>
    %50 = tpu.matmul %48, %49, %cst_53 {dimension_numbers = #tpu.dot_dimension_numbers<[1], [0], [0], [1], [0, 0, 1, 1], [], []>} : vector<1x256xf32>, vector<256x16xf32>, vector<1x16xf32> -> vector<1x16xf32>
    %c0_54 = arith.constant 0 : index
    %c0_55 = arith.constant 0 : index
    %51 = vector.load %arg9[%c0_54, %c0_55] : memref<1x16xf32, #tpu.memory_space<vmem>>, vector<1x16xf32>
    %52 = arith.addf %50, %51 : vector<1x16xf32>
    %cst_56 = arith.constant 0.000000e+00 : f32
    %53 = vector.broadcast %cst_56 : f32 to vector<1x16xf32>
    %54 = arith.maximumf %52, %53 : vector<1x16xf32>
    %c0_57 = arith.constant 0 : index
    %c0_58 = arith.constant 0 : index
    %55 = vector.load %arg10[%c0_57, %c0_58] : memref<16x256xf32, #tpu.memory_space<vmem>>, vector<16x256xf32>
    %cst_59 = arith.constant dense<0.000000e+00> : vector<1x256xf32>
    %56 = tpu.matmul %54, %55, %cst_59 {dimension_numbers = #tpu.dot_dimension_numbers<[1], [0], [0], [1], [0, 0, 1, 1], [], []>} : vector<1x16xf32>, vector<16x256xf32>, vector<1x256xf32> -> vector<1x256xf32>
    %c0_60 = arith.constant 0 : index
    %c0_61 = arith.constant 0 : index
    %57 = vector.load %arg11[%c0_60, %c0_61] : memref<1x256xf32, #tpu.memory_space<vmem>>, vector<1x256xf32>
    %58 = arith.addf %56, %57 : vector<1x256xf32>
    %cst_62 = arith.constant 0.000000e+00 : f32
    %59 = vector.broadcast %cst_62 : f32 to vector<1x256xf32>
    %60 = arith.subf %59, %58 : vector<1x256xf32>
    %61 = math.exp %60 : vector<1x256xf32>
    %cst_63 = arith.constant 1.000000e+00 : f32
    %62 = vector.broadcast %cst_63 : f32 to vector<1x256xf32>
    %63 = arith.addf %62, %61 : vector<1x256xf32>
    %64 = tpu.reciprocal %63 {approx = true} : vector<1x256xf32> -> vector<1x256xf32>
    %65 = vector.broadcast %64 : vector<1x256xf32> to vector<256x256xf32>
    %66 = arith.mulf %44, %65 : vector<256x256xf32>
    %67 = arith.truncf %66 : vector<256x256xf32> to vector<256x256xbf16>
    %c0_64 = arith.constant 0 : index
    %c0_65 = arith.constant 0 : index
    %c0_66 = arith.constant 0 : index
    %68 = vector.load %arg15[%c0_64, %c0_65, %c0_66] : memref<1x256x256xbf16, #tpu.memory_space<vmem>>, vector<1x256x256xbf16>
    %69 = vector.shape_cast %68 : vector<1x256x256xbf16> to vector<256x256xbf16>
    %70 = vector.shape_cast %67 : vector<256x256xbf16> to vector<1x256x256xbf16>
    tpu.vector_store %arg15[%c0_64, %c0_65, %c0_66], %70 {strides = array<i32>} : memref<1x256x256xbf16, #tpu.memory_space<vmem>>, vector<1x256x256xbf16>,
    %71 = arith.truncf %66 : vector<256x256xf32> to vector<256x256xbf16>
    %c0_67 = arith.constant 0 : index
    %c0_68 = arith.constant 0 : index
    %72 = vector.load %arg12[%c0_67, %c0_68] : memref<256x128xbf16, #tpu.memory_space<vmem>>, vector<256x128xbf16>
    %cst_69 = arith.constant dense<0.000000e+00> : vector<256x128xf32>
    %73 = tpu.matmul %71, %72, %cst_69 {dimension_numbers = #tpu.dot_dimension_numbers<[1], [0], [0], [1], [0, 0, 1, 1], [], []>} : vector<256x256xbf16>, vector<256x128xbf16>, vector<256x128xf32> -> vector<256x128xf32>
    %c0_70 = arith.constant 0 : index
    %c0_71 = arith.constant 0 : index
    %74 = vector.load %arg13[%c0_70, %c0_71] : memref<1x128xf32, #tpu.memory_space<vmem>>, vector<1x128xf32>
    %75 = vector.broadcast %74 : vector<1x128xf32> to vector<256x128xf32>
    %76 = arith.addf %73, %75 : vector<256x128xf32>
    %c0_72 = arith.constant 0 : index
    %c0_73 = arith.constant 0 : index
    %c0_74 = arith.constant 0 : index
    %77 = vector.load %arg14[%c0_72, %c0_73, %c0_74] : memref<1x256x128xf32, #tpu.memory_space<vmem>>, vector<1x256x128xf32>
    %78 = vector.shape_cast %77 : vector<1x256x128xf32> to vector<256x128xf32>
    %79 = vector.shape_cast %76 : vector<256x128xf32> to vector<1x256x128xf32>
    tpu.vector_store %arg14[%c0_72, %c0_73, %c0_74], %79 {strides = array<i32>} : memref<1x256x128xf32, #tpu.memory_space<vmem>>, vector<1x256x128xf32>,
    return
  }
  func.func @transform_0(%arg0: i32) -> (i32, i32, i32, i32) {
    %c0_i32 = arith.constant 0 : i32
    %c0_i32_0 = arith.constant 0 : i32
    %c0_i32_1 = arith.constant 0 : i32
    %c0_i32_2 = arith.constant 0 : i32
    return %arg0, %c0_i32, %c0_i32_0, %c0_i32_1 : i32, i32, i32, i32
  }
  func.func @transform_1(%arg0: i32) -> (i32, i32, i32) {
    %c0_i32 = arith.constant 0 : i32
    %c0_i32_0 = arith.constant 0 : i32
    %c0_i32_1 = arith.constant 0 : i32
    %c0_i32_2 = arith.constant 0 : i32
    return %c0_i32, %c0_i32_0, %c0_i32_1 : i32, i32, i32
  }
  func.func @transform_2(%arg0: i32) -> (i32, i32) {
    %c0_i32 = arith.constant 0 : i32
    %c0_i32_0 = arith.constant 0 : i32
    %c0_i32_1 = arith.constant 0 : i32
    return %c0_i32, %c0_i32_0 : i32, i32
  }
  func.func @transform_3(%arg0: i32) -> (i32, i32) {
    %c0_i32 = arith.constant 0 : i32
    %c0_i32_0 = arith.constant 0 : i32
    %c0_i32_1 = arith.constant 0 : i32
    return %c0_i32, %c0_i32_0 : i32, i32
  }
  func.func @transform_4(%arg0: i32) -> (i32, i32) {
    %c0_i32 = arith.constant 0 : i32
    %c0_i32_0 = arith.constant 0 : i32
    %c0_i32_1 = arith.constant 0 : i32
    return %c0_i32, %c0_i32_0 : i32, i32
  }
  func.func @transform_5(%arg0: i32) -> (i32, i32) {
    %c0_i32 = arith.constant 0 : i32
    %c0_i32_0 = arith.constant 0 : i32
    %c0_i32_1 = arith.constant 0 : i32
    return %c0_i32, %c0_i32_0 : i32, i32
  }
  func.func @transform_6(%arg0: i32) -> (i32, i32) {
    %c0_i32 = arith.constant 0 : i32
    %c0_i32_0 = arith.constant 0 : i32
    %c0_i32_1 = arith.constant 0 : i32
    return %c0_i32, %c0_i32_0 : i32, i32
  }
  func.func @transform_7(%arg0: i32) -> (i32, i32) {
    %c0_i32 = arith.constant 0 : i32
    %c0_i32_0 = arith.constant 0 : i32
    %c0_i32_1 = arith.constant 0 : i32
    return %c0_i32, %c0_i32_0 : i32, i32
  }
  func.func @transform_8(%arg0: i32) -> (i32, i32) {
    %c0_i32 = arith.constant 0 : i32
    %c0_i32_0 = arith.constant 0 : i32
    %c0_i32_1 = arith.constant 0 : i32
    return %c0_i32, %c0_i32_0 : i32, i32
  }
  func.func @transform_9(%arg0: i32) -> (i32, i32) {
    %c0_i32 = arith.constant 0 : i32
    %c0_i32_0 = arith.constant 0 : i32
    %c0_i32_1 = arith.constant 0 : i32
    return %c0_i32, %c0_i32_0 : i32, i32
  }
  func.func @transform_10(%arg0: i32) -> (i32, i32) {
    %c0_i32 = arith.constant 0 : i32
    %c0_i32_0 = arith.constant 0 : i32
    %c0_i32_1 = arith.constant 0 : i32
    return %c0_i32, %c0_i32_0 : i32, i32
  }
  func.func @transform_11(%arg0: i32) -> (i32, i32) {
    %c0_i32 = arith.constant 0 : i32
    %c0_i32_0 = arith.constant 0 : i32
    %c0_i32_1 = arith.constant 0 : i32
    return %c0_i32, %c0_i32_0 : i32, i32
  }
  func.func @transform_12(%arg0: i32) -> (i32, i32) {
    %c0_i32 = arith.constant 0 : i32
    %c0_i32_0 = arith.constant 0 : i32
    %c0_i32_1 = arith.constant 0 : i32
    return %c0_i32, %c0_i32_0 : i32, i32
  }
  func.func @transform_13(%arg0: i32) -> (i32, i32, i32) {
    %c0_i32 = arith.constant 0 : i32
    %c0_i32_0 = arith.constant 0 : i32
    %c0_i32_1 = arith.constant 0 : i32
    return %arg0, %c0_i32, %c0_i32_0 : i32, i32, i32
  }
  func.func @transform_14(%arg0: i32) -> (i32, i32, i32) {
    %c0_i32 = arith.constant 0 : i32
    %c0_i32_0 = arith.constant 0 : i32
    %c0_i32_1 = arith.constant 0 : i32
    return %arg0, %c0_i32, %c0_i32_0 : i32, i32, i32
  }
}

</mosaic_0001>

<bundles_post_ra>
// kernel: alpha_fb_decoder.1
= control target key start
LH: loop header
LB: loop body
LE: loop exit
PB: predicated region body
PF: predicated region fallthrough
CT: control target
= control target key end

     0   :  { %s17740_s29 = smov 0   ;;  %s24471_s0 = inlined_call_operand.vmem [shape: bf16[2,18,18,512], index: 0, kind: input, shape index: {}]   ;;  %s24472_s1 = inlined_call_operand.vmem [shape: bf16[3,1536,256], index: 1, kind: input, shape index: {}]   ;;  %s24473_s2 = inlined_call_operand.vmem [shape: f32[1,256], index: 2, kind: input, shape index: {}]   ;;  %s24474_s3 = inlined_call_operand.vmem [shape: f32[1,256], index: 3, kind: input, shape index: {}]   ;;  %s24475_s4 = inlined_call_operand.vmem [shape: bf16[256,256], index: 4, kind: input, shape index: {}]   ;;  %s24476_s5 = inlined_call_operand.vmem [shape: f32[1,256], index: 5, kind: input, shape index: {}]   ;;  %s24477_s6 = inlined_call_operand.vmem [shape: f32[1,256], index: 6, kind: input, shape index: {}]   ;;  %s24478_s7 = inlined_call_operand.vmem [shape: f32[256,16], index: 7, kind: input, shape index: {}]   ;;  %s24479_s8 = inlined_call_operand.vmem [shape: f32[1,16], index: 8, kind: input, shape index: {}]   ;;  %s24480_s9 = inlined_call_operand.vmem [shape: f32[16,256], index: 9, kind: input, shape index: {}]   ;;  %s24481_s10 = inlined_call_operand.vmem [shape: f32[1,256], index: 10, kind: input, shape index: {}]   ;;  %s24482_s11 = inlined_call_operand.vmem [shape: bf16[256,128], index: 11, kind: input, shape index: {}]   ;;  %s24483_s12 = inlined_call_operand.vmem [shape: f32[1,128], index: 12, kind: input, shape index: {}]   ;;  %s24484_s13 = inlined_call_operand.vmem [shape: f32[2,256,128], index: 13, kind: output, shape index: {0}]   ;;  %s24485_s14 = inlined_call_operand.vmem [shape: bf16[2,256,256], index: 14, kind: output, shape index: {1}]  }
   0x1 LB: > { %s14657_s30 = sadd.s32 4294967295, %s17662_s29   ;;  %p14661_p0 = scmp.ge.s32.totalorder %s17662_s29, 1  ;;  %s17662_s29 = sphi %s17740_s29, %s25_s29  }
   0x2   : > { %p415_p1 = scmp.lt.s32.totalorder %s17662_s29, 3 }
   0x4   : > { %p416_p2 = pnand %p14661_p0, %p415_p1 }
   0x6   : > { %419 = sbr.rel (%p416_p2) target bundleno = 2437 (0x985), region = 72 }
   0xb   : > { %v16530_v0 = vld [vmem:[%s24472_s1 + $0x674] ss:$8 sps:$4 sm:$0xff]   ;;  %v16534_v2 = vld [vmem:[%s24472_s1 + $0x670] ss:$8 sps:$4 sm:$0xff]   ;;  %v16536_v4 = vld [vmem:[%s24472_s1 + $0x664] ss:$8 sps:$4 sm:$0xff]  }
   0xc   : > { %v16532_v1 = vld [vmem:[%s24472_s1 + $0x774] ss:$8 sps:$4 sm:$0xff]   ;;  %5050 = vmatprep.subr.bf16.mxu0 %v16530_v0  ;;  %v16535_v3 = vld [vmem:[%s24472_s1 + $0x770] ss:$8 sps:$4 sm:$0xff]   ;;  %v16538_v5 = vld [vmem:[%s24472_s1 + $0x764] ss:$8 sps:$4 sm:$0xff]  }
   0xd   : > { %5243 = vmatprep.subr.bf16.mxu1 %v16532_v1  ;;  %5051 = vmatpush1.bf16.msra.mxu0 %v16534_v2  ;;  %v16540_v6 = vld [vmem:[%s24472_s1 + $0x660] ss:$8 sps:$4 sm:$0xff]   ;;  %v16542_v8 = vld [vmem:[%s24472_s1 + $0x654] ss:$8 sps:$4 sm:$0xff]   ;;  %v16546_v10 = vld [vmem:[%s24472_s1 + $0x650] ss:$8 sps:$4 sm:$0xff]  }
   0xe   : > { %5244 = vmatpush1.bf16.msra.mxu1 %v16535_v3  ;;  %5052 = vmatprep.subr.bf16.mxu0 %v16536_v4  ;;  %v16541_v7 = vld [vmem:[%s24472_s1 + $0x760] ss:$8 sps:$4 sm:$0xff]   ;;  %v16544_v9 = vld [vmem:[%s24472_s1 + $0x754] ss:$8 sps:$4 sm:$0xff]   ;;  %v16547_v11 = vld [vmem:[%s24472_s1 + $0x750] ss:$8 sps:$4 sm:$0xff]  }
   0xf   : > { %5245 = vmatprep.subr.bf16.mxu1 %v16538_v5  ;;  %v16548_v12 = vld [vmem:[%s24472_s1 + $0x644] ss:$8 sps:$4 sm:$0xff]   ;;  %v16552_v14 = vld [vmem:[%s24472_s1 + $0x640] ss:$8 sps:$4 sm:$0xff]   ;;  %v16554_v16 = vld [vmem:[%s24472_s1 + $0x634] ss:$8 sps:$4 sm:$0xff]  }
  0x10   : > { %v16550_v13 = vld [vmem:[%s24472_s1 + $0x744] ss:$8 sps:$4 sm:$0xff]   ;;  %v16553_v15 = vld [vmem:[%s24472_s1 + $0x740] ss:$8 sps:$4 sm:$0xff]   ;;  %v16556_v17 = vld [vmem:[%s24472_s1 + $0x734] ss:$8 sps:$4 sm:$0xff]  }
  0x11   : > { %5053 = vmatpush1.bf16.msra.mxu0 %v16540_v6  ;;  %v16558_v18 = vld [vmem:[%s24472_s1 + $0x630] ss:$8 sps:$4 sm:$0xff]   ;;  %v16560_v20 = vld [vmem:[%s24472_s1 + $0x624] ss:$8 sps:$4 sm:$0xff]   ;;  %v16564_v22 = vld [vmem:[%s24472_s1 + $0x620] ss:$8 sps:$4 sm:$0xff]  }
  0x12   : > { %5246 = vmatpush1.bf16.msra.mxu1 %v16541_v7  ;;  %5054 = vmatprep.subr.bf16.mxu0 %v16542_v8  ;;  %v16559_v19 = vld [vmem:[%s24472_s1 + $0x730] ss:$8 sps:$4 sm:$0xff]   ;;  %v16562_v21 = vld [vmem:[%s24472_s1 + $0x724] ss:$8 sps:$4 sm:$0xff]   ;;  %v16565_v23 = vld [vmem:[%s24472_s1 + $0x720] ss:$8 sps:$4 sm:$0xff]  }
  0x13   : > { %5247 = vmatprep.subr.bf16.mxu1 %v16544_v9  ;;  %v16566_v24 = vld [vmem:[%s24472_s1 + $0x614] ss:$8 sps:$4 sm:$0xff]   ;;  %v16570_v26 = vld [vmem:[%s24472_s1 + $0x610] ss:$8 sps:$4 sm:$0xff]   ;;  %v16572_v28 = vld [vmem:[%s24472_s1 + $0x604] ss:$8 sps:$4 sm:$0xff]  }
  0x14   : > { %v16568_v25 = vld [vmem:[%s24472_s1 + $0x714] ss:$8 sps:$4 sm:$0xff]   ;;  %v16571_v27 = vld [vmem:[%s24472_s1 + $0x710] ss:$8 sps:$4 sm:$0xff]   ;;  %v16574_v29 = vld [vmem:[%s24472_s1 + $0x704] ss:$8 sps:$4 sm:$0xff]  }
  0x15   : > { %5055 = vmatpush1.bf16.msra.mxu0 %v16546_v10  ;;  %v16576_v30 = vld [vmem:[%s24472_s1 + $0x600] ss:$8 sps:$4 sm:$0xff]   ;;  %p466_p3 = scmp.lt.s32.totalorder %s14657_s30, 1  ;;  %v16578_v32 = vld [vmem:[%s24472_s1 + $0x6f4] ss:$8 sps:$4 sm:$0xff]   ;;  %vm1961_vm3 = vcmask 1042432  }
  0x16   : > { %5248 = vmatpush1.bf16.msra.mxu1 %v16547_v11  ;;  %5056 = vmatprep.subr.bf16.mxu0 %v16548_v12  ;;  %v16577_v31 = vld [vmem:[%s24472_s1 + $0x700] ss:$8 sps:$4 sm:$0xff]   ;;  %v16580_v33 = vld [vmem:[%s24472_s1 + $0x7f4] ss:$8 sps:$4 sm:$0xff]   ;;  %v16582_v34 = vld [vmem:[%s24472_s1 + $0x6f0] ss:$8 sps:$4 sm:$0xff]  }
  0x17   : > { %5249 = vmatprep.subr.bf16.mxu1 %v16550_v13  ;;  %v16583_v35 = vld [vmem:[%s24472_s1 + $0x7f0] ss:$8 sps:$4 sm:$0xff]   ;;  %s25900_s30 = smov (!%p466_p3, %s14657_s30), 1  ;;  %v16584_v36 = vld [vmem:[%s24472_s1 + $0x6e4] ss:$8 sps:$4 sm:$0xff]   ;;  %vm1962_vm4 = vcmask 1046532  }
  0x18   : > { %v16586_v37 = vld [vmem:[%s24472_s1 + $0x7e4] ss:$8 sps:$4 sm:$0xff]   ;;  %v16588_v38 = vld [vmem:[%s24472_s1 + $0x6e0] ss:$8 sps:$4 sm:$0xff]   ;;  %s16520_s23 = smul.u32 864, %s25900_s30  ;;  %vm19212_vm5 = vmor %vm1961_vm3, %vm1962_vm4  ;;  %vm13860_vm6 = vcmask 130048  }
  0x19   : > { %5057 = vmatpush1.bf16.msra.mxu0 %v16552_v14  ;;  %v16589_v39 = vld [vmem:[%s24472_s1 + $0x7e0] ss:$8 sps:$4 sm:$0xff]   ;;  %v16590_v40 = vld [vmem:[%s24472_s1 + $0x6d4] ss:$8 sps:$4 sm:$0xff]   ;;  %v16594_v42 = vld [vmem:[%s24472_s1 + $0x6d0] ss:$8 sps:$4 sm:$0xff]  }
  0x1a   : > { %5250 = vmatpush1.bf16.msra.mxu1 %v16553_v15  ;;  %5058 = vmatprep.subr.bf16.mxu0 %v16554_v16  ;;  %v16592_v41 = vld [vmem:[%s24472_s1 + $0x7d4] ss:$8 sps:$4 sm:$0xff]   ;;  %v16595_v43 = vld [vmem:[%s24472_s1 + $0x7d0] ss:$8 sps:$4 sm:$0xff]   ;;  %s17890_s22 = scalar_lea.vmem %s24471_s0, %s16520_s23  ;;  %v16596_v44 = vld [vmem:[%s24472_s1 + $0x6c4] ss:$8 sps:$4 sm:$0xff]  }
  0x1b   : > { %5251 = vmatprep.subr.bf16.mxu1 %v16556_v17  ;;  %v16598_v45 = vld [vmem:[%s24472_s1 + $0x7c4] ss:$8 sps:$4 sm:$0xff]   ;;  %v16600_v46 = vld [vmem:[%s24472_s1 + $0x6c0] ss:$8 sps:$4 sm:$0xff]   ;;  %v17905_v48 = vld [vmem:[%s17890_s22 + $0x30] sm:$0xff]  ;;  %s16323_s24 = sshll.u32 %s25900_s30, 8 }
  0x1c   : > { %v16601_v47 = vld [vmem:[%s24472_s1 + $0x7c0] ss:$8 sps:$4 sm:$0xff]   ;;  %v17911_v50 = vld [vmem:[%s17890_s22 + $0x38] sm:$0xff]  ;;  %v16608_v58 = vld [vmem:[%s24472_s1 + $0x6a4] ss:$8 sps:$4 sm:$0xff]   ;;  %s24214_s27 = scalar_lea.vmem %s24485_s14, %s16323_s24  ;;  %s24402_s17 = scalar_lea.vmem %s24484_s13, %s16323_s24 }
  0x1d   : > { %5059 = vmatpush1.bf16.msra.mxu0 %v16558_v18  ;;  %v17908_v49 = vld [vmem:[%s17890_s22 + $0x40] sm:$0xff]  ;;  %v17914_v51 = vld [vmem:[%s17890_s22 + $0x48] sm:$0xff]  ;;  %v16602_v52 = vld [vmem:[%s24472_s1 + $0x6b4] ss:$8 sps:$4 sm:$0xff]   ;;  %vm734_vm0 = vsmask.f32 3328 }
  0x1e   : > { %5252 = vmatpush1.bf16.msra.mxu1 %v16559_v19  ;;  %5060 = vmatprep.subr.bf16.mxu0 %v16560_v20  ;;  %v17921_v53 = vcombine.high %v17905_v48, %v17908_v49  ;;  %v16604_v54 = vld [vmem:[%s24472_s1 + $0x7b4] ss:$8 sps:$4 sm:$0xff]   ;;  %v17928_v55 = vcombine.high %v17911_v50, %v17914_v51  ;;  %v16606_v56 = vld [vmem:[%s24472_s1 + $0x6b0] ss:$8 sps:$4 sm:$0xff]   ;;  %v16610_v59 = vld [vmem:[%s24472_s1 + $0x7a4] ss:$8 sps:$4 sm:$0xff]   ;;  %v17994_v12 = vcombine.low %v17905_v48, %v17908_v49 }
  0x1f   : > { %5253 = vmatprep.subr.bf16.mxu1 %v16562_v21  ;;  %v16607_v57 = vld [vmem:[%s24472_s1 + $0x7b0] ss:$8 sps:$4 sm:$0xff]   ;;  %v16612_v60 = vld [vmem:[%s24472_s1 + $0x6a0] ss:$8 sps:$4 sm:$0xff]   ;;  %v16614_v62 = vld [vmem:[%s24472_s1 + $0x694] ss:$8 sps:$4 sm:$0xff]   ;;  %v17998_v13 = vcombine.low %v17911_v50, %v17914_v51 }
  0x20   : > { %24845 = vst [vmem:[#allocation3_spill] sm:$0xff] %v17921_v53  ;;  %24846 = vst [vmem:[#allocation4_spill] sm:$0xff] %v17928_v55  ;;  %5082 = vmatprep.mubr.bf16.mxu0 %v17921_v53  ;;  %5275 = vmatprep.mubr.bf16.mxu1 %v17928_v55  ;;  %v16613_v61 = vld [vmem:[%s24472_s1 + $0x7a0] ss:$8 sps:$4 sm:$0xff]   ;;  %v16616_v63 = vld [vmem:[%s24472_s1 + $0x794] ss:$8 sps:$4 sm:$0xff]  }
  0x21   : > { %5061 = vmatpush1.bf16.msra.mxu0 %v16564_v22  ;;  %v16618_v0 = vld [vmem:[%s24472_s1 + $0x690] ss:$8 sps:$4 sm:$0xff]   ;;  %v16620_v2 = vld [vmem:[%s24472_s1 + $0x684] ss:$8 sps:$4 sm:$0xff]   ;;  %v16624_v4 = vld [vmem:[%s24472_s1 + $0x680] ss:$8 sps:$4 sm:$0xff]  }
  0x22   : > { %5254 = vmatpush1.bf16.msra.mxu1 %v16565_v23  ;;  %5062 = vmatprep.subr.bf16.mxu0 %v16566_v24  ;;  %v16619_v1 = vld [vmem:[%s24472_s1 + $0x790] ss:$8 sps:$4 sm:$0xff]   ;;  %v16622_v3 = vld [vmem:[%s24472_s1 + $0x784] ss:$8 sps:$4 sm:$0xff]   ;;  %v16625_v5 = vld [vmem:[%s24472_s1 + $0x780] ss:$8 sps:$4 sm:$0xff]  }
  0x23   : > { %5255 = vmatprep.subr.bf16.mxu1 %v16568_v25  ;;  %v16632_v6 = vld [vmem:[%s24472_s1 + $0x874] ss:$8 sps:$4 sm:$0xff]   ;;  %v17981_v8 = vld [vmem:[%s17890_s22 + $0x60] sm:$0xff]  ;;  %v17987_v10 = vld [vmem:[%s17890_s22 + $0x68] sm:$0xff]  ;;  %24847 = vst [vmem:[#allocation5_spill] sm:$0xff] %v17994_v12 }
  0x24   : > { %v16635_v7 = vld [vmem:[%s24472_s1 + $0x974] ss:$8 sps:$4 sm:$0xff]   ;;  %24848 = vst [vmem:[#allocation6_spill] sm:$0xff] %v17998_v13  ;;  %v16630_v14 = vld [vmem:[%s24472_s1 + $0x870] ss:$8 sps:$4 sm:$0xff]   ;;  %v18032_v23 = vld [vmem:[%s17890_s22 + $0xa0] sm:$0xff] }
  0x25   : > { %5063 = vmatpush1.bf16.msra.mxu0 %v16570_v26  ;;  %v17984_v9 = vld [vmem:[%s17890_s22 + $0x70] sm:$0xff]  ;;  %v17990_v11 = vld [vmem:[%s17890_s22 + $0x78] sm:$0xff]  ;;  %v16642_v18 = vld [vmem:[%s24472_s1 + $0x864] ss:$8 sps:$4 sm:$0xff]   ;;  %vm735_vm1 = vsmask.f32 7440 }
  0x26   : > { %5256 = vmatpush1.bf16.msra.mxu1 %v16571_v27  ;;  %5064 = vmatprep.subr.bf16.mxu0 %v16572_v28  ;;  %v16633_v15 = vld [vmem:[%s24472_s1 + $0x970] ss:$8 sps:$4 sm:$0xff]   ;;  %v18008_v16 = vcombine.high %v17981_v8, %v17984_v9  ;;  %v18012_v17 = vcombine.high %v17987_v10, %v17990_v11  ;;  %v16640_v19 = vld [vmem:[%s24472_s1 + $0x860] ss:$8 sps:$4 sm:$0xff]   ;;  %v16645_v21 = vld [vmem:[%s24472_s1 + $0x964] ss:$8 sps:$4 sm:$0xff]   ;;  %v18050_v28 = vcombine.low %v17981_v8, %v17984_v9 }
  0x27   : > { %5257 = vmatprep.subr.bf16.mxu1 %v16574_v29  ;;  %v16643_v20 = vld [vmem:[%s24472_s1 + $0x960] ss:$8 sps:$4 sm:$0xff]   ;;  %v18029_v22 = vld [vmem:[%s17890_s22 + $0x90] sm:$0xff]  ;;  %v18035_v24 = vld [vmem:[%s17890_s22 + $0x98] sm:$0xff]  ;;  %v18054_v29 = vcombine.low %v17987_v10, %v17990_v11 }
  0x28   : > { %24849 = vst [vmem:[#allocation7_spill] sm:$0xff] %v18008_v16  ;;  %24850 = vst [vmem:[#allocation8_spill] sm:$0xff] %v18012_v17  ;;  %v18038_v25 = vld [vmem:[%s17890_s22 + $0xa8] sm:$0xff]  ;;  %v16652_v26 = vld [vmem:[%s24472_s1 + $0x854] ss:$8 sps:$4 sm:$0xff]  }
  0x29   : > { %5065 = vmatpush1.bf16.msra.mxu0 %v16576_v30  ;;  %v16655_v27 = vld [vmem:[%s24472_s1 + $0x954] ss:$8 sps:$4 sm:$0xff]   ;;  %24851 = vst [vmem:[#allocation9_spill] sm:$0xff] %v18050_v28  ;;  %24852 = vst [vmem:[#allocation10_spill] sm:$0xff] %v18054_v29  ;;  %v18058_v30 = vcombine.high %v18029_v22, %v18032_v23 }
  0x2a   : > { %5258 = vmatpush1.bf16.msra.mxu1 %v16577_v31  ;;  %5066 = vmatprep.subr.bf16.mxu0 %v16578_v32  ;;  %v18062_v31 = vcombine.high %v18035_v24, %v18038_v25  ;;  %v16650_v32 = vld [vmem:[%s24472_s1 + $0x850] ss:$8 sps:$4 sm:$0xff]   ;;  %vm18366_vm2 = vmor %vm734_vm0, %vm735_vm1 }
  0x2b   : > { %5259 = vmatprep.subr.bf16.mxu1 %v16580_v33  ;;  %24853 = vst [vmem:[#allocation11_spill] sm:$0xff] %v18058_v30  ;;  %v16653_v33 = vld [vmem:[%s24472_s1 + $0x950] ss:$8 sps:$4 sm:$0xff]  }
  0x2c   : > { %24854 = vst [vmem:[#allocation12_spill] sm:$0xff] %v18062_v31 }
  0x2d   : > { %5067 = vmatpush2.bf16.msra.mxu0 %v16582_v34  ;;  %v16662_v34 = vld [vmem:[%s24472_s1 + $0x844] ss:$8 sps:$4 sm:$0xff]  }
  0x2e   : > { %5260 = vmatpush2.bf16.msra.mxu1 %v16583_v35  ;;  %5068 = vmatprep.subr.bf16.mxu0 %v16584_v36  ;;  %v16665_v35 = vld [vmem:[%s24472_s1 + $0x944] ss:$8 sps:$4 sm:$0xff]  }
  0x2f   : > { %5261 = vmatprep.subr.bf16.mxu1 %v16586_v37  ;;  %v18079_v36 = vld [vmem:[%s17890_s22 + $0xc0] sm:$0xff]  ;;  %v18082_v37 = vld [vmem:[%s17890_s22 + $0xd0] sm:$0xff] }
  0x31   : > { %5069 = vmatpush2.bf16.msra.mxu0 %v16588_v38  ;;  %v18085_v38 = vld [vmem:[%s17890_s22 + $0xc8] sm:$0xff] }
  0x32   : > { %5262 = vmatpush2.bf16.msra.mxu1 %v16589_v39  ;;  %5070 = vmatprep.subr.bf16.mxu0 %v16590_v40  ;;  %v18090_v39 = vld [vmem:[%s17890_s22 + $0xd8] sm:$0xff]  ;;  %v16660_v40 = vld [vmem:[%s24472_s1 + $0x840] ss:$8 sps:$4 sm:$0xff]  }
  0x33   : > { %5263 = vmatprep.subr.bf16.mxu1 %v16592_v41  ;;  %v16663_v41 = vld [vmem:[%s24472_s1 + $0x940] ss:$8 sps:$4 sm:$0xff]  }
  0x35   : > { %5071 = vmatpush2.bf16.msra.mxu0 %v16594_v42  ;;  %v16674_v42 = vld [vmem:[%s24472_s1 + $0x834] ss:$8 sps:$4 sm:$0xff]  }
  0x36   : > { %5264 = vmatpush2.bf16.msra.mxu1 %v16595_v43  ;;  %5072 = vmatprep.subr.bf16.mxu0 %v16596_v44  ;;  %v16677_v43 = vld [vmem:[%s24472_s1 + $0x934] ss:$8 sps:$4 sm:$0xff]   ;;  %v18106_v44 = vcombine.low %v18029_v22, %v18032_v23 }
  0x37   : > { %5265 = vmatprep.subr.bf16.mxu1 %v16598_v45  ;;  %v18110_v45 = vcombine.low %v18035_v24, %v18038_v25 }
  0x38   : > { %24855 = vst [vmem:[#allocation13_spill] sm:$0xff] %v18106_v44 }
  0x39   : > { %5073 = vmatpush2.bf16.msra.mxu0 %v16600_v46  ;;  %24856 = vst [vmem:[#allocation14_spill] sm:$0xff] %v18110_v45  ;;  %v18114_v46 = vcombine.high %v18079_v36, %v18082_v37 }
  0x3a   : > { %5266 = vmatpush2.bf16.msra.mxu1 %v16601_v47  ;;  %5074 = vmatprep.subr.bf16.mxu0 %v16602_v52  ;;  %v18118_v47 = vcombine.high %v18085_v38, %v18090_v39  ;;  %v16672_v52 = vld [vmem:[%s24472_s1 + $0x830] ss:$8 sps:$4 sm:$0xff]  }
  0x3b   : > { %5267 = vmatprep.subr.bf16.mxu1 %v16604_v54  ;;  %24857 = vst [vmem:[#allocation15_spill] sm:$0xff] %v18114_v46  ;;  %v16675_v54 = vld [vmem:[%s24472_s1 + $0x930] ss:$8 sps:$4 sm:$0xff]  }
  0x3c   : > { %24858 = vst [vmem:[#allocation16_spill] sm:$0xff] %v18118_v47 }
  0x3d   : > { %5075 = vmatpush2.bf16.msra.mxu0 %v16606_v56  ;;  %v16686_v56 = vld [vmem:[%s24472_s1 + $0x824] ss:$8 sps:$4 sm:$0xff]  }
  0x3e   : > { %5268 = vmatpush2.bf16.msra.mxu1 %v16607_v57  ;;  %5076 = vmatprep.subr.bf16.mxu0 %v16608_v58  ;;  %v16689_v57 = vld [vmem:[%s24472_s1 + $0x924] ss:$8 sps:$4 sm:$0xff]   ;;  %v16684_v58 = vld [vmem:[%s24472_s1 + $0x820] ss:$8 sps:$4 sm:$0xff]  }
  0x3f   : > { %5269 = vmatprep.subr.bf16.mxu1 %v16610_v59  ;;  %v16687_v59 = vld [vmem:[%s24472_s1 + $0x920] ss:$8 sps:$4 sm:$0xff]  }
  0x41   : > { %5077 = vmatpush2.bf16.msra.mxu0 %v16612_v60  ;;  %v16698_v60 = vld [vmem:[%s24472_s1 + $0x814] ss:$8 sps:$4 sm:$0xff]  }
  0x42   : > { %5270 = vmatpush2.bf16.msra.mxu1 %v16613_v61  ;;  %5078 = vmatprep.subr.bf16.mxu0 %v16614_v62  ;;  %v786_v61 = vshrl.u32 %v17905_v48, 16  ;;  %v789_v62 = vshll.u32 %v17905_v48, 16  ;;  %v16696_v48 = vld [vmem:[%s24472_s1 + $0x810] ss:$8 sps:$4 sm:$0xff]  }
  0x43   : > { %5271 = vmatprep.subr.bf16.mxu1 %v16616_v63  ;;  %v16701_v63 = vld [vmem:[%s24472_s1 + $0x914] ss:$8 sps:$4 sm:$0xff]  }
  0x45   : > { %5079 = vmatpush2.bf16.msra.mxu0 %v16618_v0  ;;  %v18152_v0 = vcombine.low %v18079_v36, %v18082_v37 }
  0x46   : > { %5272 = vmatpush2.bf16.msra.mxu1 %v16619_v1  ;;  %5080 = vmatprep.subr.bf16.mxu0 %v16620_v2  ;;  %v18156_v1 = vcombine.low %v18085_v38, %v18090_v39  ;;  %v16666_v2 = vld [vmem:[%s17890_s22 + $0xf4] ss:$16 sps:$4 sm:$0xff]  }
  0x47   : > { %5273 = vmatprep.subr.bf16.mxu1 %v16622_v3  ;;  %24859 = vst [vmem:[#allocation17_spill] sm:$0xff] %v18152_v0  ;;  %v16668_v3 = vld [vmem:[%s17890_s22 + $0xfc] ss:$16 sps:$4 sm:$0xff]  }
  0x48   : > { %24860 = vst [vmem:[#allocation18_spill] sm:$0xff] %v18156_v1 }
  0x49   : > { %5081 = vmatpush2.bf16.msra.mxu0 %v16624_v4  ;;  %v795_v4 = vshll.u32 %v17908_v49, 16 }
  0x4a   : > { %5274 = vmatpush2.bf16.msra.mxu1 %v16625_v5  ;;  %5436 = vmatprep.subr.bf16.mxu0 %v16632_v6  ;;  %v813_v5 = vshrl.u32 %v17908_v49, 16  ;;  %v800_v6 = vshrl.u32 %v17911_v50, 16  ;;  %v16713_v49 = vld [vmem:[%s24472_s1 + $0x904] ss:$8 sps:$4 sm:$0xff]  }
  0x4b   : > { %5629 = vmatprep.subr.bf16.mxu1 %v16635_v7  ;;  %v16699_v7 = vld [vmem:[%s24472_s1 + $0x910] ss:$8 sps:$4 sm:$0xff]  }
  0x4c   : > { %5083 = vmatmul.mubr.bf16.vlgmr.msra.gmra.mxu0 %v17994_v12  ;;  %v19320_v12 = vld [vmem:[%s17890_s22 + $0xe0] sm:$0x11] }
  0x4d   : > { %5276 = vmatmul.mubr.bf16.vlgmr.msra.gmra.mxu1 %v17998_v13  ;;  %5437 = vmatpush1.bf16.msra.mxu0 %v16630_v14  ;;  %v18169_v14 = vrot.slane %v786_v61, 4  ;;  %v16723_v61 = vld [vmem:[%s24472_s1 + $0x9f0] ss:$8 sps:$4 sm:$0xff]   ;;  %v16912_v13 = vld [vmem:[%s24472_s1 + $0x60] ss:$8 sps:$4 sm:$0xff]  }
  0x4e   : > { %5630 = vmatpush1.bf16.msra.mxu1 %v16633_v15  ;;  %5092 = vmatprep.mubr.bf16.mxu0 %v18008_v16  ;;  %v18171_v15 = vrot.slane %v789_v62, 5 }
  0x4f   : > { %5285 = vmatprep.mubr.bf16.mxu1 %v18012_v17  ;;  %5438 = vmatprep.subr.bf16.mxu0 %v16642_v18  ;;  %v16710_v18 = vld [vmem:[%s24472_s1 + $0x804] ss:$8 sps:$4 sm:$0xff]  }
  0x50   : > { %5631 = vmatprep.subr.bf16.mxu1 %v16645_v21  ;;  %v823_v21 = vshrl.u32 %v17914_v51, 16  ;;  %v792_v62 = vor.u32 %v18171_v15, %v18169_v14  ;;  %v16735_v15 = vld [vmem:[%s24472_s1 + $0x9e0] ss:$8 sps:$4 sm:$0xff]  }
  0x51   : > { %5439 = vmatpush1.bf16.msra.mxu0 %v16640_v19  ;;  %v803_v19 = vshll.u32 %v17911_v50, 16  ;;  %v16708_v50 = vld [vmem:[%s24472_s1 + $0x800] ss:$8 sps:$4 sm:$0xff]  }
  0x52   : > { %5632 = vmatpush1.bf16.msra.mxu1 %v16643_v20  ;;  %5440 = vmatprep.subr.bf16.mxu0 %v16652_v26  ;;  %v809_v20 = vshll.u32 %v17914_v51, 16  ;;  %v834_v26 = vshrl.u32 %v17981_v8, 16  ;;  %v16711_v51 = vld [vmem:[%s24472_s1 + $0x900] ss:$8 sps:$4 sm:$0xff]  }
  0x53   : > { %5633 = vmatprep.subr.bf16.mxu1 %v16655_v27  ;;  %v837_v27 = vshll.u32 %v17981_v8, 16  ;;  %v843_v8 = vshll.u32 %v17984_v9, 16 }
  0x54   : > { %5093 = vmatmul.mubr.bf16.gmra.mxu0 %v18050_v28 }
  0x55   : > { %5286 = vmatmul.mubr.bf16.gmra.mxu1 %v18054_v29  ;;  %5102 = vmatprep.mubr.bf16.mxu0 %v18058_v30  ;;  %v727_v29 = vld [vmem:[%s17890_s22 + $0x328] sm:$0x11] }
  0x56   : > { %5295 = vmatprep.mubr.bf16.mxu1 %v18062_v31  ;;  %5441 = vmatpush1.bf16.msra.mxu0 %v16650_v32  ;;  %v18189_v32 = vrot.slane %v795_v4, 5  ;;  %v16737_v4 = vld [vmem:[%s24472_s1 + $0x9e4] ss:$8 sps:$4 sm:$0xff]  }
  0x57   : > { %5634 = vmatpush1.bf16.msra.mxu1 %v16653_v33  ;;  %5442 = vmatprep.subr.bf16.mxu0 %v16662_v34  ;;  %v815_v33 = vrot.slane %v813_v5, 4  ;;  %v802_v34 = vrot.slane %v800_v6, 4  ;;  %v16732_v6 = vld [vmem:[%s24472_s1 + $0x8e0] ss:$8 sps:$4 sm:$0xff]  }
  0x58   : > { %5635 = vmatprep.subr.bf16.mxu1 %v16665_v35  ;;  %v16670_v35 = vld [vmem:[%s17890_s22 + $0xf0] ss:$16 sps:$4 sm:$0xff]  }
  0x5a   : > { %5443 = vmatpush1.bf16.msra.mxu0 %v16660_v40  ;;  %v16671_v40 = vld [vmem:[%s17890_s22 + $0xf8] ss:$16 sps:$4 sm:$0xff]  }
  0x5b   : > { %5636 = vmatpush1.bf16.msra.mxu1 %v16663_v41  ;;  %5444 = vmatprep.subr.bf16.mxu0 %v16674_v42  ;;  %v861_v41 = vshrl.u32 %v17984_v9, 16  ;;  %v16678_v42 = vld [vmem:[%s17890_s22 + $0x124] ss:$16 sps:$4 sm:$0xff]   ;;  %v16720_v9 = vld [vmem:[%s24472_s1 + $0x8f0] ss:$8 sps:$4 sm:$0xff]  }
  0x5c   : > { %5637 = vmatprep.subr.bf16.mxu1 %v16677_v43  ;;  %5103 = vmatmul.mubr.bf16.gmra.mxu0 %v18106_v44  ;;  %v16680_v43 = vld [vmem:[%s17890_s22 + $0x12c] ss:$16 sps:$4 sm:$0xff]  }
  0x5d   : > { %5296 = vmatmul.mubr.bf16.gmra.mxu1 %v18110_v45  ;;  %5112 = vmatprep.mubr.bf16.mxu0 %v18114_v46  ;;  %v726_v45 = vld [vmem:[%s17890_s22 + $0x320] sm:$0x11] }
  0x5e   : > { %5305 = vmatprep.mubr.bf16.mxu1 %v18118_v47  ;;  %5445 = vmatpush1.bf16.msra.mxu0 %v16672_v52  ;;  %v16722_v52 = vld [vmem:[%s24472_s1 + $0x8f4] ss:$8 sps:$4 sm:$0xff]  }
  0x5f   : > { %5638 = vmatpush1.bf16.msra.mxu1 %v16675_v54  ;;  %5446 = vmatprep.subr.bf16.mxu0 %v16686_v56  ;;  %v16725_v54 = vld [vmem:[%s24472_s1 + $0x9f4] ss:$8 sps:$4 sm:$0xff]   ;;  %v805_v56 = vrot.slane %v803_v19, 5  ;;  %v16683_v19 = vld [vmem:[%s17890_s22 + $0x128] ss:$16 sps:$4 sm:$0xff]  }
  0x60   : > { %5639 = vmatprep.subr.bf16.mxu1 %v16689_v57  ;;  %v18206_v57 = vrot.slane %v809_v20, 5  ;;  %v16746_v20 = vld [vmem:[%s24472_s1 + $0x8d4] ss:$8 sps:$4 sm:$0xff]  }
  0x61   : > { %v806_v5 = vor.u32 %v805_v56, %v802_v34 }
  0x62   : > { %5447 = vmatpush1.bf16.msra.mxu0 %v16684_v58  ;;  %v825_v58 = vrot.slane %v823_v21, 4  ;;  %v18238_v21 = vrot.slane %v792_v62, 4  ;;  %v896_v62 = vshrl.u32 %v18035_v24, 16 }
  0x63   : > { %5640 = vmatpush1.bf16.msra.mxu1 %v16687_v59  ;;  %5448 = vmatprep.subr.bf16.mxu0 %v16698_v60  ;;  %v836_v59 = vrot.slane %v834_v26, 4  ;;  %v839_v60 = vrot.slane %v837_v27, 5  ;;  %v851_v27 = vshll.u32 %v17987_v10, 16 }
  0x64   : > { %5641 = vmatprep.subr.bf16.mxu1 %v16701_v63  ;;  %5113 = vmatmul.mubr.bf16.gmra.mxu0 %v18152_v0  ;;  %v18216_v63 = vrot.slane %v843_v8, 5  ;;  %v677_v0 = vld [vmem:[%s17890_s22 + $0x198] sm:$0xff] }
  0x65   : > { %5306 = vmatmul.mubr.bf16.gmra.mxu1 %v18156_v1  ;;  %5122 = vmatprep.mubr.bf16.mxu0 %v16666_v2  ;;  %v863_v2 = vrot.slane %v861_v41, 4  ;;  %v840_v14 = vor.u32 %v839_v60, %v836_v59  ;;  %v857_v41 = vshll.u32 %v17990_v11, 16  ;;  %v16761_v59 = vld [vmem:[%s24472_s1 + $0x9c4] ss:$8 sps:$4 sm:$0xff]   ;;  %v885_v60 = vshll.u32 %v18029_v22, 16 }
  0x66   : > { %5315 = vmatprep.mubr.bf16.mxu1 %v16668_v3  ;;  %5449 = vmatpush1.bf16.msra.mxu0 %v16696_v48  ;;  %v16734_v3 = vld [vmem:[%s24472_s1 + $0x8e4] ss:$8 sps:$4 sm:$0xff]   ;;  %v816_v48 = vor.u32 %v815_v33, %v18189_v32  ;;  %v16749_v33 = vld [vmem:[%s24472_s1 + $0x9d4] ss:$8 sps:$4 sm:$0xff]   ;;  %v1145_v47 = vshll.u32 %v677_v0, 16  ;;  %v1159_v46 = vshrl.u32 %v677_v0, 16 }
  0x67   : > { %5642 = vmatpush1.bf16.msra.mxu1 %v16699_v7  ;;  %5450 = vmatprep.subr.bf16.mxu0 %v16710_v18  ;;  %v826_v7 = vor.u32 %v825_v58, %v18206_v57  ;;  %v848_v18 = vshrl.u32 %v17987_v10, 16  ;;  %v864_v26 = vor.u32 %v863_v2, %v18216_v63  ;;  %v18253_v8 = vrot.slane %v840_v14, 4  ;;  %v673_v1 = vld [vmem:[%s17890_s22 + $0x178] sm:$0x11] }
  0x68   : > { %5643 = vmatprep.subr.bf16.mxu1 %v16713_v49  ;;  %v16682_v49 = vld [vmem:[%s17890_s22 + $0x120] ss:$16 sps:$4 sm:$0xff]   ;;  %v18246_v34 = vrot.slane %v816_v48, 4  ;;  %v871_v10 = vshrl.u32 %v17990_v11, 16  ;;  %v853_v58 = vrot.slane %v851_v27, 5  ;;  %v899_v2 = vshll.u32 %v18035_v24, 16 }
  0x69   : > { %v18264_v56 = vrot.slane %v864_v26, 4  ;;  %v16758_v11 = vld [vmem:[%s24472_s1 + $0x8c4] ss:$8 sps:$4 sm:$0xff]   ;;  %v933_v48 = vshll.u32 %v18079_v36, 16  ;;  %v16759_v24 = vld [vmem:[%s24472_s1 + $0x9c0] ss:$8 sps:$4 sm:$0xff]  }
  0x6a   : > { %5451 = vmatpush1.bf16.msra.mxu0 %v16708_v50  ;;  %v16690_v50 = vld [vmem:[%s17890_s22 + $0x154] ss:$16 sps:$4 sm:$0xff]   ;;  %v947_v14 = vshll.u32 %v18085_v38, 16  ;;  %v891_v26 = vshll.u32 %v18032_v23, 16  ;;  %v898_v27 = vrot.slane %v896_v62, 4  ;;  %v905_v62 = vshll.u32 %v18038_v25, 16 }
  0x6b   : > { %5644 = vmatpush1.bf16.msra.mxu1 %v16711_v51  ;;  %5452 = vmatprep.subr.bf16.mxu0 %v16722_v52  ;;  %v18251_v51 = vrot.slane %v826_v7, 4  ;;  %v882_v52 = vshrl.u32 %v18029_v22, 16  ;;  %v930_v22 = vshrl.u32 %v18079_v36, 16  ;;  %v944_v7 = vshrl.u32 %v18085_v38, 16  ;;  %v16773_v36 = vld [vmem:[%s24472_s1 + $0x9b4] ss:$8 sps:$4 sm:$0xff]  }
  0x6c   : > { %5645 = vmatprep.subr.bf16.mxu1 %v16725_v54  ;;  %5123 = vmatmul.mubr.bf16.gmra.mxu0 %v16670_v35  ;;  %v18248_v35 = vrot.slane %v806_v5, 4  ;;  %v16747_v54 = vld [vmem:[%s24472_s1 + $0x9d0] ss:$8 sps:$4 sm:$0xff]  }
  0x6d   : > { %5316 = vmatmul.mubr.bf16.gmra.mxu1 %v16671_v40  ;;  %5132 = vmatprep.mubr.bf16.mxu0 %v16678_v42  ;;  %v16692_v40 = vld [vmem:[%s17890_s22 + $0x15c] ss:$16 sps:$4 sm:$0xff]   ;;  %v16744_v42 = vld [vmem:[%s24472_s1 + $0x8d0] ss:$8 sps:$4 sm:$0xff]  }
  0x6e   : > { %5325 = vmatprep.mubr.bf16.mxu1 %v16680_v43  ;;  %5453 = vmatpush2.bf16.msra.mxu0 %v16720_v9  ;;  %v850_v43 = vrot.slane %v848_v18, 4  ;;  %v18273_v9 = vrot.slane %v857_v41, 5  ;;  %v16694_v5 = vld [vmem:[%s17890_s22 + $0x150] ss:$16 sps:$4 sm:$0xff]   ;;  %v16770_v18 = vld [vmem:[%s24472_s1 + $0x8b4] ss:$8 sps:$4 sm:$0xff]  }
  0x6f   : > { %5646 = vmatpush2.bf16.msra.mxu1 %v16723_v61  ;;  %5454 = vmatprep.subr.bf16.mxu0 %v16734_v3  ;;  %v873_v61 = vrot.slane %v871_v10, 4  ;;  %v16756_v3 = vld [vmem:[%s24472_s1 + $0x8c0] ss:$8 sps:$4 sm:$0xff]   ;;  %v16768_v38 = vld [vmem:[%s24472_s1 + $0x8b0] ss:$8 sps:$4 sm:$0xff]   ;;  %v935_v41 = vrot.slane %v933_v48, 5 }
  0x70   : > { %5647 = vmatprep.subr.bf16.mxu1 %v16737_v4  ;;  %v18280_v4 = vrot.slane %v882_v52, 4  ;;  %v16771_v10 = vld [vmem:[%s24472_s1 + $0x9b0] ss:$8 sps:$4 sm:$0xff]   ;;  %v16782_v52 = vld [vmem:[%s24472_s1 + $0x8a4] ss:$8 sps:$4 sm:$0xff]  }
  0x71   : > { %v16706_v48 = vld [vmem:[%s17890_s22 + $0x180] ss:$16 sps:$4 sm:$0xff]  }
  0x72   : > { %5455 = vmatpush2.bf16.msra.mxu0 %v16732_v6  ;;  %v16695_v6 = vld [vmem:[%s17890_s22 + $0x158] ss:$16 sps:$4 sm:$0xff]  }
  0x73   : > { %5648 = vmatpush2.bf16.msra.mxu1 %v16735_v15  ;;  %5456 = vmatprep.subr.bf16.mxu0 %v16746_v20  ;;  %v16702_v15 = vld [vmem:[%s17890_s22 + $0x184] ss:$16 sps:$4 sm:$0xff]   ;;  %v854_v20 = vor.u32 %v853_v58, %v850_v43  ;;  %v949_v43 = vrot.slane %v947_v14, 5 }
  0x74   : > { %5649 = vmatprep.subr.bf16.mxu1 %v16749_v33  ;;  %5133 = vmatmul.mubr.bf16.gmra.mxu0 %v16682_v49  ;;  %v887_v49 = vrot.slane %v885_v60, 5  ;;  %v874_v33 = vor.u32 %v873_v61, %v18273_v9  ;;  %v16714_v14 = vld [vmem:[%s17890_s22 + $0x1b4] ss:$16 sps:$4 sm:$0xff]  }
  0x75   : > { %5326 = vmatmul.mubr.bf16.gmra.mxu1 %v16683_v19  ;;  %5142 = vmatprep.mubr.bf16.mxu0 %v16690_v50  ;;  %v16704_v19 = vld [vmem:[%s17890_s22 + $0x18c] ss:$16 sps:$4 sm:$0xff]   ;;  %v901_v50 = vrot.slane %v899_v2, 5  ;;  %v18318_v60 = vrot.slane %v854_v20, 4  ;;  %v919_v2 = vshrl.u32 %v18038_v25, 16  ;;  %v18341_v20 = vrot.slane %v905_v62, 5 }
  0x76   : > { %5335 = vmatprep.mubr.bf16.mxu1 %v16692_v40  ;;  %5457 = vmatpush2.bf16.msra.mxu0 %v16744_v42  ;;  %v932_v40 = vrot.slane %v930_v22, 4  ;;  %v946_v42 = vrot.slane %v944_v7, 4  ;;  %v888_v58 = vor.u32 %v887_v49, %v18280_v4  ;;  %v939_v22 = vshll.u32 %v18082_v37, 16  ;;  %v16794_v25 = vld [vmem:[%s24472_s1 + $0x894] ss:$8 sps:$4 sm:$0xff]  }
  0x77   : > { %5650 = vmatpush2.bf16.msra.mxu1 %v16747_v54  ;;  %5458 = vmatprep.subr.bf16.mxu0 %v16758_v11  ;;  %v16785_v54 = vld [vmem:[%s24472_s1 + $0x9a4] ss:$8 sps:$4 sm:$0xff]   ;;  %v909_v11 = vshrl.u32 %v18032_v23, 16  ;;  %v902_v61 = vor.u32 %v901_v50, %v898_v27  ;;  %v16783_v23 = vld [vmem:[%s24472_s1 + $0x9a0] ss:$8 sps:$4 sm:$0xff]   ;;  %v18343_v27 = vrot.slane %v919_v2, 4 }
  0x78   : > { %5651 = vmatprep.subr.bf16.mxu1 %v16761_v59  ;;  %v16780_v59 = vld [vmem:[%s24472_s1 + $0x8a0] ss:$8 sps:$4 sm:$0xff]   ;;  %v936_v4 = vor.u32 %v935_v41, %v932_v40  ;;  %v950_v7 = vor.u32 %v949_v43, %v946_v42  ;;  %v16716_v49 = vld [vmem:[%s17890_s22 + $0x1bc] ss:$16 sps:$4 sm:$0xff]   ;;  %v636_v43 = vld [vmem:[%s17890_s22 + $0x50] sm:$0x11] }
  0x79   : > { %v16809_v42 = vld [vmem:[%s24472_s1 + $0x984] ss:$8 sps:$4 sm:$0xff]   ;;  %v967_v62 = vshrl.u32 %v18090_v39, 16  ;;  %v16804_v2 = vld [vmem:[%s24472_s1 + $0x880] ss:$8 sps:$4 sm:$0xff]  }
  0x7a   : > { %5459 = vmatpush2.bf16.msra.mxu0 %v16756_v3  ;;  %v18325_v3 = vrot.slane %v874_v33, 4  ;;  %v937_v50 = vrot.slane %v936_v4, 4  ;;  %v16795_v33 = vld [vmem:[%s24472_s1 + $0x990] ss:$8 sps:$4 sm:$0xff]   ;;  %v951_v41 = vrot.slane %v950_v7, 4  ;;  %v798_v4 = vsel %vm18366_vm2, %v18238_v21, %v18189_v32 }
  0x7b   : > { %5652 = vmatpush2.bf16.msra.mxu1 %v16759_v24  ;;  %5460 = vmatprep.subr.bf16.mxu0 %v16770_v18  ;;  %v957_v24 = vshrl.u32 %v18082_v37, 16  ;;  %v889_v18 = vrot.slane %v888_v58, 4  ;;  %v16792_v37 = vld [vmem:[%s24472_s1 + $0x890] ss:$8 sps:$4 sm:$0xff]   ;;  %v819_v58 = vshll.u32 %v636_v43, 16 }
  0x7c   : > { %5653 = vmatprep.subr.bf16.mxu1 %v16773_v36  ;;  %5143 = vmatmul.mubr.bf16.gmra.mxu0 %v16694_v5  ;;  %v16707_v5 = vld [vmem:[%s17890_s22 + $0x188] ss:$16 sps:$4 sm:$0xff]   ;;  %v911_v36 = vrot.slane %v909_v11, 4  ;;  %v16812_v32 = vld [vmem:[%s24472_s1 + $0xa74] ss:$8 sps:$4 sm:$0xff]  }
  0x7d   : > { %5336 = vmatmul.mubr.bf16.gmra.mxu1 %v16695_v6  ;;  %5152 = vmatprep.mubr.bf16.mxu0 %v16702_v15  ;;  %v18333_v6 = vrot.slane %v891_v26, 5  ;;  %v16797_v15 = vld [vmem:[%s24472_s1 + $0x994] ss:$8 sps:$4 sm:$0xff]   ;;  %v953_v26 = vshll.u32 %v18090_v39, 16  ;;  %v18354_v40 = vrot.slane %v957_v24, 4  ;;  %v812_v39 = vsel %vm18366_vm2, %v18248_v35, %v18206_v57 }
  0x7e   : > { %5345 = vmatprep.mubr.bf16.mxu1 %v16704_v19  ;;  %5461 = vmatpush2.bf16.msra.mxu0 %v16768_v38  ;;  %v903_v19 = vrot.slane %v902_v61, 4  ;;  %v18349_v38 = vrot.slane %v939_v22, 5  ;;  %v637_v11 = vld [vmem:[%s17890_s22 + $0x58] sm:$0x11]  ;;  %v821_v24 = vrot.slane %v819_v58, 5  ;;  %v860_v57 = vsel %vm18366_vm2, %v18318_v60, %v18273_v9 }
  0x7f   : > { %5654 = vmatpush2.bf16.msra.mxu1 %v16771_v10  ;;  %5462 = vmatprep.subr.bf16.mxu0 %v16782_v52  ;;  %v16806_v10 = vld [vmem:[%s24472_s1 + $0x884] ss:$8 sps:$4 sm:$0xff]   ;;  %v912_v52 = vor.u32 %v911_v36, %v18333_v6  ;;  %v18373_v61 = vrot.slane %v953_v26, 5  ;;  %v829_v22 = vshll.u32 %v637_v11, 16  ;;  %v16815_v7 = vld [vmem:[%s24472_s1 + $0xb74] ss:$8 sps:$4 sm:$0xff]  }
  0x80   : > { %5655 = vmatprep.subr.bf16.mxu1 %v16785_v54  ;;  %v24861_v54 = vmov 0  ;;  %v908_v21 = vsel %vm18366_vm2, %v903_v19, %v18341_v20  ;;  %v16726_v35 = vld [vmem:[%s17890_s22 + $0x1e4] ss:$16 sps:$4 sm:$0xff]   ;;  %v18417_v9 = vsel %vm18366_vm2, %v937_v50, %v18349_v38  ;;  %v16728_v19 = vld [vmem:[%s17890_s22 + $0x1ec] ss:$16 sps:$4 sm:$0xff]  }
  0x81   : > { %v24862_v54 = vsel %vm18366_vm2, 4294967295, %v24861_v54  ;;  %v18422_v60 = vsel %vm18366_vm2, %v951_v41, %v18373_v61  ;;  %v913_v36 = vrot.slane %v912_v52, 4  ;;  %v649_v43 = vld [vmem:[%s17890_s22 + $0xb8] sm:$0x11]  ;;  %v960_v52 = vor.u32 %v18354_v40, %v18349_v38 }
  0x82   : > { %5463 = vmatpush2.bf16.msra.mxu0 %v16780_v59  ;;  %24863 = vst [vmem:[#allocation19_spill] sm:$0xff] %v24862_v54  ;;  %v922_v59 = vor.u32 %v18343_v27, %v18341_v20  ;;  %v925_v11 = vshll.u32 %v649_v43, 16  ;;  %v16754_v43 = vld [vmem:[%s17890_s22 + $0x240] ss:$16 sps:$4 sm:$0xff]   ;;  %v19306_v54 = vld [vmem:[%s17890_s22 + $0xd8] sm:$0xff] }
  0x83   : > { %5656 = vmatpush2.bf16.msra.mxu1 %v16783_v23  ;;  %5464 = vmatprep.subr.bf16.mxu0 %v16794_v25  ;;  %v16807_v23 = vld [vmem:[%s24472_s1 + $0x980] ss:$8 sps:$4 sm:$0xff]  }
  0x84   : > { %5657 = vmatprep.subr.bf16.mxu1 %v16797_v15  ;;  %5153 = vmatmul.mubr.bf16.gmra.mxu0 %v16706_v48  ;;  %v846_v48 = vsel %vm18366_vm2, %v18253_v8, %v18216_v63  ;;  %v16719_v25 = vld [vmem:[%s17890_s22 + $0x1b8] ss:$16 sps:$4 sm:$0xff]   ;;  %v894_v63 = vsel %vm18366_vm2, %v889_v18, %v18333_v6  ;;  %v831_v8 = vrot.slane %v829_v22, 5  ;;  %v822_v6 = vsel %vm18366_vm2, %v18246_v34, %v821_v24 }
  0x85   : > { %5346 = vmatmul.mubr.bf16.gmra.mxu1 %v16707_v5  ;;  %5162 = vmatprep.mubr.bf16.mxu0 %v16714_v14  ;;  %v16718_v5 = vld [vmem:[%s17890_s22 + $0x1b0] ss:$16 sps:$4 sm:$0xff]   ;;  %v643_v18 = vld [vmem:[%s17890_s22 + $0x88] sm:$0x11]  ;;  %v18429_v20 = vcombine.low %v798_v4, %v822_v6  ;;  %v18431_v27 = vcombine.high %v798_v4, %v822_v6  ;;  %v923_v41 = vrot.slane %v922_v59, 4  ;;  %v961_v22 = vrot.slane %v960_v52, 4 }
  0x86   : > { %5355 = vmatprep.mubr.bf16.mxu1 %v16716_v49  ;;  %5465 = vmatpush2.bf16.msra.mxu0 %v16792_v37  ;;  %v642_v14 = vld [vmem:[%s17890_s22 + $0x80] sm:$0x11]  ;;  %v969_v49 = vrot.slane %v967_v62, 4  ;;  %v832_v26 = vsel %vm18366_vm2, %v18251_v51, %v831_v8  ;;  %v877_v37 = vshll.u32 %v643_v18, 16  ;;  %v16731_v24 = vld [vmem:[%s17890_s22 + $0x1e8] ss:$16 sps:$4 sm:$0xff]  }
  0x87   : > { %5658 = vmatpush2.bf16.msra.mxu1 %v16795_v33  ;;  %5466 = vmatprep.subr.bf16.mxu0 %v16806_v10  ;;  %v867_v15 = vshll.u32 %v642_v14, 16  ;;  %24864 = vst [vmem:[#allocation20_spill] sm:$0xff] %v18429_v20  ;;  %24865 = vst [vmem:[#allocation21_spill] sm:$0xff] %v18431_v27  ;;  %v18436_v50 = vcombine.low %v812_v39, %v832_v26  ;;  %v18438_v34 = vcombine.high %v812_v39, %v832_v26  ;;  %v16738_v8 = vld [vmem:[%s17890_s22 + $0x214] ss:$16 sps:$4 sm:$0xff]  }
  0x88   : > { %5659 = vmatprep.subr.bf16.mxu1 %v16809_v42  ;;  %v879_v10 = vrot.slane %v877_v37, 5  ;;  %v648_v42 = vld [vmem:[%s17890_s22 + $0xb0] sm:$0x11]  ;;  %v970_v59 = vor.u32 %v969_v49, %v18373_v61  ;;  %v927_v39 = vrot.slane %v925_v11, 5  ;;  %v654_v61 = vld [vmem:[%s17890_s22 + $0xe0] sm:$0x11] }
  0x89   : > { %24866 = vst [vmem:[#allocation22_spill] sm:$0xff] %v18436_v50  ;;  %24867 = vst [vmem:[#allocation23_spill] sm:$0xff] %v18438_v34  ;;  %v869_v33 = vrot.slane %v867_v15, 5  ;;  %v915_v58 = vshll.u32 %v648_v42, 16  ;;  %v16752_v42 = vld [vmem:[%s17890_s22 + $0x24c] ss:$16 sps:$4 sm:$0xff]  }
  0x8a   : > { %5467 = vmatpush2.bf16.msra.mxu0 %v16804_v2  ;;  %v880_v38 = vsel %vm18366_vm2, %v18325_v3, %v879_v10  ;;  %v16730_v2 = vld [vmem:[%s17890_s22 + $0x1e0] ss:$16 sps:$4 sm:$0xff]   ;;  %v928_v3 = vsel %vm18366_vm2, %v923_v41, %v927_v39  ;;  %v16743_v41 = vld [vmem:[%s17890_s22 + $0x218] ss:$16 sps:$4 sm:$0xff]   ;;  %v16750_v10 = vld [vmem:[%s17890_s22 + $0x244] ss:$16 sps:$4 sm:$0xff]  }
  0x8b   : > { %5660 = vmatpush2.bf16.msra.mxu1 %v16807_v23  ;;  %5822 = vmatprep.subr.bf16.mxu0 %v16812_v32  ;;  %v870_v51 = vsel %vm18366_vm2, %v18264_v56, %v869_v33  ;;  %v18456_v56 = vcombine.high %v860_v57, %v880_v38  ;;  %v18458_v23 = vcombine.low %v860_v57, %v880_v38  ;;  %v917_v4 = vrot.slane %v915_v58, 5  ;;  %v16742_v33 = vld [vmem:[%s17890_s22 + $0x210] ss:$16 sps:$4 sm:$0xff]   ;;  %v16755_v52 = vld [vmem:[%s17890_s22 + $0x248] ss:$16 sps:$4 sm:$0xff]  }
  0x8c   : > { %6015 = vmatprep.subr.bf16.mxu1 %v16815_v7  ;;  %5163 = vmatmul.mubr.bf16.gmra.mxu0 %v16718_v5  ;;  %v18448_v62 = vcombine.high %v846_v48, %v870_v51  ;;  %v18453_v40 = vcombine.low %v846_v48, %v870_v51  ;;  %v963_v5 = vshll.u32 %v654_v61, 16  ;;  %v971_v48 = vrot.slane %v970_v59, 4  ;;  %v16740_v7 = vld [vmem:[%s17890_s22 + $0x21c] ss:$16 sps:$4 sm:$0xff]   ;;  %v16766_v51 = vld [vmem:[%s17890_s22 + $0x270] ss:$16 sps:$4 sm:$0xff]  }
  0x8d   : > { %5356 = vmatmul.mubr.bf16.gmra.mxu1 %v16719_v25  ;;  %5172 = vmatprep.mubr.bf16.mxu0 %v16726_v35  ;;  %24870 = vst [vmem:[#allocation26_spill] sm:$0xff] %v18456_v56  ;;  %24871 = vst [vmem:[#allocation27_spill] sm:$0xff] %v18458_v23  ;;  %v655_v25 = vld [vmem:[%s17890_s22 + $0xe8] sm:$0x11]  ;;  %v918_v32 = vsel %vm18366_vm2, %v913_v36, %v917_v4  ;;  %v18471_v57 = vcombine.high %v908_v21, %v928_v3  ;;  %v16774_v11 = vld [vmem:[%s17890_s22 + $0x2a4] ss:$16 sps:$4 sm:$0xff]  }
  0x8e   : > { %5365 = vmatprep.mubr.bf16.mxu1 %v16728_v19  ;;  %24868 = vst [vmem:[#allocation24_spill] sm:$0xff] %v18448_v62  ;;  %24869 = vst [vmem:[#allocation25_spill] sm:$0xff] %v18453_v40  ;;  %v973_v35 = vshll.u32 %v655_v25, 16  ;;  %v18469_v14 = vcombine.high %v894_v63, %v918_v32  ;;  %v18473_v6 = vcombine.low %v894_v63, %v918_v32  ;;  %v965_v18 = vrot.slane %v963_v5, 5  ;;  %v16767_v58 = vld [vmem:[%s17890_s22 + $0x278] ss:$16 sps:$4 sm:$0xff]  }
  0x8f   : > { %24873 = vst [vmem:[#allocation29_spill] sm:$0xff] %v18471_v57  ;;  %v18475_v15 = vcombine.low %v908_v21, %v928_v3  ;;  %v16776_v59 = vld [vmem:[%s17890_s22 + $0x2ac] ss:$16 sps:$4 sm:$0xff]   ;;  %v16778_v38 = vld [vmem:[%s17890_s22 + $0x2a0] ss:$16 sps:$4 sm:$0xff]  }
  0x90   : > { %24872 = vst [vmem:[#allocation28_spill] sm:$0xff] %v18469_v14  ;;  %24874 = vst [vmem:[#allocation30_spill] sm:$0xff] %v18473_v6  ;;  %v975_v36 = vrot.slane %v973_v35, 5  ;;  %v966_v49 = vsel %vm18366_vm2, %v961_v22, %v965_v18  ;;  %v16786_v4 = vld [vmem:[%s17890_s22 + $0x2d4] ss:$16 sps:$4 sm:$0xff]   ;;  %v657_v3 = vld [vmem:[%s17890_s22 + $0xf8] sm:$0xff] }
  0x91   : > { %24875 = vst [vmem:[#allocation31_spill] sm:$0xff] %v18475_v15  ;;  %v18482_v63 = vcombine.high %v18417_v9, %v966_v49  ;;  %v18488_v26 = vcombine.low %v18417_v9, %v966_v49  ;;  %v16762_v9 = vld [vmem:[%s17890_s22 + $0x274] ss:$16 sps:$4 sm:$0xff]   ;;  %v16788_v39 = vld [vmem:[%s17890_s22 + $0x2dc] ss:$16 sps:$4 sm:$0xff]   ;;  %v995_v49 = vshll.u32 %v657_v3, 16 }
  0x92   : > { %v976_v19 = vsel %vm18366_vm2, %v971_v48, %v975_v36  ;;  %v16790_v61 = vld [vmem:[%s17890_s22 + $0x2d0] ss:$16 sps:$4 sm:$0xff]   ;;  %v16791_v22 = vld [vmem:[%s17890_s22 + $0x2d8] ss:$16 sps:$4 sm:$0xff]   ;;  %v16798_v5 = vld [vmem:[%s17890_s22 + $0x304] ss:$16 sps:$4 sm:$0xff]  }
  0x93   : > { %24876 = vst [vmem:[#allocation32_spill] sm:$0xff] %v18482_v63  ;;  %v18485_v21 = vcombine.high %v18422_v60, %v976_v19  ;;  %24878 = vst [vmem:[#allocation34_spill] sm:$0xff] %v18488_v26  ;;  %v18491_v37 = vcombine.low %v18422_v60, %v976_v19  ;;  %v16764_v60 = vld [vmem:[%s17890_s22 + $0x27c] ss:$16 sps:$4 sm:$0xff]   ;;  %v658_v32 = vld [vmem:[%s17890_s22 + $0x100] sm:$0xff]  ;;  %v992_v36 = vshrl.u32 %v657_v3, 16 }
  0x94   : > { %5173 = vmatmul.mubr.bf16.gmra.mxu0 %v16730_v2  ;;  %v16779_v2 = vld [vmem:[%s17890_s22 + $0x2a8] ss:$16 sps:$4 sm:$0xff]   ;;  %v16800_v25 = vld [vmem:[%s17890_s22 + $0x30c] ss:$16 sps:$4 sm:$0xff]   ;;  %v1005_v18 = vshrl.u32 %v658_v32, 16 }
  0x95   : > { %5366 = vmatmul.mubr.bf16.gmra.mxu1 %v16731_v24  ;;  %5182 = vmatprep.mubr.bf16.mxu0 %v16738_v8  ;;  %24877 = vst [vmem:[#allocation33_spill] sm:$0xff] %v18485_v21  ;;  %24879 = vst [vmem:[#allocation35_spill] sm:$0xff] %v18491_v37  ;;  %v656_v24 = vld [vmem:[%s17890_s22 + $0xf0] sm:$0xff]  ;;  %v659_v48 = vld [vmem:[%s17890_s22 + $0x108] sm:$0xff] }
  0x96   : > { %5375 = vmatprep.mubr.bf16.mxu1 %v16740_v7  ;;  %v978_v35 = vshrl.u32 %v656_v24, 16  ;;  %v981_v8 = vshll.u32 %v656_v24, 16  ;;  %v987_v7 = vshll.u32 %v658_v32, 16  ;;  %v1001_v19 = vshll.u32 %v659_v48, 16 }
  0x9c   : > { %5183 = vmatmul.mubr.bf16.gmra.mxu0 %v16742_v33  ;;  %v1015_v33 = vshrl.u32 %v659_v48, 16 }
  0x9d   : > { %5376 = vmatmul.mubr.bf16.gmra.mxu1 %v16743_v41  ;;  %5192 = vmatprep.mubr.bf16.mxu0 %v16750_v10  ;;  %v16802_v41 = vld [vmem:[%s17890_s22 + $0x300] ss:$16 sps:$4 sm:$0xff]   ;;  %v16803_v10 = vld [vmem:[%s17890_s22 + $0x308] ss:$16 sps:$4 sm:$0xff]  }
  0x9e   : > { %5385 = vmatprep.mubr.bf16.mxu1 %v16752_v42  ;;  %v660_v42 = vld [vmem:[%s17890_s22 + $0x110] sm:$0x11] }
  0xa4   : > { %5193 = vmatmul.mubr.bf16.gmra.mxu0 %v16754_v43  ;;  %v662_v43 = vld [vmem:[%s17890_s22 + $0x120] sm:$0xff] }
  0xa5   : > { %5386 = vmatmul.mubr.bf16.gmra.mxu1 %v16755_v52  ;;  %5202 = vmatprep.mubr.bf16.mxu0 %v16762_v9  ;;  %v980_v52 = vrot.slane %v978_v35, 4  ;;  %v983_v9 = vrot.slane %v981_v8, 5 }
  0xa6   : > { %5395 = vmatprep.mubr.bf16.mxu1 %v16764_v60  ;;  %v661_v60 = vld [vmem:[%s17890_s22 + $0x118] sm:$0x11] }
  0xa7   : > { %v984_v24 = vor.u32 %v983_v9, %v980_v52  ;;  %v1021_v48 = vshll.u32 %v661_v60, 16  ;;  %v16813_v60 = vld [vmem:[%s24472_s1 + $0xb70] ss:$8 sps:$4 sm:$0xff]  }
  0xa9   : > { %v1023_v9 = vrot.slane %v1021_v48, 5  ;;  %v16824_v48 = vld [vmem:[%s24472_s1 + $0xa54] ss:$8 sps:$4 sm:$0xff]  }
  0xac   : > { %5203 = vmatmul.mubr.bf16.gmra.mxu0 %v16766_v51  ;;  %v664_v51 = vld [vmem:[%s17890_s22 + $0x130] sm:$0xff] }
  0xad   : > { %5396 = vmatmul.mubr.bf16.gmra.mxu1 %v16767_v58  ;;  %5212 = vmatprep.mubr.bf16.mxu0 %v16774_v11  ;;  %v989_v58 = vrot.slane %v987_v7, 5  ;;  %v1007_v11 = vrot.slane %v1005_v18, 4  ;;  %v666_v18 = vld [vmem:[%s17890_s22 + $0x140] sm:$0x11] }
  0xae   : > { %5405 = vmatprep.mubr.bf16.mxu1 %v16776_v59  ;;  %v994_v59 = vrot.slane %v992_v36, 4 }
  0xaf   : > { %v1008_v32 = vor.u32 %v1007_v11, %v989_v58 }
  0xb4   : > { %5213 = vmatmul.mubr.bf16.gmra.mxu0 %v16778_v38  ;;  %v997_v38 = vrot.slane %v995_v49, 5 }
  0xb5   : > { %5406 = vmatmul.mubr.bf16.gmra.mxu1 %v16779_v2  ;;  %5222 = vmatprep.mubr.bf16.mxu0 %v16786_v4  ;;  %v1003_v2 = vrot.slane %v1001_v19, 5  ;;  %v1017_v4 = vrot.slane %v1015_v33, 4  ;;  %v663_v19 = vld [vmem:[%s17890_s22 + $0x128] sm:$0xff] }
  0xb6   : > { %5415 = vmatprep.mubr.bf16.mxu1 %v16788_v39  ;;  %v1026_v39 = vshrl.u32 %v662_v43, 16  ;;  %v998_v3 = vor.u32 %v997_v38, %v994_v59  ;;  %v1059_v59 = vshll.u32 %v666_v18, 16  ;;  %v1040_v38 = vshrl.u32 %v663_v19, 16  ;;  %v670_v18 = vld [vmem:[%s17890_s22 + $0x160] sm:$0xff] }
  0xb7   : > { %v1018_v35 = vor.u32 %v1017_v4, %v1003_v2  ;;  %v16818_v4 = vld [vmem:[%s24472_s1 + $0xa64] ss:$8 sps:$4 sm:$0xff]  }
  0xb8   : > { %v1028_v8 = vrot.slane %v1026_v39, 4  ;;  %v999_v52 = vrot.slane %v998_v3, 4  ;;  %v668_v3 = vld [vmem:[%s17890_s22 + $0x150] sm:$0xff] }
  0xbc   : > { %5223 = vmatmul.mubr.bf16.gmra.mxu0 %v16790_v61  ;;  %v1029_v61 = vshll.u32 %v662_v43, 16  ;;  %v1009_v43 = vrot.slane %v1008_v32, 4 }
  0xbd   : > { %5416 = vmatmul.mubr.bf16.gmra.mxu1 %v16791_v22  ;;  %5232 = vmatprep.mubr.bf16.mxu0 %v16798_v5  ;;  %v1035_v22 = vshll.u32 %v664_v51, 16  ;;  %v1053_v5 = vshrl.u32 %v664_v51, 16  ;;  %v1019_v51 = vrot.slane %v1018_v35, 4 }
  0xbe   : > { %5425 = vmatprep.mubr.bf16.mxu1 %v16800_v25  ;;  %v1011_v25 = vshll.u32 %v660_v42, 16  ;;  %v1031_v7 = vrot.slane %v1029_v61, 5  ;;  %v665_v42 = vld [vmem:[%s17890_s22 + $0x138] sm:$0xff]  ;;  %v1043_v61 = vshll.u32 %v663_v19, 16 }
  0xbf   : > { %v1037_v36 = vrot.slane %v1035_v22, 5  ;;  %v1055_v49 = vrot.slane %v1053_v5, 4  ;;  %v1049_v22 = vshll.u32 %v665_v42, 16  ;;  %v16816_v5 = vld [vmem:[%s24472_s1 + $0xa60] ss:$8 sps:$4 sm:$0xff]   ;;  %v1063_v32 = vshrl.u32 %v665_v42, 16 }
  0xc0   : > { %v1013_v33 = vrot.slane %v1011_v25, 5  ;;  %v1032_v11 = vor.u32 %v1031_v7, %v1028_v8  ;;  %v16819_v25 = vld [vmem:[%s24472_s1 + $0xb60] ss:$8 sps:$4 sm:$0xff]   ;;  %v1004_v7 = vsel %vm18366_vm2, %v999_v52, %v1003_v2  ;;  %v1024_v19 = vsel %vm18366_vm2, %v1019_v51, %v1023_v9 }
  0xc1   : > { %v1056_v39 = vor.u32 %v1055_v49, %v1037_v36  ;;  %v16827_v49 = vld [vmem:[%s24472_s1 + $0xb54] ss:$8 sps:$4 sm:$0xff]   ;;  %v1065_v52 = vrot.slane %v1063_v32, 4  ;;  %v1083_v9 = vshll.u32 %v670_v18, 16  ;;  %v1101_v51 = vshrl.u32 %v670_v18, 16  ;;  %v671_v32 = vld [vmem:[%s17890_s22 + $0x168] sm:$0xff] }
  0xc2   : > { %v1014_v8 = vsel %vm18366_vm2, %v1009_v43, %v1013_v33  ;;  %v1033_v42 = vrot.slane %v1032_v11, 4  ;;  %v1045_v33 = vrot.slane %v1043_v61, 5  ;;  %v667_v43 = vld [vmem:[%s17890_s22 + $0x148] sm:$0x11]  ;;  %v16822_v11 = vld [vmem:[%s24472_s1 + $0xa50] ss:$8 sps:$4 sm:$0xff]   ;;  %v18581_v61 = vcombine.high %v1004_v7, %v1024_v19 }
  0xc3   : > { %v1057_v2 = vrot.slane %v1056_v39, 4  ;;  %v669_v39 = vld [vmem:[%s17890_s22 + $0x158] sm:$0xff]  ;;  %v1069_v18 = vshll.u32 %v667_v43, 16  ;;  %v1097_v43 = vshll.u32 %v671_v32, 16 }
  0xc4   : > { %5233 = vmatmul.mubr.bf16.gmra.mxu0 %v16802_v41  ;;  %v16810_v41 = vld [vmem:[%s24472_s1 + $0xa70] ss:$8 sps:$4 sm:$0xff]   ;;  %24881 = vst [vmem:[#allocation37_spill] sm:$0xff] %v18581_v61 }
  0xc5   : > { %5426 = vmatmul.mubr.bf16.gmra.mxu1 %v16803_v10  ;;  %5468 = vmatprep.mubr.bf16.mxu0 %v18431_v27  ;;  %v985_v10 = vrot.slane %v984_v24, 4  ;;  %v16821_v24 = vld [vmem:[%s24472_s1 + $0xb64] ss:$8 sps:$4 sm:$0xff]  }
  0xc6   : > { %5661 = vmatprep.mubr.bf16.mxu1 %v18438_v34 }
  0xc7   : > { %v990_v35 = vsel %vm18366_vm2, %v985_v10, %v989_v58  ;;  %v1042_v58 = vrot.slane %v1040_v38, 4  ;;  %v18566_v10 = vrot.slane %v1049_v22, 5 }
  0xc8   : > { %v18575_v38 = vcombine.high %v990_v35, %v1014_v8  ;;  %v18583_v22 = vcombine.low %v990_v35, %v1014_v8  ;;  %v674_v8 = vld [vmem:[%s17890_s22 + $0x180] sm:$0xff] }
  0xca   : > { %24880 = vst [vmem:[#allocation36_spill] sm:$0xff] %v18575_v38  ;;  %24882 = vst [vmem:[#allocation38_spill] sm:$0xff] %v18583_v22 }
  0xcc   : > { %5469 = vmatmul.mubr.bf16.vlgmr.msra.gmra.mxu0 %v18429_v20 }
  0xcd   : > { %5662 = vmatmul.mubr.bf16.vlgmr.msra.gmra.mxu1 %v18436_v50  ;;  %5823 = vmatpush1.bf16.msra.mxu0 %v16810_v41  ;;  %v1061_v50 = vrot.slane %v1059_v59, 5  ;;  %v1074_v41 = vshrl.u32 %v668_v3, 16  ;;  %v16825_v59 = vld [vmem:[%s24472_s1 + $0xb50] ss:$8 sps:$4 sm:$0xff]  }
  0xce   : > { %6016 = vmatpush1.bf16.msra.mxu1 %v16813_v60  ;;  %5478 = vmatprep.mubr.bf16.mxu0 %v18448_v62  ;;  %v1077_v60 = vshll.u32 %v668_v3, 16  ;;  %v1046_v3 = vor.u32 %v1045_v33, %v1042_v58  ;;  %v16831_v58 = vld [vmem:[%s24472_s1 + $0xb40] ss:$8 sps:$4 sm:$0xff]   ;;  %v1088_v33 = vshrl.u32 %v669_v39, 16 }
  0xcf   : > { %5671 = vmatprep.mubr.bf16.mxu1 %v18456_v56  ;;  %5824 = vmatprep.subr.bf16.mxu0 %v16818_v4  ;;  %v16830_v4 = vld [vmem:[%s24472_s1 + $0xa44] ss:$8 sps:$4 sm:$0xff]   ;;  %v1076_v35 = vrot.slane %v1074_v41, 4  ;;  %v1066_v56 = vor.u32 %v1065_v52, %v18566_v10  ;;  %v1091_v41 = vshll.u32 %v669_v39, 16  ;;  %v1111_v52 = vshrl.u32 %v671_v32, 16 }
  0xd0   : > { %6017 = vmatprep.subr.bf16.mxu1 %v16821_v24  ;;  %v18587_v24 = vsel %vm18366_vm2, %v1033_v42, %v1037_v36  ;;  %v1079_v36 = vrot.slane %v1077_v60, 5  ;;  %v18599_v42 = vrot.slane %v1083_v9, 5  ;;  %v18615_v60 = vcombine.low %v1004_v7, %v1024_v19  ;;  %v16836_v9 = vld [vmem:[%s24472_s1 + $0xa34] ss:$8 sps:$4 sm:$0xff]  }
  0xd1   : > { %5825 = vmatpush1.bf16.msra.mxu0 %v16816_v5  ;;  %v16833_v5 = vld [vmem:[%s24472_s1 + $0xb44] ss:$8 sps:$4 sm:$0xff]   ;;  %v1122_v32 = vshrl.u32 %v674_v8, 16  ;;  %v1047_v7 = vrot.slane %v1046_v3, 4  ;;  %v1071_v19 = vrot.slane %v1069_v18, 5  ;;  %v1067_v62 = vrot.slane %v1066_v56, 4 }
  0xd2   : > { %6018 = vmatpush1.bf16.msra.mxu1 %v16819_v25  ;;  %5826 = vmatprep.subr.bf16.mxu0 %v16824_v48  ;;  %v18595_v25 = vsel %vm18366_vm2, %v1057_v2, %v1061_v50  ;;  %v18601_v48 = vrot.slane %v1101_v51, 4  ;;  %v16828_v50 = vld [vmem:[%s24472_s1 + $0xa40] ss:$8 sps:$4 sm:$0xff]   ;;  %v672_v2 = vld [vmem:[%s17890_s22 + $0x170] sm:$0x11]  ;;  %24883 = vst [vmem:[#allocation39_spill] sm:$0xff] %v18615_v60  ;;  %v1080_v20 = vor.u32 %v1079_v36, %v1076_v35 }
  0xd3   : > { %6019 = vmatprep.subr.bf16.mxu1 %v16827_v49  ;;  %v676_v49 = vld [vmem:[%s17890_s22 + $0x190] sm:$0xff]  ;;  %v18625_v39 = vcombine.high %v18587_v24, %v18595_v25  ;;  %v1107_v27 = vshll.u32 %v672_v2, 16  ;;  %v1090_v3 = vrot.slane %v1088_v33, 4  ;;  %v1113_v56 = vrot.slane %v1111_v52, 4 }
  0xd4   : > { %5479 = vmatmul.mubr.bf16.gmra.mxu0 %v18453_v40  ;;  %v16839_v51 = vld [vmem:[%s24472_s1 + $0xb34] ss:$8 sps:$4 sm:$0xff]   ;;  %v675_v40 = vld [vmem:[%s17890_s22 + $0x188] sm:$0xff]  ;;  %v1104_v34 = vor.u32 %v18601_v48, %v18599_v42  ;;  %v1124_v18 = vrot.slane %v1122_v32, 4  ;;  %v678_v48 = vld [vmem:[%s17890_s22 + $0x1a0] sm:$0x11]  ;;  %v1052_v33 = vsel %vm18366_vm2, %v1047_v7, %v18566_v10 }
  0xd5   : > { %5672 = vmatmul.mubr.bf16.gmra.mxu1 %v18458_v23  ;;  %5488 = vmatprep.mubr.bf16.mxu0 %v18469_v14  ;;  %24884 = vst [vmem:[#allocation40_spill] sm:$0xff] %v18625_v39  ;;  %v1125_v14 = vshll.u32 %v674_v8, 16  ;;  %v1149_v23 = vshrl.u32 %v676_v49, 16  ;;  %v1136_v8 = vshrl.u32 %v675_v40, 16  ;;  %v1139_v36 = vshll.u32 %v675_v40, 16 }
  0xd6   : > { %5681 = vmatprep.mubr.bf16.mxu1 %v18471_v57  ;;  %5827 = vmatpush1.bf16.msra.mxu0 %v16822_v11  ;;  %v1131_v57 = vshll.u32 %v676_v49, 16  ;;  %v16834_v11 = vld [vmem:[%s24472_s1 + $0xa30] ss:$8 sps:$4 sm:$0xff]   ;;  %v16842_v40 = vld [vmem:[%s24472_s1 + $0xa24] ss:$8 sps:$4 sm:$0xff]   ;;  %v1109_v0 = vrot.slane %v1107_v27, 5 }
  0xd7   : > { %6020 = vmatpush1.bf16.msra.mxu1 %v16825_v59  ;;  %5828 = vmatprep.subr.bf16.mxu0 %v16830_v4  ;;  %v16837_v59 = vld [vmem:[%s24472_s1 + $0xb30] ss:$8 sps:$4 sm:$0xff]   ;;  %v1093_v4 = vrot.slane %v1091_v41, 5  ;;  %v1127_v35 = vrot.slane %v1125_v14, 5  ;;  %v1151_v2 = vrot.slane %v1149_v23, 4  ;;  %v1072_v14 = vsel %vm18366_vm2, %v1067_v62, %v1071_v19 }
  0xd8   : > { %6021 = vmatprep.subr.bf16.mxu1 %v16833_v5  ;;  %v18638_v5 = vrot.slane %v1097_v43, 5  ;;  %v18641_v49 = vrot.slane %v1131_v57, 5  ;;  %v16845_v23 = vld [vmem:[%s24472_s1 + $0xb24] ss:$8 sps:$4 sm:$0xff]   ;;  %v1081_v57 = vrot.slane %v1080_v20, 4  ;;  %v1117_v43 = vshll.u32 %v673_v1, 16 }
  0xd9   : > { %v16840_v10 = vld [vmem:[%s24472_s1 + $0xa20] ss:$8 sps:$4 sm:$0xff]   ;;  %v680_v20 = vld [vmem:[%s17890_s22 + $0x1b0] sm:$0xff]  ;;  %v1128_v52 = vor.u32 %v1127_v35, %v1124_v18  ;;  %v1141_v32 = vrot.slane %v1139_v36, 5  ;;  %v18675_v19 = vrot.slane %v1145_v47, 5  ;;  %v681_v36 = vld [vmem:[%s17890_s22 + $0x1b8] sm:$0xff] }
  0xda   : > { %5829 = vmatpush1.bf16.msra.mxu0 %v16828_v50  ;;  %v16843_v62 = vld [vmem:[%s24472_s1 + $0xb20] ss:$8 sps:$4 sm:$0xff]   ;;  %v1105_v50 = vrot.slane %v1104_v34, 4  ;;  %v1114_v41 = vor.u32 %v1113_v56, %v18638_v5  ;;  %v16848_v27 = vld [vmem:[%s24472_s1 + $0xa14] ss:$8 sps:$4 sm:$0xff]   ;;  %v18671_v34 = vcombine.low %v18587_v24, %v18595_v25  ;;  %v1152_v1 = vor.u32 %v1151_v2, %v18641_v49 }
  0xdb   : > { %6022 = vmatpush1.bf16.msra.mxu1 %v16831_v58  ;;  %5830 = vmatprep.subr.bf16.mxu0 %v16836_v9  ;;  %v1094_v58 = vor.u32 %v1093_v4, %v1090_v3  ;;  %v1155_v9 = vshll.u32 %v678_v48, 16  ;;  %v679_v7 = vld [vmem:[%s17890_s22 + $0x1a8] sm:$0x11]  ;;  %v1161_v3 = vrot.slane %v1159_v46, 4  ;;  %v18677_v4 = vcombine.high %v1052_v33, %v1072_v14  ;;  %v16851_v24 = vld [vmem:[%s24472_s1 + $0xb14] ss:$8 sps:$4 sm:$0xff]  }
  0xdc   : > { %6023 = vmatprep.subr.bf16.mxu1 %v16839_v51  ;;  %5489 = vmatmul.mubr.bf16.gmra.mxu0 %v18473_v6  ;;  %v1138_v51 = vrot.slane %v1136_v8, 4  ;;  %24885 = vst [vmem:[#allocation41_spill] sm:$0xff] %v18671_v34  ;;  %v682_v25 = vld [vmem:[%s17890_s22 + $0x1c0] sm:$0xff]  ;;  %v1173_v56 = vshll.u32 %v680_v20, 16  ;;  %v1110_v47 = vsel %vm18366_vm2, %v1105_v50, %v1109_v0  ;;  %v1115_v46 = vrot.slane %v1114_v41, 4 }
  0xdd   : > { %5682 = vmatmul.mubr.bf16.gmra.mxu1 %v18475_v15  ;;  %5498 = vmatprep.mubr.bf16.mxu0 %v18482_v63  ;;  %24886 = vst [vmem:[#allocation42_spill] sm:$0xff] %v18677_v4  ;;  %v1095_v18 = vrot.slane %v1094_v58, 4  ;;  %v1119_v35 = vrot.slane %v1117_v43, 5  ;;  %v16846_v8 = vld [vmem:[%s24472_s1 + $0xa10] ss:$8 sps:$4 sm:$0xff]   ;;  %v1129_v48 = vrot.slane %v1128_v52, 4  ;;  %v1162_v0 = vor.u32 %v1161_v3, %v18675_v19 }
  0xde   : > { %5691 = vmatprep.mubr.bf16.mxu1 %v18485_v21  ;;  %5831 = vmatpush1.bf16.msra.mxu0 %v16834_v11  ;;  %v1086_v11 = vsel %vm18366_vm2, %v1081_v57, %v18599_v42  ;;  %v16849_v42 = vld [vmem:[%s24472_s1 + $0xb10] ss:$8 sps:$4 sm:$0xff]   ;;  %v1157_v2 = vrot.slane %v1155_v9, 5  ;;  %v1153_v57 = vrot.slane %v1152_v1, 4  ;;  %v16854_v50 = vld [vmem:[%s24472_s1 + $0xa04] ss:$8 sps:$4 sm:$0xff]   ;;  %v18699_v43 = vcombine.low %v1052_v33, %v1072_v14 }
  0xdf   : > { %6024 = vmatpush1.bf16.msra.mxu1 %v16837_v59  ;;  %5832 = vmatprep.subr.bf16.mxu0 %v16842_v40  ;;  %v1170_v59 = vshrl.u32 %v680_v20, 16  ;;  %v1142_v40 = vor.u32 %v1141_v32, %v1138_v51  ;;  %v1179_v58 = vshll.u32 %v682_v25, 16  ;;  %v1197_v41 = vshrl.u32 %v682_v25, 16  ;;  %v16855_v51 = vld [vmem:[%s24472_s1 + $0xb00] ss:$8 sps:$4 sm:$0xff]   ;;  %v18880_v15 = vld [vmem:[%s17890_s22 + $0x258] sm:$0xff] }
  0xe0   : > { %6025 = vmatprep.subr.bf16.mxu1 %v16845_v23  ;;  %v1165_v23 = vshll.u32 %v679_v7, 16  ;;  %24887 = vst [vmem:[#allocation43_spill] sm:$0xff] %v18699_v43  ;;  %v1175_v20 = vrot.slane %v1173_v56, 5  ;;  %v1184_v52 = vshrl.u32 %v681_v36, 16  ;;  %v18706_v9 = vcombine.high %v1086_v11, %v1110_v47  ;;  %v18720_v32 = vld [vmem:[%s17890_s22 + $0x1d0] sm:$0x11] }
  0xe1   : > { %v1100_v33 = vsel %vm18366_vm2, %v1095_v18, %v18638_v5  ;;  %v1120_v14 = vsel %vm18366_vm2, %v1115_v46, %v1119_v35  ;;  %v683_v1 = vld [vmem:[%s17890_s22 + $0x1c8] sm:$0xff]  ;;  %v1187_v7 = vshll.u32 %v681_v36, 16  ;;  %v18725_v5 = vcombine.low %v1086_v11, %v1110_v47  ;;  %v16860_v11 = vld [vmem:[%s24472_s1 + $0xaf4] ss:$8 sps:$4 sm:$0xff]  }
  0xe2   : > { %5833 = vmatpush1.bf16.msra.mxu0 %v16840_v10  ;;  %v16857_v10 = vld [vmem:[%s24472_s1 + $0xb04] ss:$8 sps:$4 sm:$0xff]   ;;  %24888 = vst [vmem:[#allocation44_spill] sm:$0xff] %v18706_v9  ;;  %v1134_v3 = vsel %vm18366_vm2, %v1129_v48, %v18641_v49  ;;  %v1167_v25 = vrot.slane %v1165_v23, 5  ;;  %v1158_v56 = vsel %vm18366_vm2, %v1153_v57, %v1157_v2  ;;  %v1163_v18 = vrot.slane %v1162_v0, 4 }
  0xe3   : > { %6026 = vmatpush1.bf16.msra.mxu1 %v16843_v62  ;;  %5834 = vmatprep.subr.bf16.mxu0 %v16848_v27  ;;  %v1172_v62 = vrot.slane %v1170_v59, 4  ;;  %v16852_v27 = vld [vmem:[%s24472_s1 + $0xa00] ss:$8 sps:$4 sm:$0xff]   ;;  %24889 = vst [vmem:[#allocation45_spill] sm:$0xff] %v18725_v5  ;;  %v1181_v46 = vrot.slane %v1179_v58, 5  ;;  %v1199_v35 = vrot.slane %v1197_v41, 4  ;;  %v18736_v47 = vcombine.high %v1100_v33, %v1120_v14 }
  0xe4   : > { %6027 = vmatprep.subr.bf16.mxu1 %v16851_v24  ;;  %5499 = vmatmul.mubr.bf16.gmra.mxu0 %v18488_v26  ;;  %v1143_v24 = vrot.slane %v1142_v40, 4  ;;  %v686_v59 = vld [vmem:[%s17890_s22 + $0x1e0] sm:$0xff]  ;;  %v1186_v36 = vrot.slane %v1184_v52, 4  ;;  %v1193_v48 = vshll.u32 %v683_v1, 16  ;;  %v685_v2 = vld [vmem:[%s17890_s22 + $0x1d8] sm:$0x11]  ;;  %v18743_v58 = vcombine.low %v1100_v33, %v1120_v14 }
  0xe5   : > { %5692 = vmatmul.mubr.bf16.gmra.mxu1 %v18491_v37  ;;  %5508 = vmatprep.mubr.bf16.mxu0 %v18575_v38  ;;  %24890 = vst [vmem:[#allocation46_spill] sm:$0xff] %v18736_v47  ;;  %v1176_v49 = vor.u32 %v1175_v20, %v1172_v62  ;;  %v1189_v40 = vrot.slane %v1187_v7, 5  ;;  %v1207_v23 = vshrl.u32 %v683_v1, 16  ;;  %v1218_v57 = vshrl.u32 %v686_v59, 16  ;;  %v16858_v62 = vld [vmem:[%s24472_s1 + $0xaf0] ss:$8 sps:$4 sm:$0xff]  }
  0xe6   : > { %5701 = vmatprep.mubr.bf16.mxu1 %v18581_v61  ;;  %5835 = vmatpush1.bf16.msra.mxu0 %v16846_v8  ;;  %v16863_v8 = vld [vmem:[%s24472_s1 + $0xbf4] ss:$8 sps:$4 sm:$0xff]   ;;  %v1221_v0 = vshll.u32 %v686_v59, 16  ;;  %24891 = vst [vmem:[#allocation47_spill] sm:$0xff] %v18743_v58  ;;  %v18745_v41 = vcombine.high %v1134_v3, %v1158_v56  ;;  %v16861_v20 = vld [vmem:[%s24472_s1 + $0xbf0] ss:$8 sps:$4 sm:$0xff]   ;;  %v1168_v52 = vsel %vm18366_vm2, %v1163_v18, %v1167_v25 }
  0xe7   : > { %6028 = vmatpush1.bf16.msra.mxu1 %v16849_v42  ;;  %5836 = vmatprep.subr.bf16.mxu0 %v16854_v50  ;;  %v688_v42 = vld [vmem:[%s17890_s22 + $0x1f0] sm:$0xff]  ;;  %v1148_v50 = vsel %vm18366_vm2, %v1143_v24, %v18675_v19  ;;  %v1200_v33 = vor.u32 %v1199_v35, %v1181_v46  ;;  %v687_v19 = vld [vmem:[%s17890_s22 + $0x1e8] sm:$0xff]  ;;  %v18763_v7 = vcombine.low %v1134_v3, %v1158_v56  ;;  %v1177_v24 = vrot.slane %v1176_v49, 4  ;;  %v18768_v25 = vld [vmem:[%s17890_s22 + $0x200] sm:$0x11] }
  0xe8   : > { %6029 = vmatprep.subr.bf16.mxu1 %v16857_v10  ;;  %24892 = vst [vmem:[#allocation48_spill] sm:$0xff] %v18745_v41  ;;  %v1203_v10 = vshll.u32 %v18720_v32, 16  ;;  %v1227_v14 = vshll.u32 %v688_v42, 16  ;;  %v1245_v1 = vshrl.u32 %v688_v42, 16  ;;  %v16866_v32 = vld [vmem:[%s24472_s1 + $0xae4] ss:$8 sps:$4 sm:$0xff]   ;;  %v18781_v49 = vcombine.high %v1148_v50, %v1168_v52 }
  0xe9   : > { %24893 = vst [vmem:[#allocation49_spill] sm:$0xff] %v18763_v7  ;;  %v18765_v59 = vrot.slane %v1193_v48, 5  ;;  %v1213_v61 = vshll.u32 %v685_v2, 16  ;;  %v1209_v18 = vrot.slane %v1207_v23, 4  ;;  %v1220_v3 = vrot.slane %v1218_v57, 4  ;;  %v689_v35 = vld [vmem:[%s17890_s22 + $0x1f8] sm:$0xff] }
  0xea   : > { %5837 = vmatpush1.bf16.msra.mxu0 %v16852_v27  ;;  %v16869_v27 = vld [vmem:[%s24472_s1 + $0xbe4] ss:$8 sps:$4 sm:$0xff]   ;;  %v1223_v56 = vrot.slane %v1221_v0, 5  ;;  %24894 = vst [vmem:[#allocation50_spill] sm:$0xff] %v18781_v49  ;;  %v1205_v48 = vrot.slane %v1203_v10, 5  ;;  %v1235_v42 = vshll.u32 %v687_v19, 16  ;;  %v18786_v2 = vcombine.low %v1148_v50, %v1168_v52 }
  0xeb   : > { %6030 = vmatpush1.bf16.msra.mxu1 %v16855_v51  ;;  %5838 = vmatprep.subr.bf16.mxu0 %v16860_v11  ;;  %v1190_v51 = vor.u32 %v1189_v40, %v1186_v36  ;;  %v16864_v11 = vld [vmem:[%s24472_s1 + $0xae0] ss:$8 sps:$4 sm:$0xff]   ;;  %v1201_v40 = vrot.slane %v1200_v33, 4  ;;  %v18788_v23 = vrot.slane %v1227_v14, 5  ;;  %v1247_v57 = vrot.slane %v1245_v1, 4  ;;  %v692_v0 = vld [vmem:[%s17890_s22 + $0x210] sm:$0xff] }
  0xec   : > { %6031 = vmatprep.subr.bf16.mxu1 %v16863_v8  ;;  %5509 = vmatmul.mubr.bf16.gmra.mxu0 %v18583_v22  ;;  %v1232_v8 = vshrl.u32 %v687_v19, 16  ;;  %v16867_v36 = vld [vmem:[%s24472_s1 + $0xbe0] ss:$8 sps:$4 sm:$0xff]   ;;  %24895 = vst [vmem:[#allocation51_spill] sm:$0xff] %v18786_v2  ;;  %v16872_v10 = vld [vmem:[%s24472_s1 + $0xad4] ss:$8 sps:$4 sm:$0xff]   ;;  %v18796_v19 = vsel %vm18366_vm2, %v1177_v24, %v1181_v46  ;;  %v1210_v1 = vor.u32 %v1209_v18, %v18765_v59 }
  0xed   : > { %5702 = vmatmul.mubr.bf16.gmra.mxu1 %v18615_v60  ;;  %5518 = vmatprep.mubr.bf16.mxu0 %v18625_v39  ;;  %v18798_v50 = vrot.slane %v1213_v61, 5  ;;  %v1241_v52 = vshll.u32 %v689_v35, 16  ;;  %v16875_v33 = vld [vmem:[%s24472_s1 + $0xbd4] ss:$8 sps:$4 sm:$0xff]   ;;  %v18804_v14 = vrot.slane %v1190_v51, 4  ;;  %v1251_v39 = vshll.u32 %v18768_v25, 16 }
  0xee   : > { %5711 = vmatprep.mubr.bf16.mxu1 %v18677_v4  ;;  %5839 = vmatpush2.bf16.msra.mxu0 %v16858_v62  ;;  %v1255_v62 = vshrl.u32 %v689_v35, 16  ;;  %v1224_v4 = vor.u32 %v1223_v56, %v1220_v3  ;;  %v693_v46 = vld [vmem:[%s17890_s22 + $0x218] sm:$0xff]  ;;  %v695_v24 = vld [vmem:[%s17890_s22 + $0x228] sm:$0xff]  ;;  %v1237_v35 = vrot.slane %v1235_v42, 5  ;;  %v1266_v60 = vshrl.u32 %v692_v0, 16 }
  0xef   : > { %6032 = vmatpush2.bf16.msra.mxu1 %v16861_v20  ;;  %5840 = vmatprep.subr.bf16.mxu0 %v16866_v32  ;;  %v694_v20 = vld [vmem:[%s17890_s22 + $0x220] sm:$0xff]  ;;  %v16870_v61 = vld [vmem:[%s24472_s1 + $0xad0] ss:$8 sps:$4 sm:$0xff]   ;;  %v691_v32 = vld [vmem:[%s17890_s22 + $0x208] sm:$0x11]  ;;  %v1269_v22 = vshll.u32 %v692_v0, 16  ;;  %v1206_v18 = vsel %vm18366_vm2, %v1201_v40, %v1205_v48  ;;  %v1248_v25 = vor.u32 %v1247_v57, %v18788_v23 }
  0xf0   : > { %6033 = vmatprep.subr.bf16.mxu1 %v16869_v27  ;;  %v1234_v27 = vrot.slane %v1232_v8, 4  ;;  %v16873_v51 = vld [vmem:[%s24472_s1 + $0xbd0] ss:$8 sps:$4 sm:$0xff]   ;;  %v1275_v3 = vshll.u32 %v694_v20, 16  ;;  %v1293_v56 = vshrl.u32 %v694_v20, 16  ;;  %v18826_v0 = vrot.slane %v1241_v52, 5 }
  0xf1   : > { %v16878_v8 = vld [vmem:[%s24472_s1 + $0xac4] ss:$8 sps:$4 sm:$0xff]   ;;  %v1257_v38 = vrot.slane %v1255_v62, 4  ;;  %v1280_v37 = vshrl.u32 %v693_v46, 16  ;;  %v1283_v48 = vshll.u32 %v693_v46, 16  ;;  %v18833_v40 = vrot.slane %v1224_v4, 4 }
  0xf2   : > { %5841 = vmatpush2.bf16.msra.mxu0 %v16864_v11  ;;  %v16881_v42 = vld [vmem:[%s24472_s1 + $0xbc4] ss:$8 sps:$4 sm:$0xff]   ;;  %v18836_v57 = vld [vmem:[%s17890_s22 + $0x230] sm:$0x11]  ;;  %v1289_v20 = vshll.u32 %v695_v24, 16  ;;  %v1303_v52 = vshrl.u32 %v695_v24, 16  ;;  %v1238_v62 = vor.u32 %v1237_v35, %v1234_v27 }
  0xf3   : > { %6034 = vmatpush2.bf16.msra.mxu1 %v16867_v36  ;;  %5842 = vmatprep.subr.bf16.mxu0 %v16872_v10  ;;  %v18829_v11 = vld [vmem:[%s17890_s22 + $0x240] sm:$0xff]  ;;  %v1211_v36 = vrot.slane %v1210_v1, 4  ;;  %v18840_v10 = vrot.slane %v1251_v39, 5  ;;  %v1271_v46 = vrot.slane %v1269_v22, 5  ;;  %v18846_v1 = vrot.slane %v1248_v25, 4 }
  0xf4   : > { %6035 = vmatprep.subr.bf16.mxu1 %v16875_v33  ;;  %5519 = vmatmul.mubr.bf16.gmra.mxu0 %v18671_v34  ;;  %v1268_v33 = vrot.slane %v1266_v60, 4  ;;  %v700_v34 = vld [vmem:[%s17890_s22 + $0x250] sm:$0xff]  ;;  %v16876_v4 = vld [vmem:[%s24472_s1 + $0xac0] ss:$8 sps:$4 sm:$0xff]   ;;  %v18848_v26 = vrot.slane %v1275_v3, 5  ;;  %v1295_v24 = vrot.slane %v1293_v56, 4  ;;  %v18854_v22 = vcombine.high %v18796_v19, %v1206_v18 }
  0xf5   : > { %5712 = vmatmul.mubr.bf16.gmra.mxu1 %v18699_v43  ;;  %5528 = vmatprep.mubr.bf16.mxu0 %v18706_v9  ;;  %v1261_v43 = vshll.u32 %v691_v32, 16  ;;  %v16879_v39 = vld [vmem:[%s24472_s1 + $0xbc0] ss:$8 sps:$4 sm:$0xff]   ;;  %v1258_v60 = vor.u32 %v1257_v38, %v18826_v0  ;;  %v18858_v27 = vld [vmem:[%s17890_s22 + $0x238] sm:$0x11]  ;;  %v1282_v35 = vrot.slane %v1280_v37, 4 }
  0xf6   : > { %5721 = vmatprep.mubr.bf16.mxu1 %v18736_v47  ;;  %5843 = vmatpush2.bf16.msra.mxu0 %v16870_v61  ;;  %24896 = vst [vmem:[#allocation52_spill] sm:$0xff] %v18854_v22  ;;  %v1285_v25 = vrot.slane %v1283_v48, 5  ;;  %v16884_v61 = vld [vmem:[%s24472_s1 + $0xab4] ss:$8 sps:$4 sm:$0xff]   ;;  %v1305_v3 = vrot.slane %v1303_v52, 4  ;;  %v1314_v38 = vshrl.u32 %v18829_v11, 16  ;;  %v1272_v48 = vor.u32 %v1271_v46, %v1268_v33 }
  0xf7   : > { %6036 = vmatpush2.bf16.msra.mxu1 %v16873_v51  ;;  %5844 = vmatprep.subr.bf16.mxu0 %v16878_v8  ;;  %v16887_v32 = vld [vmem:[%s24472_s1 + $0xbb4] ss:$8 sps:$4 sm:$0xff]   ;;  %v18866_v51 = vrot.slane %v1289_v20, 5  ;;  %v1317_v56 = vshll.u32 %v18829_v11, 16  ;;  %v699_v37 = vld [vmem:[%s17890_s22 + $0x248] sm:$0xff]  ;;  %v18872_v8 = vcombine.low %v18796_v19, %v1206_v18  ;;  %v1299_v47 = vshll.u32 %v18836_v57, 16 }
  0xf8   : > { %6037 = vmatprep.subr.bf16.mxu1 %v16881_v42  ;;  %v1239_v42 = vrot.slane %v1238_v62, 4  ;;  %v16882_v9 = vld [vmem:[%s24472_s1 + $0xab0] ss:$8 sps:$4 sm:$0xff]   ;;  %v1263_v21 = vrot.slane %v1261_v43, 5  ;;  %v1296_v20 = vor.u32 %v1295_v24, %v18848_v26  ;;  %v1323_v52 = vshll.u32 %v700_v34, 16 }
  0xf9   : > { %24897 = vst [vmem:[#allocation53_spill] sm:$0xff] %v18872_v8  ;;  %v1341_v63 = vshrl.u32 %v700_v34, 16  ;;  %v16885_v19 = vld [vmem:[%s24472_s1 + $0xbb0] ss:$8 sps:$4 sm:$0xff]   ;;  %v1196_v18 = vsel %vm18366_vm2, %v18804_v14, %v18765_v59  ;;  %v1216_v43 = vsel %vm18366_vm2, %v1211_v36, %v18798_v50  ;;  %v1259_v11 = vrot.slane %v1258_v60, 4 }
  0xfa   : > { %5845 = vmatpush2.bf16.msra.mxu0 %v16876_v4  ;;  %v1286_v34 = vor.u32 %v1285_v25, %v1282_v35  ;;  %v16890_v57 = vld [vmem:[%s24472_s1 + $0xaa4] ss:$8 sps:$4 sm:$0xff]   ;;  %v1306_v59 = vor.u32 %v1305_v3, %v18866_v51  ;;  %v1309_v50 = vshll.u32 %v18858_v27, 16  ;;  %v1316_v36 = vrot.slane %v1314_v38, 4  ;;  %v16888_v60 = vld [vmem:[%s24472_s1 + $0xaa0] ss:$8 sps:$4 sm:$0xff]  }
  0xfb   : > { %6038 = vmatpush2.bf16.msra.mxu1 %v16879_v39  ;;  %5846 = vmatprep.subr.bf16.mxu0 %v16884_v61  ;;  %v16893_v62 = vld [vmem:[%s24472_s1 + $0xba4] ss:$8 sps:$4 sm:$0xff]   ;;  %v1319_v33 = vrot.slane %v1317_v56, 5  ;;  %v1273_v46 = vrot.slane %v1272_v48, 4  ;;  %v1301_v4 = vrot.slane %v1299_v47, 5  ;;  %v1328_v24 = vshrl.u32 %v699_v37, 16 }
  0xfc   : > { %6039 = vmatprep.subr.bf16.mxu1 %v16887_v32  ;;  %5529 = vmatmul.mubr.bf16.gmra.mxu0 %v18725_v5  ;;  %v702_v14 = vld [vmem:[%s17890_s22 + $0x260] sm:$0x11]  ;;  %v1331_v39 = vshll.u32 %v699_v37, 16  ;;  %v1297_v35 = vrot.slane %v1296_v20, 4  ;;  %v18908_v25 = vrot.slane %v1323_v52, 5  ;;  %v1343_v61 = vrot.slane %v1341_v63, 4 }
  0xfd   : > { %5722 = vmatmul.mubr.bf16.gmra.mxu1 %v18743_v58  ;;  %5538 = vmatprep.mubr.bf16.mxu0 %v18745_v41  ;;  %v1337_v27 = vshll.u32 %v18880_v15, 16  ;;  %v16891_v32 = vld [vmem:[%s24472_s1 + $0xba0] ss:$8 sps:$4 sm:$0xff]   ;;  %v18914_v47 = vcombine.high %v1196_v18, %v1216_v43  ;;  %v18916_v3 = vcombine.low %v1196_v18, %v1216_v43  ;;  %v1287_v38 = vrot.slane %v1286_v34, 4  ;;  %v16896_v63 = vld [vmem:[%s24472_s1 + $0xa94] ss:$8 sps:$4 sm:$0xff]  }
  0xfe   : > { %5731 = vmatprep.mubr.bf16.mxu1 %v18781_v49  ;;  %5847 = vmatpush2.bf16.msra.mxu0 %v16882_v9  ;;  %v1351_v56 = vshrl.u32 %v18880_v15, 16  ;;  %v16899_v9 = vld [vmem:[%s24472_s1 + $0xb94] ss:$8 sps:$4 sm:$0xff]   ;;  %v1307_v37 = vrot.slane %v1306_v59, 4  ;;  %v1311_v48 = vrot.slane %v1309_v50, 5  ;;  %v1320_v20 = vor.u32 %v1319_v33, %v1316_v36 }
  0xff   : > { %6040 = vmatpush2.bf16.msra.mxu1 %v16885_v19  ;;  %24898 = vst [vmem:[#allocation54_spill] sm:$0xff] %v18914_v47  ;;  %24899 = vst [vmem:[#allocation55_spill] sm:$0xff] %v18916_v3  ;;  %5848 = vmatprep.subr.bf16.mxu0 %v16890_v57  ;;  %v1347_v52 = vshll.u32 %v702_v14, 16  ;;  %v1230_v15 = vsel %vm18366_vm2, %v18833_v40, %v18788_v23  ;;  %v1254_v19 = vsel %vm18366_vm2, %v18846_v1, %v18840_v10  ;;  %v703_v18 = vld [vmem:[%s17890_s22 + $0x268] sm:$0x11]  ;;  %v704_v57 = vld [vmem:[%s17890_s22 + $0x270] sm:$0xff] }
 0x100   : > { %6041 = vmatprep.subr.bf16.mxu1 %v16893_v62  ;;  %v1330_v43 = vrot.slane %v1328_v24, 4  ;;  %v1333_v34 = vrot.slane %v1331_v39, 5  ;;  %v1244_v62 = vsel %vm18366_vm2, %v1239_v42, %v18826_v0  ;;  %v1264_v59 = vsel %vm18366_vm2, %v1259_v11, %v1263_v21  ;;  %v706_v23 = vld [vmem:[%s17890_s22 + $0x280] sm:$0xff]  ;;  %v16894_v40 = vld [vmem:[%s24472_s1 + $0xa90] ss:$8 sps:$4 sm:$0xff]  }
 0x101   : > { %v1344_v50 = vor.u32 %v1343_v61, %v18908_v25  ;;  %v18941_v14 = vrot.slane %v1337_v27, 5  ;;  %v16897_v10 = vld [vmem:[%s24472_s1 + $0xb90] ss:$8 sps:$4 sm:$0xff]   ;;  %v1278_v21 = vsel %vm18366_vm2, %v1273_v46, %v18848_v26  ;;  %v1302_v0 = vsel %vm18366_vm2, %v1297_v35, %v1301_v4  ;;  %v16902_v11 = vld [vmem:[%s24472_s1 + $0xa84] ss:$8 sps:$4 sm:$0xff]  }
 0x102   : > { %5849 = vmatpush2.bf16.msra.mxu0 %v16888_v60  ;;  %v1292_v1 = vsel %vm18366_vm2, %v1287_v38, %v18866_v51  ;;  %v1353_v42 = vrot.slane %v1351_v56, 4  ;;  %v16905_v36 = vld [vmem:[%s24472_s1 + $0xb84] ss:$8 sps:$4 sm:$0xff]   ;;  %v1312_v26 = vsel %vm18366_vm2, %v1307_v37, %v1311_v48  ;;  %v1321_v33 = vrot.slane %v1320_v20, 4  ;;  %v705_v4 = vld [vmem:[%s17890_s22 + $0x278] sm:$0xff] }
 0x103   : > { %6042 = vmatpush2.bf16.msra.mxu1 %v16891_v32  ;;  %5850 = vmatprep.subr.bf16.mxu0 %v16896_v63  ;;  %v1349_v51 = vrot.slane %v1347_v52, 5  ;;  %v1357_v46 = vshll.u32 %v703_v18, 16  ;;  %v1334_v24 = vor.u32 %v1333_v34, %v1330_v43  ;;  %v1362_v39 = vshrl.u32 %v704_v57, 16  ;;  %v16900_v61 = vld [vmem:[%s24472_s1 + $0xa80] ss:$8 sps:$4 sm:$0xff]  }
 0x104   : > { %6043 = vmatprep.subr.bf16.mxu1 %v16899_v9  ;;  %5539 = vmatmul.mubr.bf16.gmra.mxu0 %v18763_v7  ;;  %v1365_v60 = vshll.u32 %v704_v57, 16  ;;  %v1371_v35 = vshll.u32 %v706_v23, 16  ;;  %v18974_v27 = vcombine.high %v1230_v15, %v1254_v19  ;;  %v18976_v32 = vcombine.high %v1244_v62, %v1264_v59  ;;  %v16903_v63 = vld [vmem:[%s24472_s1 + $0xb80] ss:$8 sps:$4 sm:$0xff]   ;;  %v16908_v9 = vld [vmem:[%s24472_s1 + $0x74] ss:$8 sps:$4 sm:$0xff]  }
 0x105   : > { %5732 = vmatmul.mubr.bf16.gmra.mxu1 %v18786_v2  ;;  %5548 = vmatprep.mubr.bf16.mxu0 %v18854_v22  ;;  %v18978_v38 = vcombine.low %v1230_v15, %v1254_v19  ;;  %v1345_v56 = vrot.slane %v1344_v50, 4  ;;  %v18986_v37 = vcombine.low %v1244_v62, %v1264_v59  ;;  %v1354_v48 = vor.u32 %v1353_v42, %v18941_v14  ;;  %v16911_v15 = vld [vmem:[%s24472_s1 + $0x174] ss:$8 sps:$4 sm:$0xff]  }
 0x106   : > { %5741 = vmatprep.mubr.bf16.mxu1 %v18914_v47  ;;  %24900 = vst [vmem:[#allocation56_spill] sm:$0xff] %v18974_v27  ;;  %24901 = vst [vmem:[#allocation57_spill] sm:$0xff] %v18976_v32  ;;  %5851 = vmatpush2.bf16.msra.mxu0 %v16894_v40  ;;  %v1389_v20 = vshrl.u32 %v706_v23, 16  ;;  %v1376_v52 = vshrl.u32 %v705_v4, 16  ;;  %v18992_v19 = vcombine.high %v1278_v21, %v1302_v0  ;;  %v708_v34 = vld [vmem:[%s17890_s22 + $0x290] sm:$0x11] }
 0x107   : > { %24902 = vst [vmem:[#allocation58_spill] sm:$0xff] %v18978_v38  ;;  %6044 = vmatpush2.bf16.msra.mxu1 %v16897_v10  ;;  %24903 = vst [vmem:[#allocation59_spill] sm:$0xff] %v18986_v37  ;;  %5852 = vmatprep.subr.bf16.mxu0 %v16902_v11  ;;  %v18994_v18 = vcombine.high %v1292_v1, %v1312_v26  ;;  %v18996_v43 = vcombine.low %v1278_v21, %v1302_v0  ;;  %v1379_v57 = vshll.u32 %v705_v4, 16  ;;  %v707_v40 = vld [vmem:[%s17890_s22 + $0x288] sm:$0xff]  ;;  %v710_v10 = vld [vmem:[%s17890_s22 + $0x2a0] sm:$0xff] }
 0x108   : > { %6045 = vmatprep.subr.bf16.mxu1 %v16905_v36  ;;  %24904 = vst [vmem:[#allocation60_spill] sm:$0xff] %v18992_v19  ;;  %v18999_v62 = vcombine.low %v1292_v1, %v1312_v26  ;;  %v1326_v59 = vsel %vm18366_vm2, %v1321_v33, %v18908_v25  ;;  %v1335_v50 = vrot.slane %v1334_v24, 4  ;;  %v1359_v23 = vrot.slane %v1357_v46, 5  ;;  %v712_v47 = vld [vmem:[%s17890_s22 + $0x2b0] sm:$0xff] }
 0x109   : > { %24905 = vst [vmem:[#allocation61_spill] sm:$0xff] %v18994_v18  ;;  %24906 = vst [vmem:[#allocation62_spill] sm:$0xff] %v18996_v43  ;;  %v1350_v42 = vsel %vm18366_vm2, %v1345_v56, %v1349_v51  ;;  %v1364_v11 = vrot.slane %v1362_v39, 4  ;;  %v1367_v36 = vrot.slane %v1365_v60, 5  ;;  %v19008_v21 = vrot.slane %v1371_v35, 5 }
 0x10a   : > { %24907 = vst [vmem:[#allocation63_spill] sm:$0xff] %v18999_v62  ;;  %5853 = vmatpush2.bf16.msra.mxu0 %v16900_v61  ;;  %v1355_v0 = vrot.slane %v1354_v48, 4  ;;  %v1391_v1 = vrot.slane %v1389_v20, 4  ;;  %v1395_v26 = vshll.u32 %v708_v34, 16  ;;  %v1378_v4 = vrot.slane %v1376_v52, 4  ;;  %v711_v34 = vld [vmem:[%s17890_s22 + $0x2a8] sm:$0xff] }
 0x10b   : > { %6046 = vmatpush2.bf16.msra.mxu1 %v16903_v63  ;;  %8128 = vmatprep.subr.bf16.mxu0 %v16908_v9  ;;  %v1381_v51 = vrot.slane %v1379_v57, 5  ;;  %v1385_v46 = vshll.u32 %v707_v40, 16  ;;  %v1399_v24 = vshrl.u32 %v707_v40, 16  ;;  %v1410_v39 = vshrl.u32 %v710_v10, 16 }
 0x10c   : > { %8321 = vmatprep.subr.bf16.mxu1 %v16911_v15  ;;  %v5084_v25 = vpop.f32.mrf.mxu0  ;;  %5549 = vmatmul.mubr.bf16.gmra.mxu0 %v18872_v8  ;;  %v19017_v35 = vcombine.high %v1326_v59, %v1350_v42  ;;  %v1340_v61 = vsel %vm18366_vm2, %v1335_v50, %v18941_v14  ;;  %v1413_v56 = vshll.u32 %v710_v10, 16  ;;  %v19022_v48 = vcombine.low %v1326_v59, %v1350_v42  ;;  %v709_v14 = vld [vmem:[%s17890_s22 + $0x298] sm:$0x11] }
 0x10d   : > { %v5277_v33 = vpop.f32.mrf.mxu1  ;;  %5742 = vmatmul.mubr.bf16.gmra.mxu1 %v18916_v3  ;;  %5558 = vmatprep.mubr.bf16.mxu0 %v18974_v27  ;;  %v1368_v20 = vor.u32 %v1367_v36, %v1364_v11  ;;  %v1419_v52 = vshll.u32 %v712_v47, 16  ;;  %v1437_v15 = vshrl.u32 %v712_v47, 16  ;;  %v1360_v40 = vsel %vm18366_vm2, %v1355_v0, %v1359_v23  ;;  %v713_v11 = vld [vmem:[%s17890_s22 + $0x2b8] sm:$0xff]  ;;  %v714_v47 = vld [vmem:[%s17890_s22 + $0x2c0] sm:$0x11] }
 0x10e   : > { %v19013_v60 = vadd.f32 %v5277_v33, %v5084_v25  ;;  %5751 = vmatprep.mubr.bf16.mxu1 %v18976_v32  ;;  %24908 = vst [vmem:[#allocation64_spill] sm:$0xff] %v19017_v35  ;;  %v5086_v63 = vpop.f32.mrf.mxu0  ;;  %24909 = vst [vmem:[#allocation65_spill] sm:$0xff] %v19022_v48  ;;  %v1392_v25 = vor.u32 %v1391_v1, %v19008_v21  ;;  %v1397_v33 = vrot.slane %v1395_v26, 5  ;;  %v1387_v59 = vrot.slane %v1385_v46, 5 }
 0x10f   : > { %v5279_v9 = vpop.f32.mrf.mxu1  ;;  %v1382_v32 = vor.u32 %v1381_v51, %v1378_v4  ;;  %v1401_v42 = vrot.slane %v1399_v24, 4  ;;  %v1412_v27 = vrot.slane %v1410_v39, 4  ;;  %v1427_v3 = vshll.u32 %v711_v34, 16  ;;  %v716_v24 = vld [vmem:[%s17890_s22 + $0x2d0] sm:$0xff] }
 0x110   : > { %v19025_v57 = vadd.f32 %v5279_v9, %v5086_v63  ;;  %v5088_v50 = vpop.f32.mrf.mxu0  ;;  %v1415_v63 = vrot.slane %v1413_v56, 5  ;;  %v1424_v9 = vshrl.u32 %v711_v34, 16  ;;  %v1369_v0 = vrot.slane %v1368_v20, 4 }
 0x111   : > { %v5281_v10 = vpop.f32.mrf.mxu1  ;;  %v1405_v1 = vshll.u32 %v709_v14, 16  ;;  %v19035_v26 = vrot.slane %v1419_v52, 5  ;;  %v1439_v22 = vrot.slane %v1437_v15, 4  ;;  %v19039_v4 = vcombine.high %v1340_v61, %v1360_v40 }
 0x112   : > { %v19032_v36 = vadd.f32 %v5281_v10, %v5088_v50  ;;  %v5090_v8 = vpop.f32.mrf.mxu0  ;;  %v1433_v51 = vshll.u32 %v713_v11, 16  ;;  %v1447_v46 = vshrl.u32 %v713_v11, 16  ;;  %v1393_v56 = vrot.slane %v1392_v25, 4 }
 0x113   : > { %v5283_v23 = vpop.f32.mrf.mxu1  ;;  %24910 = vst [vmem:[#allocation66_spill] sm:$0xff] %v19039_v4  ;;  %v1383_v20 = vrot.slane %v1382_v32, 4  ;;  %v1402_v34 = vor.u32 %v1401_v42, %v1387_v59  ;;  %v1443_v52 = vshll.u32 %v714_v47, 16  ;;  %v1426_v15 = vrot.slane %v1424_v9, 4  ;;  %v715_v42 = vld [vmem:[%s17890_s22 + $0x2c8] sm:$0x11] }
 0x114   : > { %v19037_v2 = vadd.f32 %v5283_v23, %v5090_v8  ;;  %v5094_v39 = vpop.f32.mrf.mxu0  ;;  %5559 = vmatmul.mubr.bf16.gmra.mxu0 %v18978_v38  ;;  %v1416_v8 = vor.u32 %v1415_v63, %v1412_v27  ;;  %v1429_v10 = vrot.slane %v1427_v3, 5  ;;  %v19048_v38 = vcombine.low %v1340_v61, %v1360_v40  ;;  %v718_v63 = vld [vmem:[%s17890_s22 + $0x2e0] sm:$0xff] }
 0x115   : > { %v5287_v50 = vpop.f32.mrf.mxu1  ;;  %5752 = vmatmul.mubr.bf16.gmra.mxu1 %v18986_v37  ;;  %5568 = vmatprep.mubr.bf16.mxu0 %v18992_v19  ;;  %v19053_v32 = vsel %vm18366_vm2, %v1369_v0, %v19008_v21  ;;  %v1440_v25 = vor.u32 %v1439_v22, %v19035_v26  ;;  %v1458_v47 = vshrl.u32 %v716_v24, 16  ;;  %v19059_v27 = vrot.slane %v1433_v51, 5  ;;  %v717_v51 = vld [vmem:[%s17890_s22 + $0x2d8] sm:$0xff]  ;;  %v719_v37 = vld [vmem:[%s17890_s22 + $0x2e8] sm:$0xff] }
 0x116   : > { %v19044_v14 = vadd.f32 %v5287_v50, %v5094_v39  ;;  %5761 = vmatprep.mubr.bf16.mxu1 %v18994_v18  ;;  %v5096_v11 = vpop.f32.mrf.mxu0  ;;  %24911 = vst [vmem:[#allocation67_spill] sm:$0xff] %v19048_v38  ;;  %v1449_v3 = vrot.slane %v1447_v46, 4  ;;  %v1461_v9 = vshll.u32 %v716_v24, 16  ;;  %v1398_v50 = vsel %vm18366_vm2, %v1393_v56, %v1397_v33 }
 0x117   : > { %v5289_v23 = vpop.f32.mrf.mxu1  ;;  %v1388_v21 = vsel %vm18366_vm2, %v1383_v20, %v1387_v59  ;;  %v1403_v22 = vrot.slane %v1402_v34, 4  ;;  %v1407_v0 = vrot.slane %v1405_v1, 5  ;;  %v1430_v19 = vor.u32 %v1429_v10, %v1426_v15 }
 0x118   : > { %v19057_v39 = vadd.f32 %v5289_v23, %v5096_v11  ;;  %v5098_v61 = vpop.f32.mrf.mxu0  ;;  %v1417_v11 = vrot.slane %v1416_v8, 4  ;;  %v1445_v23 = vrot.slane %v1443_v52, 5  ;;  %v1441_v24 = vrot.slane %v1440_v25, 4 }
 0x119   : > { %v5291_v40 = vpop.f32.mrf.mxu1  ;;  %v1453_v49 = vshll.u32 %v715_v42, 16  ;;  %v1460_v41 = vrot.slane %v1458_v47, 4  ;;  %v1467_v58 = vshll.u32 %v718_v63, 16  ;;  %v1450_v33 = vor.u32 %v1449_v3, %v19059_v27 }
 0x11a   : > { %v19066_v18 = vadd.f32 %v5291_v40, %v5098_v61  ;;  %v5100_v46 = vpop.f32.mrf.mxu0  ;;  %v1463_v59 = vrot.slane %v1461_v9, 5  ;;  %v1485_v56 = vshrl.u32 %v718_v63, 16  ;;  %v1472_v34 = vshrl.u32 %v717_v51, 16 }
 0x11b   : > { %v5293_v7 = vpop.f32.mrf.mxu1  ;;  %v1475_v52 = vshll.u32 %v717_v51, 16  ;;  %v1481_v8 = vshll.u32 %v719_v37, 16  ;;  %v1495_v15 = vshrl.u32 %v719_v37, 16  ;;  %v19084_v25 = vsel %vm18366_vm2, %v1417_v11, %v19035_v26 }
 0x11c   : > { %v19070_v5 = vadd.f32 %v5293_v7, %v5100_v46  ;;  %v5104_v1 = vpop.f32.mrf.mxu0  ;;  %5569 = vmatmul.mubr.bf16.gmra.mxu0 %v18996_v43  ;;  %v1408_v7 = vsel %vm18366_vm2, %v1403_v22, %v1407_v0  ;;  %v19088_v37 = vsel %vm18366_vm2, %v1441_v24, %v1445_v23  ;;  %v1431_v3 = vrot.slane %v1430_v19, 4  ;;  %v720_v22 = vld [vmem:[%s17890_s22 + $0x2f0] sm:$0x11]  ;;  %v721_v46 = vld [vmem:[%s17890_s22 + $0x2f8] sm:$0x11]  ;;  %v722_v24 = vld [vmem:[%s17890_s22 + $0x300] sm:$0xff] }
 0x11d   : > { %v5297_v20 = vpop.f32.mrf.mxu1  ;;  %5762 = vmatmul.mubr.bf16.gmra.mxu1 %v18999_v62  ;;  %5578 = vmatprep.mubr.bf16.mxu0 %v19017_v35  ;;  %v1455_v63 = vrot.slane %v1453_v49, 5  ;;  %v19090_v9 = vrot.slane %v1467_v58, 5  ;;  %v1451_v40 = vrot.slane %v1450_v33, 4  ;;  %v1464_v0 = vor.u32 %v1463_v59, %v1460_v41 }
 0x11e   : > { %v19075_v10 = vadd.f32 %v5297_v20, %v5104_v1  ;;  %5771 = vmatprep.mubr.bf16.mxu1 %v19039_v4  ;;  %v5106_v42 = vpop.f32.mrf.mxu0  ;;  %v1487_v51 = vrot.slane %v1485_v56, 4  ;;  %v1474_v1 = vrot.slane %v1472_v34, 4  ;;  %v1477_v20 = vrot.slane %v1475_v52, 5 }
 0x11f   : > { %v5299_v47 = vpop.f32.mrf.mxu1  ;;  %v19096_v4 = vrot.slane %v1481_v8, 5  ;;  %v1497_v23 = vrot.slane %v1495_v15, 4  ;;  %v19101_v58 = vcombine.low %v19053_v32, %v1398_v50  ;;  %v19104_v49 = vcombine.high %v19053_v32, %v1398_v50  ;;  %v724_v15 = vld [vmem:[%s17890_s22 + $0x310] sm:$0xff] }
 0x120   : > { %v19092_v61 = vadd.f32 %v5299_v47, %v5106_v42  ;;  %v5108_v26 = vpop.f32.mrf.mxu0  ;;  %v19106_v41 = vcombine.high %v1388_v21, %v1408_v7  ;;  %v19109_v56 = vcombine.low %v1388_v21, %v1408_v7  ;;  %v19113_v34 = vcombine.high %v19084_v25, %v19088_v37  ;;  %v725_v21 = vld [vmem:[%s17890_s22 + $0x318] sm:$0xff] }
 0x121   : > { %v5301_v11 = vpop.f32.mrf.mxu1  ;;  %24912 = vst [vmem:[#allocation68_spill] sm:$0xff] %v19101_v58  ;;  %24913 = vst [vmem:[#allocation69_spill] sm:$0xff] %v19104_v49  ;;  %v19118_v52 = vsel %vm18366_vm2, %v1431_v3, %v19059_v27  ;;  %v1491_v8 = vshll.u32 %v720_v22, 16  ;;  %v1465_v50 = vrot.slane %v1464_v0, 4  ;;  %v1488_v42 = vor.u32 %v1487_v51, %v19090_v9 }
 0x122   : > { %v19098_v19 = vadd.f32 %v5301_v11, %v5108_v26  ;;  %24914 = vst [vmem:[#allocation70_spill] sm:$0xff] %v19106_v41  ;;  %v5110_v33 = vpop.f32.mrf.mxu0  ;;  %24915 = vst [vmem:[#allocation71_spill] sm:$0xff] %v19109_v56  ;;  %v1501_v47 = vshll.u32 %v721_v46, 16  ;;  %v723_v26 = vld [vmem:[%s17890_s22 + $0x308] sm:$0xff]  ;;  %v1456_v27 = vsel %vm18366_vm2, %v1451_v40, %v1455_v63  ;;  %v1478_v3 = vor.u32 %v1477_v20, %v1474_v1 }
 0x123   : > { %v5303_v59 = vpop.f32.mrf.mxu1  ;;  %24916 = vst [vmem:[#allocation72_spill] sm:$0xff] %v19113_v34  ;;  %v1498_v22 = vor.u32 %v1497_v23, %v19096_v4  ;;  %v1509_v0 = vshll.u32 %v722_v24, 16  ;;  %v1515_v51 = vshll.u32 %v724_v15, 16  ;;  %v1533_v46 = vshrl.u32 %v724_v15, 16 }
 0x124   : > { %v19121_v32 = vadd.f32 %v5303_v59, %v5110_v33  ;;  %v5114_v7 = vpop.f32.mrf.mxu0  ;;  %5579 = vmatmul.mubr.bf16.gmra.mxu0 %v19022_v48  ;;  %v1506_v33 = vshrl.u32 %v722_v24, 16  ;;  %v1523_v62 = vshll.u32 %v723_v26, 16  ;;  %v1529_v43 = vshll.u32 %v725_v21, 16 }
 0x125   : > { %v5307_v11 = vpop.f32.mrf.mxu1  ;;  %5772 = vmatmul.mubr.bf16.gmra.mxu1 %v19048_v38  ;;  %5588 = vmatprep.mubr.bf16.mxu0 %v19104_v49  ;;  %v1520_v38 = vshrl.u32 %v723_v26, 16  ;;  %v1543_v63 = vshrl.u32 %v725_v21, 16  ;;  %v1489_v1 = vrot.slane %v1488_v42, 4  ;;  %v1493_v20 = vrot.slane %v1491_v8, 5 }
 0x126   : > { %v19131_v59 = vadd.f32 %v5307_v11, %v5114_v7  ;;  %5781 = vmatprep.mubr.bf16.mxu1 %v19106_v41  ;;  %v5116_v35 = vpop.f32.mrf.mxu0  ;;  %v1503_v23 = vrot.slane %v1501_v47, 5  ;;  %v19138_v49 = vcombine.high %v19118_v52, %v1456_v27  ;;  %v1479_v24 = vrot.slane %v1478_v3, 4 }
 0x127   : > { %v5309_v48 = vpop.f32.mrf.mxu1  ;;  %v1499_v15 = vrot.slane %v1498_v22, 4  ;;  %v1508_v41 = vrot.slane %v1506_v33, 4  ;;  %v1511_v26 = vrot.slane %v1509_v0, 5  ;;  %v1517_v44 = vrot.slane %v1515_v51, 5 }
 0x128   : > { %v19135_v40 = vadd.f32 %v5309_v48, %v5116_v35  ;;  %v5118_v7 = vpop.f32.mrf.mxu0  ;;  %24917 = vst [vmem:[#allocation73_spill] sm:$0xff] %v19138_v49  ;;  %v1535_v21 = vrot.slane %v1533_v46, 4  ;;  %v1522_v42 = vrot.slane %v1520_v38, 4  ;;  %v1525_v8 = vrot.slane %v1523_v62, 5 }
 0x129   : > { %v5311_v11 = vpop.f32.mrf.mxu1  ;;  %v1531_v47 = vrot.slane %v1529_v43, 5  ;;  %v1545_v31 = vrot.slane %v1543_v63, 4  ;;  %v1470_v3 = vsel %vm18366_vm2, %v1465_v50, %v19090_v9  ;;  %v1494_v22 = vsel %vm18366_vm2, %v1489_v1, %v1493_v20 }
 0x12a   : > { %v19140_v6 = vadd.f32 %v5311_v11, %v5118_v7  ;;  %v5120_v35 = vpop.f32.mrf.mxu0  ;;  %v1484_v38 = vsel %vm18366_vm2, %v1479_v24, %v19096_v4  ;;  %v1504_v62 = vsel %vm18366_vm2, %v1499_v15, %v1503_v23  ;;  %v1512_v33 = vor.u32 %v1511_v26, %v1508_v41 }
 0x12b   : > { %v5313_v48 = vpop.f32.mrf.mxu1  ;;  %v1539_v0 = vshll.u32 %v726_v45, 16  ;;  %v1536_v50 = vor.u32 %v1535_v21, %v1517_v44  ;;  %v1526_v46 = vor.u32 %v1525_v8, %v1522_v42  ;;  %v1546_v63 = vor.u32 %v1545_v31, %v1531_v47 }
 0x12c   : > { %v19143_v30 = vadd.f32 %v5313_v48, %v5120_v35  ;;  %v5124_v28 = vpop.f32.mrf.mxu0  ;;  %5589 = vmatmul.mubr.bf16.gmra.mxu0 %v19101_v58  ;;  %v1549_v1 = vshll.u32 %v727_v29, 16  ;;  %v19166_v4 = vcombine.low %v19084_v25, %v19088_v37  ;;  %v19169_v23 = vcombine.low %v19118_v52, %v1456_v27  ;;  %v1753_v25 = vld [vmem:[%s17890_s22 + $0x40] sm:$0xff]  ;;  %v1754_v52 = vld [vmem:[%s17890_s22 + $0x48] sm:$0xff] }
 0x12d   : > { %v5317_v17 = vpop.f32.mrf.mxu1  ;;  %5782 = vmatmul.mubr.bf16.gmra.mxu1 %v19109_v56  ;;  %5598 = vmatprep.mubr.bf16.mxu0 %v19113_v34  ;;  %v19171_v45 = vcombine.high %v1470_v3, %v1494_v22  ;;  %v19175_v7 = vcombine.high %v1484_v38, %v1504_v62  ;;  %v1513_v29 = vrot.slane %v1512_v33, 4  ;;  %v1541_v31 = vrot.slane %v1539_v0, 5  ;;  %v1751_v33 = vld [vmem:[%s17890_s22 + $0x30] sm:$0xee]  ;;  %v1767_v56 = vld [vmem:[%s17890_s22 + $0xb0] sm:$0x11] }
 0x12e   : > { %v19156_v43 = vadd.f32 %v5317_v17, %v5124_v28  ;;  %5791 = vmatprep.mubr.bf16.mxu1 %v19138_v49  ;;  %v5126_v51 = vpop.f32.mrf.mxu0  ;;  %24918 = vst [vmem:[#allocation74_spill] sm:$0xff] %v19166_v4  ;;  %24919 = vst [vmem:[#allocation75_spill] sm:$0xff] %v19169_v23  ;;  %v1537_v15 = vrot.slane %v1536_v50, 4  ;;  %v1527_v26 = vrot.slane %v1526_v46, 4  ;;  %v1547_v21 = vrot.slane %v1546_v63, 4 }
 0x12f   : > { %v5319_v9 = vpop.f32.mrf.mxu1  ;;  %24920 = vst [vmem:[#allocation76_spill] sm:$0xff] %v19171_v45  ;;  %24921 = vst [vmem:[#allocation77_spill] sm:$0xff] %v19175_v7  ;;  %v1551_v35 = vrot.slane %v1549_v1, 5  ;;  %v1518_v8 = vsel %vm18366_vm2, %v1513_v29, %v1517_v44  ;;  %v1980_v0 = vrot.slane %v1753_v25, 5  ;;  %v1755_v1 = vld [vmem:[%s17890_s22 + $0x50] sm:$0x11]  ;;  %v19201_v25 = vcombine.low %v1470_v3, %v1494_v22 }
 0x130   : > { %v19162_v20 = vadd.f32 %v5319_v9, %v5126_v51  ;;  %v5128_v17 = vpop.f32.mrf.mxu0  ;;  %v1542_v50 = vsel %vm18366_vm2, %v1537_v15, %v1541_v31  ;;  %v1532_v46 = vsel %vm18366_vm2, %v1527_v26, %v1531_v47  ;;  %v1752_v44 = vld [vmem:[%s17890_s22 + $0x38] sm:$0xee]  ;;  %v1756_v29 = vld [vmem:[%s17890_s22 + $0x58] sm:$0x11]  ;;  %v19203_v31 = vcombine.low %v1484_v38, %v1504_v62 }
 0x131   : > { %v5321_v28 = vpop.f32.mrf.mxu1  ;;  %v1552_v63 = vsel %vm18366_vm2, %v1547_v21, %v1551_v35  ;;  %24922 = vst [vmem:[#allocation78_spill] sm:$0xff] %v19201_v25  ;;  %v14669_v47 = vrot.slane %v1751_v33, 9  ;;  %v19207_v26 = vcombine.high %v1518_v8, %v1542_v50  ;;  %v1987_v35 = vrot.slane %v1755_v1, 5  ;;  %v1759_v33 = vld [vmem:[%s17890_s22 + $0x70] sm:$0xff] }
 0x132   : > { %v19173_v41 = vadd.f32 %v5321_v28, %v5128_v17  ;;  %v5130_v11 = vpop.f32.mrf.mxu0  ;;  %v1984_v17 = vrot.slane %v1754_v52, 5  ;;  %24923 = vst [vmem:[#allocation79_spill] sm:$0xff] %v19203_v31  ;;  %v19209_v21 = vcombine.high %v1532_v46, %v1552_v63  ;;  %v1986_v3 = vrot.slane %v1980_v0, 4 }
 0x133   : > { %v5323_v24 = vpop.f32.mrf.mxu1  ;;  %24924 = vst [vmem:[#allocation80_spill] sm:$0xff] %v19207_v26  ;;  %v14670_v22 = vrot.slane %v1752_v44, 9  ;;  %v1990_v38 = vrot.slane %v1756_v29, 5  ;;  %v1981_v44 = vsel %vm19212_vm5, %v14669_v47, %v1980_v0  ;;  %v1762_v0 = vld [vmem:[%s17890_s22 + $0x88] sm:$0x11] }
 0x134   : > { %v19178_v37 = vadd.f32 %v5323_v24, %v5130_v11  ;;  %v5134_v27 = vpop.f32.mrf.mxu0  ;;  %5599 = vmatmul.mubr.bf16.gmra.mxu0 %v19166_v4  ;;  %24925 = vst [vmem:[#allocation81_spill] sm:$0xff] %v19209_v21  ;;  %v19240_v4 = vcombine.low %v1518_v8, %v1542_v50 }
 0x135   : > { %v5327_v48 = vpop.f32.mrf.mxu1  ;;  %5792 = vmatmul.mubr.bf16.gmra.mxu1 %v19169_v23  ;;  %5608 = vmatprep.mubr.bf16.mxu0 %v19171_v45 }
 0x136   : > { %v19183_v42 = vadd.f32 %v5327_v48, %v5134_v27  ;;  %5801 = vmatprep.mubr.bf16.mxu1 %v19175_v7  ;;  %v5136_v51 = vpop.f32.mrf.mxu0  ;;  %v24926_v48 = vmov 0  ;;  %v1758_v7 = vld [vmem:[%s17890_s22 + $0x68] sm:$0xee]  ;;  %24929 = vst [vmem:[#allocation83_spill] sm:$0xff] %v19240_v4 }
 0x137   : > { %v5329_v9 = vpop.f32.mrf.mxu1  ;;  %v24927_v48 = vsel %vm19212_vm5, 4294967295, %v24926_v48 }
 0x138   : > { %v19197_v28 = vadd.f32 %v5329_v9, %v5136_v51  ;;  %v5138_v11 = vpop.f32.mrf.mxu0  ;;  %24928 = vst [vmem:[#allocation82_spill] sm:$0xff] %v24927_v48  ;;  %v1989_v51 = vrot.slane %v1984_v17, 4  ;;  %v1760_v9 = vld [vmem:[%s17890_s22 + $0x78] sm:$0xff] }
 0x139   : > { %v5331_v24 = vpop.f32.mrf.mxu1  ;;  %v1998_v47 = vrot.slane %v1760_v9, 5 }
 0x13a   : > { %v19205_v15 = vadd.f32 %v5331_v24, %v5138_v11  ;;  %v5140_v52 = vpop.f32.mrf.mxu0 }
 0x13b   : > { %v5333_v27 = vpop.f32.mrf.mxu1 }
 0x13c   : > { %v19216_v62 = vadd.f32 %v5333_v27, %v5140_v52  ;;  %v5144_v11 = vpop.f32.mrf.mxu0  ;;  %5609 = vmatmul.mubr.bf16.gmra.mxu0 %v19201_v25  ;;  %v1988_v27 = vsel %vm19212_vm5, %v1986_v3, %v1987_v35  ;;  %v1985_v25 = vsel %vm19212_vm5, %v14670_v22, %v1984_v17  ;;  %v19242_v35 = vcombine.low %v1532_v46, %v1552_v63 }
 0x13d   : > { %v5337_v24 = vpop.f32.mrf.mxu1  ;;  %5802 = vmatmul.mubr.bf16.gmra.mxu1 %v19203_v31  ;;  %5618 = vmatprep.mubr.bf16.mxu0 %v19207_v26  ;;  %v1761_v26 = vld [vmem:[%s17890_s22 + $0x80] sm:$0x11]  ;;  %v1994_v31 = vrot.slane %v1759_v33, 5  ;;  %v19246_v3 = vcombine.high %v1981_v44, %v1988_v27  ;;  %v14672_v46 = vrot.slane %v1758_v7, 9  ;;  %v2003_v63 = vrot.slane %v1998_v47, 4 }
 0x13e   : > { %v19222_v1 = vadd.f32 %v5337_v24, %v5144_v11  ;;  %5811 = vmatprep.mubr.bf16.mxu1 %v19209_v21  ;;  %v5146_v29 = vpop.f32.mrf.mxu0  ;;  %v1991_v11 = vsel %vm19212_vm5, %v1989_v51, %v1990_v38  ;;  %v1757_v24 = vld [vmem:[%s17890_s22 + $0x60] sm:$0xee]  ;;  %24930 = vst [vmem:[#allocation84_spill] sm:$0xff] %v19242_v35  ;;  %v19254_v38 = vld [vmem:[%s17890_s22 + $0xa8] sm:$0xff]  ;;  %v2001_v8 = vrot.slane %v1761_v26, 5 }
 0x13f   : > { %v5339_v52 = vpop.f32.mrf.mxu1  ;;  %24931 = vst [vmem:[#allocation85_spill] sm:$0xff] %v19246_v3  ;;  %v19248_v22 = vcombine.high %v1985_v25, %v1991_v11  ;;  %v19251_v51 = vld [vmem:[%s17890_s22 + $0xa0] sm:$0xff] }
 0x140   : > { %v19236_v21 = vadd.f32 %v5339_v52, %v5146_v29  ;;  %v5148_v45 = vpop.f32.mrf.mxu0  ;;  %v14671_v29 = vrot.slane %v1757_v24, 9  ;;  %v2000_v52 = vrot.slane %v1994_v31, 4 }
 0x141   : > { %v5341_v23 = vpop.f32.mrf.mxu1  ;;  %24932 = vst [vmem:[#allocation86_spill] sm:$0xff] %v19248_v22 }
 0x142   : > { %v19244_v17 = vadd.f32 %v5341_v23, %v5148_v45  ;;  %v5150_v33 = vpop.f32.mrf.mxu0  ;;  %v2004_v23 = vrot.slane %v1762_v0, 5  ;;  %v1763_v45 = vld [vmem:[%s17890_s22 + $0x90] sm:$0xee]  ;;  %v1995_v24 = vsel %vm19212_vm5, %v14671_v29, %v1994_v31  ;;  %v2002_v0 = vsel %vm19212_vm5, %v2000_v52, %v2001_v8 }
 0x143   : > { %v5343_v9 = vpop.f32.mrf.mxu1  ;;  %v1999_v31 = vsel %vm19212_vm5, %v14672_v46, %v1998_v47  ;;  %v16914_v47 = vld [vmem:[%s24472_s1 + $0x64] ss:$8 sps:$4 sm:$0xff]  }
 0x144   : > { %v19256_v50 = vadd.f32 %v5343_v9, %v5150_v33  ;;  %v5154_v49 = vpop.f32.mrf.mxu0  ;;  %5619 = vmatmul.mubr.bf16.gmra.mxu0 %v19240_v4  ;;  %v2008_v33 = vrot.slane %v19251_v51, 5  ;;  %v1764_v9 = vld [vmem:[%s17890_s22 + $0x98] sm:$0xee]  ;;  %v2005_v29 = vsel %vm19212_vm5, %v2003_v63, %v2004_v23  ;;  %v1768_v51 = vld [vmem:[%s17890_s22 + $0xb8] sm:$0x11] }
 0x145   : > { %v5347_v34 = vpop.f32.mrf.mxu1  ;;  %5812 = vmatmul.mubr.bf16.gmra.mxu1 %v19242_v35  ;;  %5854 = vmatprep.mubr.bf16.mxu0 %v19246_v3  ;;  %v2012_v35 = vrot.slane %v19254_v38, 5  ;;  %v19286_v38 = vcombine.low %v1981_v44, %v1988_v27  ;;  %v19292_v3 = vcombine.high %v1995_v24, %v2002_v0  ;;  %v16917_v46 = vld [vmem:[%s24472_s1 + $0x164] ss:$8 sps:$4 sm:$0xff]   ;;  %v2015_v44 = vrot.slane %v1767_v56, 5  ;;  %v16915_v56 = vld [vmem:[%s24472_s1 + $0x160] ss:$8 sps:$4 sm:$0xff]  }
 0x146   : > { %v19262_v58 = vadd.f32 %v5347_v34, %v5154_v49  ;;  %6047 = vmatprep.mubr.bf16.mxu1 %v19248_v22  ;;  %v5156_v26 = vpop.f32.mrf.mxu0  ;;  %v16906_v49 = vld [vmem:[%s24472_s1 + $0x70] ss:$8 sps:$4 sm:$0xff]   ;;  %v14674_v27 = vrot.slane %v1764_v9, 9  ;;  %v2014_v23 = vrot.slane %v2008_v33, 4  ;;  %v19317_v9 = vld [vmem:[%s17890_s22 + $0xc0] sm:$0xee] }
 0x147   : > { %v5349_v7 = vpop.f32.mrf.mxu1  ;;  %v16909_v34 = vld [vmem:[%s24472_s1 + $0x170] ss:$8 sps:$4 sm:$0xff]   ;;  %24935 = vst [vmem:[#allocation89_spill] sm:$0xff] %v19286_v38  ;;  %24938 = vst [vmem:[#allocation92_spill] sm:$0xff] %v19292_v3 }
 0x148   : > { %24933 = vst [vmem:[#allocation87_spill] sm:$0xff] %v19262_v58  ;;  %v19273_v4 = vadd.f32 %v5349_v7, %v5156_v26  ;;  %v5158_v52 = vpop.f32.mrf.mxu0  ;;  %v19288_v26 = vcombine.low %v1985_v25, %v1991_v11  ;;  %v14673_v7 = vrot.slane %v1763_v45, 9  ;;  %v19300_v11 = vcombine.high %v1999_v31, %v2005_v29  ;;  %v19573_v58 = vld [vmem:[%s17890_s22 + $0x170] sm:$0x11] }
 0x149   : > { %v5351_v8 = vpop.f32.mrf.mxu1  ;;  %v2017_v45 = vrot.slane %v2012_v35, 4 }
 0x14a   : > { %24934 = vst [vmem:[#allocation88_spill] sm:$0xff] %v19273_v4  ;;  %24936 = vst [vmem:[#allocation90_spill] sm:$0xff] %v19288_v26  ;;  %v19290_v22 = vadd.f32 %v5351_v8, %v5158_v52  ;;  %v5160_v63 = vpop.f32.mrf.mxu0  ;;  %v2018_v52 = vrot.slane %v1768_v51, 5  ;;  %v19303_v8 = vld [vmem:[%s17890_s22 + $0xd0] sm:$0xff] }
 0x14b   : > { %v5353_v25 = vpop.f32.mrf.mxu1  ;;  %24939 = vst [vmem:[#allocation93_spill] sm:$0xff] %v19300_v11 }
 0x14c   : > { %24937 = vst [vmem:[#allocation91_spill] sm:$0xff] %v19290_v22  ;;  %v19308_v16 = vadd.f32 %v5353_v25, %v5160_v63  ;;  %v5164_v55 = vpop.f32.mrf.mxu0  ;;  %5855 = vmatmul.mubr.bf16.vlgmr.msra.gmra.mxu0 %v19286_v38  ;;  %v16920_v63 = vld [vmem:[%s24472_s1 + $0x54] ss:$8 sps:$4 sm:$0xff]  }
 0x14d   : > { %v5357_v51 = vpop.f32.mrf.mxu1  ;;  %6048 = vmatmul.mubr.bf16.vlgmr.msra.gmra.mxu1 %v19288_v26  ;;  %v16923_v25 = vld [vmem:[%s24472_s1 + $0x154] ss:$8 sps:$4 sm:$0xff]   ;;  %8129 = vmatpush1.bf16.msra.mxu0 %v16906_v49  ;;  %v2022_v26 = vrot.slane %v19303_v8, 5  ;;  %v19345_v49 = vsel %vm19212_vm5, %v14674_v27, %v2012_v35  ;;  %v1770_v8 = vld [vmem:[%s17890_s22 + $0xc8] sm:$0xee]  ;;  %v19358_v35 = vcombine.low %v1999_v31, %v2005_v29 }
 0x14e   : > { %24940 = vst [vmem:[#allocation94_spill] sm:$0xff] %v19308_v16  ;;  %v19330_v53 = vadd.f32 %v5357_v51, %v5164_v55  ;;  %8322 = vmatpush1.bf16.msra.mxu1 %v16909_v34  ;;  %v19334_v16 = vsel %vm19212_vm5, %v14673_v7, %v2008_v33  ;;  %v5166_v38 = vpop.f32.mrf.mxu0  ;;  %5864 = vmatprep.mubr.bf16.mxu0 %v19292_v3  ;;  %v2026_v34 = vrot.slane %v19306_v54, 5  ;;  %v1774_v51 = vld [vmem:[%s17890_s22 + $0xe8] sm:$0x11]  ;;  %v16918_v27 = vld [vmem:[%s24472_s1 + $0x50] ss:$8 sps:$4 sm:$0xff]  }
 0x14f   : > { %v5359_v22 = vpop.f32.mrf.mxu1  ;;  %6057 = vmatprep.mubr.bf16.mxu1 %v19300_v11  ;;  %v19341_v55 = vsel %vm19212_vm5, %v2014_v23, %v2015_v44  ;;  %v19349_v33 = vsel %vm19212_vm5, %v2017_v45, %v2018_v52  ;;  %8130 = vmatprep.subr.bf16.mxu0 %v16914_v47  ;;  %v19356_v23 = vcombine.low %v1995_v24, %v2002_v0  ;;  %v16921_v54 = vld [vmem:[%s24472_s1 + $0x150] ss:$8 sps:$4 sm:$0xff]   ;;  %v2028_v31 = vrot.slane %v2022_v26, 4  ;;  %v16926_v29 = vld [vmem:[%s24472_s1 + $0x44] ss:$8 sps:$4 sm:$0xff]  }
 0x150   : > { %24941 = vst [vmem:[#allocation95_spill] sm:$0xff] %v19330_v53  ;;  %v19352_v7 = vadd.f32 %v5359_v22, %v5166_v38  ;;  %8323 = vmatprep.subr.bf16.mxu1 %v16917_v46  ;;  %v5168_v11 = vpop.f32.mrf.mxu0  ;;  %24944 = vst [vmem:[#allocation98_spill] sm:$0xff] %v19358_v35  ;;  %v14675_v22 = vrot.slane %v19317_v9, 9  ;;  %v2029_v38 = vrot.slane %v19320_v12, 5  ;;  %v19372_v24 = vcombine.high %v19334_v16, %v19341_v55  ;;  %v16929_v12 = vld [vmem:[%s24472_s1 + $0x144] ss:$8 sps:$4 sm:$0xff]  }
 0x151   : > { %v5361_v44 = vpop.f32.mrf.mxu1  ;;  %24943 = vst [vmem:[#allocation97_spill] sm:$0xff] %v19356_v23  ;;  %8131 = vmatpush1.bf16.msra.mxu0 %v16912_v13  ;;  %v19376_v0 = vcombine.high %v19345_v49, %v19349_v33  ;;  %v19385_v13 = vld [vmem:[%s17890_s22 + $0x100] sm:$0xff]  ;;  %v19388_v46 = vld [vmem:[%s17890_s22 + $0x108] sm:$0xff]  ;;  %v14676_v52 = vrot.slane %v1770_v8, 9  ;;  %v2032_v9 = vrot.slane %v1774_v51, 5 }
 0x152   : > { %24942 = vst [vmem:[#allocation96_spill] sm:$0xff] %v19352_v7  ;;  %v19368_v47 = vadd.f32 %v5361_v44, %v5168_v11  ;;  %8324 = vmatpush1.bf16.msra.mxu1 %v16915_v56  ;;  %24946 = vst [vmem:[#allocation100_spill] sm:$0xff] %v19372_v24  ;;  %v5170_v11 = vpop.f32.mrf.mxu0  ;;  %8132 = vmatprep.subr.bf16.mxu0 %v16920_v63  ;;  %v2031_v56 = vrot.slane %v2026_v34, 4  ;;  %v19393_v3 = vld [vmem:[%s17890_s22 + $0xf0] sm:$0xee] }
 0x153   : > { %24947 = vst [vmem:[#allocation101_spill] sm:$0xff] %v19376_v0  ;;  %v5363_v45 = vpop.f32.mrf.mxu1  ;;  %8325 = vmatprep.subr.bf16.mxu1 %v16923_v25  ;;  %v16924_v53 = vld [vmem:[%s24472_s1 + $0x40] ss:$8 sps:$4 sm:$0xff]   ;;  %v19404_v25 = vld [vmem:[%s17890_s22 + $0x110] sm:$0x11] }
 0x154   : > { %24945 = vst [vmem:[#allocation99_spill] sm:$0xff] %v19368_v47  ;;  %v19390_v44 = vadd.f32 %v5363_v45, %v5170_v11  ;;  %v5174_v47 = vpop.f32.mrf.mxu0  ;;  %5865 = vmatmul.mubr.bf16.gmra.mxu0 %v19356_v23  ;;  %v16927_v63 = vld [vmem:[%s24472_s1 + $0x140] ss:$8 sps:$4 sm:$0xff]   ;;  %v19407_v8 = vld [vmem:[%s17890_s22 + $0xf8] sm:$0xee]  ;;  %v19415_v11 = vsel %vm19212_vm5, %v14675_v22, %v2022_v26  ;;  %v19419_v45 = vsel %vm19212_vm5, %v2028_v31, %v2029_v38  ;;  %v2036_v26 = vrot.slane %v19385_v13, 5 }
 0x155   : > { %v5367_v7 = vpop.f32.mrf.mxu1  ;;  %6058 = vmatmul.mubr.bf16.gmra.mxu1 %v19358_v35  ;;  %5874 = vmatprep.mubr.bf16.mxu0 %v19372_v24  ;;  %v1780_v35 = vld [vmem:[%s17890_s22 + $0x118] sm:$0x11]  ;;  %v2040_v22 = vrot.slane %v19388_v46, 5  ;;  %v19442_v13 = vcombine.low %v19334_v16, %v19341_v55  ;;  %v19460_v16 = vld [vmem:[%s17890_s22 + $0x130] sm:$0xff] }
 0x156   : > { %24948 = vst [vmem:[#allocation102_spill] sm:$0xff] %v19390_v44  ;;  %v19409_v51 = vadd.f32 %v5367_v7, %v5174_v47  ;;  %6067 = vmatprep.mubr.bf16.mxu1 %v19376_v0  ;;  %v5176_v23 = vpop.f32.mrf.mxu0  ;;  %8133 = vmatpush1.bf16.msra.mxu0 %v16918_v27  ;;  %v19424_v7 = vsel %vm19212_vm5, %v14676_v52, %v2026_v34  ;;  %v16932_v27 = vld [vmem:[%s24472_s1 + $0x34] ss:$8 sps:$4 sm:$0xff]   ;;  %v16930_v46 = vld [vmem:[%s24472_s1 + $0x30] ss:$8 sps:$4 sm:$0xff]   ;;  %v2042_v0 = vrot.slane %v2036_v26, 4 }
 0x157   : > { %v5369_v44 = vpop.f32.mrf.mxu1  ;;  %8326 = vmatpush1.bf16.msra.mxu1 %v16921_v54  ;;  %v19428_v47 = vsel %vm19212_vm5, %v2031_v56, %v2032_v9  ;;  %8134 = vmatprep.subr.bf16.mxu0 %v16926_v29  ;;  %v16935_v34 = vld [vmem:[%s24472_s1 + $0x134] ss:$8 sps:$4 sm:$0xff]   ;;  %24951 = vst [vmem:[#allocation105_spill] sm:$0xff] %v19442_v13  ;;  %v19450_v29 = vcombine.high %v19415_v11, %v19419_v45  ;;  %v16933_v52 = vld [vmem:[%s24472_s1 + $0x130] ss:$8 sps:$4 sm:$0xff]   ;;  %v2045_v24 = vrot.slane %v2040_v22, 4 }
 0x158   : > { %24949 = vst [vmem:[#allocation103_spill] sm:$0xff] %v19409_v51  ;;  %v19432_v38 = vadd.f32 %v5369_v44, %v5176_v23  ;;  %8327 = vmatprep.subr.bf16.mxu1 %v16929_v12  ;;  %v5178_v54 = vpop.f32.mrf.mxu0  ;;  %v19446_v23 = vcombine.low %v19345_v49, %v19349_v33  ;;  %v14677_v12 = vrot.slane %v19393_v3, 9  ;;  %v19466_v49 = vcombine.high %v19424_v7, %v19428_v47  ;;  %v19471_v56 = vld [vmem:[%s17890_s22 + $0x138] sm:$0xff]  ;;  %v16938_v9 = vld [vmem:[%s24472_s1 + $0x24] ss:$8 sps:$4 sm:$0xff]  }
 0x159   : > { %v5371_v31 = vpop.f32.mrf.mxu1  ;;  %24953 = vst [vmem:[#allocation107_spill] sm:$0xff] %v19450_v29  ;;  %v2043_v33 = vrot.slane %v19404_v25, 5  ;;  %v14678_v3 = vrot.slane %v19407_v8, 9  ;;  %v16941_v44 = vld [vmem:[%s24472_s1 + $0x124] ss:$8 sps:$4 sm:$0xff]   ;;  %v2046_v25 = vrot.slane %v1780_v35, 5 }
 0x15a   : > { %24950 = vst [vmem:[#allocation104_spill] sm:$0xff] %v19432_v38  ;;  %24952 = vst [vmem:[#allocation106_spill] sm:$0xff] %v19446_v23  ;;  %v19462_v55 = vadd.f32 %v5371_v31, %v5178_v54  ;;  %v5180_v54 = vpop.f32.mrf.mxu0  ;;  %8135 = vmatpush1.bf16.msra.mxu0 %v16924_v53  ;;  %v19482_v8 = vld [vmem:[%s17890_s22 + $0x120] sm:$0xee]  ;;  %v19485_v38 = vld [vmem:[%s17890_s22 + $0x140] sm:$0x11] }
 0x15b   : > { %24955 = vst [vmem:[#allocation109_spill] sm:$0xff] %v19466_v49  ;;  %v5373_v31 = vpop.f32.mrf.mxu1  ;;  %8328 = vmatpush1.bf16.msra.mxu1 %v16927_v63  ;;  %8136 = vmatprep.subr.bf16.mxu0 %v16932_v27  ;;  %v16936_v53 = vld [vmem:[%s24472_s1 + $0x20] ss:$8 sps:$4 sm:$0xff]   ;;  %v19501_v27 = vsel %vm19212_vm5, %v14677_v12, %v2036_v26  ;;  %v2054_v26 = vrot.slane %v19471_v56, 5 }
 0x15c   : > { %24954 = vst [vmem:[#allocation108_spill] sm:$0xff] %v19462_v55  ;;  %v19479_v55 = vadd.f32 %v5373_v31, %v5180_v54  ;;  %8329 = vmatprep.subr.bf16.mxu1 %v16935_v34  ;;  %v5184_v51 = vpop.f32.mrf.mxu0  ;;  %5875 = vmatmul.mubr.bf16.gmra.mxu0 %v19442_v13  ;;  %v16939_v35 = vld [vmem:[%s24472_s1 + $0x120] ss:$8 sps:$4 sm:$0xff]   ;;  %v2050_v34 = vrot.slane %v19460_v16, 5 }
 0x15d   : > { %v5377_v4 = vpop.f32.mrf.mxu1  ;;  %6068 = vmatmul.mubr.bf16.gmra.mxu1 %v19446_v23  ;;  %5884 = vmatprep.mubr.bf16.mxu0 %v19450_v29  ;;  %v1782_v54 = vld [vmem:[%s17890_s22 + $0x128] sm:$0xee]  ;;  %v1786_v31 = vld [vmem:[%s17890_s22 + $0x148] sm:$0x11] }
 0x15e   : > { %24956 = vst [vmem:[#allocation110_spill] sm:$0xff] %v19479_v55  ;;  %v19495_v63 = vadd.f32 %v5377_v4, %v5184_v51  ;;  %6077 = vmatprep.mubr.bf16.mxu1 %v19466_v49  ;;  %v5186_v23 = vpop.f32.mrf.mxu0  ;;  %v19508_v55 = vsel %vm19212_vm5, %v2042_v0, %v2043_v33  ;;  %v19512_v4 = vsel %vm19212_vm5, %v14678_v3, %v2040_v22  ;;  %v16944_v0 = vld [vmem:[%s24472_s1 + $0x14] ss:$8 sps:$4 sm:$0xff]   ;;  %v16942_v33 = vld [vmem:[%s24472_s1 + $0x10] ss:$8 sps:$4 sm:$0xff]   ;;  %v2060_v49 = vrot.slane %v1786_v31, 5 }
 0x15f   : > { %v5379_v13 = vpop.f32.mrf.mxu1  ;;  %v19516_v51 = vsel %vm19212_vm5, %v2045_v24, %v2046_v25  ;;  %8137 = vmatpush1.bf16.msra.mxu0 %v16930_v46  ;;  %8330 = vmatpush1.bf16.msra.mxu1 %v16933_v52  ;;  %v16947_v22 = vld [vmem:[%s24472_s1 + $0x114] ss:$8 sps:$4 sm:$0xff]   ;;  %v19529_v46 = vcombine.low %v19415_v11, %v19419_v45  ;;  %v2057_v52 = vrot.slane %v19485_v38, 5  ;;  %v16945_v3 = vld [vmem:[%s24472_s1 + $0x110] ss:$8 sps:$4 sm:$0xff]   ;;  %v19547_v11 = vcombine.high %v19501_v27, %v19508_v55  ;;  %v19557_v38 = vld [vmem:[%s17890_s22 + $0x168] sm:$0xff] }
 0x160   : > { %24957 = vst [vmem:[#allocation111_spill] sm:$0xff] %v19495_v63  ;;  %v19519_v12 = vadd.f32 %v5379_v13, %v5186_v23  ;;  %8138 = vmatprep.subr.bf16.mxu0 %v16938_v9  ;;  %8331 = vmatprep.subr.bf16.mxu1 %v16941_v44  ;;  %v5188_v24 = vpop.f32.mrf.mxu0  ;;  %v19533_v13 = vcombine.low %v19424_v7, %v19428_v47  ;;  %v14679_v23 = vrot.slane %v19482_v8, 9  ;;  %v2056_v7 = vrot.slane %v2050_v34, 4  ;;  %v19554_v47 = vld [vmem:[%s17890_s22 + $0x160] sm:$0xff] }
 0x161   : > { %v5381_v16 = vpop.f32.mrf.mxu1  ;;  %24959 = vst [vmem:[#allocation113_spill] sm:$0xff] %v19529_v46  ;;  %24962 = vst [vmem:[#allocation116_spill] sm:$0xff] %v19547_v11  ;;  %v19551_v45 = vcombine.high %v19512_v4, %v19516_v51  ;;  %v16950_v9 = vld [vmem:[%s24472_s1 + $0x4] ss:$8 sps:$4 sm:$0xff]  }
 0x162   : > { %24958 = vst [vmem:[#allocation112_spill] sm:$0xff] %v19519_v12  ;;  %24960 = vst [vmem:[#allocation114_spill] sm:$0xff] %v19533_v13  ;;  %v19543_v56 = vadd.f32 %v5381_v16, %v5188_v24  ;;  %v16953_v44 = vld [vmem:[%s24472_s1 + $0x104] ss:$8 sps:$4 sm:$0xff]   ;;  %v5190_v25 = vpop.f32.mrf.mxu0  ;;  %v14680_v24 = vrot.slane %v1782_v54, 9  ;;  %v2059_v16 = vrot.slane %v2054_v26, 4 }
 0x163   : > { %24963 = vst [vmem:[#allocation117_spill] sm:$0xff] %v19551_v45  ;;  %v5383_v8 = vpop.f32.mrf.mxu1  ;;  %8139 = vmatpush1.bf16.msra.mxu0 %v16936_v53  ;;  %8332 = vmatpush1.bf16.msra.mxu1 %v16939_v35  ;;  %v19576_v54 = vld [vmem:[%s17890_s22 + $0x158] sm:$0xee]  ;;  %v16948_v53 = vld [vmem:[%s24472_s1] ss:$8 sps:$4 sm:$0xff]  }
 0x164   : > { %24961 = vst [vmem:[#allocation115_spill] sm:$0xff] %v19543_v56  ;;  %v19565_v29 = vadd.f32 %v5383_v8, %v5190_v25  ;;  %v19568_v56 = vld [vmem:[%s17890_s22 + $0x150] sm:$0xee]  ;;  %8140 = vmatprep.subr.bf16.mxu0 %v16944_v0  ;;  %8333 = vmatprep.subr.bf16.mxu1 %v16947_v22  ;;  %v5194_v12 = vpop.f32.mrf.mxu0  ;;  %v16951_v35 = vld [vmem:[%s24472_s1 + $0x100] ss:$8 sps:$4 sm:$0xff]   ;;  %v19590_v0 = vsel %vm19212_vm5, %v14679_v23, %v2050_v34  ;;  %v2068_v34 = vrot.slane %v19557_v38, 5 }
 0x165   : > { %v5387_v63 = vpop.f32.mrf.mxu1  ;;  %5885 = vmatmul.mubr.bf16.gmra.mxu0 %v19529_v46  ;;  %6078 = vmatmul.mubr.bf16.gmra.mxu1 %v19533_v13  ;;  %v19594_v22 = vsel %vm19212_vm5, %v2056_v7, %v2057_v52  ;;  %v1792_v25 = vld [vmem:[%s17890_s22 + $0x178] sm:$0x11]  ;;  %v19599_v46 = vsel %vm19212_vm5, %v14680_v24, %v2054_v26  ;;  %v19629_v38 = vld [vmem:[%s17890_s22 + $0x190] sm:$0xff]  ;;  %v16962_v24 = vld [vmem:[%s24472_s1 + $0xe4] ss:$8 sps:$4 sm:$0xff]  }
 0x166   : > { %24964 = vst [vmem:[#allocation118_spill] sm:$0xff] %v19565_v29  ;;  %v19584_v31 = vadd.f32 %v5387_v63, %v5194_v12  ;;  %5894 = vmatprep.mubr.bf16.mxu0 %v19547_v11  ;;  %6087 = vmatprep.mubr.bf16.mxu1 %v19551_v45  ;;  %v5196_v8 = vpop.f32.mrf.mxu0  ;;  %v19603_v63 = vsel %vm19212_vm5, %v2059_v16, %v2060_v49  ;;  %v2064_v12 = vrot.slane %v19554_v47, 5  ;;  %v16956_v26 = vld [vmem:[%s24472_s1 + $0xf4] ss:$8 sps:$4 sm:$0xff]   ;;  %v16965_v16 = vld [vmem:[%s24472_s1 + $0x1e4] ss:$8 sps:$4 sm:$0xff]  }
 0x167   : > { %v5389_v13 = vpop.f32.mrf.mxu1  ;;  %8141 = vmatpush1.bf16.msra.mxu0 %v16942_v33  ;;  %8334 = vmatpush1.bf16.msra.mxu1 %v16945_v3  ;;  %v16959_v49 = vld [vmem:[%s24472_s1 + $0x1f4] ss:$8 sps:$4 sm:$0xff]   ;;  %v19617_v47 = vcombine.low %v19501_v27, %v19508_v55  ;;  %v19625_v33 = vcombine.high %v19590_v0, %v19594_v22  ;;  %v14681_v3 = vrot.slane %v19568_v56, 9  ;;  %v16957_v55 = vld [vmem:[%s24472_s1 + $0x1f0] ss:$8 sps:$4 sm:$0xff]   ;;  %v14682_v56 = vrot.slane %v19576_v54, 9 }
 0x168   : > { %24965 = vst [vmem:[#allocation119_spill] sm:$0xff] %v19584_v31  ;;  %v19607_v23 = vadd.f32 %v5389_v13, %v5196_v8  ;;  %8142 = vmatprep.subr.bf16.mxu0 %v16950_v9  ;;  %8335 = vmatprep.subr.bf16.mxu1 %v16953_v44  ;;  %v5198_v52 = vpop.f32.mrf.mxu0  ;;  %v19621_v13 = vcombine.low %v19512_v4, %v19516_v51  ;;  %v16954_v9 = vld [vmem:[%s24472_s1 + $0xf0] ss:$8 sps:$4 sm:$0xff]   ;;  %v2071_v51 = vrot.slane %v19573_v58, 5  ;;  %v2073_v45 = vrot.slane %v2068_v34, 4 }
 0x169   : > { %v5391_v7 = vpop.f32.mrf.mxu1  ;;  %24967 = vst [vmem:[#allocation121_spill] sm:$0xff] %v19617_v47  ;;  %24969 = vst [vmem:[#allocation123_spill] sm:$0xff] %v19625_v33  ;;  %v19641_v4 = vcombine.high %v19599_v46, %v19603_v63  ;;  %v19646_v44 = vld [vmem:[%s17890_s22 + $0x198] sm:$0xff]  ;;  %v2074_v11 = vrot.slane %v1792_v25, 5  ;;  %v19657_v54 = vld [vmem:[%s17890_s22 + $0x180] sm:$0xee] }
 0x16a   : > { %24966 = vst [vmem:[#allocation120_spill] sm:$0xff] %v19607_v23  ;;  %24968 = vst [vmem:[#allocation122_spill] sm:$0xff] %v19621_v13  ;;  %v19637_v27 = vadd.f32 %v5391_v7, %v5198_v52  ;;  %v5200_v8 = vpop.f32.mrf.mxu0  ;;  %v2070_v7 = vrot.slane %v2064_v12, 4 }
 0x16b   : > { %24971 = vst [vmem:[#allocation125_spill] sm:$0xff] %v19641_v4  ;;  %v5393_v52 = vpop.f32.mrf.mxu1  ;;  %8143 = vmatpush1.bf16.msra.mxu0 %v16948_v53  ;;  %8336 = vmatpush1.bf16.msra.mxu1 %v16951_v35  ;;  %v16960_v53 = vld [vmem:[%s24472_s1 + $0xe0] ss:$8 sps:$4 sm:$0xff]  }
 0x16c   : > { %24970 = vst [vmem:[#allocation124_spill] sm:$0xff] %v19637_v27  ;;  %v19654_v58 = vadd.f32 %v5393_v52, %v5200_v8  ;;  %v19660_v27 = vld [vmem:[%s17890_s22 + $0x1a0] sm:$0x11]  ;;  %8144 = vmatprep.subr.bf16.mxu0 %v16956_v26  ;;  %8337 = vmatprep.subr.bf16.mxu1 %v16959_v49  ;;  %v5204_v23 = vpop.f32.mrf.mxu0  ;;  %v19676_v26 = vsel %vm19212_vm5, %v14681_v3, %v2064_v12  ;;  %v2078_v49 = vrot.slane %v19629_v38, 5  ;;  %v1794_v8 = vld [vmem:[%s17890_s22 + $0x188] sm:$0xee] }
 0x16d   : > { %v5397_v31 = vpop.f32.mrf.mxu1  ;;  %5895 = vmatmul.mubr.bf16.gmra.mxu0 %v19617_v47  ;;  %6088 = vmatmul.mubr.bf16.gmra.mxu1 %v19621_v13  ;;  %v16963_v35 = vld [vmem:[%s24472_s1 + $0x1e0] ss:$8 sps:$4 sm:$0xff]   ;;  %v2082_v12 = vrot.slane %v19646_v44, 5  ;;  %v16968_v38 = vld [vmem:[%s24472_s1 + $0xd4] ss:$8 sps:$4 sm:$0xff]  }
 0x16e   : > { %24972 = vst [vmem:[#allocation126_spill] sm:$0xff] %v19654_v58  ;;  %v19670_v25 = vadd.f32 %v5397_v31, %v5204_v23  ;;  %5904 = vmatprep.mubr.bf16.mxu0 %v19625_v33  ;;  %6097 = vmatprep.mubr.bf16.mxu1 %v19641_v4  ;;  %v1798_v52 = vld [vmem:[%s17890_s22 + $0x1a8] sm:$0x11]  ;;  %v5206_v13 = vpop.f32.mrf.mxu0  ;;  %v19683_v58 = vsel %vm19212_vm5, %v2070_v7, %v2071_v51  ;;  %v16966_v51 = vld [vmem:[%s24472_s1 + $0xd0] ss:$8 sps:$4 sm:$0xff]  }
 0x16f   : > { %v5399_v47 = vpop.f32.mrf.mxu1  ;;  %v19687_v31 = vsel %vm19212_vm5, %v14682_v56, %v2068_v34  ;;  %v19691_v23 = vsel %vm19212_vm5, %v2073_v45, %v2074_v11  ;;  %8145 = vmatpush2.bf16.msra.mxu0 %v16954_v9  ;;  %8338 = vmatpush2.bf16.msra.mxu1 %v16957_v55  ;;  %v16971_v34 = vld [vmem:[%s24472_s1 + $0x1d4] ss:$8 sps:$4 sm:$0xff]   ;;  %v19704_v9 = vcombine.low %v19590_v0, %v19594_v22  ;;  %v2085_v55 = vrot.slane %v19660_v27, 5  ;;  %v16969_v56 = vld [vmem:[%s24472_s1 + $0x1d0] ss:$8 sps:$4 sm:$0xff]   ;;  %v19732_v27 = vld [vmem:[%s17890_s22 + $0x1c8] sm:$0xff] }
 0x170   : > { %24973 = vst [vmem:[#allocation127_spill] sm:$0xff] %v19670_v25  ;;  %v19694_v3 = vadd.f32 %v5399_v47, %v5206_v13  ;;  %8146 = vmatprep.subr.bf16.mxu0 %v16962_v24  ;;  %8339 = vmatprep.subr.bf16.mxu1 %v16965_v16  ;;  %v5208_v11 = vpop.f32.mrf.mxu0  ;;  %v19708_v47 = vcombine.low %v19599_v46, %v19603_v63  ;;  %v14683_v13 = vrot.slane %v19657_v54, 9  ;;  %v2084_v22 = vrot.slane %v2078_v49, 4  ;;  %v19729_v63 = vld [vmem:[%s17890_s22 + $0x1c0] sm:$0xff] }
 0x171   : > { %v5401_v45 = vpop.f32.mrf.mxu1  ;;  %24975 = vst [vmem:[#allocation129_spill] sm:$0xff] %v19704_v9  ;;  %v19722_v0 = vcombine.high %v19676_v26, %v19683_v58  ;;  %v19726_v46 = vcombine.high %v19687_v31, %v19691_v23  ;;  %v16974_v24 = vld [vmem:[%s24472_s1 + $0xc4] ss:$8 sps:$4 sm:$0xff]   ;;  %v2088_v4 = vrot.slane %v1798_v52, 5 }
 0x172   : > { %24974 = vst [vmem:[#allocation128_spill] sm:$0xff] %v19694_v3  ;;  %24976 = vst [vmem:[#allocation130_spill] sm:$0xff] %v19708_v47  ;;  %v19718_v44 = vadd.f32 %v5401_v45, %v5208_v11  ;;  %v16977_v16 = vld [vmem:[%s24472_s1 + $0x1c4] ss:$8 sps:$4 sm:$0xff]   ;;  %v5210_v7 = vpop.f32.mrf.mxu0  ;;  %v14684_v11 = vrot.slane %v1794_v8, 9  ;;  %v2087_v45 = vrot.slane %v2082_v12, 4 }
 0x173   : > { %24978 = vst [vmem:[#allocation132_spill] sm:$0xff] %v19722_v0  ;;  %24979 = vst [vmem:[#allocation133_spill] sm:$0xff] %v19726_v46  ;;  %v5403_v54 = vpop.f32.mrf.mxu1  ;;  %8147 = vmatpush2.bf16.msra.mxu0 %v16960_v53  ;;  %8340 = vmatpush2.bf16.msra.mxu1 %v16963_v35  ;;  %v19746_v3 = vld [vmem:[%s17890_s22 + $0x1d0] sm:$0x11]  ;;  %v19751_v8 = vld [vmem:[%s17890_s22 + $0x1b8] sm:$0xee] }
 0x174   : > { %24977 = vst [vmem:[#allocation131_spill] sm:$0xff] %v19718_v44  ;;  %v19740_v33 = vadd.f32 %v5403_v54, %v5210_v7  ;;  %v19743_v44 = vld [vmem:[%s17890_s22 + $0x1b0] sm:$0xee]  ;;  %8148 = vmatprep.subr.bf16.mxu0 %v16968_v38  ;;  %8341 = vmatprep.subr.bf16.mxu1 %v16971_v34  ;;  %v5214_v25 = vpop.f32.mrf.mxu0  ;;  %v16972_v53 = vld [vmem:[%s24472_s1 + $0xc0] ss:$8 sps:$4 sm:$0xff]   ;;  %v19765_v38 = vsel %vm19212_vm5, %v14683_v13, %v2078_v49  ;;  %v2096_v49 = vrot.slane %v19732_v27, 5 }
 0x175   : > { %v5407_v29 = vpop.f32.mrf.mxu1  ;;  %5905 = vmatmul.mubr.bf16.gmra.mxu0 %v19704_v9  ;;  %6098 = vmatmul.mubr.bf16.gmra.mxu1 %v19708_v47  ;;  %v16975_v35 = vld [vmem:[%s24472_s1 + $0x1c0] ss:$8 sps:$4 sm:$0xff]   ;;  %v19769_v34 = vsel %vm19212_vm5, %v2084_v22, %v2085_v55  ;;  %v1804_v7 = vld [vmem:[%s17890_s22 + $0x1d8] sm:$0x11]  ;;  %v19774_v9 = vsel %vm19212_vm5, %v14684_v11, %v2082_v12  ;;  %v19785_v55 = vld [vmem:[%s17890_s22 + $0x1f0] sm:$0xff]  ;;  %v2099_v27 = vrot.slane %v19746_v3, 5 }
 0x176   : > { %24980 = vst [vmem:[#allocation134_spill] sm:$0xff] %v19740_v33  ;;  %v19759_v52 = vadd.f32 %v5407_v29, %v5214_v25  ;;  %5914 = vmatprep.mubr.bf16.mxu0 %v19722_v0  ;;  %6107 = vmatprep.mubr.bf16.mxu1 %v19726_v46  ;;  %v5216_v54 = vpop.f32.mrf.mxu0  ;;  %v19778_v29 = vsel %vm19212_vm5, %v2087_v45, %v2088_v4  ;;  %v2092_v25 = vrot.slane %v19729_v63, 5  ;;  %v16980_v12 = vld [vmem:[%s24472_s1 + $0xb4] ss:$8 sps:$4 sm:$0xff]   ;;  %v16986_v3 = vld [vmem:[%s24472_s1 + $0xa4] ss:$8 sps:$4 sm:$0xff]  }
 0x177   : > { %v5409_v47 = vpop.f32.mrf.mxu1  ;;  %8149 = vmatpush2.bf16.msra.mxu0 %v16966_v51  ;;  %8342 = vmatpush2.bf16.msra.mxu1 %v16969_v56  ;;  %v16983_v4 = vld [vmem:[%s24472_s1 + $0x1b4] ss:$8 sps:$4 sm:$0xff]   ;;  %v19795_v51 = vcombine.low %v19676_v26, %v19683_v58  ;;  %v14685_v56 = vrot.slane %v19743_v44, 9  ;;  %v19813_v58 = vcombine.high %v19765_v38, %v19769_v34  ;;  %v19817_v26 = vcombine.high %v19774_v9, %v19778_v29  ;;  %v16989_v44 = vld [vmem:[%s24472_s1 + $0x1a4] ss:$8 sps:$4 sm:$0xff]  }
 0x178   : > { %24981 = vst [vmem:[#allocation135_spill] sm:$0xff] %v19759_v52  ;;  %v19782_v13 = vadd.f32 %v5409_v47, %v5216_v54  ;;  %8150 = vmatprep.subr.bf16.mxu0 %v16974_v24  ;;  %8343 = vmatprep.subr.bf16.mxu1 %v16977_v16  ;;  %v5218_v22 = vpop.f32.mrf.mxu0  ;;  %v19799_v47 = vcombine.low %v19687_v31, %v19691_v23  ;;  %v16978_v24 = vld [vmem:[%s24472_s1 + $0xb0] ss:$8 sps:$4 sm:$0xff]   ;;  %v14686_v31 = vrot.slane %v19751_v8, 9  ;;  %v2102_v46 = vrot.slane %v1804_v7, 5 }
 0x179   : > { %v5411_v63 = vpop.f32.mrf.mxu1  ;;  %24983 = vst [vmem:[#allocation137_spill] sm:$0xff] %v19795_v51  ;;  %v16981_v16 = vld [vmem:[%s24472_s1 + $0x1b0] ss:$8 sps:$4 sm:$0xff]   ;;  %24986 = vst [vmem:[#allocation140_spill] sm:$0xff] %v19813_v58  ;;  %v19832_v8 = vld [vmem:[%s17890_s22 + $0x1e0] sm:$0xee] }
 0x17a   : > { %24982 = vst [vmem:[#allocation136_spill] sm:$0xff] %v19782_v13  ;;  %24984 = vst [vmem:[#allocation138_spill] sm:$0xff] %v19799_v47  ;;  %v19809_v11 = vadd.f32 %v5411_v63, %v5218_v22  ;;  %v19821_v23 = vld [vmem:[%s17890_s22 + $0x1f8] sm:$0xff]  ;;  %v5220_v45 = vpop.f32.mrf.mxu0  ;;  %v2098_v22 = vrot.slane %v2092_v25, 4  ;;  %v2101_v63 = vrot.slane %v2096_v49, 4  ;;  %v2106_v7 = vrot.slane %v19785_v55, 5 }
 0x17b   : > { %24987 = vst [vmem:[#allocation141_spill] sm:$0xff] %v19817_v26  ;;  %v5413_v54 = vpop.f32.mrf.mxu1  ;;  %8151 = vmatpush2.bf16.msra.mxu0 %v16972_v53  ;;  %8344 = vmatpush2.bf16.msra.mxu1 %v16975_v35  ;;  %v19837_v52 = vld [vmem:[%s17890_s22 + $0x200] sm:$0x11]  ;;  %v1810_v55 = vld [vmem:[%s17890_s22 + $0x208] sm:$0x11] }
 0x17c   : > { %24985 = vst [vmem:[#allocation139_spill] sm:$0xff] %v19809_v11  ;;  %v19829_v0 = vadd.f32 %v5413_v54, %v5220_v45  ;;  %8152 = vmatprep.subr.bf16.mxu0 %v16980_v12  ;;  %8345 = vmatprep.subr.bf16.mxu1 %v16983_v4  ;;  %v5224_v11 = vpop.f32.mrf.mxu0  ;;  %v16984_v53 = vld [vmem:[%s24472_s1 + $0xa0] ss:$8 sps:$4 sm:$0xff]   ;;  %v19852_v4 = vsel %vm19212_vm5, %v14685_v56, %v2092_v25  ;;  %v2110_v25 = vrot.slane %v19821_v23, 5 }
 0x17d   : > { %v5417_v13 = vpop.f32.mrf.mxu1  ;;  %5915 = vmatmul.mubr.bf16.gmra.mxu0 %v19795_v51  ;;  %6108 = vmatmul.mubr.bf16.gmra.mxu1 %v19799_v47  ;;  %v16987_v35 = vld [vmem:[%s24472_s1 + $0x1a0] ss:$8 sps:$4 sm:$0xff]   ;;  %v19858_v51 = vsel %vm19212_vm5, %v2098_v22, %v2099_v27  ;;  %v16992_v27 = vld [vmem:[%s24472_s1 + $0x94] ss:$8 sps:$4 sm:$0xff]   ;;  %v19879_v23 = vcombine.low %v19765_v38, %v19769_v34  ;;  %v16993_v22 = vld [vmem:[%s24472_s1 + $0x190] ss:$8 sps:$4 sm:$0xff]  }
 0x17e   : > { %24988 = vst [vmem:[#allocation142_spill] sm:$0xff] %v19829_v0  ;;  %v19846_v12 = vadd.f32 %v5417_v13, %v5224_v11  ;;  %5924 = vmatprep.mubr.bf16.mxu0 %v19813_v58  ;;  %6117 = vmatprep.mubr.bf16.mxu1 %v19817_v26  ;;  %v1806_v45 = vld [vmem:[%s17890_s22 + $0x1e8] sm:$0xee]  ;;  %v5226_v54 = vpop.f32.mrf.mxu0  ;;  %v19862_v13 = vsel %vm19212_vm5, %v14686_v31, %v2096_v49  ;;  %v16995_v49 = vld [vmem:[%s24472_s1 + $0x194] ss:$8 sps:$4 sm:$0xff]   ;;  %v2115_v58 = vrot.slane %v2110_v25, 4 }
 0x17f   : > { %v5419_v47 = vpop.f32.mrf.mxu1  ;;  %v19866_v11 = vsel %vm19212_vm5, %v2101_v63, %v2102_v46  ;;  %8153 = vmatpush2.bf16.msra.mxu0 %v16978_v24  ;;  %8346 = vmatpush2.bf16.msra.mxu1 %v16981_v16  ;;  %24991 = vst [vmem:[#allocation145_spill] sm:$0xff] %v19879_v23  ;;  %v14687_v24 = vrot.slane %v19832_v8, 9  ;;  %v2112_v16 = vrot.slane %v2106_v7, 4  ;;  %v19907_v63 = vld [vmem:[%s17890_s22 + $0x228] sm:$0xff]  ;;  %v14688_v26 = vrot.slane %v1806_v45, 9 }
 0x180   : > { %24989 = vst [vmem:[#allocation143_spill] sm:$0xff] %v19846_v12  ;;  %v19869_v56 = vadd.f32 %v5419_v47, %v5226_v54  ;;  %8154 = vmatprep.subr.bf16.mxu0 %v16986_v3  ;;  %8347 = vmatprep.subr.bf16.mxu1 %v16989_v44  ;;  %v5228_v31 = vpop.f32.mrf.mxu0  ;;  %v19883_v47 = vcombine.low %v19774_v9, %v19778_v29  ;;  %v19887_v3 = vld [vmem:[%s17890_s22 + $0x220] sm:$0xff]  ;;  %v16990_v44 = vld [vmem:[%s24472_s1 + $0x90] ss:$8 sps:$4 sm:$0xff]   ;;  %v2113_v29 = vrot.slane %v19837_v52, 5 }
 0x181   : > { %v5421_v46 = vpop.f32.mrf.mxu1  ;;  %v19899_v9 = vcombine.high %v19852_v4, %v19858_v51  ;;  %v19903_v34 = vcombine.high %v19862_v13, %v19866_v11  ;;  %v16998_v8 = vld [vmem:[%s24472_s1 + $0x84] ss:$8 sps:$4 sm:$0xff]   ;;  %v19918_v52 = vld [vmem:[%s17890_s22 + $0x210] sm:$0xee]  ;;  %v19921_v12 = vld [vmem:[%s17890_s22 + $0x230] sm:$0x11] }
 0x182   : > { %24990 = vst [vmem:[#allocation144_spill] sm:$0xff] %v19869_v56  ;;  %24992 = vst [vmem:[#allocation146_spill] sm:$0xff] %v19883_v47  ;;  %v19895_v38 = vadd.f32 %v5421_v46, %v5228_v31  ;;  %v17001_v54 = vld [vmem:[%s24472_s1 + $0x184] ss:$8 sps:$4 sm:$0xff]   ;;  %v5230_v31 = vpop.f32.mrf.mxu0 }
 0x183   : > { %24994 = vst [vmem:[#allocation148_spill] sm:$0xff] %v19899_v9  ;;  %24995 = vst [vmem:[#allocation149_spill] sm:$0xff] %v19903_v34  ;;  %v5423_v46 = vpop.f32.mrf.mxu1  ;;  %8155 = vmatpush2.bf16.msra.mxu0 %v16984_v53  ;;  %8348 = vmatpush2.bf16.msra.mxu1 %v16987_v35  ;;  %v16996_v53 = vld [vmem:[%s24472_s1 + $0x80] ss:$8 sps:$4 sm:$0xff]  }
 0x184   : > { %24993 = vst [vmem:[#allocation147_spill] sm:$0xff] %v19895_v38  ;;  %v2116_v38 = vrot.slane %v1810_v55, 5  ;;  %v19915_v56 = vadd.f32 %v5423_v46, %v5230_v31  ;;  %8156 = vmatprep.subr.bf16.mxu0 %v16992_v27  ;;  %8349 = vmatprep.subr.bf16.mxu1 %v16995_v49  ;;  %v5234_v0 = vpop.f32.mrf.mxu0  ;;  %v16999_v35 = vld [vmem:[%s24472_s1 + $0x180] ss:$8 sps:$4 sm:$0xff]   ;;  %v2107_v55 = vsel %vm19212_vm5, %v14687_v24, %v2106_v7  ;;  %v2120_v27 = vrot.slane %v19887_v3, 5 }
 0x185   : > { %v5427_v33 = vpop.f32.mrf.mxu1  ;;  %5925 = vmatmul.mubr.bf16.gmra.mxu0 %v19879_v23  ;;  %6118 = vmatmul.mubr.bf16.gmra.mxu1 %v19883_v47  ;;  %v1812_v49 = vld [vmem:[%s17890_s22 + $0x218] sm:$0xee]  ;;  %v1816_v31 = vld [vmem:[%s17890_s22 + $0x238] sm:$0x11]  ;;  %v2114_v23 = vsel %vm19212_vm5, %v2112_v16, %v2113_v29  ;;  %v19957_v16 = vcombine.low %v19852_v4, %v19858_v51  ;;  %v14689_v3 = vrot.slane %v19918_v52, 9 }
 0x186   : > { %v19931_v45 = vadd.f32 %v5427_v33, %v5234_v0  ;;  %5934 = vmatprep.mubr.bf16.mxu0 %v19899_v9  ;;  %6127 = vmatprep.mubr.bf16.mxu1 %v19903_v34  ;;  %v5236_v46 = vpop.f32.mrf.mxu0  ;;  %v2111_v33 = vsel %vm19212_vm5, %v14688_v26, %v2110_v25  ;;  %v2117_v0 = vsel %vm19212_vm5, %v2115_v58, %v2116_v38  ;;  %v2124_v34 = vrot.slane %v19907_v63, 5  ;;  %v17010_v24 = vld [vmem:[%s24472_s1 + $0x274] ss:$8 sps:$4 sm:$0xff]  }
 0x187   : > { %v5429_v47 = vpop.f32.mrf.mxu1  ;;  %8157 = vmatpush2.bf16.msra.mxu0 %v16990_v44  ;;  %8350 = vmatpush2.bf16.msra.mxu1 %v16993_v22  ;;  %v17013_v26 = vld [vmem:[%s24472_s1 + $0x374] ss:$8 sps:$4 sm:$0xff]   ;;  %24996 = vst [vmem:[#allocation150_spill] sm:$0xff] %v19957_v16  ;;  %v2127_v44 = vrot.slane %v19921_v12, 5  ;;  %v19967_v38 = vcombine.high %v2107_v55, %v2114_v23  ;;  %v19969_v29 = vcombine.high %v2111_v33, %v2117_v0  ;;  %v2126_v63 = vrot.slane %v2120_v27, 4 }
 0x188   : > { %v19947_v7 = vadd.f32 %v5429_v47, %v5236_v46  ;;  %8158 = vmatprep.subr.bf16.mxu0 %v16998_v8  ;;  %8351 = vmatprep.subr.bf16.mxu1 %v17001_v54  ;;  %v5238_v25 = vpop.f32.mrf.mxu0  ;;  %v19961_v47 = vcombine.low %v19862_v13, %v19866_v11  ;;  %v19972_v8 = vld [vmem:[%s17890_s22 + $0x250] sm:$0xff]  ;;  %v19975_v51 = vld [vmem:[%s17890_s22 + $0x258] sm:$0xff]  ;;  %v14690_v11 = vrot.slane %v1812_v49, 9  ;;  %v2129_v54 = vrot.slane %v2124_v34, 4  ;;  %v1817_v46 = vld [vmem:[%s17890_s22 + $0x240] sm:$0xee] }
 0x189   : > { %v5431_v58 = vpop.f32.mrf.mxu1  ;;  %24999 = vst [vmem:[#allocation153_spill] sm:$0xff] %v19967_v38  ;;  %25000 = vst [vmem:[#allocation154_spill] sm:$0xff] %v19969_v29  ;;  %v2130_v52 = vrot.slane %v1816_v31, 5 }
 0x18a   : > { %24997 = vst [vmem:[#allocation151_spill] sm:$0xff] %v19961_v47  ;;  %v19965_v22 = vadd.f32 %v5431_v58, %v5238_v25  ;;  %v5240_v4 = vpop.f32.mrf.mxu0  ;;  %v1821_v25 = vld [vmem:[%s17890_s22 + $0x260] sm:$0x11] }
 0x18b   : > { %v5433_v13 = vpop.f32.mrf.mxu1  ;;  %8159 = vmatpush2.bf16.msra.mxu0 %v16996_v53  ;;  %8352 = vmatpush2.bf16.msra.mxu1 %v16999_v35  ;;  %v2121_v53 = vsel %vm19212_vm5, %v14689_v3, %v2120_v27  ;;  %v2128_v35 = vsel %vm19212_vm5, %v2126_v63, %v2127_v44  ;;  %v20000_v3 = vcombine.low %v2107_v55, %v2114_v23  ;;  %v1822_v44 = vld [vmem:[%s17890_s22 + $0x268] sm:$0x11]  ;;  %v1825_v23 = vld [vmem:[%s17890_s22 + $0x280] sm:$0xff] }
 0x18c   : > { %24998 = vst [vmem:[#allocation152_spill] sm:$0xff] %v19965_v22  ;;  %v19977_v12 = vadd.f32 %v5433_v13, %v5240_v4  ;;  %8514 = vmatprep.subr.bf16.mxu0 %v17010_v24  ;;  %8707 = vmatprep.subr.bf16.mxu1 %v17013_v26  ;;  %v5470_v58 = vpop.f32.mrf.mxu0  ;;  %v1818_v22 = vld [vmem:[%s17890_s22 + $0x248] sm:$0xee]  ;;  %v2125_v26 = vsel %vm19212_vm5, %v14690_v11, %v2124_v34  ;;  %v2138_v13 = vrot.slane %v19975_v51, 5  ;;  %v14691_v11 = vrot.slane %v1817_v46, 9 }
 0x18d   : > { %v5663_v9 = vpop.f32.mrf.mxu1  ;;  %5935 = vmatmul.mubr.bf16.gmra.mxu0 %v19957_v16  ;;  %6128 = vmatmul.mubr.bf16.gmra.mxu1 %v19961_v47  ;;  %v5471_v49 = vadd.f32 %v5470_v58, %v19013_v60  ;;  %v2131_v4 = vsel %vm19212_vm5, %v2129_v54, %v2130_v52  ;;  %v2134_v60 = vrot.slane %v19972_v8, 5  ;;  %25001 = vst [vmem:[#allocation155_spill] sm:$0xff] %v20000_v3  ;;  %v2141_v8 = vrot.slane %v1821_v25, 5  ;;  %v20014_v55 = vld [vmem:[%s17890_s22 + $0x288] sm:$0xff]  ;;  %v1823_v25 = vld [vmem:[%s17890_s22 + $0x270] sm:$0xee] }
 0x18e   : > { %5944 = vmatprep.mubr.bf16.mxu0 %v19967_v38  ;;  %6137 = vmatprep.mubr.bf16.mxu1 %v19969_v29  ;;  %v5472_v31 = vpop.f32.mrf.mxu0  ;;  %v20003_v38 = vcombine.low %v2111_v33, %v2117_v0  ;;  %v20005_v34 = vcombine.high %v2121_v53, %v2128_v35  ;;  %v20010_v51 = vcombine.high %v2125_v26, %v2131_v4  ;;  %v2143_v0 = vrot.slane %v2138_v13, 4 }
 0x18f   : > { %v5665_v24 = vpop.f32.mrf.mxu1  ;;  %v19997_v58 = vadd.f32 %v5663_v9, %v5471_v49  ;;  %v5473_v27 = vadd.f32 %v5472_v31, %v19025_v57  ;;  %v14692_v57 = vrot.slane %v1818_v22, 9  ;;  %v2140_v33 = vrot.slane %v2134_v60, 4 }
 0x190   : > { %v5474_v63 = vpop.f32.mrf.mxu0  ;;  %25002 = vst [vmem:[#allocation156_spill] sm:$0xff] %v20003_v38  ;;  %25003 = vst [vmem:[#allocation157_spill] sm:$0xff] %v20005_v34  ;;  %v2144_v31 = vrot.slane %v1822_v44, 5 }
 0x191   : > { %v5667_v29 = vpop.f32.mrf.mxu1  ;;  %v20007_v54 = vadd.f32 %v5665_v24, %v5473_v27  ;;  %v5475_v9 = vadd.f32 %v5474_v63, %v19032_v36  ;;  %25004 = vst [vmem:[#allocation158_spill] sm:$0xff] %v20010_v51  ;;  %v1827_v24 = vld [vmem:[%s17890_s22 + $0x290] sm:$0x11]  ;;  %v2148_v36 = vrot.slane %v1825_v23, 5  ;;  %v2139_v23 = vsel %vm19212_vm5, %v14692_v57, %v2138_v13 }
 0x192   : > { %v5476_v52 = vpop.f32.mrf.mxu0  ;;  %v14693_v13 = vrot.slane %v1823_v25, 9 }
 0x193   : > { %v5669_v49 = vpop.f32.mrf.mxu1  ;;  %v20016_v47 = vadd.f32 %v5667_v29, %v5475_v9  ;;  %v5477_v46 = vadd.f32 %v5476_v52, %v19037_v2  ;;  %v2135_v2 = vsel %vm19212_vm5, %v14691_v11, %v2134_v60  ;;  %v2142_v9 = vsel %vm19212_vm5, %v2140_v33, %v2141_v8  ;;  %v1824_v11 = vld [vmem:[%s17890_s22 + $0x278] sm:$0xee] }
 0x194   : > { %v5480_v27 = vpop.f32.mrf.mxu0  ;;  %v2145_v52 = vsel %vm19212_vm5, %v2143_v0, %v2144_v31  ;;  %v20040_v60 = vcombine.low %v2121_v53, %v2128_v35  ;;  %v20044_v33 = vcombine.low %v2125_v26, %v2131_v4  ;;  %v2154_v57 = vrot.slane %v2148_v36, 4  ;;  %v1831_v53 = vld [vmem:[%s17890_s22 + $0x2b0] sm:$0xff]  ;;  %v20055_v35 = vld [vmem:[%s17890_s22 + $0x2b8] sm:$0xff] }
 0x195   : > { %v5673_v16 = vpop.f32.mrf.mxu1  ;;  %5945 = vmatmul.mubr.bf16.gmra.mxu0 %v20000_v3  ;;  %6138 = vmatmul.mubr.bf16.gmra.mxu1 %v20003_v38  ;;  %v20023_v22 = vadd.f32 %v5669_v49, %v5477_v46  ;;  %v5481_v63 = vadd.f32 %v5480_v27, %v19044_v14  ;;  %v2152_v14 = vrot.slane %v20014_v55, 5  ;;  %v1828_v27 = vld [vmem:[%s17890_s22 + $0x298] sm:$0x11]  ;;  %v2155_v0 = vrot.slane %v1827_v24, 5 }
 0x196   : > { %5954 = vmatprep.mubr.bf16.mxu0 %v20005_v34  ;;  %6147 = vmatprep.mubr.bf16.mxu1 %v20010_v51  ;;  %v5482_v29 = vpop.f32.mrf.mxu0  ;;  %25005 = vst [vmem:[#allocation159_spill] sm:$0xff] %v20040_v60  ;;  %25006 = vst [vmem:[#allocation160_spill] sm:$0xff] %v20044_v33  ;;  %v20049_v31 = vcombine.high %v2135_v2, %v2142_v9  ;;  %v14694_v26 = vrot.slane %v1824_v11, 9  ;;  %v2158_v25 = vrot.slane %v1828_v27, 5 }
 0x197   : > { %v5675_v44 = vpop.f32.mrf.mxu1  ;;  %v20037_v49 = vadd.f32 %v5673_v16, %v5481_v63  ;;  %v5483_v46 = vadd.f32 %v5482_v29, %v19057_v39  ;;  %v20051_v39 = vcombine.high %v2139_v23, %v2145_v52  ;;  %v2157_v4 = vrot.slane %v2152_v14, 4 }
 0x198   : > { %v5484_v51 = vpop.f32.mrf.mxu0  ;;  %25007 = vst [vmem:[#allocation161_spill] sm:$0xff] %v20049_v31 }
 0x199   : > { %v5677_v8 = vpop.f32.mrf.mxu1  ;;  %v20046_v55 = vadd.f32 %v5675_v44, %v5483_v46  ;;  %v5485_v16 = vadd.f32 %v5484_v51, %v19066_v18  ;;  %25008 = vst [vmem:[#allocation162_spill] sm:$0xff] %v20051_v39  ;;  %v1829_v44 = vld [vmem:[%s17890_s22 + $0x2a0] sm:$0xee]  ;;  %v1833_v46 = vld [vmem:[%s17890_s22 + $0x2c0] sm:$0x11]  ;;  %v2149_v51 = vsel %vm19212_vm5, %v14693_v13, %v2148_v36  ;;  %v2159_v36 = vsel %vm19212_vm5, %v2157_v4, %v2158_v25 }
 0x19a   : > { %v5486_v63 = vpop.f32.mrf.mxu0  ;;  %v2166_v13 = vrot.slane %v20055_v35, 5  ;;  %v2169_v35 = vrot.slane %v1833_v46, 5  ;;  %v1835_v46 = vld [vmem:[%s17890_s22 + $0x2d0] sm:$0xee] }
 0x19b   : > { %v5679_v29 = vpop.f32.mrf.mxu1  ;;  %v20057_v34 = vadd.f32 %v5677_v8, %v5485_v16  ;;  %v5487_v24 = vadd.f32 %v5486_v63, %v19070_v5  ;;  %v2156_v5 = vsel %vm19212_vm5, %v2154_v57, %v2155_v0  ;;  %v2162_v8 = vrot.slane %v1831_v53, 5  ;;  %v1830_v57 = vld [vmem:[%s17890_s22 + $0x2a8] sm:$0xee]  ;;  %v1834_v0 = vld [vmem:[%s17890_s22 + $0x2c8] sm:$0x11] }
 0x19c   : > { %v5490_v38 = vpop.f32.mrf.mxu0 }
 0x19d   : > { %v5683_v18 = vpop.f32.mrf.mxu1  ;;  %5955 = vmatmul.mubr.bf16.gmra.mxu0 %v20040_v60  ;;  %6148 = vmatmul.mubr.bf16.gmra.mxu1 %v20044_v33  ;;  %v20066_v11 = vadd.f32 %v5679_v29, %v5487_v24  ;;  %v5491_v27 = vadd.f32 %v5490_v38, %v19075_v10  ;;  %v2153_v33 = vsel %vm19212_vm5, %v14694_v26, %v2152_v14  ;;  %v14695_v26 = vrot.slane %v1829_v44, 9 }
 0x19e   : > { %5964 = vmatprep.mubr.bf16.mxu0 %v20049_v31  ;;  %6157 = vmatprep.mubr.bf16.mxu1 %v20051_v39  ;;  %v5492_v16 = vpop.f32.mrf.mxu0  ;;  %v20081_v29 = vcombine.low %v2135_v2, %v2142_v9  ;;  %v20085_v39 = vcombine.low %v2139_v23, %v2145_v52  ;;  %v20087_v14 = vcombine.high %v2149_v51, %v2156_v5  ;;  %v1837_v2 = vld [vmem:[%s17890_s22 + $0x2e0] sm:$0xff]  ;;  %v20096_v9 = vld [vmem:[%s17890_s22 + $0x2e8] sm:$0xff]  ;;  %v14696_v23 = vrot.slane %v1830_v57, 9 }
 0x19f   : > { %v5685_v63 = vpop.f32.mrf.mxu1  ;;  %v20078_v10 = vadd.f32 %v5683_v18, %v5491_v27  ;;  %v5493_v38 = vadd.f32 %v5492_v16, %v19092_v61  ;;  %v20092_v18 = vcombine.high %v2153_v33, %v2159_v36  ;;  %v2168_v61 = vrot.slane %v2162_v8, 4 }
 0x1a0   : > { %25009 = vst [vmem:[#allocation163_spill] sm:$0xff] %v20081_v29  ;;  %v5494_v53 = vpop.f32.mrf.mxu0  ;;  %25010 = vst [vmem:[#allocation164_spill] sm:$0xff] %v20085_v39  ;;  %v2171_v52 = vrot.slane %v2166_v13, 4  ;;  %v2172_v31 = vrot.slane %v1834_v0, 5 }
 0x1a1   : > { %v5687_v24 = vpop.f32.mrf.mxu1  ;;  %25011 = vst [vmem:[#allocation165_spill] sm:$0xff] %v20087_v14  ;;  %v20089_v4 = vadd.f32 %v5685_v63, %v5493_v38  ;;  %v5495_v25 = vadd.f32 %v5494_v53, %v19098_v19  ;;  %25012 = vst [vmem:[#allocation166_spill] sm:$0xff] %v20092_v18  ;;  %v1839_v63 = vld [vmem:[%s17890_s22 + $0x2f0] sm:$0x11]  ;;  %v2163_v19 = vsel %vm19212_vm5, %v14695_v26, %v2162_v8  ;;  %v2176_v53 = vrot.slane %v1837_v2, 5 }
 0x1a2   : > { %v5496_v27 = vpop.f32.mrf.mxu0  ;;  %v2173_v8 = vsel %vm19212_vm5, %v2171_v52, %v2172_v31  ;;  %v2180_v26 = vrot.slane %v20096_v9, 5  ;;  %v14697_v31 = vrot.slane %v1835_v46, 9  ;;  %v2183_v9 = vrot.slane %v1839_v63, 5  ;;  %v1845_v63 = vld [vmem:[%s17890_s22 + $0x320] sm:$0x11] }
 0x1a3   : > { %v5689_v16 = vpop.f32.mrf.mxu1  ;;  %v20098_v60 = vadd.f32 %v5687_v24, %v5495_v25  ;;  %v5497_v44 = vadd.f32 %v5496_v27, %v19121_v32  ;;  %v2170_v32 = vsel %vm19212_vm5, %v2168_v61, %v2169_v35  ;;  %v2167_v27 = vsel %vm19212_vm5, %v14696_v23, %v2166_v13  ;;  %v1836_v35 = vld [vmem:[%s17890_s22 + $0x2d8] sm:$0xee]  ;;  %v1840_v61 = vld [vmem:[%s17890_s22 + $0x2f8] sm:$0x11] }
 0x1a4   : > { %v5500_v38 = vpop.f32.mrf.mxu0  ;;  %v20128_v13 = vcombine.high %v2163_v19, %v2170_v32  ;;  %v20133_v52 = vcombine.high %v2167_v27, %v2173_v8 }
 0x1a5   : > { %v5693_v3 = vpop.f32.mrf.mxu1  ;;  %5965 = vmatmul.mubr.bf16.gmra.mxu0 %v20081_v29  ;;  %6158 = vmatmul.mubr.bf16.gmra.mxu1 %v20085_v39  ;;  %v20107_v57 = vadd.f32 %v5689_v16, %v5497_v44  ;;  %v5501_v0 = vadd.f32 %v5500_v38, %v19131_v59  ;;  %v20122_v44 = vcombine.low %v2149_v51, %v2156_v5  ;;  %v1843_v51 = vld [vmem:[%s17890_s22 + $0x310] sm:$0xff]  ;;  %v1844_v5 = vld [vmem:[%s17890_s22 + $0x318] sm:$0xff]  ;;  %v1841_v29 = vld [vmem:[%s17890_s22 + $0x300] sm:$0xee] }
 0x1a6   : > { %5974 = vmatprep.mubr.bf16.mxu0 %v20087_v14  ;;  %6167 = vmatprep.mubr.bf16.mxu1 %v20092_v18  ;;  %v5502_v24 = vpop.f32.mrf.mxu0  ;;  %v20126_v18 = vcombine.low %v2153_v33, %v2159_v36  ;;  %25015 = vst [vmem:[#allocation169_spill] sm:$0xff] %v20128_v13  ;;  %25016 = vst [vmem:[#allocation170_spill] sm:$0xff] %v20133_v52  ;;  %v14698_v14 = vrot.slane %v1836_v35, 9  ;;  %v2185_v33 = vrot.slane %v2180_v26, 4  ;;  %v2186_v36 = vrot.slane %v1840_v61, 5 }
 0x1a7   : > { %v5695_v25 = vpop.f32.mrf.mxu1  ;;  %v20119_v59 = vadd.f32 %v5693_v3, %v5501_v0  ;;  %v5503_v16 = vadd.f32 %v5502_v24, %v19135_v40  ;;  %25013 = vst [vmem:[#allocation167_spill] sm:$0xff] %v20122_v44  ;;  %v2182_v40 = vrot.slane %v2176_v53, 4 }
 0x1a8   : > { %v5504_v2 = vpop.f32.mrf.mxu0  ;;  %25014 = vst [vmem:[#allocation168_spill] sm:$0xff] %v20126_v18 }
 0x1a9   : > { %v5697_v38 = vpop.f32.mrf.mxu1  ;;  %v20130_v23 = vadd.f32 %v5695_v25, %v5503_v16  ;;  %v5505_v3 = vadd.f32 %v5504_v2, %v19140_v6  ;;  %v2177_v6 = vsel %vm19212_vm5, %v14697_v31, %v2176_v53  ;;  %v2190_v2 = vrot.slane %v1843_v51, 5 }
 0x1aa   : > { %v5506_v0 = vpop.f32.mrf.mxu0  ;;  %v2187_v53 = vsel %vm19212_vm5, %v2185_v33, %v2186_v36  ;;  %v2194_v31 = vrot.slane %v1844_v5, 5 }
 0x1ab   : > { %v5699_v24 = vpop.f32.mrf.mxu1  ;;  %v20137_v39 = vadd.f32 %v5697_v38, %v5505_v3  ;;  %v5507_v46 = vadd.f32 %v5506_v0, %v19143_v30  ;;  %v2184_v30 = vsel %vm19212_vm5, %v2182_v40, %v2183_v9  ;;  %v2181_v0 = vsel %vm19212_vm5, %v14698_v14, %v2180_v26 }
 0x1ac   : > { %v5510_v25 = vpop.f32.mrf.mxu0  ;;  %v20164_v40 = vcombine.low %v2167_v27, %v2173_v8  ;;  %v20166_v51 = vcombine.high %v2177_v6, %v2184_v30  ;;  %v2197_v14 = vrot.slane %v1845_v63, 5  ;;  %v20171_v33 = vcombine.high %v2181_v0, %v2187_v53 }
 0x1ad   : > { %v5703_v16 = vpop.f32.mrf.mxu1  ;;  %5975 = vmatmul.mubr.bf16.gmra.mxu0 %v20122_v44  ;;  %6168 = vmatmul.mubr.bf16.gmra.mxu1 %v20126_v18  ;;  %v20146_v35 = vadd.f32 %v5699_v24, %v5507_v46  ;;  %v5511_v61 = vadd.f32 %v5510_v25, %v19156_v43  ;;  %v20160_v46 = vcombine.low %v2163_v19, %v2170_v32  ;;  %v1842_v25 = vld [vmem:[%s17890_s22 + $0x308] sm:$0xee]  ;;  %v14699_v18 = vrot.slane %v1841_v29, 9 }
 0x1ae   : > { %5984 = vmatprep.mubr.bf16.mxu0 %v20128_v13  ;;  %6177 = vmatprep.mubr.bf16.mxu1 %v20133_v52  ;;  %v5512_v38 = vpop.f32.mrf.mxu0  ;;  %v1846_v52 = vld [vmem:[%s17890_s22 + $0x328] sm:$0x11]  ;;  %25018 = vst [vmem:[#allocation172_spill] sm:$0xff] %v20164_v40  ;;  %25019 = vst [vmem:[#allocation173_spill] sm:$0xff] %v20166_v51  ;;  %v2196_v36 = vrot.slane %v2190_v2, 4  ;;  %v14700_v32 = vrot.slane %v1842_v25, 9 }
 0x1af   : > { %v5705_v3 = vpop.f32.mrf.mxu1  ;;  %v20157_v24 = vadd.f32 %v5703_v16, %v5511_v61  ;;  %v5513_v43 = vadd.f32 %v5512_v38, %v19162_v20  ;;  %25017 = vst [vmem:[#allocation171_spill] sm:$0xff] %v20160_v46  ;;  %25020 = vst [vmem:[#allocation174_spill] sm:$0xff] %v20171_v33  ;;  %v2199_v16 = vrot.slane %v2194_v31, 4  ;;  %v2200_v61 = vrot.slane %v1846_v52, 5 }
 0x1b0   : > { %v5514_v13 = vpop.f32.mrf.mxu0  ;;  %v2191_v63 = vsel %vm19212_vm5, %v14699_v18, %v2190_v2 }
 0x1b1   : > { %v5707_v9 = vpop.f32.mrf.mxu1  ;;  %v20168_v26 = vadd.f32 %v5705_v3, %v5513_v43  ;;  %v5515_v5 = vadd.f32 %v5514_v13, %v19173_v41  ;;  %v2195_v3 = vsel %vm19212_vm5, %v14700_v32, %v2194_v31  ;;  %v2201_v43 = vsel %vm19212_vm5, %v2199_v16, %v2200_v61 }
 0x1b2   : > { %v5516_v20 = vpop.f32.mrf.mxu0  ;;  %v20203_v31 = vcombine.high %v2195_v3, %v2201_v43 }
 0x1b3   : > { %v5709_v19 = vpop.f32.mrf.mxu1  ;;  %v20173_v38 = vadd.f32 %v5707_v9, %v5515_v5  ;;  %v5517_v27 = vadd.f32 %v5516_v20, %v19178_v37  ;;  %v2198_v37 = vsel %vm19212_vm5, %v2196_v36, %v2197_v14  ;;  %v20194_v20 = vcombine.low %v2177_v6, %v2184_v30 }
 0x1b4   : > { %v5520_v8 = vpop.f32.mrf.mxu0  ;;  %v20201_v14 = vcombine.high %v2191_v63, %v2198_v37  ;;  %25024 = vst [vmem:[#allocation178_spill] sm:$0xff] %v20203_v31 }
 0x1b5   : > { %v5713_v44 = vpop.f32.mrf.mxu1  ;;  %5985 = vmatmul.mubr.bf16.gmra.mxu0 %v20160_v46  ;;  %6178 = vmatmul.mubr.bf16.gmra.mxu1 %v20164_v40  ;;  %v20178_v29 = vadd.f32 %v5709_v19, %v5517_v27  ;;  %v5521_v41 = vadd.f32 %v5520_v8, %v19183_v42  ;;  %25021 = vst [vmem:[#allocation175_spill] sm:$0xff] %v20194_v20 }
 0x1b6   : > { %5994 = vmatprep.mubr.bf16.mxu0 %v20166_v51  ;;  %6187 = vmatprep.mubr.bf16.mxu1 %v20171_v33  ;;  %v5522_v13 = vpop.f32.mrf.mxu0  ;;  %v20196_v19 = vcombine.low %v2181_v0, %v2187_v53  ;;  %25023 = vst [vmem:[#allocation177_spill] sm:$0xff] %v20201_v14  ;;  %v17038_v51 = vld [vmem:[%s24472_s1 + $0x220] ss:$8 sps:$4 sm:$0xff]  }
 0x1b7   : > { %v5715_v52 = vpop.f32.mrf.mxu1  ;;  %v20191_v25 = vadd.f32 %v5713_v44, %v5521_v41  ;;  %v5523_v42 = vadd.f32 %v5522_v13, %v19197_v28  ;;  %v20218_v41 = vcombine.low %v2191_v63, %v2198_v37  ;;  %v20220_v13 = vcombine.low %v2195_v3, %v2201_v43  ;;  %v25027_v37 = vld [vmem:[#allocation87_spill] sm:$0xff] }
 0x1b8   : > { %v5524_v9 = vpop.f32.mrf.mxu0  ;;  %25022 = vst [vmem:[#allocation176_spill] sm:$0xff] %v20196_v19 }
 0x1b9   : > { %v5717_v5 = vpop.f32.mrf.mxu1  ;;  %v20198_v18 = vadd.f32 %v5715_v52, %v5523_v42  ;;  %v5525_v2 = vadd.f32 %v5524_v9, %v19205_v15  ;;  %25025 = vst [vmem:[#allocation179_spill] sm:$0xff] %v20218_v41  ;;  %25026 = vst [vmem:[#allocation180_spill] sm:$0xff] %v20220_v13  ;;  %v17004_v42 = vld [vmem:[%s17890_s22 + $0x4] ss:$16 sps:$4 sm:$0xff]   ;;  %v17007_v9 = vld [vmem:[%s17890_s22 + $0xc] ss:$16 sps:$4 sm:$0xff]  }
 0x1ba   : > { %v5526_v36 = vpop.f32.mrf.mxu0 }
 0x1bb   : > { %v5719_v32 = vpop.f32.mrf.mxu1  ;;  %v20205_v44 = vadd.f32 %v5717_v5, %v5525_v2  ;;  %v5527_v28 = vadd.f32 %v5526_v36, %v19216_v62 }
 0x1bc   : > { %v5530_v16 = vpop.f32.mrf.mxu0 }
 0x1bd   : > { %v5723_v61 = vpop.f32.mrf.mxu1  ;;  %5995 = vmatmul.mubr.bf16.gmra.mxu0 %v20194_v20  ;;  %6188 = vmatmul.mubr.bf16.gmra.mxu1 %v20196_v19  ;;  %v20210_v6 = vadd.f32 %v5719_v32, %v5527_v28  ;;  %v5531_v15 = vadd.f32 %v5530_v16, %v19222_v1  ;;  %v17002_v16 = vld [vmem:[%s17890_s22] ss:$16 sps:$4 sm:$0xff]   ;;  %v25042_v19 = vld [vmem:[#allocation104_spill] sm:$0xff] }
 0x1be   : > { %6004 = vmatprep.mubr.bf16.mxu0 %v20201_v14  ;;  %6197 = vmatprep.mubr.bf16.mxu1 %v20203_v31  ;;  %v5532_v30 = vpop.f32.mrf.mxu0  ;;  %v25034_v31 = vld [vmem:[#allocation96_spill] sm:$0xff] }
 0x1bf   : > { %v5725_v0 = vpop.f32.mrf.mxu1  ;;  %v20215_v53 = vadd.f32 %v5723_v61, %v5531_v15  ;;  %v5533_v62 = vadd.f32 %v5532_v30, %v19236_v21  ;;  %v25028_v15 = vld [vmem:[#allocation88_spill] sm:$0xff] }
 0x1c0   : > { %v5534_v27 = vpop.f32.mrf.mxu0 }
 0x1c1   : > { %v5727_v8 = vpop.f32.mrf.mxu1  ;;  %v20222_v52 = vadd.f32 %v5725_v0, %v5533_v62  ;;  %v5535_v1 = vadd.f32 %v5534_v27, %v19244_v17  ;;  %v17008_v0 = vld [vmem:[%s24472_s1 + $0x270] ss:$8 sps:$4 sm:$0xff]  }
 0x1c2   : > { %v5536_v5 = vpop.f32.mrf.mxu0  ;;  %v17011_v62 = vld [vmem:[%s24472_s1 + $0x370] ss:$8 sps:$4 sm:$0xff]  }
 0x1c3   : > { %v5729_v2 = vpop.f32.mrf.mxu1  ;;  %v20227_v36 = vadd.f32 %v5727_v8, %v5535_v1  ;;  %v5537_v21 = vadd.f32 %v5536_v5, %v19256_v50  ;;  %v17005_v50 = vld [vmem:[%s17890_s22 + $0x8] ss:$16 sps:$4 sm:$0xff]   ;;  %v17016_v5 = vld [vmem:[%s24472_s1 + $0x264] ss:$8 sps:$4 sm:$0xff]  }
 0x1c4   : > { %v5540_v32 = vpop.f32.mrf.mxu0 }
 0x1c5   : > { %v5733_v28 = vpop.f32.mrf.mxu1  ;;  %6005 = vmatmul.mubr.bf16.gmra.mxu0 %v20218_v41  ;;  %6198 = vmatmul.mubr.bf16.gmra.mxu1 %v20220_v13  ;;  %v20232_v63 = vadd.f32 %v5729_v2, %v5537_v21  ;;  %v5541_v17 = vadd.f32 %v5540_v32, %v25027_v37  ;;  %v17019_v2 = vld [vmem:[%s24472_s1 + $0x364] ss:$8 sps:$4 sm:$0xff]   ;;  %v25030_v37 = vld [vmem:[#allocation94_spill] sm:$0xff] }
 0x1c6   : > { %8160 = vmatprep.mubr.bf16.mxu0 %v17004_v42  ;;  %8353 = vmatprep.mubr.bf16.mxu1 %v17007_v9  ;;  %v5542_v3 = vpop.f32.mrf.mxu0  ;;  %v25029_v42 = vld [vmem:[#allocation91_spill] sm:$0xff]  ;;  %v25033_v41 = vld [vmem:[#allocation4_spill] sm:$0xff] }
 0x1c7   : > { %v5735_v43 = vpop.f32.mrf.mxu1  ;;  %v20236_v61 = vadd.f32 %v5733_v28, %v5541_v17  ;;  %v5543_v30 = vadd.f32 %v5542_v3, %v25028_v15  ;;  %v17014_v3 = vld [vmem:[%s24472_s1 + $0x260] ss:$8 sps:$4 sm:$0xff]  }
 0x1c8   : > { %v5544_v27 = vpop.f32.mrf.mxu0  ;;  %v25032_v13 = vld [vmem:[#allocation3_spill] sm:$0xff] }
 0x1c9   : > { %v5737_v8 = vpop.f32.mrf.mxu1  ;;  %v20246_v1 = vadd.f32 %v5735_v43, %v5543_v30  ;;  %v5545_v9 = vadd.f32 %v5544_v27, %v25029_v42  ;;  %v17017_v43 = vld [vmem:[%s24472_s1 + $0x360] ss:$8 sps:$4 sm:$0xff]   ;;  %v17022_v27 = vld [vmem:[%s24472_s1 + $0x254] ss:$8 sps:$4 sm:$0xff]  }
 0x1ca   : > { %v5546_v21 = vpop.f32.mrf.mxu0  ;;  %v25031_v42 = vld [vmem:[#allocation95_spill] sm:$0xff] }
 0x1cb   : > { %v5739_v32 = vpop.f32.mrf.mxu1  ;;  %v20255_v28 = vadd.f32 %v5737_v8, %v5545_v9  ;;  %v5547_v17 = vadd.f32 %v5546_v21, %v25030_v37 }
 0x1cc   : > { %v5550_v15 = vpop.f32.mrf.mxu0 }
 0x1cd   : > { %v5743_v30 = vpop.f32.mrf.mxu1  ;;  %8161 = vmatmul.mubr.bf16.vlgmr.msra.gmra.mxu0 %v17002_v16  ;;  %8354 = vmatmul.mubr.bf16.vlgmr.msra.gmra.mxu1 %v17005_v50  ;;  %v20267_v8 = vadd.f32 %v5739_v32, %v5547_v17  ;;  %v5551_v9 = vadd.f32 %v5550_v15, %v25031_v42  ;;  %v17025_v16 = vld [vmem:[%s24472_s1 + $0x354] ss:$8 sps:$4 sm:$0xff]  }
 0x1ce   : > { %8515 = vmatpush1.bf16.msra.mxu0 %v17008_v0  ;;  %8708 = vmatpush1.bf16.msra.mxu1 %v17011_v62  ;;  %v5552_v21 = vpop.f32.mrf.mxu0  ;;  %v17020_v0 = vld [vmem:[%s24472_s1 + $0x250] ss:$8 sps:$4 sm:$0xff]   ;;  %v25035_v62 = vld [vmem:[#allocation99_spill] sm:$0xff] }
 0x1cf   : > { %v5745_v37 = vpop.f32.mrf.mxu1  ;;  %8170 = vmatprep.mubr.bf16.mxu0 %v25032_v13  ;;  %8363 = vmatprep.mubr.bf16.mxu1 %v25033_v41  ;;  %v20275_v50 = vadd.f32 %v5743_v30, %v5551_v9  ;;  %v5553_v14 = vadd.f32 %v5552_v21, %v25034_v31  ;;  %v17023_v41 = vld [vmem:[%s24472_s1 + $0x350] ss:$8 sps:$4 sm:$0xff]   ;;  %v17028_v31 = vld [vmem:[%s24472_s1 + $0x244] ss:$8 sps:$4 sm:$0xff]  }
 0x1d0   : > { %8516 = vmatprep.subr.bf16.mxu0 %v17016_v5  ;;  %8709 = vmatprep.subr.bf16.mxu1 %v17019_v2  ;;  %v5554_v32 = vpop.f32.mrf.mxu0  ;;  %v17031_v5 = vld [vmem:[%s24472_s1 + $0x344] ss:$8 sps:$4 sm:$0xff]  }
 0x1d1   : > { %v5747_v17 = vpop.f32.mrf.mxu1  ;;  %v20284_v13 = vadd.f32 %v5745_v37, %v5553_v14  ;;  %v5555_v15 = vadd.f32 %v5554_v32, %v25035_v62  ;;  %v25036_v14 = vld [vmem:[#allocation102_spill] sm:$0xff]  ;;  %v17026_v32 = vld [vmem:[%s24472_s1 + $0x240] ss:$8 sps:$4 sm:$0xff]  }
 0x1d2   : > { %8517 = vmatpush1.bf16.msra.mxu0 %v17014_v3  ;;  %8710 = vmatpush1.bf16.msra.mxu1 %v17017_v43  ;;  %v5556_v2 = vpop.f32.mrf.mxu0  ;;  %v25037_v3 = vld [vmem:[#allocation5_spill] sm:$0xff]  ;;  %v25038_v43 = vld [vmem:[#allocation6_spill] sm:$0xff]  ;;  %v17029_v62 = vld [vmem:[%s24472_s1 + $0x340] ss:$8 sps:$4 sm:$0xff]  }
 0x1d3   : > { %v5749_v30 = vpop.f32.mrf.mxu1  ;;  %8518 = vmatprep.subr.bf16.mxu0 %v17022_v27  ;;  %8711 = vmatprep.subr.bf16.mxu1 %v17025_v16  ;;  %v20293_v42 = vadd.f32 %v5747_v17, %v5555_v15  ;;  %v5557_v9 = vadd.f32 %v5556_v2, %v25036_v14  ;;  %v25039_v16 = vld [vmem:[#allocation103_spill] sm:$0xff]  ;;  %v25041_v2 = vld [vmem:[#allocation8_spill] sm:$0xff] }
 0x1d4   : > { %v5560_v21 = vpop.f32.mrf.mxu0  ;;  %v25040_v15 = vld [vmem:[#allocation7_spill] sm:$0xff] }
 0x1d5   : > { %v5753_v37 = vpop.f32.mrf.mxu1  ;;  %8171 = vmatmul.mubr.bf16.gmra.mxu0 %v25037_v3  ;;  %8364 = vmatmul.mubr.bf16.gmra.mxu1 %v25038_v43  ;;  %v20304_v27 = vadd.f32 %v5749_v30, %v5557_v9  ;;  %v5561_v17 = vadd.f32 %v5560_v21, %v25039_v16  ;;  %v17034_v30 = vld [vmem:[%s24472_s1 + $0x234] ss:$8 sps:$4 sm:$0xff]  }
 0x1d6   : > { %8180 = vmatprep.mubr.bf16.mxu0 %v25040_v15  ;;  %8373 = vmatprep.mubr.bf16.mxu1 %v25041_v2  ;;  %v5562_v14 = vpop.f32.mrf.mxu0  ;;  %v17037_v9 = vld [vmem:[%s24472_s1 + $0x334] ss:$8 sps:$4 sm:$0xff]  }
 0x1d7   : > { %v5755_v3 = vpop.f32.mrf.mxu1  ;;  %8519 = vmatpush1.bf16.msra.mxu0 %v17020_v0  ;;  %8712 = vmatpush1.bf16.msra.mxu1 %v17023_v41  ;;  %v20309_v43 = vadd.f32 %v5753_v37, %v5561_v17  ;;  %v5563_v20 = vadd.f32 %v5562_v14, %v25042_v19  ;;  %v25043_v0 = vld [vmem:[#allocation108_spill] sm:$0xff]  ;;  %v17032_v19 = vld [vmem:[%s24472_s1 + $0x230] ss:$8 sps:$4 sm:$0xff]  }
 0x1d8   : > { %8520 = vmatprep.subr.bf16.mxu0 %v17028_v31  ;;  %8713 = vmatprep.subr.bf16.mxu1 %v17031_v5  ;;  %v5564_v21 = vpop.f32.mrf.mxu0  ;;  %v17035_v31 = vld [vmem:[%s24472_s1 + $0x330] ss:$8 sps:$4 sm:$0xff]  }
 0x1d9   : > { %v5757_v16 = vpop.f32.mrf.mxu1  ;;  %v20318_v2 = vadd.f32 %v5755_v3, %v5563_v20  ;;  %v5565_v41 = vadd.f32 %v5564_v21, %v25043_v0  ;;  %v25044_v14 = vld [vmem:[#allocation110_spill] sm:$0xff]  ;;  %v17040_v20 = vld [vmem:[%s24472_s1 + $0x224] ss:$8 sps:$4 sm:$0xff]   ;;  %v25045_v21 = vld [vmem:[#allocation9_spill] sm:$0xff] }
 0x1da   : > { %v5566_v37 = vpop.f32.mrf.mxu0  ;;  %v25046_v0 = vld [vmem:[#allocation10_spill] sm:$0xff] }
 0x1db   : > { %v5759_v17 = vpop.f32.mrf.mxu1  ;;  %8521 = vmatpush1.bf16.msra.mxu0 %v17026_v32  ;;  %8714 = vmatpush1.bf16.msra.mxu1 %v17029_v62  ;;  %v20327_v5 = vadd.f32 %v5757_v16, %v5565_v41  ;;  %v5567_v15 = vadd.f32 %v5566_v37, %v25044_v14  ;;  %v17043_v32 = vld [vmem:[%s24472_s1 + $0x324] ss:$8 sps:$4 sm:$0xff]  }
 0x1dc   : > { %8522 = vmatprep.subr.bf16.mxu0 %v17034_v30  ;;  %8715 = vmatprep.subr.bf16.mxu1 %v17037_v9  ;;  %v5570_v62 = vpop.f32.mrf.mxu0  ;;  %v25047_v41 = vld [vmem:[#allocation111_spill] sm:$0xff]  ;;  %v25049_v9 = vld [vmem:[#allocation12_spill] sm:$0xff] }
 0x1dd   : > { %v5763_v3 = vpop.f32.mrf.mxu1  ;;  %8181 = vmatmul.mubr.bf16.gmra.mxu0 %v25045_v21  ;;  %8374 = vmatmul.mubr.bf16.gmra.mxu1 %v25046_v0  ;;  %v20338_v16 = vadd.f32 %v5759_v17, %v5567_v15  ;;  %v5571_v37 = vadd.f32 %v5570_v62, %v25047_v41  ;;  %v25048_v30 = vld [vmem:[#allocation11_spill] sm:$0xff]  ;;  %v25050_v17 = vld [vmem:[#allocation112_spill] sm:$0xff]  ;;  %v17046_v41 = vld [vmem:[%s24472_s1 + $0x214] ss:$8 sps:$4 sm:$0xff]  }
 0x1de   : > { %8190 = vmatprep.mubr.bf16.mxu0 %v25048_v30  ;;  %8383 = vmatprep.mubr.bf16.mxu1 %v25049_v9  ;;  %v5572_v14 = vpop.f32.mrf.mxu0  ;;  %v17041_v0 = vld [vmem:[%s24472_s1 + $0x320] ss:$8 sps:$4 sm:$0xff]  }
 0x1df   : > { %v5765_v33 = vpop.f32.mrf.mxu1  ;;  %8523 = vmatpush1.bf16.msra.mxu0 %v17032_v19  ;;  %8716 = vmatpush1.bf16.msra.mxu1 %v17035_v31  ;;  %v20349_v15 = vadd.f32 %v5763_v3, %v5571_v37  ;;  %v5573_v62 = vadd.f32 %v5572_v14, %v25050_v17  ;;  %v17049_v19 = vld [vmem:[%s24472_s1 + $0x314] ss:$8 sps:$4 sm:$0xff]   ;;  %v25051_v21 = vld [vmem:[#allocation115_spill] sm:$0xff] }
 0x1e0   : > { %8524 = vmatprep.subr.bf16.mxu0 %v17040_v20  ;;  %8717 = vmatprep.subr.bf16.mxu1 %v17043_v32  ;;  %v5574_v31 = vpop.f32.mrf.mxu0  ;;  %v17044_v20 = vld [vmem:[%s24472_s1 + $0x210] ss:$8 sps:$4 sm:$0xff]  }
 0x1e1   : > { %v5767_v9 = vpop.f32.mrf.mxu1  ;;  %v20358_v30 = vadd.f32 %v5765_v33, %v5573_v62  ;;  %v5575_v40 = vadd.f32 %v5574_v31, %v25051_v21  ;;  %v17047_v32 = vld [vmem:[%s24472_s1 + $0x310] ss:$8 sps:$4 sm:$0xff]   ;;  %v17052_v33 = vld [vmem:[%s24472_s1 + $0x204] ss:$8 sps:$4 sm:$0xff]  }
 0x1e2   : > { %v5576_v3 = vpop.f32.mrf.mxu0  ;;  %v25053_v17 = vld [vmem:[#allocation118_spill] sm:$0xff]  ;;  %v25054_v62 = vld [vmem:[#allocation13_spill] sm:$0xff] }
 0x1e3   : > { %v5769_v37 = vpop.f32.mrf.mxu1  ;;  %8525 = vmatpush1.bf16.msra.mxu0 %v17038_v51  ;;  %8718 = vmatpush1.bf16.msra.mxu1 %v17041_v0  ;;  %v20367_v14 = vadd.f32 %v5767_v9, %v5575_v40  ;;  %v5577_v46 = vadd.f32 %v5576_v3, %v25053_v17  ;;  %v17055_v51 = vld [vmem:[%s24472_s1 + $0x304] ss:$8 sps:$4 sm:$0xff]   ;;  %v25055_v31 = vld [vmem:[#allocation14_spill] sm:$0xff] }
 0x1e4   : > { %8526 = vmatprep.subr.bf16.mxu0 %v17046_v41  ;;  %8719 = vmatprep.subr.bf16.mxu1 %v17049_v19  ;;  %v5580_v21 = vpop.f32.mrf.mxu0  ;;  %v25057_v9 = vld [vmem:[#allocation119_spill] sm:$0xff]  ;;  %v25059_v19 = vld [vmem:[#allocation16_spill] sm:$0xff] }
 0x1e5   : > { %25052 = vst [vmem:[#allocation87_spill] sm:$0xff] %v20367_v14  ;;  %v5773_v0 = vpop.f32.mrf.mxu1  ;;  %8191 = vmatmul.mubr.bf16.gmra.mxu0 %v25054_v62  ;;  %8384 = vmatmul.mubr.bf16.gmra.mxu1 %v25055_v31  ;;  %v20378_v40 = vadd.f32 %v5769_v37, %v5577_v46  ;;  %v5581_v3 = vadd.f32 %v5580_v21, %v25057_v9  ;;  %v25058_v41 = vld [vmem:[#allocation15_spill] sm:$0xff]  ;;  %v25061_v37 = vld [vmem:[#allocation120_spill] sm:$0xff]  ;;  %v17058_v9 = vld [vmem:[%s24472_s1 + $0x2f4] ss:$8 sps:$4 sm:$0xff]  }
 0x1e6   : > { %8200 = vmatprep.mubr.bf16.mxu0 %v25058_v41  ;;  %8393 = vmatprep.mubr.bf16.mxu1 %v25059_v19  ;;  %v5582_v17 = vpop.f32.mrf.mxu0  ;;  %v17050_v14 = vld [vmem:[%s24472_s1 + $0x200] ss:$8 sps:$4 sm:$0xff]  }
 0x1e7   : > { %25056 = vst [vmem:[#allocation88_spill] sm:$0xff] %v20378_v40  ;;  %v5775_v48 = vpop.f32.mrf.mxu1  ;;  %8527 = vmatpush1.bf16.msra.mxu0 %v17044_v20  ;;  %8720 = vmatpush1.bf16.msra.mxu1 %v17047_v32  ;;  %v17053_v31 = vld [vmem:[%s24472_s1 + $0x300] ss:$8 sps:$4 sm:$0xff]   ;;  %v20389_v46 = vadd.f32 %v5773_v0, %v5581_v3  ;;  %v5583_v21 = vadd.f32 %v5582_v17, %v25061_v37  ;;  %v17061_v20 = vld [vmem:[%s24472_s1 + $0x3f4] ss:$8 sps:$4 sm:$0xff]  }
 0x1e8   : > { %8528 = vmatprep.subr.bf16.mxu0 %v17052_v33  ;;  %8721 = vmatprep.subr.bf16.mxu1 %v17055_v51  ;;  %v5584_v32 = vpop.f32.mrf.mxu0  ;;  %v25063_v62 = vld [vmem:[#allocation124_spill] sm:$0xff]  ;;  %v17056_v33 = vld [vmem:[%s24472_s1 + $0x2f0] ss:$8 sps:$4 sm:$0xff]  }
 0x1e9   : > { %25060 = vst [vmem:[#allocation91_spill] sm:$0xff] %v20389_v46  ;;  %v5777_v19 = vpop.f32.mrf.mxu1  ;;  %v20398_v41 = vadd.f32 %v5775_v48, %v5583_v21  ;;  %v5585_v40 = vadd.f32 %v5584_v32, %v25063_v62  ;;  %v17059_v51 = vld [vmem:[%s24472_s1 + $0x3f0] ss:$8 sps:$4 sm:$0xff]   ;;  %v17067_v62 = vld [vmem:[%s24472_s1 + $0x3e4] ss:$8 sps:$4 sm:$0xff]  }
 0x1ea   : > { %v5586_v0 = vpop.f32.mrf.mxu0  ;;  %v25065_v48 = vld [vmem:[#allocation126_spill] sm:$0xff]  ;;  %v25066_v32 = vld [vmem:[#allocation17_spill] sm:$0xff]  ;;  %v17062_v46 = vld [vmem:[%s24472_s1 + $0x2e0] ss:$8 sps:$4 sm:$0xff]  }
 0x1eb   : > { %25062 = vst [vmem:[#allocation94_spill] sm:$0xff] %v20398_v41  ;;  %v5779_v3 = vpop.f32.mrf.mxu1  ;;  %8529 = vmatpush1.bf16.msra.mxu0 %v17050_v14  ;;  %8722 = vmatpush1.bf16.msra.mxu1 %v17053_v31  ;;  %v20407_v17 = vadd.f32 %v5777_v19, %v5585_v40  ;;  %v5587_v37 = vadd.f32 %v5586_v0, %v25065_v48  ;;  %v17064_v14 = vld [vmem:[%s24472_s1 + $0x2e4] ss:$8 sps:$4 sm:$0xff]   ;;  %v25067_v41 = vld [vmem:[#allocation18_spill] sm:$0xff] }
 0x1ec   : > { %8530 = vmatprep.subr.bf16.mxu0 %v17058_v9  ;;  %8723 = vmatprep.subr.bf16.mxu1 %v17061_v20  ;;  %v5590_v31 = vpop.f32.mrf.mxu0  ;;  %v25069_v19 = vld [vmem:[#allocation127_spill] sm:$0xff]  ;;  %v17565_v20 = vld [vmem:[%s17890_s22 + $0xfc] ss:$16 sps:$4 sm:$0xff]  }
 0x1ed   : > { %25064 = vst [vmem:[#allocation95_spill] sm:$0xff] %v20407_v17  ;;  %v5783_v21 = vpop.f32.mrf.mxu1  ;;  %8201 = vmatmul.mubr.bf16.gmra.mxu0 %v25066_v32  ;;  %8394 = vmatmul.mubr.bf16.gmra.mxu1 %v25067_v41  ;;  %v20418_v40 = vadd.f32 %v5779_v3, %v5587_v37  ;;  %v5591_v0 = vadd.f32 %v5590_v31, %v25069_v19  ;;  %v17564_v9 = vld [vmem:[%s17890_s22 + $0xf4] ss:$16 sps:$4 sm:$0xff]   ;;  %v17065_v41 = vld [vmem:[%s24472_s1 + $0x3e0] ss:$8 sps:$4 sm:$0xff]  }
 0x1ee   : > { %8210 = vmatprep.mubr.bf16.mxu0 %v17564_v9  ;;  %8403 = vmatprep.mubr.bf16.mxu1 %v17565_v20  ;;  %v5592_v48 = vpop.f32.mrf.mxu0  ;;  %v25071_v37 = vld [vmem:[#allocation128_spill] sm:$0xff]  ;;  %v17070_v19 = vld [vmem:[%s24472_s1 + $0x2d4] ss:$8 sps:$4 sm:$0xff]   ;;  %v25073_v32 = vld [vmem:[#allocation131_spill] sm:$0xff] }
 0x1ef   : > { %25068 = vst [vmem:[#allocation3_spill] sm:$0xff] %v20418_v40  ;;  %v5785_v17 = vpop.f32.mrf.mxu1  ;;  %8531 = vmatpush2.bf16.msra.mxu0 %v17056_v33  ;;  %8724 = vmatpush2.bf16.msra.mxu1 %v17059_v51  ;;  %v20429_v3 = vadd.f32 %v5783_v21, %v5591_v0  ;;  %v5593_v31 = vadd.f32 %v5592_v48, %v25071_v37  ;;  %v17073_v33 = vld [vmem:[%s24472_s1 + $0x3d4] ss:$8 sps:$4 sm:$0xff]   ;;  %v17074_v40 = vld [vmem:[%s24472_s1 + $0x2c0] ss:$8 sps:$4 sm:$0xff]  }
 0x1f0   : > { %8532 = vmatprep.subr.bf16.mxu0 %v17064_v14  ;;  %8725 = vmatprep.subr.bf16.mxu1 %v17067_v62  ;;  %v5594_v51 = vpop.f32.mrf.mxu0  ;;  %v17068_v14 = vld [vmem:[%s24472_s1 + $0x2d0] ss:$8 sps:$4 sm:$0xff]  }
 0x1f1   : > { %25070 = vst [vmem:[#allocation4_spill] sm:$0xff] %v20429_v3  ;;  %v5787_v9 = vpop.f32.mrf.mxu1  ;;  %v20438_v20 = vadd.f32 %v5785_v17, %v5593_v31  ;;  %v5595_v21 = vadd.f32 %v5594_v51, %v25073_v32  ;;  %v17071_v62 = vld [vmem:[%s24472_s1 + $0x3d0] ss:$8 sps:$4 sm:$0xff]  }
 0x1f2   : > { %v5596_v0 = vpop.f32.mrf.mxu0  ;;  %v25075_v17 = vld [vmem:[#allocation134_spill] sm:$0xff] }
 0x1f3   : > { %25072 = vst [vmem:[#allocation96_spill] sm:$0xff] %v20438_v20  ;;  %v5789_v48 = vpop.f32.mrf.mxu1  ;;  %8533 = vmatpush2.bf16.msra.mxu0 %v17062_v46  ;;  %8726 = vmatpush2.bf16.msra.mxu1 %v17065_v41  ;;  %v20447_v37 = vadd.f32 %v5787_v9, %v5595_v21  ;;  %v5597_v31 = vadd.f32 %v5596_v0, %v25075_v17  ;;  %v17076_v41 = vld [vmem:[%s24472_s1 + $0x2c4] ss:$8 sps:$4 sm:$0xff]   ;;  %v17566_v20 = vld [vmem:[%s17890_s22 + $0xf0] ss:$16 sps:$4 sm:$0xff]  }
 0x1f4   : > { %8534 = vmatprep.subr.bf16.mxu0 %v17070_v19  ;;  %8727 = vmatprep.subr.bf16.mxu1 %v17073_v33  ;;  %v17079_v46 = vld [vmem:[%s24472_s1 + $0x3c4] ss:$8 sps:$4 sm:$0xff]   ;;  %v5600_v32 = vpop.f32.mrf.mxu0  ;;  %v17567_v3 = vld [vmem:[%s17890_s22 + $0xf8] ss:$16 sps:$4 sm:$0xff]  }
 0x1f5   : > { %25074 = vst [vmem:[#allocation99_spill] sm:$0xff] %v20447_v37  ;;  %v5793_v51 = vpop.f32.mrf.mxu1  ;;  %8211 = vmatmul.mubr.bf16.gmra.mxu0 %v17566_v20  ;;  %8404 = vmatmul.mubr.bf16.gmra.mxu1 %v17567_v3  ;;  %v20458_v9 = vadd.f32 %v5789_v48, %v5597_v31  ;;  %v25077_v21 = vld [vmem:[#allocation135_spill] sm:$0xff]  ;;  %v17569_v33 = vld [vmem:[%s17890_s22 + $0x12c] ss:$16 sps:$4 sm:$0xff]  }
 0x1f6   : > { %v5601_v0 = vadd.f32 %v5600_v32, %v25077_v21  ;;  %v17568_v19 = vld [vmem:[%s17890_s22 + $0x124] ss:$16 sps:$4 sm:$0xff]   ;;  %8413 = vmatprep.mubr.bf16.mxu1 %v17569_v33  ;;  %v5602_v17 = vpop.f32.mrf.mxu0  ;;  %v17077_v3 = vld [vmem:[%s24472_s1 + $0x3c0] ss:$8 sps:$4 sm:$0xff]  }
 0x1f7   : > { %25076 = vst [vmem:[#allocation102_spill] sm:$0xff] %v20458_v9  ;;  %8220 = vmatprep.mubr.bf16.mxu0 %v17568_v19  ;;  %v5795_v37 = vpop.f32.mrf.mxu1  ;;  %8535 = vmatpush2.bf16.msra.mxu0 %v17068_v14  ;;  %v25079_v48 = vld [vmem:[#allocation136_spill] sm:$0xff]  ;;  %v17082_v32 = vld [vmem:[%s24472_s1 + $0x2b4] ss:$8 sps:$4 sm:$0xff]   ;;  %v25081_v33 = vld [vmem:[#allocation139_spill] sm:$0xff] }
 0x1f8   : > { %8728 = vmatpush2.bf16.msra.mxu1 %v17071_v62  ;;  %v20469_v20 = vadd.f32 %v5793_v51, %v5601_v0  ;;  %v5603_v31 = vadd.f32 %v5602_v17, %v25079_v48  ;;  %8536 = vmatprep.subr.bf16.mxu0 %v17076_v41  ;;  %v17085_v14 = vld [vmem:[%s24472_s1 + $0x3b4] ss:$8 sps:$4 sm:$0xff]   ;;  %v5604_v62 = vpop.f32.mrf.mxu0  ;;  %v17080_v41 = vld [vmem:[%s24472_s1 + $0x2b0] ss:$8 sps:$4 sm:$0xff]   ;;  %v17086_v9 = vld [vmem:[%s24472_s1 + $0x2a0] ss:$8 sps:$4 sm:$0xff]  }
 0x1f9   : > { %8729 = vmatprep.subr.bf16.mxu1 %v17079_v46  ;;  %v5797_v21 = vpop.f32.mrf.mxu1  ;;  %v5605_v51 = vadd.f32 %v5604_v62, %v25081_v33  ;;  %v17083_v46 = vld [vmem:[%s24472_s1 + $0x3b0] ss:$8 sps:$4 sm:$0xff]  }
 0x1fa   : > { %25078 = vst [vmem:[#allocation5_spill] sm:$0xff] %v20469_v20  ;;  %v20478_v19 = vadd.f32 %v5795_v37, %v5603_v31  ;;  %v5606_v0 = vpop.f32.mrf.mxu0  ;;  %v25083_v37 = vld [vmem:[#allocation142_spill] sm:$0xff] }
 0x1fb   : > { %v5799_v17 = vpop.f32.mrf.mxu1  ;;  %8537 = vmatpush2.bf16.msra.mxu0 %v17074_v40  ;;  %v20487_v48 = vadd.f32 %v5797_v21, %v5605_v51  ;;  %v5607_v31 = vadd.f32 %v5606_v0, %v25083_v37  ;;  %v17088_v40 = vld [vmem:[%s24472_s1 + $0x2a4] ss:$8 sps:$4 sm:$0xff]   ;;  %v17571_v20 = vld [vmem:[%s17890_s22 + $0x128] ss:$16 sps:$4 sm:$0xff]  }
 0x1fc   : > { %25080 = vst [vmem:[#allocation6_spill] sm:$0xff] %v20478_v19  ;;  %8730 = vmatpush2.bf16.msra.mxu1 %v17077_v3  ;;  %8538 = vmatprep.subr.bf16.mxu0 %v17082_v32  ;;  %v17091_v3 = vld [vmem:[%s24472_s1 + $0x3a4] ss:$8 sps:$4 sm:$0xff]   ;;  %v5610_v62 = vpop.f32.mrf.mxu0  ;;  %v17570_v19 = vld [vmem:[%s17890_s22 + $0x120] ss:$16 sps:$4 sm:$0xff]  }
 0x1fd   : > { %25082 = vst [vmem:[#allocation103_spill] sm:$0xff] %v20487_v48  ;;  %8731 = vmatprep.subr.bf16.mxu1 %v17085_v14  ;;  %v5803_v33 = vpop.f32.mrf.mxu1  ;;  %8221 = vmatmul.mubr.bf16.gmra.mxu0 %v17570_v19  ;;  %v20498_v21 = vadd.f32 %v5799_v17, %v5607_v31  ;;  %v25084_v51 = vld [vmem:[#allocation143_spill] sm:$0xff]  ;;  %v17573_v14 = vld [vmem:[%s17890_s22 + $0x15c] ss:$16 sps:$4 sm:$0xff]  }
 0x1fe   : > { %8414 = vmatmul.mubr.bf16.gmra.mxu1 %v17571_v20  ;;  %v5611_v0 = vadd.f32 %v5610_v62, %v25084_v51  ;;  %v17572_v32 = vld [vmem:[%s17890_s22 + $0x154] ss:$16 sps:$4 sm:$0xff]   ;;  %v5612_v37 = vpop.f32.mrf.mxu0  ;;  %v17089_v20 = vld [vmem:[%s24472_s1 + $0x3a0] ss:$8 sps:$4 sm:$0xff]  }
 0x1ff   : > { %8230 = vmatprep.mubr.bf16.mxu0 %v17572_v32  ;;  %8423 = vmatprep.mubr.bf16.mxu1 %v17573_v14  ;;  %v5805_v48 = vpop.f32.mrf.mxu1  ;;  %v25085_v17 = vld [vmem:[#allocation144_spill] sm:$0xff]  ;;  %v17094_v62 = vld [vmem:[%s24472_s1 + $0x294] ss:$8 sps:$4 sm:$0xff]   ;;  %v25087_v14 = vld [vmem:[#allocation147_spill] sm:$0xff] }
 0x200   : > { %8539 = vmatpush2.bf16.msra.mxu0 %v17080_v41  ;;  %8732 = vmatpush2.bf16.msra.mxu1 %v17083_v46  ;;  %v20509_v19 = vadd.f32 %v5803_v33, %v5611_v0  ;;  %v5613_v31 = vadd.f32 %v5612_v37, %v25085_v17  ;;  %v17097_v41 = vld [vmem:[%s24472_s1 + $0x394] ss:$8 sps:$4 sm:$0xff]   ;;  %v5614_v46 = vpop.f32.mrf.mxu0 }
 0x201   : > { %8540 = vmatprep.subr.bf16.mxu0 %v17088_v40  ;;  %8733 = vmatprep.subr.bf16.mxu1 %v17091_v3  ;;  %v5807_v51 = vpop.f32.mrf.mxu1  ;;  %v5615_v33 = vadd.f32 %v5614_v46, %v25087_v14  ;;  %v17092_v40 = vld [vmem:[%s24472_s1 + $0x290] ss:$8 sps:$4 sm:$0xff]  }
 0x202   : > { %v20518_v32 = vadd.f32 %v5805_v48, %v5613_v31  ;;  %v5616_v0 = vpop.f32.mrf.mxu0  ;;  %v17095_v3 = vld [vmem:[%s24472_s1 + $0x390] ss:$8 sps:$4 sm:$0xff]  }
 0x203   : > { %v5809_v37 = vpop.f32.mrf.mxu1  ;;  %v20527_v17 = vadd.f32 %v5807_v51, %v5615_v33  ;;  %v5617_v48 = vadd.f32 %v5616_v0, %v19915_v56  ;;  %v17574_v14 = vld [vmem:[%s17890_s22 + $0x150] ss:$16 sps:$4 sm:$0xff]  }
 0x204   : > { %25086 = vst [vmem:[#allocation104_spill] sm:$0xff] %v20518_v32  ;;  %8541 = vmatpush2.bf16.msra.mxu0 %v17086_v9  ;;  %8734 = vmatpush2.bf16.msra.mxu1 %v17089_v20  ;;  %v17100_v9 = vld [vmem:[%s24472_s1 + $0x284] ss:$8 sps:$4 sm:$0xff]   ;;  %v5620_v31 = vpop.f32.mrf.mxu0  ;;  %v17575_v32 = vld [vmem:[%s17890_s22 + $0x158] ss:$16 sps:$4 sm:$0xff]  }
 0x205   : > { %25088 = vst [vmem:[#allocation108_spill] sm:$0xff] %v20527_v17  ;;  %8542 = vmatprep.subr.bf16.mxu0 %v17094_v62  ;;  %8735 = vmatprep.subr.bf16.mxu1 %v17097_v41  ;;  %v17103_v20 = vld [vmem:[%s24472_s1 + $0x384] ss:$8 sps:$4 sm:$0xff]   ;;  %v5813_v46 = vpop.f32.mrf.mxu1  ;;  %v20538_v51 = vadd.f32 %v5809_v37, %v5617_v48  ;;  %v5621_v56 = vadd.f32 %v5620_v31, %v19931_v45  ;;  %v17098_v17 = vld [vmem:[%s24472_s1 + $0x280] ss:$8 sps:$4 sm:$0xff]  }
 0x206   : > { %8231 = vmatmul.mubr.bf16.gmra.mxu0 %v17574_v14  ;;  %8424 = vmatmul.mubr.bf16.gmra.mxu1 %v17575_v32  ;;  %v17576_v62 = vld [vmem:[%s17890_s22 + $0x184] ss:$16 sps:$4 sm:$0xff]   ;;  %v17577_v41 = vld [vmem:[%s17890_s22 + $0x18c] ss:$16 sps:$4 sm:$0xff]   ;;  %v5622_v33 = vpop.f32.mrf.mxu0  ;;  %v17101_v32 = vld [vmem:[%s24472_s1 + $0x380] ss:$8 sps:$4 sm:$0xff]  }
 0x207   : > { %8240 = vmatprep.mubr.bf16.mxu0 %v17576_v62  ;;  %8433 = vmatprep.mubr.bf16.mxu1 %v17577_v41  ;;  %v5815_v0 = vpop.f32.mrf.mxu1  ;;  %v20549_v37 = vadd.f32 %v5813_v46, %v5621_v56  ;;  %v5623_v45 = vadd.f32 %v5622_v33, %v19947_v7  ;;  %v17106_v48 = vld [vmem:[%s24472_s1 + $0x474] ss:$8 sps:$4 sm:$0xff]   ;;  %v25090_v46 = vld [vmem:[#allocation152_spill] sm:$0xff] }
 0x208   : > { %8543 = vmatpush2.bf16.msra.mxu0 %v17092_v40  ;;  %8736 = vmatpush2.bf16.msra.mxu1 %v17095_v3  ;;  %v17109_v40 = vld [vmem:[%s24472_s1 + $0x574] ss:$8 sps:$4 sm:$0xff]   ;;  %v5624_v3 = vpop.f32.mrf.mxu0 }
 0x209   : > { %25089 = vst [vmem:[#allocation110_spill] sm:$0xff] %v20549_v37  ;;  %8544 = vmatprep.subr.bf16.mxu0 %v17100_v9  ;;  %8737 = vmatprep.subr.bf16.mxu1 %v17103_v20  ;;  %v5817_v31 = vpop.f32.mrf.mxu1  ;;  %v20558_v14 = vadd.f32 %v5815_v0, %v5623_v45  ;;  %v5625_v56 = vadd.f32 %v5624_v3, %v25090_v46  ;;  %v17578_v37 = vld [vmem:[%s17890_s22 + $0x180] ss:$16 sps:$4 sm:$0xff]   ;;  %v17579_v0 = vld [vmem:[%s17890_s22 + $0x188] ss:$16 sps:$4 sm:$0xff]  }
 0x20a   : > { %v5626_v62 = vpop.f32.mrf.mxu0  ;;  %v17580_v46 = vld [vmem:[%s17890_s22 + $0x1b4] ss:$16 sps:$4 sm:$0xff]  }
 0x20b   : > { %v5819_v7 = vpop.f32.mrf.mxu1  ;;  %v20561_v9 = vadd.f32 %v5817_v31, %v5625_v56  ;;  %v5627_v20 = vadd.f32 %v5626_v62, %v19977_v12 }
 0x20c   : > { %8545 = vmatpush2.bf16.msra.mxu0 %v17098_v17  ;;  %8738 = vmatpush2.bf16.msra.mxu1 %v17101_v32  ;;  %v5856_v41 = vpop.f32.mrf.mxu0  ;;  %v17581_v17 = vld [vmem:[%s17890_s22 + $0x1bc] ss:$16 sps:$4 sm:$0xff]  }
 0x20d   : > { %8900 = vmatprep.subr.bf16.mxu0 %v17106_v48  ;;  %9093 = vmatprep.subr.bf16.mxu1 %v17109_v40  ;;  %v6049_v33 = vpop.f32.mrf.mxu1  ;;  %v20566_v45 = vadd.f32 %v5819_v7, %v5627_v20  ;;  %v5857_v3 = vadd.f32 %v5856_v41, %v19997_v58 }
 0x20e   : > { %8241 = vmatmul.mubr.bf16.gmra.mxu0 %v17578_v37  ;;  %8434 = vmatmul.mubr.bf16.gmra.mxu1 %v17579_v0  ;;  %v5858_v32 = vpop.f32.mrf.mxu0 }
 0x20f   : > { %8250 = vmatprep.mubr.bf16.mxu0 %v17580_v46  ;;  %8443 = vmatprep.mubr.bf16.mxu1 %v17581_v17  ;;  %v6051_v12 = vpop.f32.mrf.mxu1  ;;  %v20571_v48 = vadd.f32 %v6049_v33, %v5857_v3  ;;  %v5859_v40 = vadd.f32 %v5858_v32, %v20007_v54  ;;  %v17582_v33 = vld [vmem:[%s17890_s22 + $0x1b0] ss:$16 sps:$4 sm:$0xff]   ;;  %v17583_v3 = vld [vmem:[%s17890_s22 + $0x1b8] ss:$16 sps:$4 sm:$0xff]   ;;  %v17584_v32 = vld [vmem:[%s17890_s22 + $0x1e4] ss:$16 sps:$4 sm:$0xff]  }
 0x210   : > { %v5860_v31 = vpop.f32.mrf.mxu0 }
 0x211   : > { %v6053_v37 = vpop.f32.mrf.mxu1  ;;  %v20574_v56 = vadd.f32 %v6051_v12, %v5859_v40  ;;  %v5861_v58 = vadd.f32 %v5860_v31, %v20016_v47  ;;  %v17585_v12 = vld [vmem:[%s17890_s22 + $0x1ec] ss:$16 sps:$4 sm:$0xff]  }
 0x212   : > { %v5862_v62 = vpop.f32.mrf.mxu0 }
 0x213   : > { %v6055_v7 = vpop.f32.mrf.mxu1  ;;  %v20577_v20 = vadd.f32 %v6053_v37, %v5861_v58  ;;  %v5863_v41 = vadd.f32 %v5862_v62, %v20023_v22 }
 0x214   : > { %v5866_v0 = vpop.f32.mrf.mxu0 }
 0x215   : > { %v6059_v46 = vpop.f32.mrf.mxu1  ;;  %v20582_v54 = vadd.f32 %v6055_v7, %v5863_v41  ;;  %v5867_v17 = vadd.f32 %v5866_v0, %v20037_v49 }
 0x216   : > { %8251 = vmatmul.mubr.bf16.gmra.mxu0 %v17582_v33  ;;  %8444 = vmatmul.mubr.bf16.gmra.mxu1 %v17583_v3  ;;  %v5868_v47 = vpop.f32.mrf.mxu0 }
 0x217   : > { %8260 = vmatprep.mubr.bf16.mxu0 %v17584_v32  ;;  %8453 = vmatprep.mubr.bf16.mxu1 %v17585_v12  ;;  %v6061_v40 = vpop.f32.mrf.mxu1  ;;  %v20587_v31 = vadd.f32 %v6059_v46, %v5867_v17  ;;  %v5869_v22 = vadd.f32 %v5868_v47, %v20046_v55  ;;  %v17586_v46 = vld [vmem:[%s17890_s22 + $0x1e0] ss:$16 sps:$4 sm:$0xff]   ;;  %v17587_v17 = vld [vmem:[%s17890_s22 + $0x1e8] ss:$16 sps:$4 sm:$0xff]   ;;  %v17588_v47 = vld [vmem:[%s17890_s22 + $0x214] ss:$16 sps:$4 sm:$0xff]  }
 0x218   : > { %v5870_v37 = vpop.f32.mrf.mxu0 }
 0x219   : > { %v6063_v58 = vpop.f32.mrf.mxu1  ;;  %v20590_v62 = vadd.f32 %v6061_v40, %v5869_v22  ;;  %v5871_v49 = vadd.f32 %v5870_v37, %v20057_v34  ;;  %v17589_v40 = vld [vmem:[%s17890_s22 + $0x21c] ss:$16 sps:$4 sm:$0xff]  }
 0x21a   : > { %v5872_v7 = vpop.f32.mrf.mxu0 }
 0x21b   : > { %v6065_v41 = vpop.f32.mrf.mxu1  ;;  %v20593_v0 = vadd.f32 %v6063_v58, %v5871_v49  ;;  %v5873_v33 = vadd.f32 %v5872_v7, %v20066_v11 }
 0x21c   : > { %v5876_v3 = vpop.f32.mrf.mxu0 }
 0x21d   : > { %v6069_v32 = vpop.f32.mrf.mxu1  ;;  %v20598_v55 = vadd.f32 %v6065_v41, %v5873_v33  ;;  %v5877_v12 = vadd.f32 %v5876_v3, %v20078_v10 }
 0x21e   : > { %8261 = vmatmul.mubr.bf16.gmra.mxu0 %v17586_v46  ;;  %8454 = vmatmul.mubr.bf16.gmra.mxu1 %v17587_v17  ;;  %v5878_v34 = vpop.f32.mrf.mxu0 }
 0x21f   : > { %8270 = vmatprep.mubr.bf16.mxu0 %v17588_v47  ;;  %8463 = vmatprep.mubr.bf16.mxu1 %v17589_v40  ;;  %v6071_v22 = vpop.f32.mrf.mxu1  ;;  %v20603_v37 = vadd.f32 %v6069_v32, %v5877_v12  ;;  %v5879_v11 = vadd.f32 %v5878_v34, %v20089_v4  ;;  %v17590_v32 = vld [vmem:[%s17890_s22 + $0x210] ss:$16 sps:$4 sm:$0xff]   ;;  %v17591_v12 = vld [vmem:[%s17890_s22 + $0x218] ss:$16 sps:$4 sm:$0xff]   ;;  %v17592_v34 = vld [vmem:[%s17890_s22 + $0x244] ss:$16 sps:$4 sm:$0xff]  }
 0x220   : > { %v5880_v58 = vpop.f32.mrf.mxu0 }
 0x221   : > { %25091 = vst [vmem:[#allocation111_spill] sm:$0xff] %v20603_v37  ;;  %v6073_v49 = vpop.f32.mrf.mxu1  ;;  %v20606_v7 = vadd.f32 %v6071_v22, %v5879_v11  ;;  %v5881_v10 = vadd.f32 %v5880_v58, %v20098_v60  ;;  %v17593_v60 = vld [vmem:[%s17890_s22 + $0x24c] ss:$16 sps:$4 sm:$0xff]  }
 0x222   : > { %v5882_v41 = vpop.f32.mrf.mxu0 }
 0x223   : > { %25092 = vst [vmem:[#allocation112_spill] sm:$0xff] %v20606_v7  ;;  %v6075_v33 = vpop.f32.mrf.mxu1  ;;  %v20609_v3 = vadd.f32 %v6073_v49, %v5881_v10  ;;  %v5883_v46 = vadd.f32 %v5882_v41, %v20107_v57 }
 0x225   : > { %25093 = vst [vmem:[#allocation115_spill] sm:$0xff] %v20609_v3  ;;  %v5886_v17 = vpop.f32.mrf.mxu0  ;;  %v6079_v47 = vpop.f32.mrf.mxu1  ;;  %v20614_v4 = vadd.f32 %v6075_v33, %v5883_v46  ;;  %v626_v33 = vld [vmem:[%s17890_s22] sm:$0xff] }
 0x226   : > { %8271 = vmatmul.mubr.bf16.gmra.mxu0 %v17590_v32  ;;  %8464 = vmatmul.mubr.bf16.gmra.mxu1 %v17591_v12  ;;  %v5887_v40 = vadd.f32 %v5886_v17, %v20119_v59  ;;  %v628_v32 = vld [vmem:[%s17890_s22 + $0x10] sm:$0xff] }
 0x227   : > { %25094 = vst [vmem:[#allocation118_spill] sm:$0xff] %v20614_v4  ;;  %8280 = vmatprep.mubr.bf16.mxu0 %v17592_v34  ;;  %8473 = vmatprep.mubr.bf16.mxu1 %v17593_v60  ;;  %v5888_v22 = vpop.f32.mrf.mxu0  ;;  %v6081_v57 = vpop.f32.mrf.mxu1  ;;  %v629_v34 = vld [vmem:[%s17890_s22 + $0x18] sm:$0xff] }
 0x228   : > { %v20619_v11 = vadd.f32 %v6079_v47, %v5887_v40  ;;  %v5889_v58 = vadd.f32 %v5888_v22, %v20130_v23  ;;  %v627_v40 = vld [vmem:[%s17890_s22 + $0x8] sm:$0xff]  ;;  %v17594_v22 = vld [vmem:[%s17890_s22 + $0x240] ss:$16 sps:$4 sm:$0xff]   ;;  %v775_v7 = vshrl.u32 %v629_v34, 16 }
 0x229   : > { %v5890_v49 = vpop.f32.mrf.mxu0  ;;  %v6083_v10 = vpop.f32.mrf.mxu1  ;;  %v752_v4 = vshrl.u32 %v627_v40, 16  ;;  %v755_v3 = vshll.u32 %v627_v40, 16 }
 0x22a   : > { %25095 = vst [vmem:[#allocation119_spill] sm:$0xff] %v20619_v11  ;;  %v20622_v41 = vadd.f32 %v6081_v57, %v5889_v58  ;;  %v5891_v59 = vadd.f32 %v5890_v49, %v20137_v39  ;;  %v17595_v57 = vld [vmem:[%s17890_s22 + $0x248] ss:$16 sps:$4 sm:$0xff]   ;;  %v738_v58 = vshrl.u32 %v626_v33, 16  ;;  %v741_v39 = vshll.u32 %v626_v33, 16 }
 0x22b   : > { %v5892_v46 = vpop.f32.mrf.mxu0  ;;  %v6085_v17 = vpop.f32.mrf.mxu1  ;;  %v17596_v11 = vld [vmem:[%s17890_s22 + $0x274] ss:$16 sps:$4 sm:$0xff]  }
 0x22c   : > { %25096 = vst [vmem:[#allocation120_spill] sm:$0xff] %v20622_v41  ;;  %v20627_v12 = vadd.f32 %v6083_v10, %v5891_v59  ;;  %v5893_v47 = vadd.f32 %v5892_v46, %v20146_v35  ;;  %v17597_v10 = vld [vmem:[%s17890_s22 + $0x27c] ss:$16 sps:$4 sm:$0xff]   ;;  %v747_v59 = vshll.u32 %v628_v32, 16  ;;  %v765_v35 = vshrl.u32 %v628_v32, 16 }
 0x22d   : > { %v5896_v23 = vpop.f32.mrf.mxu0  ;;  %v6089_v60 = vpop.f32.mrf.mxu1 }
 0x22e   : > { %25097 = vst [vmem:[#allocation124_spill] sm:$0xff] %v20627_v12  ;;  %8281 = vmatmul.mubr.bf16.gmra.mxu0 %v17594_v22  ;;  %8474 = vmatmul.mubr.bf16.gmra.mxu1 %v17595_v57  ;;  %v20634_v49 = vadd.f32 %v6085_v17, %v5893_v47  ;;  %v5897_v41 = vadd.f32 %v5896_v23, %v20157_v24  ;;  %v761_v22 = vshll.u32 %v629_v34, 16  ;;  %v740_v24 = vrot.slane %v738_v58, 4 }
 0x22f   : > { %8290 = vmatprep.mubr.bf16.mxu0 %v17596_v11  ;;  %8483 = vmatprep.mubr.bf16.mxu1 %v17597_v10  ;;  %v5898_v46 = vpop.f32.mrf.mxu0  ;;  %v6091_v12 = vpop.f32.mrf.mxu1  ;;  %v743_v11 = vrot.slane %v741_v39, 5  ;;  %v20645_v10 = vrot.slane %v747_v59, 5  ;;  %v767_v40 = vrot.slane %v765_v35, 4  ;;  %v631_v39 = vld [vmem:[%s17890_s22 + $0x28] sm:$0x11] }
 0x230   : > { %25098 = vst [vmem:[#allocation126_spill] sm:$0xff] %v20634_v49  ;;  %v20639_v57 = vadd.f32 %v6089_v60, %v5897_v41  ;;  %v5899_v33 = vadd.f32 %v5898_v46, %v20168_v26  ;;  %v630_v41 = vld [vmem:[%s17890_s22 + $0x20] sm:$0x11]  ;;  %v754_v60 = vrot.slane %v752_v4, 4  ;;  %v757_v26 = vrot.slane %v755_v3, 5 }
 0x231   : > { %v5900_v17 = vpop.f32.mrf.mxu0  ;;  %v6093_v47 = vpop.f32.mrf.mxu1  ;;  %v763_v46 = vrot.slane %v761_v22, 5  ;;  %v17598_v59 = vld [vmem:[%s17890_s22 + $0x270] ss:$16 sps:$4 sm:$0xff]   ;;  %v17600_v4 = vld [vmem:[%s17890_s22 + $0x2a4] ss:$16 sps:$4 sm:$0xff]   ;;  %v771_v22 = vshll.u32 %v630_v41, 16 }
 0x232   : > { %25099 = vst [vmem:[#allocation127_spill] sm:$0xff] %v20639_v57  ;;  %v20642_v23 = vadd.f32 %v6091_v12, %v5899_v33  ;;  %v5901_v32 = vadd.f32 %v5900_v17, %v20173_v38  ;;  %v777_v57 = vrot.slane %v775_v7, 4  ;;  %v17599_v17 = vld [vmem:[%s17890_s22 + $0x278] ss:$16 sps:$4 sm:$0xff]   ;;  %v17601_v3 = vld [vmem:[%s17890_s22 + $0x2ac] ss:$16 sps:$4 sm:$0xff]   ;;  %v744_v7 = vor.u32 %v743_v11, %v740_v24 }
 0x233   : > { %v5902_v49 = vpop.f32.mrf.mxu0  ;;  %v6095_v34 = vpop.f32.mrf.mxu1  ;;  %v781_v37 = vshll.u32 %v631_v39, 16  ;;  %v773_v41 = vrot.slane %v771_v22, 5  ;;  %v17604_v22 = vld [vmem:[%s17890_s22 + $0x2d4] ss:$16 sps:$4 sm:$0xff]  }
 0x234   : > { %25100 = vst [vmem:[#allocation128_spill] sm:$0xff] %v20642_v23  ;;  %v20648_v58 = vadd.f32 %v6093_v47, %v5901_v32  ;;  %v5903_v12 = vadd.f32 %v5902_v49, %v20178_v29  ;;  %v768_v29 = vor.u32 %v767_v40, %v20645_v10  ;;  %v758_v49 = vor.u32 %v757_v26, %v754_v60 }
 0x235   : > { %v5906_v33 = vpop.f32.mrf.mxu0  ;;  %v6099_v38 = vpop.f32.mrf.mxu1  ;;  %v745_v11 = vrot.slane %v744_v7, 4  ;;  %v783_v26 = vrot.slane %v781_v37, 5 }
 0x236   : > { %25101 = vst [vmem:[#allocation131_spill] sm:$0xff] %v20648_v58  ;;  %8291 = vmatmul.mubr.bf16.gmra.mxu0 %v17598_v59  ;;  %8484 = vmatmul.mubr.bf16.gmra.mxu1 %v17599_v17  ;;  %v20654_v35 = vadd.f32 %v6095_v34, %v5903_v12  ;;  %v5907_v23 = vadd.f32 %v5906_v33, %v20191_v25  ;;  %v769_v60 = vrot.slane %v768_v29, 4 }
 0x237   : > { %8300 = vmatprep.mubr.bf16.mxu0 %v17600_v4  ;;  %8493 = vmatprep.mubr.bf16.mxu1 %v17601_v3  ;;  %v5908_v47 = vpop.f32.mrf.mxu0  ;;  %v6101_v32 = vpop.f32.mrf.mxu1  ;;  %v778_v58 = vor.u32 %v777_v57, %v763_v46  ;;  %v759_v57 = vrot.slane %v758_v49, 4  ;;  %v17602_v3 = vld [vmem:[%s17890_s22 + $0x2a0] ss:$16 sps:$4 sm:$0xff]  }
 0x238   : > { %v20660_v59 = vadd.f32 %v6099_v38, %v5907_v23  ;;  %v5909_v34 = vadd.f32 %v5908_v47, %v20198_v18  ;;  %v17603_v47 = vld [vmem:[%s17890_s22 + $0x2a8] ss:$16 sps:$4 sm:$0xff]   ;;  %v774_v49 = vsel %vm18366_vm2, %v769_v60, %v773_v41 }
 0x239   : > { %v5910_v12 = vpop.f32.mrf.mxu0  ;;  %v6103_v25 = vpop.f32.mrf.mxu1  ;;  %v779_v23 = vrot.slane %v778_v58, 4 }
 0x23a   : > { %v20663_v33 = vadd.f32 %v6101_v32, %v5909_v34  ;;  %v5911_v24 = vadd.f32 %v5910_v12, %v20205_v44  ;;  %v17605_v32 = vld [vmem:[%s17890_s22 + $0x2dc] ss:$16 sps:$4 sm:$0xff]   ;;  %v764_v34 = vsel %vm18366_vm2, %v759_v57, %v763_v46 }
 0x23b   : > { %v5912_v17 = vpop.f32.mrf.mxu0  ;;  %v6105_v40 = vpop.f32.mrf.mxu1 }
 0x23c   : > { %v20666_v39 = vadd.f32 %v6103_v25, %v5911_v24  ;;  %v5913_v18 = vadd.f32 %v5912_v17, %v20210_v6  ;;  %v750_v6 = vsel %vm18366_vm2, %v745_v11, %v20645_v10 }
 0x23d   : > { %v5916_v38 = vpop.f32.mrf.mxu0  ;;  %v6109_v4 = vpop.f32.mrf.mxu1  ;;  %v15284_v11 = vcombine.high %v750_v6, %v774_v49 }
 0x23e   : > { %8301 = vmatmul.mubr.bf16.gmra.mxu0 %v17602_v3  ;;  %8494 = vmatmul.mubr.bf16.gmra.mxu1 %v17603_v47  ;;  %v20671_v44 = vadd.f32 %v6105_v40, %v5913_v18  ;;  %v5917_v7 = vadd.f32 %v5916_v38, %v20215_v53  ;;  %v784_v53 = vsel %vm18366_vm2, %v779_v23, %v783_v26  ;;  %v17606_v38 = vld [vmem:[%s17890_s22 + $0x2d0] ss:$16 sps:$4 sm:$0xff]  }
 0x23f   : > { %8310 = vmatprep.mubr.bf16.mxu0 %v17604_v22  ;;  %8503 = vmatprep.mubr.bf16.mxu1 %v17605_v32  ;;  %v5918_v58 = vpop.f32.mrf.mxu0  ;;  %v6111_v37 = vpop.f32.mrf.mxu1  ;;  %v15286_v41 = vcombine.high %v764_v34, %v784_v53 }
 0x240   : > { %v20685_v12 = vadd.f32 %v6109_v4, %v5917_v7  ;;  %v5919_v25 = vadd.f32 %v5918_v58, %v20222_v52  ;;  %v17607_v4 = vld [vmem:[%s17890_s22 + $0x2d8] ss:$16 sps:$4 sm:$0xff]   ;;  %v15283_v58 = vcombine.low %v750_v6, %v774_v49  ;;  %v17112_v6 = vld [vmem:[%s24472_s1 + $0x464] ss:$8 sps:$4 sm:$0xff]  }
 0x241   : > { %v5920_v24 = vpop.f32.mrf.mxu0  ;;  %v6113_v17 = vpop.f32.mrf.mxu1 }
 0x242   : > { %v20688_v40 = vadd.f32 %v6111_v37, %v5919_v25  ;;  %v5921_v10 = vadd.f32 %v5920_v24, %v20227_v36  ;;  %v15285_v37 = vcombine.low %v764_v34, %v784_v53 }
 0x243   : > { %v5922_v60 = vpop.f32.mrf.mxu0  ;;  %v6115_v18 = vpop.f32.mrf.mxu1 }
 0x244   : > { %v20691_v46 = vadd.f32 %v6113_v17, %v5921_v10  ;;  %v5923_v57 = vadd.f32 %v5922_v60, %v20232_v63  ;;  %v17107_v17 = vld [vmem:[%s24472_s1 + $0x570] ss:$8 sps:$4 sm:$0xff]  }
 0x245   : > { %v5926_v23 = vpop.f32.mrf.mxu0  ;;  %v6119_v26 = vpop.f32.mrf.mxu1 }
 0x246   : > { %8311 = vmatmul.mubr.bf16.gmra.mxu0 %v17606_v38  ;;  %8504 = vmatmul.mubr.bf16.gmra.mxu1 %v17607_v4  ;;  %v20696_v52 = vadd.f32 %v6115_v18, %v5923_v57  ;;  %v5927_v3 = vadd.f32 %v5926_v23, %v20236_v61  ;;  %v17104_v61 = vld [vmem:[%s24472_s1 + $0x470] ss:$8 sps:$4 sm:$0xff]   ;;  %v17113_v18 = vld [vmem:[%s24472_s1 + $0x560] ss:$8 sps:$4 sm:$0xff]   ;;  %v17121_v4 = vld [vmem:[%s24472_s1 + $0x554] ss:$8 sps:$4 sm:$0xff]  }
 0x247   : > { %8546 = vmatprep.mubr.bf16.mxu0 %v15284_v11  ;;  %8739 = vmatprep.mubr.bf16.mxu1 %v15286_v41  ;;  %v5928_v36 = vpop.f32.mrf.mxu0  ;;  %v6121_v47 = vpop.f32.mrf.mxu1  ;;  %v25104_v38 = vld [vmem:[#allocation23_spill] sm:$0xff] }
 0x248   : > { %v20699_v7 = vadd.f32 %v6119_v26, %v5927_v3  ;;  %v5929_v22 = vadd.f32 %v5928_v36, %v20246_v1  ;;  %v25103_v26 = vld [vmem:[#allocation21_spill] sm:$0xff] }
 0x249   : > { %v5930_v32 = vpop.f32.mrf.mxu0  ;;  %v6123_v63 = vpop.f32.mrf.mxu1 }
 0x24a   : > { %v20702_v25 = vadd.f32 %v6121_v47, %v5929_v22  ;;  %v5931_v24 = vadd.f32 %v5930_v32, %v20255_v28  ;;  %v17115_v28 = vld [vmem:[%s24472_s1 + $0x564] ss:$8 sps:$4 sm:$0xff]  }
 0x24b   : > { %v5932_v10 = vpop.f32.mrf.mxu0  ;;  %v6125_v11 = vpop.f32.mrf.mxu1 }
 0x24c   : > { %v20711_v41 = vadd.f32 %v6123_v63, %v5931_v24  ;;  %v5933_v1 = vadd.f32 %v5932_v10, %v20267_v8  ;;  %v17110_v8 = vld [vmem:[%s24472_s1 + $0x460] ss:$8 sps:$4 sm:$0xff]   ;;  %v17116_v24 = vld [vmem:[%s24472_s1 + $0x450] ss:$8 sps:$4 sm:$0xff]   ;;  %v17127_v10 = vld [vmem:[%s24472_s1 + $0x544] ss:$8 sps:$4 sm:$0xff]  }
 0x24d   : > { %v5936_v49 = vpop.f32.mrf.mxu0  ;;  %v6129_v34 = vpop.f32.mrf.mxu1 }
 0x24e   : > { %8547 = vmatmul.mubr.bf16.vlgmr.msra.gmra.mxu0 %v15283_v58  ;;  %8740 = vmatmul.mubr.bf16.vlgmr.msra.gmra.mxu1 %v15285_v37  ;;  %v20720_v53 = vadd.f32 %v6125_v11, %v5933_v1  ;;  %v5937_v60 = vadd.f32 %v5936_v49, %v20275_v50  ;;  %v17118_v50 = vld [vmem:[%s24472_s1 + $0x454] ss:$8 sps:$4 sm:$0xff]  }
 0x24f   : > { %8901 = vmatpush1.bf16.msra.mxu0 %v17104_v61  ;;  %9094 = vmatpush1.bf16.msra.mxu1 %v17107_v17  ;;  %v5938_v57 = vpop.f32.mrf.mxu0  ;;  %v6131_v23 = vpop.f32.mrf.mxu1 }
 0x250   : > { %8556 = vmatprep.mubr.bf16.mxu0 %v25103_v26  ;;  %8749 = vmatprep.mubr.bf16.mxu1 %v25104_v38  ;;  %v20737_v3 = vadd.f32 %v6129_v34, %v5937_v60  ;;  %v5939_v36 = vadd.f32 %v5938_v57, %v20284_v13  ;;  %v17119_v13 = vld [vmem:[%s24472_s1 + $0x550] ss:$8 sps:$4 sm:$0xff]   ;;  %v25107_v60 = vld [vmem:[#allocation24_spill] sm:$0xff]  ;;  %v17130_v38 = vld [vmem:[%s24472_s1 + $0x434] ss:$8 sps:$4 sm:$0xff]  }
 0x251   : > { %8902 = vmatprep.subr.bf16.mxu0 %v17112_v6  ;;  %9095 = vmatprep.subr.bf16.mxu1 %v17115_v28  ;;  %v5940_v47 = vpop.f32.mrf.mxu0  ;;  %v6133_v22 = vpop.f32.mrf.mxu1  ;;  %v25105_v6 = vld [vmem:[#allocation20_spill] sm:$0xff]  ;;  %v25106_v28 = vld [vmem:[#allocation22_spill] sm:$0xff] }
 0x252   : > { %v20740_v32 = vadd.f32 %v6131_v23, %v5939_v36  ;;  %v5941_v63 = vadd.f32 %v5940_v47, %v20293_v42  ;;  %v17124_v42 = vld [vmem:[%s24472_s1 + $0x444] ss:$8 sps:$4 sm:$0xff]   ;;  %v17122_v57 = vld [vmem:[%s24472_s1 + $0x440] ss:$8 sps:$4 sm:$0xff]  }
 0x253   : > { %8903 = vmatpush1.bf16.msra.mxu0 %v17110_v8  ;;  %9096 = vmatpush1.bf16.msra.mxu1 %v17113_v18  ;;  %v5942_v58 = vpop.f32.mrf.mxu0  ;;  %v6135_v37 = vpop.f32.mrf.mxu1  ;;  %v17125_v23 = vld [vmem:[%s24472_s1 + $0x540] ss:$8 sps:$4 sm:$0xff]  }
 0x254   : > { %8904 = vmatprep.subr.bf16.mxu0 %v17118_v50  ;;  %9097 = vmatprep.subr.bf16.mxu1 %v17121_v4  ;;  %v20749_v61 = vadd.f32 %v6133_v22, %v5941_v63  ;;  %v5943_v17 = vadd.f32 %v5942_v58, %v20304_v27  ;;  %v25108_v27 = vld [vmem:[#allocation26_spill] sm:$0xff] }
 0x255   : > { %v5946_v11 = vpop.f32.mrf.mxu0  ;;  %v6139_v1 = vpop.f32.mrf.mxu1  ;;  %v17133_v50 = vld [vmem:[%s24472_s1 + $0x534] ss:$8 sps:$4 sm:$0xff]  }
 0x256   : > { %8557 = vmatmul.mubr.bf16.gmra.mxu0 %v25105_v6  ;;  %8750 = vmatmul.mubr.bf16.gmra.mxu1 %v25106_v28  ;;  %v20760_v49 = vadd.f32 %v6135_v37, %v5943_v17  ;;  %v5947_v34 = vadd.f32 %v5946_v11, %v20309_v43  ;;  %v17131_v37 = vld [vmem:[%s24472_s1 + $0x530] ss:$8 sps:$4 sm:$0xff]   ;;  %v17139_v17 = vld [vmem:[%s24472_s1 + $0x524] ss:$8 sps:$4 sm:$0xff]  }
 0x257   : > { %8566 = vmatprep.mubr.bf16.mxu0 %v25107_v60  ;;  %8759 = vmatprep.mubr.bf16.mxu1 %v25108_v27  ;;  %v5948_v8 = vpop.f32.mrf.mxu0  ;;  %v6141_v18 = vpop.f32.mrf.mxu1  ;;  %v25109_v11 = vld [vmem:[#allocation25_spill] sm:$0xff]  ;;  %v25111_v28 = vld [vmem:[#allocation28_spill] sm:$0xff] }
 0x258   : > { %8905 = vmatpush1.bf16.msra.mxu0 %v17116_v24  ;;  %9098 = vmatpush1.bf16.msra.mxu1 %v17119_v13  ;;  %v20771_v26 = vadd.f32 %v6139_v1, %v5947_v34  ;;  %v5949_v43 = vadd.f32 %v5948_v8, %v20318_v2  ;;  %v17128_v2 = vld [vmem:[%s24472_s1 + $0x430] ss:$8 sps:$4 sm:$0xff]   ;;  %v25110_v1 = vld [vmem:[#allocation27_spill] sm:$0xff] }
 0x259   : > { %8906 = vmatprep.subr.bf16.mxu0 %v17124_v42  ;;  %9099 = vmatprep.subr.bf16.mxu1 %v17127_v10  ;;  %v5950_v4 = vpop.f32.mrf.mxu0  ;;  %v6143_v36 = vpop.f32.mrf.mxu1  ;;  %v25112_v34 = vld [vmem:[#allocation29_spill] sm:$0xff]  ;;  %v17170_v60 = vld [vmem:[%s24472_s1 + $0x4c0] ss:$8 sps:$4 sm:$0xff]  }
 0x25a   : > { %v20780_v47 = vadd.f32 %v6141_v18, %v5949_v43  ;;  %v5951_v22 = vadd.f32 %v5950_v4, %v20327_v5  ;;  %v17136_v5 = vld [vmem:[%s24472_s1 + $0x424] ss:$8 sps:$4 sm:$0xff]  }
 0x25b   : > { %v5952_v63 = vpop.f32.mrf.mxu0  ;;  %v6145_v58 = vpop.f32.mrf.mxu1 }
 0x25c   : > { %8907 = vmatpush1.bf16.msra.mxu0 %v17122_v57  ;;  %9100 = vmatpush1.bf16.msra.mxu1 %v17125_v23  ;;  %v20789_v24 = vadd.f32 %v6143_v36, %v5951_v22  ;;  %v5953_v13 = vadd.f32 %v5952_v63, %v20338_v16  ;;  %v17134_v57 = vld [vmem:[%s24472_s1 + $0x420] ss:$8 sps:$4 sm:$0xff]  }
 0x25d   : > { %8908 = vmatprep.subr.bf16.mxu0 %v17130_v38  ;;  %9101 = vmatprep.subr.bf16.mxu1 %v17133_v50  ;;  %v5956_v42 = vpop.f32.mrf.mxu0  ;;  %v6149_v10 = vpop.f32.mrf.mxu1  ;;  %v17137_v23 = vld [vmem:[%s24472_s1 + $0x520] ss:$8 sps:$4 sm:$0xff]   ;;  %v17142_v38 = vld [vmem:[%s24472_s1 + $0x414] ss:$8 sps:$4 sm:$0xff]  }
 0x25e   : > { %8567 = vmatmul.mubr.bf16.gmra.mxu0 %v25109_v11  ;;  %8760 = vmatmul.mubr.bf16.gmra.mxu1 %v25110_v1  ;;  %v20800_v6 = vadd.f32 %v6145_v58, %v5953_v13  ;;  %v5957_v16 = vadd.f32 %v5956_v42, %v20349_v15  ;;  %v17145_v50 = vld [vmem:[%s24472_s1 + $0x514] ss:$8 sps:$4 sm:$0xff]   ;;  %v25113_v63 = vld [vmem:[#allocation87_spill] sm:$0xff]  ;;  %v17143_v13 = vld [vmem:[%s24472_s1 + $0x510] ss:$8 sps:$4 sm:$0xff]  }
 0x25f   : > { %8576 = vmatprep.mubr.bf16.mxu0 %v25111_v28  ;;  %8769 = vmatprep.mubr.bf16.mxu1 %v25112_v34  ;;  %v5958_v8 = vpop.f32.mrf.mxu0  ;;  %v6151_v18 = vpop.f32.mrf.mxu1  ;;  %v17158_v28 = vld [vmem:[%s24472_s1 + $0x4e0] ss:$8 sps:$4 sm:$0xff]  }
 0x260   : > { %8909 = vmatpush1.bf16.msra.mxu0 %v17128_v2  ;;  %9102 = vmatpush1.bf16.msra.mxu1 %v17131_v37  ;;  %v20811_v43 = vadd.f32 %v6149_v10, %v5957_v16  ;;  %v5959_v15 = vadd.f32 %v5958_v8, %v20358_v30  ;;  %v17140_v30 = vld [vmem:[%s24472_s1 + $0x410] ss:$8 sps:$4 sm:$0xff]   ;;  %v17148_v10 = vld [vmem:[%s24472_s1 + $0x404] ss:$8 sps:$4 sm:$0xff]  }
 0x261   : > { %8910 = vmatprep.subr.bf16.mxu0 %v17136_v5  ;;  %9103 = vmatprep.subr.bf16.mxu1 %v17139_v17  ;;  %v5960_v4 = vpop.f32.mrf.mxu0  ;;  %v6153_v36 = vpop.f32.mrf.mxu1  ;;  %v25114_v17 = vld [vmem:[#allocation88_spill] sm:$0xff] }
 0x262   : > { %v20820_v22 = vadd.f32 %v6151_v18, %v5959_v15  ;;  %v5961_v58 = vadd.f32 %v5960_v4, %v25113_v63  ;;  %v17151_v16 = vld [vmem:[%s24472_s1 + $0x504] ss:$8 sps:$4 sm:$0xff]  }
 0x263   : > { %v5962_v2 = vpop.f32.mrf.mxu0  ;;  %v6155_v37 = vpop.f32.mrf.mxu1  ;;  %v25117_v4 = vld [vmem:[#allocation91_spill] sm:$0xff] }
 0x264   : > { %8911 = vmatpush1.bf16.msra.mxu0 %v17134_v57  ;;  %9104 = vmatpush1.bf16.msra.mxu1 %v17137_v23  ;;  %v20829_v5 = vadd.f32 %v6153_v36, %v5961_v58  ;;  %v5963_v42 = vadd.f32 %v5962_v2, %v25114_v17  ;;  %v25115_v57 = vld [vmem:[#allocation30_spill] sm:$0xff]  ;;  %v25116_v23 = vld [vmem:[#allocation31_spill] sm:$0xff] }
 0x265   : > { %8912 = vmatprep.subr.bf16.mxu0 %v17142_v38  ;;  %9105 = vmatprep.subr.bf16.mxu1 %v17145_v50  ;;  %v5966_v8 = vpop.f32.mrf.mxu0  ;;  %v6159_v18 = vpop.f32.mrf.mxu1  ;;  %v25118_v38 = vld [vmem:[#allocation32_spill] sm:$0xff]  ;;  %v25119_v50 = vld [vmem:[#allocation33_spill] sm:$0xff] }
 0x266   : > { %8577 = vmatmul.mubr.bf16.gmra.mxu0 %v25115_v57  ;;  %8770 = vmatmul.mubr.bf16.gmra.mxu1 %v25116_v23  ;;  %v20840_v15 = vadd.f32 %v6155_v37, %v5963_v42  ;;  %v5967_v36 = vadd.f32 %v5966_v8, %v25117_v4  ;;  %v17146_v2 = vld [vmem:[%s24472_s1 + $0x400] ss:$8 sps:$4 sm:$0xff]   ;;  %v25120_v42 = vld [vmem:[#allocation94_spill] sm:$0xff] }
 0x267   : > { %8586 = vmatprep.mubr.bf16.mxu0 %v25118_v38  ;;  %8779 = vmatprep.mubr.bf16.mxu1 %v25119_v50  ;;  %v5968_v63 = vpop.f32.mrf.mxu0  ;;  %v6161_v58 = vpop.f32.mrf.mxu1  ;;  %v17149_v17 = vld [vmem:[%s24472_s1 + $0x500] ss:$8 sps:$4 sm:$0xff]   ;;  %v17154_v4 = vld [vmem:[%s24472_s1 + $0x4f4] ss:$8 sps:$4 sm:$0xff]  }
 0x268   : > { %8913 = vmatpush1.bf16.msra.mxu0 %v17140_v30  ;;  %9106 = vmatpush1.bf16.msra.mxu1 %v17143_v13  ;;  %v20851_v37 = vadd.f32 %v6159_v18, %v5967_v36  ;;  %v5969_v8 = vadd.f32 %v5968_v63, %v25120_v42  ;;  %v17157_v30 = vld [vmem:[%s24472_s1 + $0x5f4] ss:$8 sps:$4 sm:$0xff]   ;;  %v25121_v38 = vld [vmem:[#allocation95_spill] sm:$0xff] }
 0x269   : > { %8914 = vmatprep.subr.bf16.mxu0 %v17148_v10  ;;  %9107 = vmatprep.subr.bf16.mxu1 %v17151_v16  ;;  %v5970_v13 = vpop.f32.mrf.mxu0  ;;  %v6163_v29 = vpop.f32.mrf.mxu1  ;;  %v17152_v10 = vld [vmem:[%s24472_s1 + $0x4f0] ss:$8 sps:$4 sm:$0xff]   ;;  %v25122_v42 = vld [vmem:[#allocation3_spill] sm:$0xff] }
 0x26a   : > { %v20860_v50 = vadd.f32 %v6161_v58, %v5969_v8  ;;  %v5971_v23 = vadd.f32 %v5970_v13, %v25121_v38  ;;  %v17155_v16 = vld [vmem:[%s24472_s1 + $0x5f0] ss:$8 sps:$4 sm:$0xff]   ;;  %v17160_v38 = vld [vmem:[%s24472_s1 + $0x4e4] ss:$8 sps:$4 sm:$0xff]  }
 0x26b   : > { %v5972_v18 = vpop.f32.mrf.mxu0  ;;  %v6165_v36 = vpop.f32.mrf.mxu1  ;;  %v17163_v58 = vld [vmem:[%s24472_s1 + $0x5e4] ss:$8 sps:$4 sm:$0xff]   ;;  %v25123_v8 = vld [vmem:[#allocation34_spill] sm:$0xff] }
 0x26c   : > { %8915 = vmatpush1.bf16.msra.mxu0 %v17146_v2  ;;  %9108 = vmatpush1.bf16.msra.mxu1 %v17149_v17  ;;  %v20869_v63 = vadd.f32 %v6163_v29, %v5971_v23  ;;  %v5973_v57 = vadd.f32 %v5972_v18, %v25122_v42  ;;  %v25124_v13 = vld [vmem:[#allocation35_spill] sm:$0xff]  ;;  %v25125_v23 = vld [vmem:[#allocation4_spill] sm:$0xff] }
 0x26d   : > { %8916 = vmatprep.subr.bf16.mxu0 %v17154_v4  ;;  %9109 = vmatprep.subr.bf16.mxu1 %v17157_v30  ;;  %v5976_v2 = vpop.f32.mrf.mxu0  ;;  %v6169_v17 = vpop.f32.mrf.mxu1  ;;  %v25126_v4 = vld [vmem:[#allocation36_spill] sm:$0xff]  ;;  %v25127_v30 = vld [vmem:[#allocation37_spill] sm:$0xff] }
 0x26e   : > { %8587 = vmatmul.mubr.bf16.gmra.mxu0 %v25123_v8  ;;  %8780 = vmatmul.mubr.bf16.gmra.mxu1 %v25124_v13  ;;  %v20880_v29 = vadd.f32 %v6165_v36, %v5973_v57  ;;  %v5977_v18 = vadd.f32 %v5976_v2, %v25125_v23  ;;  %v17161_v13 = vld [vmem:[%s24472_s1 + $0x5e0] ss:$8 sps:$4 sm:$0xff]   ;;  %v17166_v23 = vld [vmem:[%s24472_s1 + $0x4d4] ss:$8 sps:$4 sm:$0xff]  }
 0x26f   : > { %8596 = vmatprep.mubr.bf16.mxu0 %v25126_v4  ;;  %8789 = vmatprep.mubr.bf16.mxu1 %v25127_v30  ;;  %v5978_v42 = vpop.f32.mrf.mxu0  ;;  %v6171_v34 = vpop.f32.mrf.mxu1  ;;  %v25128_v36 = vld [vmem:[#allocation96_spill] sm:$0xff]  ;;  %v25129_v8 = vld [vmem:[#allocation99_spill] sm:$0xff] }
 0x270   : > { %8917 = vmatpush2.bf16.msra.mxu0 %v17152_v10  ;;  %9110 = vmatpush2.bf16.msra.mxu1 %v17155_v16  ;;  %v20891_v57 = vadd.f32 %v6169_v17, %v5977_v18  ;;  %v5979_v2 = vadd.f32 %v5978_v42, %v25128_v36  ;;  %v17169_v10 = vld [vmem:[%s24472_s1 + $0x5d4] ss:$8 sps:$4 sm:$0xff]  }
 0x271   : > { %8918 = vmatprep.subr.bf16.mxu0 %v17160_v38  ;;  %9111 = vmatprep.subr.bf16.mxu1 %v17163_v58  ;;  %v5980_v16 = vpop.f32.mrf.mxu0  ;;  %v6173_v30 = vpop.f32.mrf.mxu1  ;;  %v17164_v38 = vld [vmem:[%s24472_s1 + $0x4d0] ss:$8 sps:$4 sm:$0xff]  }
 0x272   : > { %v20900_v4 = vadd.f32 %v6171_v34, %v5979_v2  ;;  %v5981_v1 = vadd.f32 %v5980_v16, %v25129_v8  ;;  %v17167_v58 = vld [vmem:[%s24472_s1 + $0x5d0] ss:$8 sps:$4 sm:$0xff]   ;;  %v17172_v34 = vld [vmem:[%s24472_s1 + $0x4c4] ss:$8 sps:$4 sm:$0xff]  }
 0x273   : > { %v5982_v17 = vpop.f32.mrf.mxu0  ;;  %v6175_v18 = vpop.f32.mrf.mxu1  ;;  %v25130_v36 = vld [vmem:[#allocation102_spill] sm:$0xff]  ;;  %v25132_v16 = vld [vmem:[#allocation39_spill] sm:$0xff] }
 0x274   : > { %8919 = vmatpush2.bf16.msra.mxu0 %v17158_v28  ;;  %9112 = vmatpush2.bf16.msra.mxu1 %v17161_v13  ;;  %v20909_v42 = vadd.f32 %v6173_v30, %v5981_v1  ;;  %v5983_v11 = vadd.f32 %v5982_v17, %v25130_v36  ;;  %v17175_v28 = vld [vmem:[%s24472_s1 + $0x5c4] ss:$8 sps:$4 sm:$0xff]   ;;  %v25131_v2 = vld [vmem:[#allocation38_spill] sm:$0xff]  ;;  %v25134_v30 = vld [vmem:[#allocation5_spill] sm:$0xff] }
 0x275   : > { %8920 = vmatprep.subr.bf16.mxu0 %v17166_v23  ;;  %9113 = vmatprep.subr.bf16.mxu1 %v17169_v10  ;;  %v5986_v8 = vpop.f32.mrf.mxu0  ;;  %v6179_v13 = vpop.f32.mrf.mxu1  ;;  %v25135_v23 = vld [vmem:[#allocation40_spill] sm:$0xff]  ;;  %v25136_v10 = vld [vmem:[#allocation42_spill] sm:$0xff] }
 0x276   : > { %8597 = vmatmul.mubr.bf16.gmra.mxu0 %v25131_v2  ;;  %8790 = vmatmul.mubr.bf16.gmra.mxu1 %v25132_v16  ;;  %v20920_v1 = vadd.f32 %v6175_v18, %v5983_v11  ;;  %v5987_v17 = vadd.f32 %v5986_v8, %v25134_v30  ;;  %v17173_v16 = vld [vmem:[%s24472_s1 + $0x5c0] ss:$8 sps:$4 sm:$0xff]   ;;  %v25137_v18 = vld [vmem:[#allocation6_spill] sm:$0xff] }
 0x277   : > { %8606 = vmatprep.mubr.bf16.mxu0 %v25135_v23  ;;  %8799 = vmatprep.mubr.bf16.mxu1 %v25136_v10  ;;  %v5988_v36 = vpop.f32.mrf.mxu0  ;;  %v6181_v27 = vpop.f32.mrf.mxu1  ;;  %v17178_v30 = vld [vmem:[%s24472_s1 + $0x4b4] ss:$8 sps:$4 sm:$0xff]   ;;  %v25138_v2 = vld [vmem:[#allocation103_spill] sm:$0xff] }
 0x278   : > { %25133 = vst [vmem:[#allocation134_spill] sm:$0xff] %v20920_v1  ;;  %8921 = vmatpush2.bf16.msra.mxu0 %v17164_v38  ;;  %9114 = vmatpush2.bf16.msra.mxu1 %v17167_v58  ;;  %v20931_v11 = vadd.f32 %v6179_v13, %v5987_v17  ;;  %v5989_v8 = vadd.f32 %v5988_v36, %v25137_v18  ;;  %v17181_v38 = vld [vmem:[%s24472_s1 + $0x5b4] ss:$8 sps:$4 sm:$0xff]  }
 0x279   : > { %8922 = vmatprep.subr.bf16.mxu0 %v17172_v34  ;;  %9115 = vmatprep.subr.bf16.mxu1 %v17175_v28  ;;  %v5990_v58 = vpop.f32.mrf.mxu0  ;;  %v6183_v10 = vpop.f32.mrf.mxu1  ;;  %v17176_v34 = vld [vmem:[%s24472_s1 + $0x4b0] ss:$8 sps:$4 sm:$0xff]  }
 0x27a   : > { %v20940_v23 = vadd.f32 %v6181_v27, %v5989_v8  ;;  %v5991_v1 = vadd.f32 %v5990_v58, %v25138_v2  ;;  %v17179_v28 = vld [vmem:[%s24472_s1 + $0x5b0] ss:$8 sps:$4 sm:$0xff]   ;;  %v17184_v27 = vld [vmem:[%s24472_s1 + $0x4a4] ss:$8 sps:$4 sm:$0xff]  }
 0x27b   : > { %v5992_v13 = vpop.f32.mrf.mxu0  ;;  %v6185_v17 = vpop.f32.mrf.mxu1  ;;  %v25140_v8 = vld [vmem:[#allocation41_spill] sm:$0xff]  ;;  %v25141_v58 = vld [vmem:[#allocation43_spill] sm:$0xff] }
 0x27c   : > { %8923 = vmatpush2.bf16.msra.mxu0 %v17170_v60  ;;  %9116 = vmatpush2.bf16.msra.mxu1 %v17173_v16  ;;  %v20949_v36 = vadd.f32 %v6183_v10, %v5991_v1  ;;  %v5993_v18 = vadd.f32 %v5992_v13, %v20498_v21  ;;  %v17187_v60 = vld [vmem:[%s24472_s1 + $0x5a4] ss:$8 sps:$4 sm:$0xff]  }
 0x27d   : > { %8924 = vmatprep.subr.bf16.mxu0 %v17178_v30  ;;  %9117 = vmatprep.subr.bf16.mxu1 %v17181_v38  ;;  %v5996_v2 = vpop.f32.mrf.mxu0  ;;  %v6189_v16 = vpop.f32.mrf.mxu1  ;;  %v25143_v10 = vld [vmem:[#allocation44_spill] sm:$0xff]  ;;  %v25144_v30 = vld [vmem:[#allocation46_spill] sm:$0xff] }
 0x27e   : > { %25139 = vst [vmem:[#allocation135_spill] sm:$0xff] %v20949_v36  ;;  %8607 = vmatmul.mubr.bf16.gmra.mxu0 %v25140_v8  ;;  %8800 = vmatmul.mubr.bf16.gmra.mxu1 %v25141_v58  ;;  %v20960_v1 = vadd.f32 %v6185_v17, %v5993_v18  ;;  %v5997_v21 = vadd.f32 %v5996_v2, %v20509_v19  ;;  %v17182_v36 = vld [vmem:[%s24472_s1 + $0x4a0] ss:$8 sps:$4 sm:$0xff]   ;;  %v17190_v2 = vld [vmem:[%s24472_s1 + $0x494] ss:$8 sps:$4 sm:$0xff]  }
 0x27f   : > { %8616 = vmatprep.mubr.bf16.mxu0 %v25143_v10  ;;  %8809 = vmatprep.mubr.bf16.mxu1 %v25144_v30  ;;  %v5998_v38 = vpop.f32.mrf.mxu0  ;;  %v6191_v13 = vpop.f32.mrf.mxu1  ;;  %v17185_v58 = vld [vmem:[%s24472_s1 + $0x5a0] ss:$8 sps:$4 sm:$0xff]  }
 0x280   : > { %25142 = vst [vmem:[#allocation136_spill] sm:$0xff] %v20960_v1  ;;  %8925 = vmatpush2.bf16.msra.mxu0 %v17176_v34  ;;  %9118 = vmatpush2.bf16.msra.mxu1 %v17179_v28  ;;  %v20971_v17 = vadd.f32 %v6189_v16, %v5997_v21  ;;  %v25145_v18 = vld [vmem:[#allocation104_spill] sm:$0xff]  ;;  %v17193_v34 = vld [vmem:[%s24472_s1 + $0x594] ss:$8 sps:$4 sm:$0xff]  }
 0x281   : > { %v5999_v19 = vadd.f32 %v5998_v38, %v25145_v18  ;;  %8926 = vmatprep.subr.bf16.mxu0 %v17184_v27  ;;  %9119 = vmatprep.subr.bf16.mxu1 %v17187_v60  ;;  %v6000_v28 = vpop.f32.mrf.mxu0  ;;  %v6193_v30 = vpop.f32.mrf.mxu1  ;;  %v25147_v8 = vld [vmem:[#allocation108_spill] sm:$0xff]  ;;  %v17188_v27 = vld [vmem:[%s24472_s1 + $0x490] ss:$8 sps:$4 sm:$0xff]  }
 0x282   : > { %v6001_v1 = vadd.f32 %v6000_v28, %v25147_v8  ;;  %v17191_v60 = vld [vmem:[%s24472_s1 + $0x590] ss:$8 sps:$4 sm:$0xff]   ;;  %v17196_v8 = vld [vmem:[%s24472_s1 + $0x484] ss:$8 sps:$4 sm:$0xff]  }
 0x283   : > { %v20980_v10 = vadd.f32 %v6191_v13, %v5999_v19  ;;  %v6002_v16 = vpop.f32.mrf.mxu0  ;;  %v6195_v21 = vpop.f32.mrf.mxu1  ;;  %v25149_v19 = vld [vmem:[#allocation45_spill] sm:$0xff]  ;;  %v25150_v28 = vld [vmem:[#allocation47_spill] sm:$0xff] }
 0x284   : > { %8927 = vmatpush2.bf16.msra.mxu0 %v17182_v36  ;;  %9120 = vmatpush2.bf16.msra.mxu1 %v17185_v58  ;;  %v20989_v38 = vadd.f32 %v6193_v30, %v6001_v1  ;;  %v6003_v18 = vadd.f32 %v6002_v16, %v20538_v51  ;;  %v17199_v36 = vld [vmem:[%s24472_s1 + $0x584] ss:$8 sps:$4 sm:$0xff]   ;;  %v25151_v30 = vld [vmem:[#allocation110_spill] sm:$0xff] }
 0x285   : > { %25146 = vst [vmem:[#allocation139_spill] sm:$0xff] %v20980_v10  ;;  %8928 = vmatprep.subr.bf16.mxu0 %v17190_v2  ;;  %9121 = vmatprep.subr.bf16.mxu1 %v17193_v34  ;;  %v6006_v58 = vpop.f32.mrf.mxu0  ;;  %v6199_v13 = vpop.f32.mrf.mxu1  ;;  %v25152_v2 = vld [vmem:[#allocation48_spill] sm:$0xff]  ;;  %v25153_v34 = vld [vmem:[#allocation50_spill] sm:$0xff] }
 0x286   : > { %25148 = vst [vmem:[#allocation142_spill] sm:$0xff] %v20989_v38  ;;  %8617 = vmatmul.mubr.bf16.gmra.mxu0 %v25149_v19  ;;  %8810 = vmatmul.mubr.bf16.gmra.mxu1 %v25150_v28  ;;  %v21000_v1 = vadd.f32 %v6195_v21, %v6003_v18  ;;  %v6007_v51 = vadd.f32 %v6006_v58, %v25151_v30  ;;  %v17194_v10 = vld [vmem:[%s24472_s1 + $0x480] ss:$8 sps:$4 sm:$0xff]   ;;  %v17202_v58 = vld [vmem:[%s24472_s1 + $0xc74] ss:$8 sps:$4 sm:$0xff]  }
 0x287   : > { %8626 = vmatprep.mubr.bf16.mxu0 %v25152_v2  ;;  %8819 = vmatprep.mubr.bf16.mxu1 %v25153_v34  ;;  %v6008_v16 = vpop.f32.mrf.mxu0  ;;  %v6201_v38 = vpop.f32.mrf.mxu1  ;;  %v17197_v28 = vld [vmem:[%s24472_s1 + $0x580] ss:$8 sps:$4 sm:$0xff]   ;;  %v25155_v19 = vld [vmem:[#allocation49_spill] sm:$0xff] }
 0x288   : > { %8929 = vmatpush2.bf16.msra.mxu0 %v17188_v27  ;;  %9122 = vmatpush2.bf16.msra.mxu1 %v17191_v60  ;;  %v21011_v21 = vadd.f32 %v6199_v13, %v6007_v51  ;;  %v6009_v18 = vadd.f32 %v6008_v16, %v20558_v14  ;;  %v17205_v27 = vld [vmem:[%s24472_s1 + $0xd74] ss:$8 sps:$4 sm:$0xff]  }
 0x289   : > { %8930 = vmatprep.subr.bf16.mxu0 %v17196_v8  ;;  %9123 = vmatprep.subr.bf16.mxu1 %v17199_v36  ;;  %v6010_v60 = vpop.f32.mrf.mxu0  ;;  %v6203_v30 = vpop.f32.mrf.mxu1 }
 0x28a   : > { %25154 = vst [vmem:[#allocation143_spill] sm:$0xff] %v21011_v21  ;;  %v21020_v34 = vadd.f32 %v6201_v38, %v6009_v18  ;;  %v6011_v2 = vadd.f32 %v6010_v60, %v20561_v9  ;;  %v25156_v21 = vld [vmem:[#allocation51_spill] sm:$0xff]  ;;  %v25157_v18 = vld [vmem:[#allocation52_spill] sm:$0xff] }
 0x28b   : > { %v6012_v13 = vpop.f32.mrf.mxu0  ;;  %v6205_v51 = vpop.f32.mrf.mxu1 }
 0x28c   : > { %8931 = vmatpush2.bf16.msra.mxu0 %v17194_v10  ;;  %9124 = vmatpush2.bf16.msra.mxu1 %v17197_v28  ;;  %v21023_v14 = vadd.f32 %v6203_v30, %v6011_v2  ;;  %v6013_v8 = vadd.f32 %v6012_v13, %v20566_v45  ;;  %v25158_v10 = vld [vmem:[#allocation54_spill] sm:$0xff] }
 0x28d   : > { %11592 = vmatprep.subr.bf16.mxu0 %v17202_v58  ;;  %11785 = vmatprep.subr.bf16.mxu1 %v17205_v27  ;;  %v8162_v36 = vpop.f32.mrf.mxu0  ;;  %v8355_v16 = vpop.f32.mrf.mxu1 }
 0x28e   : > { %8627 = vmatmul.mubr.bf16.gmra.mxu0 %v25155_v19  ;;  %8820 = vmatmul.mubr.bf16.gmra.mxu1 %v25156_v21  ;;  %v21028_v38 = vadd.f32 %v6205_v51, %v6013_v8  ;;  %v8163_v9 = vadd.f32 %v8162_v36, %v20571_v48 }
 0x28f   : > { %8636 = vmatprep.mubr.bf16.mxu0 %v25157_v18  ;;  %8829 = vmatprep.mubr.bf16.mxu1 %v25158_v10  ;;  %v8164_v28 = vpop.f32.mrf.mxu0  ;;  %v8357_v2 = vpop.f32.mrf.mxu1  ;;  %v25159_v18 = vld [vmem:[#allocation53_spill] sm:$0xff] }
 0x290   : > { %v21033_v60 = vadd.f32 %v8355_v16, %v8163_v9  ;;  %v8165_v45 = vadd.f32 %v8164_v28, %v20574_v56  ;;  %v25160_v16 = vld [vmem:[#allocation55_spill] sm:$0xff]  ;;  %v25162_v28 = vld [vmem:[#allocation56_spill] sm:$0xff] }
 0x291   : > { %v8166_v58 = vpop.f32.mrf.mxu0  ;;  %v8359_v27 = vpop.f32.mrf.mxu1 }
 0x292   : > { %v21036_v30 = vadd.f32 %v8357_v2, %v8165_v45  ;;  %v8167_v13 = vadd.f32 %v8166_v58, %v20577_v20  ;;  %v25163_v2 = vld [vmem:[#allocation57_spill] sm:$0xff] }
 0x293   : > { %v8168_v51 = vpop.f32.mrf.mxu0  ;;  %v8361_v8 = vpop.f32.mrf.mxu1 }
 0x294   : > { %v21039_v21 = vadd.f32 %v8359_v27, %v8167_v13  ;;  %v8169_v48 = vadd.f32 %v8168_v51, %v20582_v54 }
 0x295   : > { %v8172_v36 = vpop.f32.mrf.mxu0  ;;  %v8365_v10 = vpop.f32.mrf.mxu1 }
 0x296   : > { %8637 = vmatmul.mubr.bf16.gmra.mxu0 %v25159_v18  ;;  %8830 = vmatmul.mubr.bf16.gmra.mxu1 %v25160_v16  ;;  %v21044_v9 = vadd.f32 %v8361_v8, %v8169_v48  ;;  %v8173_v56 = vadd.f32 %v8172_v36, %v20587_v31 }
 0x297   : > { %8646 = vmatprep.mubr.bf16.mxu0 %v25162_v28  ;;  %8839 = vmatprep.mubr.bf16.mxu1 %v25163_v2  ;;  %v8174_v20 = vpop.f32.mrf.mxu0  ;;  %v8367_v45 = vpop.f32.mrf.mxu1  ;;  %v25167_v28 = vld [vmem:[#allocation58_spill] sm:$0xff] }
 0x298   : > { %25161 = vst [vmem:[#allocation144_spill] sm:$0xff] %v21044_v9  ;;  %v21049_v58 = vadd.f32 %v8365_v10, %v8173_v56  ;;  %v8175_v54 = vadd.f32 %v8174_v20, %v20590_v62  ;;  %v25168_v10 = vld [vmem:[#allocation59_spill] sm:$0xff]  ;;  %v25208_v9 = vld [vmem:[#allocation74_spill] sm:$0xff] }
 0x299   : > { %v8176_v27 = vpop.f32.mrf.mxu0  ;;  %v8369_v13 = vpop.f32.mrf.mxu1  ;;  %v25170_v62 = vld [vmem:[#allocation111_spill] sm:$0xff] }
 0x29a   : > { %25164 = vst [vmem:[#allocation147_spill] sm:$0xff] %v21049_v58  ;;  %v21052_v51 = vadd.f32 %v8367_v45, %v8175_v54  ;;  %v8177_v16 = vadd.f32 %v8176_v27, %v20593_v0  ;;  %v25171_v45 = vld [vmem:[#allocation60_spill] sm:$0xff]  ;;  %v25172_v54 = vld [vmem:[#allocation61_spill] sm:$0xff] }
 0x29b   : > { %v8178_v8 = vpop.f32.mrf.mxu0  ;;  %v8371_v48 = vpop.f32.mrf.mxu1 }
 0x29c   : > { %25165 = vst [vmem:[#allocation152_spill] sm:$0xff] %v21052_v51  ;;  %v21055_v18 = vadd.f32 %v8369_v13, %v8177_v16  ;;  %v8179_v31 = vadd.f32 %v8178_v8, %v20598_v55  ;;  %v25174_v13 = vld [vmem:[#allocation112_spill] sm:$0xff]  ;;  %v25179_v51 = vld [vmem:[#allocation62_spill] sm:$0xff] }
 0x29d   : > { %v8182_v36 = vpop.f32.mrf.mxu0  ;;  %v8375_v2 = vpop.f32.mrf.mxu1 }
 0x29e   : > { %25166 = vst [vmem:[#allocation21_spill] sm:$0xff] %v21055_v18  ;;  %8647 = vmatmul.mubr.bf16.gmra.mxu0 %v25167_v28  ;;  %8840 = vmatmul.mubr.bf16.gmra.mxu1 %v25168_v10  ;;  %v21060_v56 = vadd.f32 %v8371_v48, %v8179_v31  ;;  %v8183_v20 = vadd.f32 %v8182_v36, %v25170_v62  ;;  %v25176_v28 = vld [vmem:[#allocation115_spill] sm:$0xff]  ;;  %v25178_v36 = vld [vmem:[#allocation118_spill] sm:$0xff] }
 0x29f   : > { %8656 = vmatprep.mubr.bf16.mxu0 %v25171_v45  ;;  %8849 = vmatprep.mubr.bf16.mxu1 %v25172_v54  ;;  %v8184_v0 = vpop.f32.mrf.mxu0  ;;  %v8377_v27 = vpop.f32.mrf.mxu1 }
 0x2a0   : > { %25169 = vst [vmem:[#allocation23_spill] sm:$0xff] %v21060_v56  ;;  %v21065_v16 = vadd.f32 %v8375_v2, %v8183_v20  ;;  %v8185_v55 = vadd.f32 %v8184_v0, %v25174_v13  ;;  %v25180_v2 = vld [vmem:[#allocation63_spill] sm:$0xff] }
 0x2a1   : > { %v8186_v8 = vpop.f32.mrf.mxu0  ;;  %v8379_v19 = vpop.f32.mrf.mxu1  ;;  %v25182_v0 = vld [vmem:[#allocation119_spill] sm:$0xff] }
 0x2a2   : > { %25173 = vst [vmem:[#allocation20_spill] sm:$0xff] %v21065_v16  ;;  %v21068_v18 = vadd.f32 %v8377_v27, %v8185_v55  ;;  %v8187_v10 = vadd.f32 %v8186_v8, %v25176_v28  ;;  %v25183_v27 = vld [vmem:[#allocation64_spill] sm:$0xff]  ;;  %v25184_v55 = vld [vmem:[#allocation66_spill] sm:$0xff]  ;;  %v25191_v16 = vld [vmem:[#allocation65_spill] sm:$0xff] }
 0x2a3   : > { %v8188_v48 = vpop.f32.mrf.mxu0  ;;  %v8381_v31 = vpop.f32.mrf.mxu1 }
 0x2a4   : > { %25175 = vst [vmem:[#allocation22_spill] sm:$0xff] %v21068_v18  ;;  %v21071_v56 = vadd.f32 %v8379_v19, %v8187_v10  ;;  %v8189_v62 = vadd.f32 %v8188_v48, %v25178_v36  ;;  %v25186_v10 = vld [vmem:[#allocation120_spill] sm:$0xff] }
 0x2a5   : > { %v8192_v45 = vpop.f32.mrf.mxu0  ;;  %v8385_v54 = vpop.f32.mrf.mxu1 }
 0x2a6   : > { %25177 = vst [vmem:[#allocation87_spill] sm:$0xff] %v21071_v56  ;;  %8657 = vmatmul.mubr.bf16.gmra.mxu0 %v25179_v51  ;;  %8850 = vmatmul.mubr.bf16.gmra.mxu1 %v25180_v2  ;;  %v21076_v20 = vadd.f32 %v8381_v31, %v8189_v62  ;;  %v8193_v13 = vadd.f32 %v8192_v45, %v25182_v0  ;;  %v25188_v51 = vld [vmem:[#allocation124_spill] sm:$0xff]  ;;  %v25190_v45 = vld [vmem:[#allocation126_spill] sm:$0xff] }
 0x2a7   : > { %8666 = vmatprep.mubr.bf16.mxu0 %v25183_v27  ;;  %8859 = vmatprep.mubr.bf16.mxu1 %v25184_v55  ;;  %v8194_v28 = vpop.f32.mrf.mxu0  ;;  %v8387_v8 = vpop.f32.mrf.mxu1 }
 0x2a8   : > { %25181 = vst [vmem:[#allocation88_spill] sm:$0xff] %v21076_v20  ;;  %v21081_v19 = vadd.f32 %v8385_v54, %v8193_v13  ;;  %v8195_v48 = vadd.f32 %v8194_v28, %v25186_v10  ;;  %v25192_v54 = vld [vmem:[#allocation67_spill] sm:$0xff]  ;;  %v25195_v10 = vld [vmem:[#allocation69_spill] sm:$0xff] }
 0x2a9   : > { %v8196_v36 = vpop.f32.mrf.mxu0  ;;  %v8389_v56 = vpop.f32.mrf.mxu1  ;;  %v25194_v28 = vld [vmem:[#allocation127_spill] sm:$0xff] }
 0x2aa   : > { %25185 = vst [vmem:[#allocation91_spill] sm:$0xff] %v21081_v19  ;;  %v21084_v18 = vadd.f32 %v8387_v8, %v8195_v48  ;;  %v8197_v2 = vadd.f32 %v8196_v36, %v25188_v51  ;;  %v25196_v51 = vld [vmem:[#allocation70_spill] sm:$0xff]  ;;  %v25198_v36 = vld [vmem:[#allocation128_spill] sm:$0xff] }
 0x2ab   : > { %v8198_v31 = vpop.f32.mrf.mxu0  ;;  %v8391_v62 = vpop.f32.mrf.mxu1 }
 0x2ac   : > { %25187 = vst [vmem:[#allocation94_spill] sm:$0xff] %v21084_v18  ;;  %v21087_v20 = vadd.f32 %v8389_v56, %v8197_v2  ;;  %v8199_v0 = vadd.f32 %v8198_v31, %v25190_v45  ;;  %v1746_v18 = vld [vmem:[%s17890_s22 + $0x8] sm:$0xee] }
 0x2ad   : > { %v8202_v27 = vpop.f32.mrf.mxu0  ;;  %v8395_v55 = vpop.f32.mrf.mxu1  ;;  %v14668_v58 = vrot.slane %v1746_v18, 9 }
 0x2ae   : > { %25189 = vst [vmem:[#allocation95_spill] sm:$0xff] %v21087_v20  ;;  %8667 = vmatmul.mubr.bf16.gmra.mxu0 %v25191_v16  ;;  %8860 = vmatmul.mubr.bf16.gmra.mxu1 %v25192_v54  ;;  %v21092_v13 = vadd.f32 %v8391_v62, %v8199_v0  ;;  %v8203_v8 = vadd.f32 %v8202_v27, %v25194_v28  ;;  %v25200_v54 = vld [vmem:[#allocation131_spill] sm:$0xff]  ;;  %v1747_v27 = vld [vmem:[%s17890_s22 + $0x10] sm:$0xff] }
 0x2af   : > { %8676 = vmatprep.mubr.bf16.mxu0 %v25195_v10  ;;  %8869 = vmatprep.mubr.bf16.mxu1 %v25196_v51  ;;  %v8204_v56 = vpop.f32.mrf.mxu0  ;;  %v8397_v2 = vpop.f32.mrf.mxu1  ;;  %v1748_v10 = vld [vmem:[%s17890_s22 + $0x18] sm:$0xff] }
 0x2b0   : > { %25193 = vst [vmem:[#allocation3_spill] sm:$0xff] %v21092_v13  ;;  %v21097_v48 = vadd.f32 %v8395_v55, %v8203_v8  ;;  %v8205_v31 = vadd.f32 %v8204_v56, %v25198_v36  ;;  %v25202_v56 = vld [vmem:[#allocation68_spill] sm:$0xff] }
 0x2b1   : > { %v8206_v45 = vpop.f32.mrf.mxu0  ;;  %v8399_v16 = vpop.f32.mrf.mxu1 }
 0x2b2   : > { %25197 = vst [vmem:[#allocation4_spill] sm:$0xff] %v21097_v48  ;;  %v21100_v20 = vadd.f32 %v8397_v2, %v8205_v31  ;;  %v8207_v62 = vadd.f32 %v8206_v45, %v25200_v54  ;;  %v25203_v2 = vld [vmem:[#allocation71_spill] sm:$0xff]  ;;  %v25205_v31 = vld [vmem:[#allocation72_spill] sm:$0xff]  ;;  %v1966_v45 = vrot.slane %v1747_v27, 5 }
 0x2b3   : > { %v8208_v0 = vpop.f32.mrf.mxu0  ;;  %v8401_v13 = vpop.f32.mrf.mxu1 }
 0x2b4   : > { %25199 = vst [vmem:[#allocation96_spill] sm:$0xff] %v21100_v20  ;;  %v21104_v28 = vadd.f32 %v8399_v16, %v8207_v62  ;;  %v8209_v51 = vadd.f32 %v8208_v0, %v20654_v35  ;;  %v25206_v16 = vld [vmem:[#allocation73_spill] sm:$0xff]  ;;  %v1745_v0 = vld [vmem:[%s17890_s22] sm:$0xee] }
 0x2b5   : > { %v8212_v55 = vpop.f32.mrf.mxu0  ;;  %v8405_v8 = vpop.f32.mrf.mxu1 }
 0x2b6   : > { %25201 = vst [vmem:[#allocation99_spill] sm:$0xff] %v21104_v28  ;;  %8677 = vmatmul.mubr.bf16.gmra.mxu0 %v25202_v56  ;;  %8870 = vmatmul.mubr.bf16.gmra.mxu1 %v25203_v2  ;;  %v21110_v36 = vadd.f32 %v8401_v13, %v8209_v51  ;;  %v8213_v54 = vadd.f32 %v8212_v55, %v20660_v59  ;;  %v1970_v28 = vrot.slane %v1748_v10, 5  ;;  %v1749_v56 = vld [vmem:[%s17890_s22 + $0x20] sm:$0x11]  ;;  %v1750_v2 = vld [vmem:[%s17890_s22 + $0x28] sm:$0x11] }
 0x2b7   : > { %8686 = vmatprep.mubr.bf16.mxu0 %v25205_v31  ;;  %8879 = vmatprep.mubr.bf16.mxu1 %v25206_v16  ;;  %v8214_v35 = vpop.f32.mrf.mxu0  ;;  %v8407_v62 = vpop.f32.mrf.mxu1  ;;  %v14667_v55 = vrot.slane %v1745_v0, 9  ;;  %v1972_v16 = vrot.slane %v1966_v45, 4  ;;  %v1973_v19 = vrot.slane %v1749_v56, 5  ;;  %v25210_v0 = vld [vmem:[#allocation76_spill] sm:$0xff]  ;;  %v25211_v56 = vld [vmem:[#allocation77_spill] sm:$0xff] }
 0x2b8   : > { %25204 = vst [vmem:[#allocation102_spill] sm:$0xff] %v21110_v36  ;;  %v21116_v20 = vadd.f32 %v8405_v8, %v8213_v54  ;;  %v8215_v48 = vadd.f32 %v8214_v35, %v20663_v33  ;;  %v1975_v10 = vrot.slane %v1970_v28, 4  ;;  %v1976_v8 = vrot.slane %v1750_v2, 5 }
 0x2b9   : > { %v8216_v13 = vpop.f32.mrf.mxu0  ;;  %v8409_v51 = vpop.f32.mrf.mxu1 }
 0x2ba   : > { %25207 = vst [vmem:[#allocation5_spill] sm:$0xff] %v21116_v20  ;;  %v21122_v36 = vadd.f32 %v8407_v62, %v8215_v48  ;;  %v8217_v59 = vadd.f32 %v8216_v13, %v20666_v39  ;;  %v25209_v48 = vld [vmem:[#allocation75_spill] sm:$0xff] }
 0x2bb   : > { %v8218_v27 = vpop.f32.mrf.mxu0  ;;  %v8411_v31 = vpop.f32.mrf.mxu1 }
 0x2bc   : > { %v21125_v54 = vadd.f32 %v8409_v51, %v8217_v59  ;;  %v8219_v33 = vadd.f32 %v8218_v27, %v20671_v44  ;;  %v1967_v51 = vsel %vm19212_vm5, %v14667_v55, %v1966_v45  ;;  %v1974_v44 = vsel %vm19212_vm5, %v1972_v16, %v1973_v19 }
 0x2bd   : > { %v8222_v35 = vpop.f32.mrf.mxu0  ;;  %v1971_v59 = vsel %vm19212_vm5, %v14668_v58, %v1970_v28  ;;  %v15288_v45 = vcombine.high %v1967_v51, %v1974_v44 }
 0x2be   : > { %v8415_v20 = vpop.f32.mrf.mxu1  ;;  %8687 = vmatmul.mubr.bf16.gmra.mxu0 %v25208_v9  ;;  %8880 = vmatmul.mubr.bf16.gmra.mxu1 %v25209_v48  ;;  %v21130_v62 = vadd.f32 %v8411_v31, %v8219_v33  ;;  %v8223_v39 = vadd.f32 %v8222_v35, %v20685_v12  ;;  %v1977_v31 = vsel %vm19212_vm5, %v1975_v10, %v1976_v8  ;;  %v25214_v8 = vld [vmem:[#allocation79_spill] sm:$0xff] }
 0x2bf   : > { %8696 = vmatprep.mubr.bf16.mxu0 %v25210_v0  ;;  %8889 = vmatprep.mubr.bf16.mxu1 %v25211_v56  ;;  %v8224_v18 = vpop.f32.mrf.mxu0  ;;  %v15290_v55 = vcombine.high %v1971_v59, %v1977_v31 }
 0x2c0   : > { %v8417_v2 = vpop.f32.mrf.mxu1  ;;  %v21143_v27 = vadd.f32 %v8415_v20, %v8223_v39  ;;  %v8225_v12 = vadd.f32 %v8224_v18, %v20688_v40  ;;  %v25213_v20 = vld [vmem:[#allocation78_spill] sm:$0xff] }
 0x2c1   : > { %v8226_v33 = vpop.f32.mrf.mxu0 }
 0x2c2   : > { %v8419_v35 = vpop.f32.mrf.mxu1  ;;  %v21146_v56 = vadd.f32 %v8417_v2, %v8225_v12  ;;  %v8227_v0 = vadd.f32 %v8226_v33, %v20691_v46  ;;  %v15289_v33 = vcombine.low %v1971_v59, %v1977_v31 }
 0x2c3   : > { %v8228_v48 = vpop.f32.mrf.mxu0 }
 0x2c4   : > { %v8421_v19 = vpop.f32.mrf.mxu1  ;;  %v21149_v16 = vadd.f32 %v8419_v35, %v8227_v0  ;;  %v8229_v58 = vadd.f32 %v8228_v48, %v20696_v52  ;;  %v15287_v48 = vcombine.low %v1967_v51, %v1974_v44  ;;  %v17208_v51 = vld [vmem:[%s24472_s1 + $0xc64] ss:$8 sps:$4 sm:$0xff]  }
 0x2c6   : > { %v8232_v28 = vpop.f32.mrf.mxu0  ;;  %v8425_v10 = vpop.f32.mrf.mxu1  ;;  %8697 = vmatmul.mubr.bf16.gmra.mxu0 %v25213_v20  ;;  %8890 = vmatmul.mubr.bf16.gmra.mxu1 %v25214_v8  ;;  %v21154_v40 = vadd.f32 %v8421_v19, %v8229_v58  ;;  %v17290_v8 = vld [vmem:[%s24472_s1 + $0xc80] ss:$8 sps:$4 sm:$0xff]   ;;  %v25252_v20 = vld [vmem:[#allocation146_spill] sm:$0xff] }
 0x2c7   : > { %v8233_v39 = vadd.f32 %v8232_v28, %v20699_v7  ;;  %8932 = vmatprep.mubr.bf16.mxu0 %v15288_v45  ;;  %9125 = vmatprep.mubr.bf16.mxu1 %v15290_v55  ;;  %v17200_v7 = vld [vmem:[%s24472_s1 + $0xc70] ss:$8 sps:$4 sm:$0xff]  }
 0x2c8   : > { %v8234_v46 = vpop.f32.mrf.mxu0  ;;  %v8427_v18 = vpop.f32.mrf.mxu1  ;;  %v17203_v45 = vld [vmem:[%s24472_s1 + $0xd70] ss:$8 sps:$4 sm:$0xff]  }
 0x2c9   : > { %v21157_v2 = vadd.f32 %v8425_v10, %v8233_v39  ;;  %v8235_v0 = vadd.f32 %v8234_v46, %v20702_v25  ;;  %v25215_v46 = vld [vmem:[#allocation85_spill] sm:$0xff] }
 0x2ca   : > { %v8236_v12 = vpop.f32.mrf.mxu0  ;;  %v8429_v52 = vpop.f32.mrf.mxu1 }
 0x2cb   : > { %v21160_v35 = vadd.f32 %v8427_v18, %v8235_v0  ;;  %v8237_v13 = vadd.f32 %v8236_v12, %v20711_v41  ;;  %v17211_v41 = vld [vmem:[%s24472_s1 + $0xd64] ss:$8 sps:$4 sm:$0xff]   ;;  %v25216_v18 = vld [vmem:[#allocation86_spill] sm:$0xff] }
 0x2cc   : > { %v8238_v55 = vpop.f32.mrf.mxu0  ;;  %v8431_v19 = vpop.f32.mrf.mxu1  ;;  %v17217_v0 = vld [vmem:[%s24472_s1 + $0xd54] ss:$8 sps:$4 sm:$0xff]  }
 0x2cd   : > { %v21169_v58 = vadd.f32 %v8429_v52, %v8237_v13  ;;  %v8239_v25 = vadd.f32 %v8238_v55, %v20720_v53  ;;  %v17206_v53 = vld [vmem:[%s24472_s1 + $0xc60] ss:$8 sps:$4 sm:$0xff]  }
 0x2ce   : > { %v8242_v44 = vpop.f32.mrf.mxu0  ;;  %v8435_v59 = vpop.f32.mrf.mxu1  ;;  %8933 = vmatmul.mubr.bf16.vlgmr.msra.gmra.mxu0 %v15287_v48  ;;  %9126 = vmatmul.mubr.bf16.vlgmr.msra.gmra.mxu1 %v15289_v33  ;;  %v17209_v13 = vld [vmem:[%s24472_s1 + $0xd60] ss:$8 sps:$4 sm:$0xff]  }
 0x2cf   : > { %v21178_v31 = vadd.f32 %v8431_v19, %v8239_v25  ;;  %v8243_v28 = vadd.f32 %v8242_v44, %v20737_v3  ;;  %11593 = vmatpush1.bf16.msra.mxu0 %v17200_v7  ;;  %11786 = vmatpush1.bf16.msra.mxu1 %v17203_v45  ;;  %v17214_v3 = vld [vmem:[%s24472_s1 + $0xc54] ss:$8 sps:$4 sm:$0xff]   ;;  %v17212_v25 = vld [vmem:[%s24472_s1 + $0xc50] ss:$8 sps:$4 sm:$0xff]   ;;  %v17223_v44 = vld [vmem:[%s24472_s1 + $0xd44] ss:$8 sps:$4 sm:$0xff]  }
 0x2d0   : > { %v8244_v10 = vpop.f32.mrf.mxu0  ;;  %v8437_v39 = vpop.f32.mrf.mxu1  ;;  %8942 = vmatprep.mubr.bf16.mxu0 %v25215_v46  ;;  %9135 = vmatprep.mubr.bf16.mxu1 %v25216_v18  ;;  %v25219_v46 = vld [vmem:[#allocation92_spill] sm:$0xff] }
 0x2d1   : > { %v21195_v12 = vadd.f32 %v8435_v59, %v8243_v28  ;;  %v8245_v52 = vadd.f32 %v8244_v10, %v20740_v32  ;;  %11594 = vmatprep.subr.bf16.mxu0 %v17208_v51  ;;  %11787 = vmatprep.subr.bf16.mxu1 %v17211_v41  ;;  %v17215_v32 = vld [vmem:[%s24472_s1 + $0xd50] ss:$8 sps:$4 sm:$0xff]  }
 0x2d2   : > { %v8246_v48 = vpop.f32.mrf.mxu0  ;;  %v8439_v33 = vpop.f32.mrf.mxu1 }
 0x2d3   : > { %v21198_v7 = vadd.f32 %v8437_v39, %v8245_v52  ;;  %v8247_v45 = vadd.f32 %v8246_v48, %v20749_v61  ;;  %11595 = vmatpush1.bf16.msra.mxu0 %v17206_v53  ;;  %11788 = vmatpush1.bf16.msra.mxu1 %v17209_v13  ;;  %v17220_v61 = vld [vmem:[%s24472_s1 + $0xc44] ss:$8 sps:$4 sm:$0xff]   ;;  %v25217_v53 = vld [vmem:[#allocation89_spill] sm:$0xff]  ;;  %v25218_v13 = vld [vmem:[#allocation90_spill] sm:$0xff] }
 0x2d4   : > { %v8248_v55 = vpop.f32.mrf.mxu0  ;;  %v8441_v19 = vpop.f32.mrf.mxu1  ;;  %11596 = vmatprep.subr.bf16.mxu0 %v17214_v3  ;;  %11789 = vmatprep.subr.bf16.mxu1 %v17217_v0  ;;  %v17218_v0 = vld [vmem:[%s24472_s1 + $0xc40] ss:$8 sps:$4 sm:$0xff]  }
 0x2d5   : > { %v21207_v51 = vadd.f32 %v8439_v33, %v8247_v45  ;;  %v8249_v41 = vadd.f32 %v8248_v55, %v20760_v49  ;;  %v25220_v49 = vld [vmem:[#allocation93_spill] sm:$0xff]  ;;  %v17221_v52 = vld [vmem:[%s24472_s1 + $0xd40] ss:$8 sps:$4 sm:$0xff]  }
 0x2d6   : > { %v8252_v59 = vpop.f32.mrf.mxu0  ;;  %v8445_v28 = vpop.f32.mrf.mxu1  ;;  %8943 = vmatmul.mubr.bf16.gmra.mxu0 %v25217_v53  ;;  %9136 = vmatmul.mubr.bf16.gmra.mxu1 %v25218_v13  ;;  %v17226_v33 = vld [vmem:[%s24472_s1 + $0xc34] ss:$8 sps:$4 sm:$0xff]   ;;  %v17235_v53 = vld [vmem:[%s24472_s1 + $0xd24] ss:$8 sps:$4 sm:$0xff]  }
 0x2d7   : > { %v21218_v10 = vadd.f32 %v8441_v19, %v8249_v41  ;;  %v8253_v39 = vadd.f32 %v8252_v59, %v20771_v26  ;;  %8952 = vmatprep.mubr.bf16.mxu0 %v25219_v46  ;;  %9145 = vmatprep.mubr.bf16.mxu1 %v25220_v49  ;;  %v17229_v45 = vld [vmem:[%s24472_s1 + $0xd34] ss:$8 sps:$4 sm:$0xff]  }
 0x2d8   : > { %v8254_v18 = vpop.f32.mrf.mxu0  ;;  %v8447_v3 = vpop.f32.mrf.mxu1  ;;  %11597 = vmatpush1.bf16.msra.mxu0 %v17212_v25  ;;  %11790 = vmatpush1.bf16.msra.mxu1 %v17215_v32 }
 0x2d9   : > { %v21229_v48 = vadd.f32 %v8445_v28, %v8253_v39  ;;  %v8255_v26 = vadd.f32 %v8254_v18, %v20780_v47  ;;  %11598 = vmatprep.subr.bf16.mxu0 %v17220_v61  ;;  %11791 = vmatprep.subr.bf16.mxu1 %v17223_v44  ;;  %v17224_v47 = vld [vmem:[%s24472_s1 + $0xc30] ss:$8 sps:$4 sm:$0xff]  }
 0x2da   : > { %v8256_v55 = vpop.f32.mrf.mxu0  ;;  %v8449_v19 = vpop.f32.mrf.mxu1  ;;  %v17227_v61 = vld [vmem:[%s24472_s1 + $0xd30] ss:$8 sps:$4 sm:$0xff]  }
 0x2db   : > { %v21238_v25 = vadd.f32 %v8447_v3, %v8255_v26  ;;  %v8257_v32 = vadd.f32 %v8256_v55, %v20789_v24  ;;  %v17232_v24 = vld [vmem:[%s24472_s1 + $0xc24] ss:$8 sps:$4 sm:$0xff]   ;;  %v25221_v18 = vld [vmem:[#allocation97_spill] sm:$0xff]  ;;  %v25222_v3 = vld [vmem:[#allocation98_spill] sm:$0xff] }
 0x2dc   : > { %v8258_v41 = vpop.f32.mrf.mxu0  ;;  %v8451_v59 = vpop.f32.mrf.mxu1  ;;  %11599 = vmatpush1.bf16.msra.mxu0 %v17218_v0  ;;  %11792 = vmatpush1.bf16.msra.mxu1 %v17221_v52  ;;  %v25223_v52 = vld [vmem:[#allocation100_spill] sm:$0xff]  ;;  %v25224_v26 = vld [vmem:[#allocation101_spill] sm:$0xff] }
 0x2dd   : > { %v21247_v44 = vadd.f32 %v8449_v19, %v8257_v32  ;;  %v8259_v28 = vadd.f32 %v8258_v41, %v20800_v6  ;;  %11600 = vmatprep.subr.bf16.mxu0 %v17226_v33  ;;  %11793 = vmatprep.subr.bf16.mxu1 %v17229_v45  ;;  %v17230_v55 = vld [vmem:[%s24472_s1 + $0xc20] ss:$8 sps:$4 sm:$0xff]   ;;  %v17238_v41 = vld [vmem:[%s24472_s1 + $0xc14] ss:$8 sps:$4 sm:$0xff]  }
 0x2de   : > { %v8262_v13 = vpop.f32.mrf.mxu0  ;;  %v8455_v39 = vpop.f32.mrf.mxu1  ;;  %8953 = vmatmul.mubr.bf16.gmra.mxu0 %v25221_v18  ;;  %9146 = vmatmul.mubr.bf16.gmra.mxu1 %v25222_v3  ;;  %v17233_v19 = vld [vmem:[%s24472_s1 + $0xd20] ss:$8 sps:$4 sm:$0xff]  }
 0x2df   : > { %v21258_v0 = vadd.f32 %v8451_v59, %v8259_v28  ;;  %v8263_v6 = vadd.f32 %v8262_v13, %v20811_v43  ;;  %8962 = vmatprep.mubr.bf16.mxu0 %v25223_v52  ;;  %9155 = vmatprep.mubr.bf16.mxu1 %v25224_v26  ;;  %v17241_v59 = vld [vmem:[%s24472_s1 + $0xd14] ss:$8 sps:$4 sm:$0xff]   ;;  %v17242_v26 = vld [vmem:[%s24472_s1 + $0xc00] ss:$8 sps:$4 sm:$0xff]  }
 0x2e0   : > { %v8264_v33 = vpop.f32.mrf.mxu0  ;;  %v8457_v45 = vpop.f32.mrf.mxu1  ;;  %11601 = vmatpush1.bf16.msra.mxu0 %v17224_v47  ;;  %11794 = vmatpush1.bf16.msra.mxu1 %v17227_v61  ;;  %v17266_v52 = vld [vmem:[%s24472_s1 + $0xcc0] ss:$8 sps:$4 sm:$0xff]  }
 0x2e1   : > { %v21269_v32 = vadd.f32 %v8455_v39, %v8263_v6  ;;  %v8265_v43 = vadd.f32 %v8264_v33, %v20820_v22  ;;  %11602 = vmatprep.subr.bf16.mxu0 %v17232_v24  ;;  %11795 = vmatprep.subr.bf16.mxu1 %v17235_v53  ;;  %v17236_v22 = vld [vmem:[%s24472_s1 + $0xc10] ss:$8 sps:$4 sm:$0xff]   ;;  %v17278_v18 = vld [vmem:[%s24472_s1 + $0xca0] ss:$8 sps:$4 sm:$0xff]  }
 0x2e2   : > { %v8266_v47 = vpop.f32.mrf.mxu0  ;;  %v8459_v61 = vpop.f32.mrf.mxu1  ;;  %v17239_v24 = vld [vmem:[%s24472_s1 + $0xd10] ss:$8 sps:$4 sm:$0xff]  }
 0x2e3   : > { %v21278_v28 = vadd.f32 %v8457_v45, %v8265_v43  ;;  %v8267_v13 = vadd.f32 %v8266_v47, %v20829_v5  ;;  %v17244_v5 = vld [vmem:[%s24472_s1 + $0xc04] ss:$8 sps:$4 sm:$0xff]   ;;  %v25225_v43 = vld [vmem:[#allocation105_spill] sm:$0xff]  ;;  %v25226_v47 = vld [vmem:[#allocation106_spill] sm:$0xff] }
 0x2e4   : > { %v8268_v39 = vpop.f32.mrf.mxu0  ;;  %v8461_v6 = vpop.f32.mrf.mxu1  ;;  %11603 = vmatpush1.bf16.msra.mxu0 %v17230_v55  ;;  %11796 = vmatpush1.bf16.msra.mxu1 %v17233_v19  ;;  %v17247_v45 = vld [vmem:[%s24472_s1 + $0xd04] ss:$8 sps:$4 sm:$0xff]  }
 0x2e5   : > { %v21287_v53 = vadd.f32 %v8459_v61, %v8267_v13  ;;  %v8269_v33 = vadd.f32 %v8268_v39, %v20840_v15  ;;  %11604 = vmatprep.subr.bf16.mxu0 %v17238_v41  ;;  %11797 = vmatprep.subr.bf16.mxu1 %v17241_v59  ;;  %v25227_v41 = vld [vmem:[#allocation107_spill] sm:$0xff]  ;;  %v25228_v59 = vld [vmem:[#allocation109_spill] sm:$0xff] }
 0x2e6   : > { %v8272_v55 = vpop.f32.mrf.mxu0  ;;  %v8465_v19 = vpop.f32.mrf.mxu1  ;;  %8963 = vmatmul.mubr.bf16.gmra.mxu0 %v25225_v43  ;;  %9156 = vmatmul.mubr.bf16.gmra.mxu1 %v25226_v47  ;;  %v17245_v47 = vld [vmem:[%s24472_s1 + $0xd00] ss:$8 sps:$4 sm:$0xff]  }
 0x2e7   : > { %v21298_v61 = vadd.f32 %v8461_v6, %v8269_v33  ;;  %v8273_v15 = vadd.f32 %v8272_v55, %v20851_v37  ;;  %8972 = vmatprep.mubr.bf16.mxu0 %v25227_v41  ;;  %9165 = vmatprep.mubr.bf16.mxu1 %v25228_v59  ;;  %v17250_v33 = vld [vmem:[%s24472_s1 + $0xcf4] ss:$8 sps:$4 sm:$0xff]   ;;  %v17254_v43 = vld [vmem:[%s24472_s1 + $0xce0] ss:$8 sps:$4 sm:$0xff]  }
 0x2e8   : > { %v8274_v13 = vpop.f32.mrf.mxu0  ;;  %v8467_v39 = vpop.f32.mrf.mxu1  ;;  %11605 = vmatpush1.bf16.msra.mxu0 %v17236_v22  ;;  %11798 = vmatpush1.bf16.msra.mxu1 %v17239_v24  ;;  %v17253_v22 = vld [vmem:[%s24472_s1 + $0xdf4] ss:$8 sps:$4 sm:$0xff]  }
 0x2e9   : > { %v21309_v6 = vadd.f32 %v8465_v19, %v8273_v15  ;;  %v8275_v37 = vadd.f32 %v8274_v13, %v20860_v50  ;;  %11606 = vmatprep.subr.bf16.mxu0 %v17244_v5  ;;  %11799 = vmatprep.subr.bf16.mxu1 %v17247_v45  ;;  %v17248_v50 = vld [vmem:[%s24472_s1 + $0xcf0] ss:$8 sps:$4 sm:$0xff]  }
 0x2ea   : > { %v8276_v24 = vpop.f32.mrf.mxu0  ;;  %v8469_v55 = vpop.f32.mrf.mxu1  ;;  %v17251_v5 = vld [vmem:[%s24472_s1 + $0xdf0] ss:$8 sps:$4 sm:$0xff]  }
 0x2eb   : > { %v21318_v59 = vadd.f32 %v8467_v39, %v8275_v37  ;;  %v8277_v41 = vadd.f32 %v8276_v24, %v20869_v63  ;;  %v17256_v63 = vld [vmem:[%s24472_s1 + $0xce4] ss:$8 sps:$4 sm:$0xff]   ;;  %v25229_v37 = vld [vmem:[#allocation113_spill] sm:$0xff]  ;;  %v25230_v24 = vld [vmem:[#allocation114_spill] sm:$0xff] }
 0x2ec   : > { %v8278_v19 = vpop.f32.mrf.mxu0  ;;  %v8471_v15 = vpop.f32.mrf.mxu1  ;;  %11607 = vmatpush1.bf16.msra.mxu0 %v17242_v26  ;;  %11800 = vmatpush1.bf16.msra.mxu1 %v17245_v47  ;;  %v17259_v26 = vld [vmem:[%s24472_s1 + $0xde4] ss:$8 sps:$4 sm:$0xff]  }
 0x2ed   : > { %v21327_v45 = vadd.f32 %v8469_v55, %v8277_v41  ;;  %v8279_v13 = vadd.f32 %v8278_v19, %v20880_v29  ;;  %11608 = vmatprep.subr.bf16.mxu0 %v17250_v33  ;;  %11801 = vmatprep.subr.bf16.mxu1 %v17253_v22  ;;  %v25231_v33 = vld [vmem:[#allocation116_spill] sm:$0xff]  ;;  %v25232_v22 = vld [vmem:[#allocation117_spill] sm:$0xff] }
 0x2ee   : > { %v8282_v47 = vpop.f32.mrf.mxu0  ;;  %v8475_v39 = vpop.f32.mrf.mxu1  ;;  %8973 = vmatmul.mubr.bf16.gmra.mxu0 %v25229_v37  ;;  %9166 = vmatmul.mubr.bf16.gmra.mxu1 %v25230_v24  ;;  %v17257_v24 = vld [vmem:[%s24472_s1 + $0xde0] ss:$8 sps:$4 sm:$0xff]  }
 0x2ef   : > { %v21338_v41 = vadd.f32 %v8471_v15, %v8279_v13  ;;  %v8283_v29 = vadd.f32 %v8282_v47, %v20891_v57  ;;  %8982 = vmatprep.mubr.bf16.mxu0 %v25231_v33  ;;  %9175 = vmatprep.mubr.bf16.mxu1 %v25232_v22  ;;  %v17262_v13 = vld [vmem:[%s24472_s1 + $0xcd4] ss:$8 sps:$4 sm:$0xff]  }
 0x2f0   : > { %v8284_v55 = vpop.f32.mrf.mxu0  ;;  %v8477_v19 = vpop.f32.mrf.mxu1  ;;  %11609 = vmatpush2.bf16.msra.mxu0 %v17248_v50  ;;  %11802 = vmatpush2.bf16.msra.mxu1 %v17251_v5  ;;  %v17265_v50 = vld [vmem:[%s24472_s1 + $0xdd4] ss:$8 sps:$4 sm:$0xff]  }
 0x2f1   : > { %v21349_v15 = vadd.f32 %v8475_v39, %v8283_v29  ;;  %v8285_v57 = vadd.f32 %v8284_v55, %v20900_v4  ;;  %11610 = vmatprep.subr.bf16.mxu0 %v17256_v63  ;;  %11803 = vmatprep.subr.bf16.mxu1 %v17259_v26  ;;  %v17260_v4 = vld [vmem:[%s24472_s1 + $0xcd0] ss:$8 sps:$4 sm:$0xff]  }
 0x2f2   : > { %v8286_v5 = vpop.f32.mrf.mxu0  ;;  %v8479_v47 = vpop.f32.mrf.mxu1  ;;  %v17263_v63 = vld [vmem:[%s24472_s1 + $0xdd0] ss:$8 sps:$4 sm:$0xff]  }
 0x2f3   : > { %v21358_v22 = vadd.f32 %v8477_v19, %v8285_v57  ;;  %v8287_v33 = vadd.f32 %v8286_v5, %v20909_v42  ;;  %v25233_v55 = vld [vmem:[#allocation134_spill] sm:$0xff]  ;;  %v17268_v42 = vld [vmem:[%s24472_s1 + $0xcc4] ss:$8 sps:$4 sm:$0xff]   ;;  %v25234_v57 = vld [vmem:[#allocation121_spill] sm:$0xff] }
 0x2f4   : > { %v8288_v39 = vpop.f32.mrf.mxu0  ;;  %v8481_v29 = vpop.f32.mrf.mxu1  ;;  %11611 = vmatpush2.bf16.msra.mxu0 %v17254_v43  ;;  %11804 = vmatpush2.bf16.msra.mxu1 %v17257_v24  ;;  %v17271_v43 = vld [vmem:[%s24472_s1 + $0xdc4] ss:$8 sps:$4 sm:$0xff]   ;;  %v25235_v5 = vld [vmem:[#allocation122_spill] sm:$0xff] }
 0x2f5   : > { %v21367_v26 = vadd.f32 %v8479_v47, %v8287_v33  ;;  %v8289_v37 = vadd.f32 %v8288_v39, %v25233_v55  ;;  %11612 = vmatprep.subr.bf16.mxu0 %v17262_v13  ;;  %11805 = vmatprep.subr.bf16.mxu1 %v17265_v50  ;;  %v25236_v13 = vld [vmem:[#allocation123_spill] sm:$0xff]  ;;  %v25237_v50 = vld [vmem:[#allocation125_spill] sm:$0xff] }
 0x2f6   : > { %v8292_v24 = vpop.f32.mrf.mxu0  ;;  %v8485_v19 = vpop.f32.mrf.mxu1  ;;  %8983 = vmatmul.mubr.bf16.gmra.mxu0 %v25234_v57  ;;  %9176 = vmatmul.mubr.bf16.gmra.mxu1 %v25235_v5  ;;  %v17269_v5 = vld [vmem:[%s24472_s1 + $0xdc0] ss:$8 sps:$4 sm:$0xff]  }
 0x2f7   : > { %v21378_v33 = vadd.f32 %v8481_v29, %v8289_v37  ;;  %v8293_v47 = vadd.f32 %v8292_v24, %v20931_v11  ;;  %8992 = vmatprep.mubr.bf16.mxu0 %v25236_v13  ;;  %9185 = vmatprep.mubr.bf16.mxu1 %v25237_v50  ;;  %v17274_v29 = vld [vmem:[%s24472_s1 + $0xcb4] ss:$8 sps:$4 sm:$0xff]   ;;  %v25238_v13 = vld [vmem:[#allocation135_spill] sm:$0xff] }
 0x2f8   : > { %v8294_v39 = vpop.f32.mrf.mxu0  ;;  %v8487_v55 = vpop.f32.mrf.mxu1  ;;  %11613 = vmatpush2.bf16.msra.mxu0 %v17260_v4  ;;  %11806 = vmatpush2.bf16.msra.mxu1 %v17263_v63  ;;  %v17277_v4 = vld [vmem:[%s24472_s1 + $0xdb4] ss:$8 sps:$4 sm:$0xff]  }
 0x2f9   : > { %v21389_v37 = vadd.f32 %v8485_v19, %v8293_v47  ;;  %v8295_v11 = vadd.f32 %v8294_v39, %v20940_v23  ;;  %11614 = vmatprep.subr.bf16.mxu0 %v17268_v42  ;;  %11807 = vmatprep.subr.bf16.mxu1 %v17271_v43  ;;  %v17272_v23 = vld [vmem:[%s24472_s1 + $0xcb0] ss:$8 sps:$4 sm:$0xff]   ;;  %v25239_v39 = vld [vmem:[#allocation136_spill] sm:$0xff] }
 0x2fa   : > { %v8296_v63 = vpop.f32.mrf.mxu0  ;;  %v8489_v24 = vpop.f32.mrf.mxu1  ;;  %v17275_v42 = vld [vmem:[%s24472_s1 + $0xdb0] ss:$8 sps:$4 sm:$0xff]  }
 0x2fb   : > { %v21398_v50 = vadd.f32 %v8487_v55, %v8295_v11  ;;  %v8297_v57 = vadd.f32 %v8296_v63, %v25238_v13  ;;  %v17280_v13 = vld [vmem:[%s24472_s1 + $0xca4] ss:$8 sps:$4 sm:$0xff]   ;;  %v25240_v11 = vld [vmem:[#allocation129_spill] sm:$0xff]  ;;  %v25241_v63 = vld [vmem:[#allocation130_spill] sm:$0xff] }
 0x2fc   : > { %v8298_v19 = vpop.f32.mrf.mxu0  ;;  %v8491_v47 = vpop.f32.mrf.mxu1  ;;  %11615 = vmatpush2.bf16.msra.mxu0 %v17266_v52  ;;  %11808 = vmatpush2.bf16.msra.mxu1 %v17269_v5  ;;  %v17283_v52 = vld [vmem:[%s24472_s1 + $0xda4] ss:$8 sps:$4 sm:$0xff]  }
 0x2fd   : > { %v21407_v43 = vadd.f32 %v8489_v24, %v8297_v57  ;;  %v8299_v3 = vadd.f32 %v8298_v19, %v25239_v39  ;;  %11616 = vmatprep.subr.bf16.mxu0 %v17274_v29  ;;  %11809 = vmatprep.subr.bf16.mxu1 %v17277_v4  ;;  %v25242_v29 = vld [vmem:[#allocation132_spill] sm:$0xff]  ;;  %v25243_v4 = vld [vmem:[#allocation133_spill] sm:$0xff] }
 0x2fe   : > { %v8302_v5 = vpop.f32.mrf.mxu0  ;;  %v8495_v55 = vpop.f32.mrf.mxu1  ;;  %8993 = vmatmul.mubr.bf16.gmra.mxu0 %v25240_v11  ;;  %9186 = vmatmul.mubr.bf16.gmra.mxu1 %v25241_v63  ;;  %v17281_v63 = vld [vmem:[%s24472_s1 + $0xda0] ss:$8 sps:$4 sm:$0xff]   ;;  %v25245_v11 = vld [vmem:[#allocation142_spill] sm:$0xff] }
 0x2ff   : > { %v21418_v57 = vadd.f32 %v8491_v47, %v8299_v3  ;;  %v8303_v24 = vadd.f32 %v8302_v5, %v20971_v17  ;;  %9002 = vmatprep.mubr.bf16.mxu0 %v25242_v29  ;;  %9195 = vmatprep.mubr.bf16.mxu1 %v25243_v4  ;;  %v25244_v47 = vld [vmem:[#allocation139_spill] sm:$0xff]  ;;  %v17286_v5 = vld [vmem:[%s24472_s1 + $0xc94] ss:$8 sps:$4 sm:$0xff]  }
 0x300   : > { %v8304_v19 = vpop.f32.mrf.mxu0  ;;  %v8497_v39 = vpop.f32.mrf.mxu1  ;;  %11617 = vmatpush2.bf16.msra.mxu0 %v17272_v23  ;;  %11810 = vmatpush2.bf16.msra.mxu1 %v17275_v42  ;;  %v17289_v23 = vld [vmem:[%s24472_s1 + $0xd94] ss:$8 sps:$4 sm:$0xff]  }
 0x301   : > { %v21429_v3 = vadd.f32 %v8495_v55, %v8303_v24  ;;  %v8305_v17 = vadd.f32 %v8304_v19, %v25244_v47  ;;  %11618 = vmatprep.subr.bf16.mxu0 %v17280_v13  ;;  %11811 = vmatprep.subr.bf16.mxu1 %v17283_v52  ;;  %v17284_v13 = vld [vmem:[%s24472_s1 + $0xc90] ss:$8 sps:$4 sm:$0xff]  }
 0x302   : > { %v8306_v42 = vpop.f32.mrf.mxu0  ;;  %v8499_v4 = vpop.f32.mrf.mxu1  ;;  %v17287_v52 = vld [vmem:[%s24472_s1 + $0xd90] ss:$8 sps:$4 sm:$0xff]  }
 0x303   : > { %v21438_v29 = vadd.f32 %v8497_v39, %v8305_v17  ;;  %v8307_v49 = vadd.f32 %v8306_v42, %v25245_v11  ;;  %v17292_v11 = vld [vmem:[%s24472_s1 + $0xc84] ss:$8 sps:$4 sm:$0xff]   ;;  %v25246_v17 = vld [vmem:[#allocation137_spill] sm:$0xff]  ;;  %v25247_v42 = vld [vmem:[#allocation138_spill] sm:$0xff] }
 0x304   : > { %v8308_v55 = vpop.f32.mrf.mxu0  ;;  %v8501_v24 = vpop.f32.mrf.mxu1  ;;  %11619 = vmatpush2.bf16.msra.mxu0 %v17278_v18  ;;  %11812 = vmatpush2.bf16.msra.mxu1 %v17281_v63  ;;  %v17295_v18 = vld [vmem:[%s24472_s1 + $0xd84] ss:$8 sps:$4 sm:$0xff]  }
 0x305   : > { %v21447_v19 = vadd.f32 %v8499_v4, %v8307_v49  ;;  %v8309_v47 = vadd.f32 %v8308_v55, %v21000_v1  ;;  %11620 = vmatprep.subr.bf16.mxu0 %v17286_v5  ;;  %11813 = vmatprep.subr.bf16.mxu1 %v17289_v23  ;;  %v25248_v4 = vld [vmem:[#allocation143_spill] sm:$0xff]  ;;  %v25249_v5 = vld [vmem:[#allocation140_spill] sm:$0xff]  ;;  %v25250_v23 = vld [vmem:[#allocation141_spill] sm:$0xff] }
 0x306   : > { %v8312_v63 = vpop.f32.mrf.mxu0  ;;  %v8505_v39 = vpop.f32.mrf.mxu1  ;;  %9003 = vmatmul.mubr.bf16.gmra.mxu0 %v25246_v17  ;;  %9196 = vmatmul.mubr.bf16.gmra.mxu1 %v25247_v42  ;;  %v17293_v42 = vld [vmem:[%s24472_s1 + $0xd80] ss:$8 sps:$4 sm:$0xff]   ;;  %v25251_v17 = vld [vmem:[#allocation145_spill] sm:$0xff] }
 0x307   : > { %v21458_v49 = vadd.f32 %v8501_v24, %v8309_v47  ;;  %v8313_v1 = vadd.f32 %v8312_v63, %v25248_v4  ;;  %9012 = vmatprep.mubr.bf16.mxu0 %v25249_v5  ;;  %9205 = vmatprep.mubr.bf16.mxu1 %v25250_v23  ;;  %v17298_v63 = vld [vmem:[%s24472_s1 + $0xe74] ss:$8 sps:$4 sm:$0xff]  }
 0x308   : > { %v8314_v55 = vpop.f32.mrf.mxu0  ;;  %v8507_v46 = vpop.f32.mrf.mxu1  ;;  %11621 = vmatpush2.bf16.msra.mxu0 %v17284_v13  ;;  %11814 = vmatpush2.bf16.msra.mxu1 %v17287_v52  ;;  %v17301_v13 = vld [vmem:[%s24472_s1 + $0xf74] ss:$8 sps:$4 sm:$0xff]  }
 0x309   : > { %v21469_v24 = vadd.f32 %v8505_v39, %v8313_v1  ;;  %v8315_v47 = vadd.f32 %v8314_v55, %v21020_v34  ;;  %11622 = vmatprep.subr.bf16.mxu0 %v17292_v11  ;;  %11815 = vmatprep.subr.bf16.mxu1 %v17295_v18 }
 0x30a   : > { %v8316_v52 = vpop.f32.mrf.mxu0  ;;  %v8509_v4 = vpop.f32.mrf.mxu1 }
 0x30b   : > { %v21478_v23 = vadd.f32 %v8507_v46, %v8315_v47  ;;  %v8317_v5 = vadd.f32 %v8316_v52, %v21023_v14  ;;  %v25253_v47 = vld [vmem:[#allocation148_spill] sm:$0xff] }
 0x30c   : > { %v8318_v39 = vpop.f32.mrf.mxu0  ;;  %v8511_v1 = vpop.f32.mrf.mxu1  ;;  %11623 = vmatpush2.bf16.msra.mxu0 %v17290_v8  ;;  %11816 = vmatpush2.bf16.msra.mxu1 %v17293_v42  ;;  %v25254_v8 = vld [vmem:[#allocation149_spill] sm:$0xff] }
 0x30d   : > { %v21481_v34 = vadd.f32 %v8509_v4, %v8317_v5  ;;  %v8319_v11 = vadd.f32 %v8318_v39, %v21028_v38  ;;  %11978 = vmatprep.subr.bf16.mxu0 %v17298_v63  ;;  %12171 = vmatprep.subr.bf16.mxu1 %v17301_v13 }
 0x30e   : > { %v8548_v18 = vpop.f32.mrf.mxu0  ;;  %v8741_v55 = vpop.f32.mrf.mxu1  ;;  %9013 = vmatmul.mubr.bf16.gmra.mxu0 %v25251_v17  ;;  %9206 = vmatmul.mubr.bf16.gmra.mxu1 %v25252_v20  ;;  %v25258_v17 = vld [vmem:[#allocation150_spill] sm:$0xff] }
 0x30f   : > { %v21486_v46 = vadd.f32 %v8511_v1, %v8319_v11  ;;  %v8549_v14 = vadd.f32 %v8548_v18, %v21033_v60  ;;  %9022 = vmatprep.mubr.bf16.mxu0 %v25253_v47  ;;  %9215 = vmatprep.mubr.bf16.mxu1 %v25254_v8  ;;  %v25257_v60 = vld [vmem:[#allocation144_spill] sm:$0xff] }
 0x310   : > { %v8550_v42 = vpop.f32.mrf.mxu0  ;;  %v8743_v5 = vpop.f32.mrf.mxu1 }
 0x311   : > { %v21491_v52 = vadd.f32 %v8741_v55, %v8549_v14  ;;  %v8551_v38 = vadd.f32 %v8550_v42, %v21036_v30  ;;  %v25259_v55 = vld [vmem:[#allocation151_spill] sm:$0xff] }
 0x312   : > { %v8552_v63 = vpop.f32.mrf.mxu0  ;;  %v8745_v13 = vpop.f32.mrf.mxu1  ;;  %v25261_v30 = vld [vmem:[#allocation147_spill] sm:$0xff] }
 0x313   : > { %v21494_v4 = vadd.f32 %v8743_v5, %v8551_v38  ;;  %v8553_v39 = vadd.f32 %v8552_v63, %v21039_v21  ;;  %v25262_v5 = vld [vmem:[#allocation153_spill] sm:$0xff]  ;;  %v25263_v38 = vld [vmem:[#allocation154_spill] sm:$0xff] }
 0x314   : > { %v8554_v1 = vpop.f32.mrf.mxu0  ;;  %v8747_v11 = vpop.f32.mrf.mxu1 }
 0x315   : > { %25255 = vst [vmem:[#allocation6_spill] sm:$0xff] %v21494_v4  ;;  %v21497_v20 = vadd.f32 %v8745_v13, %v8553_v39  ;;  %v8555_v18 = vadd.f32 %v8554_v1, %v25257_v60  ;;  %v25265_v39 = vld [vmem:[#allocation152_spill] sm:$0xff]  ;;  %v25270_v4 = vld [vmem:[#allocation155_spill] sm:$0xff] }
 0x316   : > { %v8558_v47 = vpop.f32.mrf.mxu0  ;;  %v8751_v8 = vpop.f32.mrf.mxu1  ;;  %9023 = vmatmul.mubr.bf16.gmra.mxu0 %v25258_v17  ;;  %9216 = vmatmul.mubr.bf16.gmra.mxu1 %v25259_v55  ;;  %v25267_v17 = vld [vmem:[#allocation21_spill] sm:$0xff] }
 0x317   : > { %25256 = vst [vmem:[#allocation103_spill] sm:$0xff] %v21497_v20  ;;  %v21502_v14 = vadd.f32 %v8747_v11, %v8555_v18  ;;  %v8559_v42 = vadd.f32 %v8558_v47, %v25261_v30  ;;  %9032 = vmatprep.mubr.bf16.mxu0 %v25262_v5  ;;  %9225 = vmatprep.mubr.bf16.mxu1 %v25263_v38  ;;  %v25269_v47 = vld [vmem:[#allocation23_spill] sm:$0xff] }
 0x318   : > { %v8560_v21 = vpop.f32.mrf.mxu0  ;;  %v8753_v63 = vpop.f32.mrf.mxu1 }
 0x319   : > { %25260 = vst [vmem:[#allocation104_spill] sm:$0xff] %v21502_v14  ;;  %v21507_v13 = vadd.f32 %v8751_v8, %v8559_v42  ;;  %v8561_v1 = vadd.f32 %v8560_v21, %v25265_v39  ;;  %v25271_v8 = vld [vmem:[#allocation156_spill] sm:$0xff] }
 0x31a   : > { %v8562_v60 = vpop.f32.mrf.mxu0  ;;  %v8755_v9 = vpop.f32.mrf.mxu1  ;;  %v25273_v21 = vld [vmem:[#allocation20_spill] sm:$0xff] }
 0x31b   : > { %25264 = vst [vmem:[#allocation108_spill] sm:$0xff] %v21507_v13  ;;  %v21510_v20 = vadd.f32 %v8753_v63, %v8561_v1  ;;  %v8563_v55 = vadd.f32 %v8562_v60, %v25267_v17  ;;  %v25274_v63 = vld [vmem:[#allocation157_spill] sm:$0xff]  ;;  %v25275_v1 = vld [vmem:[#allocation158_spill] sm:$0xff]  ;;  %v25282_v13 = vld [vmem:[#allocation159_spill] sm:$0xff] }
 0x31c   : > { %v8564_v11 = vpop.f32.mrf.mxu0  ;;  %v8757_v18 = vpop.f32.mrf.mxu1 }
 0x31d   : > { %25266 = vst [vmem:[#allocation110_spill] sm:$0xff] %v21510_v20  ;;  %v21513_v14 = vadd.f32 %v8755_v9, %v8563_v55  ;;  %v8565_v30 = vadd.f32 %v8564_v11, %v25269_v47  ;;  %v25277_v55 = vld [vmem:[#allocation22_spill] sm:$0xff] }
 0x31e   : > { %v8568_v5 = vpop.f32.mrf.mxu0  ;;  %v8761_v38 = vpop.f32.mrf.mxu1  ;;  %9033 = vmatmul.mubr.bf16.gmra.mxu0 %v25270_v4  ;;  %9226 = vmatmul.mubr.bf16.gmra.mxu1 %v25271_v8  ;;  %v25279_v4 = vld [vmem:[#allocation87_spill] sm:$0xff] }
 0x31f   : > { %25268 = vst [vmem:[#allocation111_spill] sm:$0xff] %v21513_v14  ;;  %v21518_v42 = vadd.f32 %v8757_v18, %v8565_v30  ;;  %v8569_v39 = vadd.f32 %v8568_v5, %v25273_v21  ;;  %9042 = vmatprep.mubr.bf16.mxu0 %v25274_v63  ;;  %9235 = vmatprep.mubr.bf16.mxu1 %v25275_v1  ;;  %v25281_v5 = vld [vmem:[#allocation88_spill] sm:$0xff] }
 0x320   : > { %v8570_v17 = vpop.f32.mrf.mxu0  ;;  %v8763_v60 = vpop.f32.mrf.mxu1 }
 0x321   : > { %25272 = vst [vmem:[#allocation112_spill] sm:$0xff] %v21518_v42  ;;  %v21523_v9 = vadd.f32 %v8761_v38, %v8569_v39  ;;  %v8571_v11 = vadd.f32 %v8570_v17, %v25277_v55  ;;  %v25283_v38 = vld [vmem:[#allocation160_spill] sm:$0xff]  ;;  %v25285_v17 = vld [vmem:[#allocation91_spill] sm:$0xff] }
 0x322   : > { %v8572_v47 = vpop.f32.mrf.mxu0  ;;  %v8765_v14 = vpop.f32.mrf.mxu1 }
 0x323   : > { %25276 = vst [vmem:[#allocation115_spill] sm:$0xff] %v21523_v9  ;;  %v21526_v20 = vadd.f32 %v8763_v60, %v8571_v11  ;;  %v8573_v8 = vadd.f32 %v8572_v47, %v25279_v4  ;;  %v25286_v60 = vld [vmem:[#allocation161_spill] sm:$0xff]  ;;  %v25287_v11 = vld [vmem:[#allocation162_spill] sm:$0xff]  ;;  %v25294_v9 = vld [vmem:[#allocation163_spill] sm:$0xff] }
 0x324   : > { %v8574_v18 = vpop.f32.mrf.mxu0  ;;  %v8767_v30 = vpop.f32.mrf.mxu1 }
 0x325   : > { %25278 = vst [vmem:[#allocation118_spill] sm:$0xff] %v21526_v20  ;;  %v21529_v42 = vadd.f32 %v8765_v14, %v8573_v8  ;;  %v8575_v21 = vadd.f32 %v8574_v18, %v25281_v5  ;;  %v25289_v8 = vld [vmem:[#allocation94_spill] sm:$0xff] }
 0x326   : > { %v8578_v63 = vpop.f32.mrf.mxu0  ;;  %v8771_v1 = vpop.f32.mrf.mxu1  ;;  %9043 = vmatmul.mubr.bf16.gmra.mxu0 %v25282_v13  ;;  %9236 = vmatmul.mubr.bf16.gmra.mxu1 %v25283_v38  ;;  %v25291_v13 = vld [vmem:[#allocation95_spill] sm:$0xff] }
 0x327   : > { %25280 = vst [vmem:[#allocation119_spill] sm:$0xff] %v21529_v42  ;;  %v21534_v39 = vadd.f32 %v8767_v30, %v8575_v21  ;;  %v8579_v55 = vadd.f32 %v8578_v63, %v25285_v17  ;;  %9052 = vmatprep.mubr.bf16.mxu0 %v25286_v60  ;;  %9245 = vmatprep.mubr.bf16.mxu1 %v25287_v11  ;;  %v25293_v63 = vld [vmem:[#allocation3_spill] sm:$0xff] }
 0x328   : > { %v8580_v4 = vpop.f32.mrf.mxu0  ;;  %v8773_v47 = vpop.f32.mrf.mxu1 }
 0x329   : > { %25284 = vst [vmem:[#allocation120_spill] sm:$0xff] %v21534_v39  ;;  %v21539_v14 = vadd.f32 %v8771_v1, %v8579_v55  ;;  %v8581_v18 = vadd.f32 %v8580_v4, %v25289_v8  ;;  %v25295_v1 = vld [vmem:[#allocation164_spill] sm:$0xff] }
 0x32a   : > { %v8582_v5 = vpop.f32.mrf.mxu0  ;;  %v8775_v42 = vpop.f32.mrf.mxu1  ;;  %v25297_v4 = vld [vmem:[#allocation4_spill] sm:$0xff] }
 0x32b   : > { %25288 = vst [vmem:[#allocation124_spill] sm:$0xff] %v21539_v14  ;;  %v21542_v20 = vadd.f32 %v8773_v47, %v8581_v18  ;;  %v8583_v38 = vadd.f32 %v8582_v5, %v25291_v13  ;;  %v25298_v47 = vld [vmem:[#allocation165_spill] sm:$0xff]  ;;  %v25299_v18 = vld [vmem:[#allocation166_spill] sm:$0xff]  ;;  %v25304_v14 = vld [vmem:[#allocation167_spill] sm:$0xff] }
 0x32c   : > { %v8584_v30 = vpop.f32.mrf.mxu0  ;;  %v8777_v21 = vpop.f32.mrf.mxu1 }
 0x32d   : > { %25290 = vst [vmem:[#allocation126_spill] sm:$0xff] %v21542_v20  ;;  %v21545_v39 = vadd.f32 %v8775_v42, %v8583_v38  ;;  %v8585_v17 = vadd.f32 %v8584_v30, %v25293_v63  ;;  %v25300_v38 = vld [vmem:[#allocation96_spill] sm:$0xff] }
 0x32e   : > { %v8588_v60 = vpop.f32.mrf.mxu0  ;;  %v8781_v11 = vpop.f32.mrf.mxu1  ;;  %9053 = vmatmul.mubr.bf16.gmra.mxu0 %v25294_v9  ;;  %9246 = vmatmul.mubr.bf16.gmra.mxu1 %v25295_v1  ;;  %v25301_v9 = vld [vmem:[#allocation99_spill] sm:$0xff] }
 0x32f   : > { %25292 = vst [vmem:[#allocation127_spill] sm:$0xff] %v21545_v39  ;;  %v21550_v55 = vadd.f32 %v8777_v21, %v8585_v17  ;;  %v8589_v8 = vadd.f32 %v8588_v60, %v25297_v4  ;;  %9062 = vmatprep.mubr.bf16.mxu0 %v25298_v47  ;;  %9255 = vmatprep.mubr.bf16.mxu1 %v25299_v18  ;;  %v25303_v60 = vld [vmem:[#allocation102_spill] sm:$0xff] }
 0x330   : > { %v8590_v13 = vpop.f32.mrf.mxu0  ;;  %v8783_v5 = vpop.f32.mrf.mxu1 }
 0x331   : > { %25296 = vst [vmem:[#allocation128_spill] sm:$0xff] %v21550_v55  ;;  %v21555_v42 = vadd.f32 %v8781_v11, %v8589_v8  ;;  %v8591_v30 = vadd.f32 %v8590_v13, %v25300_v38  ;;  %v25305_v11 = vld [vmem:[#allocation168_spill] sm:$0xff]  ;;  %v25306_v13 = vld [vmem:[#allocation5_spill] sm:$0xff] }
 0x332   : > { %v8592_v63 = vpop.f32.mrf.mxu0  ;;  %v8785_v39 = vpop.f32.mrf.mxu1 }
 0x333   : > { %v21558_v20 = vadd.f32 %v8783_v5, %v8591_v30  ;;  %v8593_v1 = vadd.f32 %v8592_v63, %v25301_v9  ;;  %v25307_v5 = vld [vmem:[#allocation169_spill] sm:$0xff]  ;;  %v25308_v30 = vld [vmem:[#allocation170_spill] sm:$0xff] }
 0x334   : > { %v8594_v21 = vpop.f32.mrf.mxu0  ;;  %v8787_v17 = vpop.f32.mrf.mxu1 }
 0x335   : > { %v21561_v55 = vadd.f32 %v8785_v39, %v8593_v1  ;;  %v8595_v4 = vadd.f32 %v8594_v21, %v25303_v60 }
 0x336   : > { %v8598_v47 = vpop.f32.mrf.mxu0  ;;  %v8791_v18 = vpop.f32.mrf.mxu1  ;;  %9063 = vmatmul.mubr.bf16.gmra.mxu0 %v25304_v14  ;;  %9256 = vmatmul.mubr.bf16.gmra.mxu1 %v25305_v11 }
 0x337   : > { %25302 = vst [vmem:[#allocation131_spill] sm:$0xff] %v21561_v55  ;;  %v21566_v8 = vadd.f32 %v8787_v17, %v8595_v4  ;;  %v8599_v38 = vadd.f32 %v8598_v47, %v25306_v13  ;;  %9072 = vmatprep.mubr.bf16.mxu0 %v25307_v5  ;;  %9265 = vmatprep.mubr.bf16.mxu1 %v25308_v30  ;;  %v25309_v5 = vld [vmem:[#allocation171_spill] sm:$0xff] }
 0x338   : > { %v8600_v9 = vpop.f32.mrf.mxu0  ;;  %v8793_v63 = vpop.f32.mrf.mxu1 }
 0x339   : > { %v21571_v39 = vadd.f32 %v8791_v18, %v8599_v38  ;;  %v8601_v1 = vadd.f32 %v8600_v9, %v21122_v36  ;;  %v25310_v18 = vld [vmem:[#allocation172_spill] sm:$0xff]  ;;  %v25311_v9 = vld [vmem:[#allocation173_spill] sm:$0xff] }
 0x33a   : > { %v8602_v21 = vpop.f32.mrf.mxu0  ;;  %v8795_v60 = vpop.f32.mrf.mxu1 }
 0x33b   : > { %v21574_v55 = vadd.f32 %v8793_v63, %v8601_v1  ;;  %v8603_v11 = vadd.f32 %v8602_v21, %v21125_v54  ;;  %v25312_v63 = vld [vmem:[#allocation174_spill] sm:$0xff] }
 0x33c   : > { %v8604_v17 = vpop.f32.mrf.mxu0  ;;  %v8797_v4 = vpop.f32.mrf.mxu1 }
 0x33d   : > { %v21577_v14 = vadd.f32 %v8795_v60, %v8603_v11  ;;  %v8605_v47 = vadd.f32 %v8604_v17, %v21130_v62 }
 0x33e   : > { %v8608_v13 = vpop.f32.mrf.mxu0  ;;  %v8801_v30 = vpop.f32.mrf.mxu1  ;;  %9073 = vmatmul.mubr.bf16.gmra.mxu0 %v25309_v5  ;;  %9266 = vmatmul.mubr.bf16.gmra.mxu1 %v25310_v18 }
 0x33f   : > { %v21582_v38 = vadd.f32 %v8797_v4, %v8605_v47  ;;  %v8609_v36 = vadd.f32 %v8608_v13, %v21143_v27  ;;  %9082 = vmatprep.mubr.bf16.mxu0 %v25311_v9  ;;  %9275 = vmatprep.mubr.bf16.mxu1 %v25312_v63  ;;  %v25313_v9 = vld [vmem:[#allocation175_spill] sm:$0xff] }
 0x340   : > { %v8610_v54 = vpop.f32.mrf.mxu0  ;;  %v8803_v1 = vpop.f32.mrf.mxu1 }
 0x341   : > { %v21587_v11 = vadd.f32 %v8801_v30, %v8609_v36  ;;  %v8611_v62 = vadd.f32 %v8610_v54, %v21146_v56  ;;  %v25314_v30 = vld [vmem:[#allocation176_spill] sm:$0xff]  ;;  %v25315_v54 = vld [vmem:[#allocation7_spill] sm:$0xff] }
 0x342   : > { %v8612_v21 = vpop.f32.mrf.mxu0  ;;  %v8805_v60 = vpop.f32.mrf.mxu1 }
 0x343   : > { %v21590_v17 = vadd.f32 %v8803_v1, %v8611_v62  ;;  %v8613_v18 = vadd.f32 %v8612_v21, %v21149_v16  ;;  %v25316_v1 = vld [vmem:[#allocation8_spill] sm:$0xff] }
 0x344   : > { %v8614_v4 = vpop.f32.mrf.mxu0  ;;  %v8807_v47 = vpop.f32.mrf.mxu1 }
 0x345   : > { %v21593_v5 = vadd.f32 %v8805_v60, %v8613_v18  ;;  %v8615_v27 = vadd.f32 %v8614_v4, %v21154_v40 }
 0x346   : > { %v8618_v13 = vpop.f32.mrf.mxu0  ;;  %v8811_v63 = vpop.f32.mrf.mxu1  ;;  %9083 = vmatmul.mubr.bf16.gmra.mxu0 %v25313_v9  ;;  %9276 = vmatmul.mubr.bf16.gmra.mxu1 %v25314_v30  ;;  %v25321_v9 = vld [vmem:[#allocation11_spill] sm:$0xff] }
 0x347   : > { %v21598_v36 = vadd.f32 %v8807_v47, %v8615_v27  ;;  %v8619_v56 = vadd.f32 %v8618_v13, %v21157_v2  ;;  %11624 = vmatprep.mubr.bf16.mxu0 %v25315_v54  ;;  %11817 = vmatprep.mubr.bf16.mxu1 %v25316_v1  ;;  %v17296_v2 = vld [vmem:[%s24472_s1 + $0xe70] ss:$8 sps:$4 sm:$0xff]  }
 0x348   : > { %v8620_v16 = vpop.f32.mrf.mxu0  ;;  %v8813_v62 = vpop.f32.mrf.mxu1  ;;  %v17299_v47 = vld [vmem:[%s24472_s1 + $0xf70] ss:$8 sps:$4 sm:$0xff]  }
 0x349   : > { %v21603_v18 = vadd.f32 %v8811_v63, %v8619_v56  ;;  %v8621_v40 = vadd.f32 %v8620_v16, %v21160_v35  ;;  %v17304_v56 = vld [vmem:[%s24472_s1 + $0xe64] ss:$8 sps:$4 sm:$0xff]   ;;  %v25318_v16 = vld [vmem:[#allocation9_spill] sm:$0xff] }
 0x34a   : > { %v8622_v21 = vpop.f32.mrf.mxu0  ;;  %v8815_v60 = vpop.f32.mrf.mxu1 }
 0x34b   : > { %v21606_v4 = vadd.f32 %v8813_v62, %v8621_v40  ;;  %v8623_v30 = vadd.f32 %v8622_v21, %v21169_v58  ;;  %v17307_v58 = vld [vmem:[%s24472_s1 + $0xf64] ss:$8 sps:$4 sm:$0xff]   ;;  %v25319_v62 = vld [vmem:[#allocation10_spill] sm:$0xff]  ;;  %v17305_v21 = vld [vmem:[%s24472_s1 + $0xf60] ss:$8 sps:$4 sm:$0xff]  }
 0x34c   : > { %v8624_v27 = vpop.f32.mrf.mxu0  ;;  %v8817_v13 = vpop.f32.mrf.mxu1 }
 0x34d   : > { %v21615_v63 = vadd.f32 %v8815_v60, %v8623_v30  ;;  %v8625_v35 = vadd.f32 %v8624_v27, %v21178_v31  ;;  %v17302_v31 = vld [vmem:[%s24472_s1 + $0xe60] ss:$8 sps:$4 sm:$0xff]  }
 0x34e   : > { %v8628_v54 = vpop.f32.mrf.mxu0  ;;  %v8821_v1 = vpop.f32.mrf.mxu1  ;;  %11625 = vmatmul.mubr.bf16.vlgmr.msra.gmra.mxu0 %v25318_v16  ;;  %11818 = vmatmul.mubr.bf16.vlgmr.msra.gmra.mxu1 %v25319_v62  ;;  %v25322_v16 = vld [vmem:[#allocation12_spill] sm:$0xff] }
 0x34f   : > { %25317 = vst [vmem:[#allocation85_spill] sm:$0xff] %v21615_v63  ;;  %v21626_v40 = vadd.f32 %v8817_v13, %v8625_v35  ;;  %v8629_v30 = vadd.f32 %v8628_v54, %v21195_v12  ;;  %11979 = vmatpush1.bf16.msra.mxu0 %v17296_v2  ;;  %12172 = vmatpush1.bf16.msra.mxu1 %v17299_v47  ;;  %v17310_v12 = vld [vmem:[%s24472_s1 + $0xe54] ss:$8 sps:$4 sm:$0xff]   ;;  %v17308_v63 = vld [vmem:[%s24472_s1 + $0xe50] ss:$8 sps:$4 sm:$0xff]  }
 0x350   : > { %v8630_v60 = vpop.f32.mrf.mxu0  ;;  %v8823_v27 = vpop.f32.mrf.mxu1  ;;  %11634 = vmatprep.mubr.bf16.mxu0 %v25321_v9  ;;  %11827 = vmatprep.mubr.bf16.mxu1 %v25322_v16  ;;  %v17313_v2 = vld [vmem:[%s24472_s1 + $0xf54] ss:$8 sps:$4 sm:$0xff]  }
 0x351   : > { %25320 = vst [vmem:[#allocation86_spill] sm:$0xff] %v21626_v40  ;;  %v21643_v47 = vadd.f32 %v8821_v1, %v8629_v30  ;;  %v8631_v13 = vadd.f32 %v8630_v60, %v21198_v7  ;;  %11980 = vmatprep.subr.bf16.mxu0 %v17304_v56  ;;  %12173 = vmatprep.subr.bf16.mxu1 %v17307_v58  ;;  %v17311_v7 = vld [vmem:[%s24472_s1 + $0xf50] ss:$8 sps:$4 sm:$0xff]   ;;  %v17319_v1 = vld [vmem:[%s24472_s1 + $0xf44] ss:$8 sps:$4 sm:$0xff]  }
 0x352   : > { %v8632_v35 = vpop.f32.mrf.mxu0  ;;  %v8825_v54 = vpop.f32.mrf.mxu1  ;;  %v25324_v60 = vld [vmem:[#allocation14_spill] sm:$0xff] }
 0x353   : > { %v21646_v62 = vadd.f32 %v8823_v27, %v8631_v13  ;;  %v8633_v9 = vadd.f32 %v8632_v35, %v21207_v51  ;;  %11981 = vmatpush1.bf16.msra.mxu0 %v17302_v31  ;;  %12174 = vmatpush1.bf16.msra.mxu1 %v17305_v21  ;;  %v17316_v51 = vld [vmem:[%s24472_s1 + $0xe44] ss:$8 sps:$4 sm:$0xff]   ;;  %v25323_v21 = vld [vmem:[#allocation13_spill] sm:$0xff] }
 0x354   : > { %v8634_v16 = vpop.f32.mrf.mxu0  ;;  %v8827_v40 = vpop.f32.mrf.mxu1  ;;  %11982 = vmatprep.subr.bf16.mxu0 %v17310_v12  ;;  %12175 = vmatprep.subr.bf16.mxu1 %v17313_v2  ;;  %v25325_v2 = vld [vmem:[#allocation15_spill] sm:$0xff] }
 0x355   : > { %v21655_v56 = vadd.f32 %v8825_v54, %v8633_v9  ;;  %v8635_v58 = vadd.f32 %v8634_v16, %v21218_v10  ;;  %v25326_v10 = vld [vmem:[#allocation16_spill] sm:$0xff]  ;;  %v17322_v16 = vld [vmem:[%s24472_s1 + $0xe34] ss:$8 sps:$4 sm:$0xff]  }
 0x356   : > { %v8638_v30 = vpop.f32.mrf.mxu0  ;;  %v8831_v31 = vpop.f32.mrf.mxu1  ;;  %11635 = vmatmul.mubr.bf16.gmra.mxu0 %v25323_v21  ;;  %11828 = vmatmul.mubr.bf16.gmra.mxu1 %v25324_v60  ;;  %v17314_v54 = vld [vmem:[%s24472_s1 + $0xe40] ss:$8 sps:$4 sm:$0xff]  }
 0x357   : > { %v21666_v27 = vadd.f32 %v8827_v40, %v8635_v58  ;;  %v8639_v12 = vadd.f32 %v8638_v30, %v21229_v48  ;;  %11644 = vmatprep.mubr.bf16.mxu0 %v25325_v2  ;;  %11837 = vmatprep.mubr.bf16.mxu1 %v25326_v10  ;;  %v17317_v9 = vld [vmem:[%s24472_s1 + $0xf40] ss:$8 sps:$4 sm:$0xff]   ;;  %v17331_v2 = vld [vmem:[%s24472_s1 + $0xf24] ss:$8 sps:$4 sm:$0xff]  }
 0x358   : > { %v8640_v13 = vpop.f32.mrf.mxu0  ;;  %v8833_v35 = vpop.f32.mrf.mxu1  ;;  %11983 = vmatpush1.bf16.msra.mxu0 %v17308_v63  ;;  %12176 = vmatpush1.bf16.msra.mxu1 %v17311_v7  ;;  %v17325_v63 = vld [vmem:[%s24472_s1 + $0xf34] ss:$8 sps:$4 sm:$0xff]  }
 0x359   : > { %v21677_v40 = vadd.f32 %v8831_v31, %v8639_v12  ;;  %v8641_v48 = vadd.f32 %v8640_v13, %v21238_v25  ;;  %11984 = vmatprep.subr.bf16.mxu0 %v17316_v51  ;;  %12177 = vmatprep.subr.bf16.mxu1 %v17319_v1  ;;  %v17320_v25 = vld [vmem:[%s24472_s1 + $0xe30] ss:$8 sps:$4 sm:$0xff]  }
 0x35a   : > { %v8642_v7 = vpop.f32.mrf.mxu0  ;;  %v8835_v58 = vpop.f32.mrf.mxu1  ;;  %v17323_v51 = vld [vmem:[%s24472_s1 + $0xf30] ss:$8 sps:$4 sm:$0xff]  }
 0x35b   : > { %v21686_v30 = vadd.f32 %v8833_v35, %v8641_v48  ;;  %v8643_v21 = vadd.f32 %v8642_v7, %v21247_v44  ;;  %v17328_v44 = vld [vmem:[%s24472_s1 + $0xe24] ss:$8 sps:$4 sm:$0xff]   ;;  %v25327_v35 = vld [vmem:[#allocation17_spill] sm:$0xff] }
 0x35c   : > { %v8644_v31 = vpop.f32.mrf.mxu0  ;;  %v8837_v60 = vpop.f32.mrf.mxu1  ;;  %11985 = vmatpush1.bf16.msra.mxu0 %v17314_v54  ;;  %12178 = vmatpush1.bf16.msra.mxu1 %v17317_v9  ;;  %v25328_v54 = vld [vmem:[#allocation18_spill] sm:$0xff]  ;;  %v17608_v48 = vld [vmem:[%s17890_s22 + $0xf4] ss:$16 sps:$4 sm:$0xff]  }
 0x35d   : > { %v21695_v1 = vadd.f32 %v8835_v58, %v8643_v21  ;;  %v8645_v12 = vadd.f32 %v8644_v31, %v21258_v0  ;;  %11986 = vmatprep.subr.bf16.mxu0 %v17322_v16  ;;  %12179 = vmatprep.subr.bf16.mxu1 %v17325_v63  ;;  %v17609_v16 = vld [vmem:[%s17890_s22 + $0xfc] ss:$16 sps:$4 sm:$0xff]   ;;  %v17326_v58 = vld [vmem:[%s24472_s1 + $0xe20] ss:$8 sps:$4 sm:$0xff]  }
 0x35e   : > { %v8648_v10 = vpop.f32.mrf.mxu0  ;;  %v8841_v13 = vpop.f32.mrf.mxu1  ;;  %11645 = vmatmul.mubr.bf16.gmra.mxu0 %v25327_v35  ;;  %11838 = vmatmul.mubr.bf16.gmra.mxu1 %v25328_v54  ;;  %v17329_v21 = vld [vmem:[%s24472_s1 + $0xf20] ss:$8 sps:$4 sm:$0xff]  }
 0x35f   : > { %v21706_v9 = vadd.f32 %v8837_v60, %v8645_v12  ;;  %v8649_v0 = vadd.f32 %v8648_v10, %v21269_v32  ;;  %11654 = vmatprep.mubr.bf16.mxu0 %v17608_v48  ;;  %11847 = vmatprep.mubr.bf16.mxu1 %v17609_v16  ;;  %v17334_v60 = vld [vmem:[%s24472_s1 + $0xe14] ss:$8 sps:$4 sm:$0xff]   ;;  %v17343_v48 = vld [vmem:[%s24472_s1 + $0xf04] ss:$8 sps:$4 sm:$0xff]  }
 0x360   : > { %v8650_v63 = vpop.f32.mrf.mxu0  ;;  %v8843_v7 = vpop.f32.mrf.mxu1  ;;  %11987 = vmatpush1.bf16.msra.mxu0 %v17320_v25  ;;  %12180 = vmatpush1.bf16.msra.mxu1 %v17323_v51  ;;  %v17337_v25 = vld [vmem:[%s24472_s1 + $0xf14] ss:$8 sps:$4 sm:$0xff]  }
 0x361   : > { %v21717_v31 = vadd.f32 %v8841_v13, %v8649_v0  ;;  %v8651_v32 = vadd.f32 %v8650_v63, %v21278_v28  ;;  %11988 = vmatprep.subr.bf16.mxu0 %v17328_v44  ;;  %12181 = vmatprep.subr.bf16.mxu1 %v17331_v2  ;;  %v17332_v44 = vld [vmem:[%s24472_s1 + $0xe10] ss:$8 sps:$4 sm:$0xff]  }
 0x362   : > { %v8652_v51 = vpop.f32.mrf.mxu0  ;;  %v8845_v12 = vpop.f32.mrf.mxu1  ;;  %v17335_v2 = vld [vmem:[%s24472_s1 + $0xf10] ss:$8 sps:$4 sm:$0xff]  }
 0x363   : > { %v21726_v10 = vadd.f32 %v8843_v7, %v8651_v32  ;;  %v8653_v13 = vadd.f32 %v8652_v51, %v21287_v53  ;;  %v17340_v53 = vld [vmem:[%s24472_s1 + $0xe04] ss:$8 sps:$4 sm:$0xff]   ;;  %v17610_v7 = vld [vmem:[%s17890_s22 + $0xf0] ss:$16 sps:$4 sm:$0xff]  }
 0x364   : > { %v8654_v35 = vpop.f32.mrf.mxu0  ;;  %v8847_v28 = vpop.f32.mrf.mxu1  ;;  %11989 = vmatpush1.bf16.msra.mxu0 %v17326_v58  ;;  %12182 = vmatpush1.bf16.msra.mxu1 %v17329_v21  ;;  %v17611_v58 = vld [vmem:[%s17890_s22 + $0xf8] ss:$16 sps:$4 sm:$0xff]   ;;  %v17612_v32 = vld [vmem:[%s17890_s22 + $0x124] ss:$16 sps:$4 sm:$0xff]  }
 0x365   : > { %v21735_v54 = vadd.f32 %v8845_v12, %v8653_v13  ;;  %v8655_v0 = vadd.f32 %v8654_v35, %v21298_v61  ;;  %11990 = vmatprep.subr.bf16.mxu0 %v17334_v60  ;;  %12183 = vmatprep.subr.bf16.mxu1 %v17337_v25  ;;  %v17613_v60 = vld [vmem:[%s17890_s22 + $0x12c] ss:$16 sps:$4 sm:$0xff]   ;;  %v17338_v12 = vld [vmem:[%s24472_s1 + $0xe00] ss:$8 sps:$4 sm:$0xff]  }
 0x366   : > { %v8658_v16 = vpop.f32.mrf.mxu0  ;;  %v8851_v63 = vpop.f32.mrf.mxu1  ;;  %11655 = vmatmul.mubr.bf16.gmra.mxu0 %v17610_v7  ;;  %11848 = vmatmul.mubr.bf16.gmra.mxu1 %v17611_v58  ;;  %v17341_v13 = vld [vmem:[%s24472_s1 + $0xf00] ss:$8 sps:$4 sm:$0xff]  }
 0x367   : > { %v21746_v21 = vadd.f32 %v8847_v28, %v8655_v0  ;;  %v8659_v61 = vadd.f32 %v8658_v16, %v21309_v6  ;;  %11664 = vmatprep.mubr.bf16.mxu0 %v17612_v32  ;;  %11857 = vmatprep.mubr.bf16.mxu1 %v17613_v60  ;;  %v17346_v28 = vld [vmem:[%s24472_s1 + $0xef4] ss:$8 sps:$4 sm:$0xff]   ;;  %v17355_v32 = vld [vmem:[%s24472_s1 + $0xfe4] ss:$8 sps:$4 sm:$0xff]  }
 0x368   : > { %v8660_v25 = vpop.f32.mrf.mxu0  ;;  %v8853_v51 = vpop.f32.mrf.mxu1  ;;  %11991 = vmatpush1.bf16.msra.mxu0 %v17332_v44  ;;  %12184 = vmatpush1.bf16.msra.mxu1 %v17335_v2  ;;  %v17349_v44 = vld [vmem:[%s24472_s1 + $0xff4] ss:$8 sps:$4 sm:$0xff]  }
 0x369   : > { %v21757_v35 = vadd.f32 %v8851_v63, %v8659_v61  ;;  %v8661_v6 = vadd.f32 %v8660_v25, %v21318_v59  ;;  %11992 = vmatprep.subr.bf16.mxu0 %v17340_v53  ;;  %12185 = vmatprep.subr.bf16.mxu1 %v17343_v48  ;;  %v17344_v53 = vld [vmem:[%s24472_s1 + $0xef0] ss:$8 sps:$4 sm:$0xff]  }
 0x36a   : > { %v8662_v2 = vpop.f32.mrf.mxu0  ;;  %v8855_v0 = vpop.f32.mrf.mxu1  ;;  %v17347_v48 = vld [vmem:[%s24472_s1 + $0xff0] ss:$8 sps:$4 sm:$0xff]  }
 0x36b   : > { %v21766_v16 = vadd.f32 %v8853_v51, %v8661_v6  ;;  %v8663_v63 = vadd.f32 %v8662_v2, %v21327_v45  ;;  %v17352_v45 = vld [vmem:[%s24472_s1 + $0xee4] ss:$8 sps:$4 sm:$0xff]   ;;  %v17614_v51 = vld [vmem:[%s17890_s22 + $0x120] ss:$16 sps:$4 sm:$0xff]  }
 0x36c   : > { %v8664_v7 = vpop.f32.mrf.mxu0  ;;  %v8857_v59 = vpop.f32.mrf.mxu1  ;;  %11993 = vmatpush1.bf16.msra.mxu0 %v17338_v12  ;;  %12186 = vmatpush1.bf16.msra.mxu1 %v17341_v13  ;;  %v17615_v12 = vld [vmem:[%s17890_s22 + $0x128] ss:$16 sps:$4 sm:$0xff]   ;;  %v17616_v6 = vld [vmem:[%s17890_s22 + $0x154] ss:$16 sps:$4 sm:$0xff]  }
 0x36d   : > { %v21775_v58 = vadd.f32 %v8855_v0, %v8663_v63  ;;  %v8665_v61 = vadd.f32 %v8664_v7, %v21338_v41  ;;  %11994 = vmatprep.subr.bf16.mxu0 %v17346_v28  ;;  %12187 = vmatprep.subr.bf16.mxu1 %v17349_v44  ;;  %v17617_v28 = vld [vmem:[%s17890_s22 + $0x15c] ss:$16 sps:$4 sm:$0xff]   ;;  %v17350_v0 = vld [vmem:[%s24472_s1 + $0xee0] ss:$8 sps:$4 sm:$0xff]  }
 0x36e   : > { %v8668_v60 = vpop.f32.mrf.mxu0  ;;  %v8861_v25 = vpop.f32.mrf.mxu1  ;;  %11665 = vmatmul.mubr.bf16.gmra.mxu0 %v17614_v51  ;;  %11858 = vmatmul.mubr.bf16.gmra.mxu1 %v17615_v12  ;;  %v17353_v63 = vld [vmem:[%s24472_s1 + $0xfe0] ss:$8 sps:$4 sm:$0xff]  }
 0x36f   : > { %v21786_v13 = vadd.f32 %v8857_v59, %v8665_v61  ;;  %v8669_v41 = vadd.f32 %v8668_v60, %v21349_v15  ;;  %11674 = vmatprep.mubr.bf16.mxu0 %v17616_v6  ;;  %11867 = vmatprep.mubr.bf16.mxu1 %v17617_v28  ;;  %v17358_v59 = vld [vmem:[%s24472_s1 + $0xed4] ss:$8 sps:$4 sm:$0xff]   ;;  %v17367_v6 = vld [vmem:[%s24472_s1 + $0xfc4] ss:$8 sps:$4 sm:$0xff]  }
 0x370   : > { %v8670_v44 = vpop.f32.mrf.mxu0  ;;  %v8863_v2 = vpop.f32.mrf.mxu1  ;;  %11995 = vmatpush2.bf16.msra.mxu0 %v17344_v53  ;;  %12188 = vmatpush2.bf16.msra.mxu1 %v17347_v48  ;;  %v17361_v53 = vld [vmem:[%s24472_s1 + $0xfd4] ss:$8 sps:$4 sm:$0xff]  }
 0x371   : > { %v21797_v7 = vadd.f32 %v8861_v25, %v8669_v41  ;;  %v8671_v15 = vadd.f32 %v8670_v44, %v21358_v22  ;;  %11996 = vmatprep.subr.bf16.mxu0 %v17352_v45  ;;  %12189 = vmatprep.subr.bf16.mxu1 %v17355_v32  ;;  %v17356_v45 = vld [vmem:[%s24472_s1 + $0xed0] ss:$8 sps:$4 sm:$0xff]  }
 0x372   : > { %v8672_v48 = vpop.f32.mrf.mxu0  ;;  %v8865_v61 = vpop.f32.mrf.mxu1  ;;  %v17359_v32 = vld [vmem:[%s24472_s1 + $0xfd0] ss:$8 sps:$4 sm:$0xff]  }
 0x373   : > { %v21806_v60 = vadd.f32 %v8863_v2, %v8671_v15  ;;  %v8673_v25 = vadd.f32 %v8672_v48, %v21367_v26  ;;  %v17364_v26 = vld [vmem:[%s24472_s1 + $0xec4] ss:$8 sps:$4 sm:$0xff]   ;;  %v17618_v2 = vld [vmem:[%s17890_s22 + $0x150] ss:$16 sps:$4 sm:$0xff]  }
 0x374   : > { %v8674_v51 = vpop.f32.mrf.mxu0  ;;  %v8867_v22 = vpop.f32.mrf.mxu1  ;;  %11997 = vmatpush2.bf16.msra.mxu0 %v17350_v0  ;;  %12190 = vmatpush2.bf16.msra.mxu1 %v17353_v63  ;;  %v17619_v0 = vld [vmem:[%s17890_s22 + $0x158] ss:$16 sps:$4 sm:$0xff]   ;;  %v17620_v15 = vld [vmem:[%s17890_s22 + $0x184] ss:$16 sps:$4 sm:$0xff]  }
 0x375   : > { %v21815_v12 = vadd.f32 %v8865_v61, %v8673_v25  ;;  %v8675_v41 = vadd.f32 %v8674_v51, %v21378_v33  ;;  %11998 = vmatprep.subr.bf16.mxu0 %v17358_v59  ;;  %12191 = vmatprep.subr.bf16.mxu1 %v17361_v53  ;;  %v17621_v59 = vld [vmem:[%s17890_s22 + $0x18c] ss:$16 sps:$4 sm:$0xff]   ;;  %v17362_v61 = vld [vmem:[%s24472_s1 + $0xec0] ss:$8 sps:$4 sm:$0xff]  }
 0x376   : > { %v8678_v28 = vpop.f32.mrf.mxu0  ;;  %v8871_v44 = vpop.f32.mrf.mxu1  ;;  %11675 = vmatmul.mubr.bf16.gmra.mxu0 %v17618_v2  ;;  %11868 = vmatmul.mubr.bf16.gmra.mxu1 %v17619_v0  ;;  %v17365_v25 = vld [vmem:[%s24472_s1 + $0xfc0] ss:$8 sps:$4 sm:$0xff]  }
 0x377   : > { %v21826_v63 = vadd.f32 %v8867_v22, %v8675_v41  ;;  %v8679_v33 = vadd.f32 %v8678_v28, %v21389_v37  ;;  %11684 = vmatprep.mubr.bf16.mxu0 %v17620_v15  ;;  %11877 = vmatprep.mubr.bf16.mxu1 %v17621_v59  ;;  %v17370_v22 = vld [vmem:[%s24472_s1 + $0xeb4] ss:$8 sps:$4 sm:$0xff]   ;;  %v17379_v15 = vld [vmem:[%s24472_s1 + $0xfa4] ss:$8 sps:$4 sm:$0xff]  }
 0x378   : > { %v8680_v53 = vpop.f32.mrf.mxu0  ;;  %v8873_v48 = vpop.f32.mrf.mxu1  ;;  %11999 = vmatpush2.bf16.msra.mxu0 %v17356_v45  ;;  %12192 = vmatpush2.bf16.msra.mxu1 %v17359_v32  ;;  %v17373_v45 = vld [vmem:[%s24472_s1 + $0xfb4] ss:$8 sps:$4 sm:$0xff]  }
 0x379   : > { %v21837_v51 = vadd.f32 %v8871_v44, %v8679_v33  ;;  %v8681_v37 = vadd.f32 %v8680_v53, %v21398_v50  ;;  %12000 = vmatprep.subr.bf16.mxu0 %v17364_v26  ;;  %12193 = vmatprep.subr.bf16.mxu1 %v17367_v6  ;;  %v17368_v26 = vld [vmem:[%s24472_s1 + $0xeb0] ss:$8 sps:$4 sm:$0xff]  }
 0x37a   : > { %v8682_v32 = vpop.f32.mrf.mxu0  ;;  %v8875_v41 = vpop.f32.mrf.mxu1  ;;  %v17371_v6 = vld [vmem:[%s24472_s1 + $0xfb0] ss:$8 sps:$4 sm:$0xff]  }
 0x37b   : > { %v21846_v28 = vadd.f32 %v8873_v48, %v8681_v37  ;;  %v8683_v44 = vadd.f32 %v8682_v32, %v21407_v43  ;;  %v17376_v43 = vld [vmem:[%s24472_s1 + $0xea4] ss:$8 sps:$4 sm:$0xff]   ;;  %v17622_v48 = vld [vmem:[%s17890_s22 + $0x180] ss:$16 sps:$4 sm:$0xff]  }
 0x37c   : > { %v8684_v2 = vpop.f32.mrf.mxu0  ;;  %v8877_v50 = vpop.f32.mrf.mxu1  ;;  %12001 = vmatpush2.bf16.msra.mxu0 %v17362_v61  ;;  %12194 = vmatpush2.bf16.msra.mxu1 %v17365_v25  ;;  %v17623_v61 = vld [vmem:[%s17890_s22 + $0x188] ss:$16 sps:$4 sm:$0xff]   ;;  %v17624_v37 = vld [vmem:[%s17890_s22 + $0x1b4] ss:$16 sps:$4 sm:$0xff]  }
 0x37d   : > { %v21855_v0 = vadd.f32 %v8875_v41, %v8683_v44  ;;  %v8685_v33 = vadd.f32 %v8684_v2, %v21418_v57  ;;  %12002 = vmatprep.subr.bf16.mxu0 %v17370_v22  ;;  %12195 = vmatprep.subr.bf16.mxu1 %v17373_v45  ;;  %v17625_v22 = vld [vmem:[%s17890_s22 + $0x1bc] ss:$16 sps:$4 sm:$0xff]   ;;  %v17374_v41 = vld [vmem:[%s24472_s1 + $0xea0] ss:$8 sps:$4 sm:$0xff]  }
 0x37e   : > { %v8688_v59 = vpop.f32.mrf.mxu0  ;;  %v8881_v53 = vpop.f32.mrf.mxu1  ;;  %11685 = vmatmul.mubr.bf16.gmra.mxu0 %v17622_v48  ;;  %11878 = vmatmul.mubr.bf16.gmra.mxu1 %v17623_v61  ;;  %v17377_v44 = vld [vmem:[%s24472_s1 + $0xfa0] ss:$8 sps:$4 sm:$0xff]  }
 0x37f   : > { %v21866_v25 = vadd.f32 %v8877_v50, %v8685_v33  ;;  %v8689_v57 = vadd.f32 %v8688_v59, %v21429_v3  ;;  %11694 = vmatprep.mubr.bf16.mxu0 %v17624_v37  ;;  %11887 = vmatprep.mubr.bf16.mxu1 %v17625_v22  ;;  %v17382_v50 = vld [vmem:[%s24472_s1 + $0xe94] ss:$8 sps:$4 sm:$0xff]   ;;  %v17395_v37 = vld [vmem:[%s24472_s1 + $0xf84] ss:$8 sps:$4 sm:$0xff]  }
 0x380   : > { %v8690_v45 = vpop.f32.mrf.mxu0  ;;  %v8883_v32 = vpop.f32.mrf.mxu1  ;;  %12003 = vmatpush2.bf16.msra.mxu0 %v17368_v26  ;;  %12196 = vmatpush2.bf16.msra.mxu1 %v17371_v6  ;;  %v17385_v26 = vld [vmem:[%s24472_s1 + $0xf94] ss:$8 sps:$4 sm:$0xff]  }
 0x381   : > { %v21877_v2 = vadd.f32 %v8881_v53, %v8689_v57  ;;  %v8691_v3 = vadd.f32 %v8690_v45, %v21438_v29  ;;  %12004 = vmatprep.subr.bf16.mxu0 %v17376_v43  ;;  %12197 = vmatprep.subr.bf16.mxu1 %v17379_v15  ;;  %v17380_v43 = vld [vmem:[%s24472_s1 + $0xe90] ss:$8 sps:$4 sm:$0xff]  }
 0x382   : > { %v8692_v6 = vpop.f32.mrf.mxu0  ;;  %v8885_v33 = vpop.f32.mrf.mxu1  ;;  %v17383_v15 = vld [vmem:[%s24472_s1 + $0xf90] ss:$8 sps:$4 sm:$0xff]  }
 0x383   : > { %v21886_v59 = vadd.f32 %v8883_v32, %v8691_v3  ;;  %v8693_v53 = vadd.f32 %v8692_v6, %v21447_v19  ;;  %v17392_v19 = vld [vmem:[%s24472_s1 + $0xe84] ss:$8 sps:$4 sm:$0xff]   ;;  %v17626_v32 = vld [vmem:[%s17890_s22 + $0x1b0] ss:$16 sps:$4 sm:$0xff]  }
 0x384   : > { %v8694_v48 = vpop.f32.mrf.mxu0  ;;  %v8887_v29 = vpop.f32.mrf.mxu1  ;;  %12005 = vmatpush2.bf16.msra.mxu0 %v17374_v41  ;;  %12198 = vmatpush2.bf16.msra.mxu1 %v17377_v44  ;;  %v17627_v41 = vld [vmem:[%s17890_s22 + $0x1b8] ss:$16 sps:$4 sm:$0xff]   ;;  %v17628_v3 = vld [vmem:[%s17890_s22 + $0x1e4] ss:$16 sps:$4 sm:$0xff]  }
 0x385   : > { %v21895_v61 = vadd.f32 %v8885_v33, %v8693_v53  ;;  %v8695_v57 = vadd.f32 %v8694_v48, %v21458_v49  ;;  %12006 = vmatprep.subr.bf16.mxu0 %v17382_v50  ;;  %12199 = vmatprep.subr.bf16.mxu1 %v17385_v26  ;;  %v17629_v50 = vld [vmem:[%s17890_s22 + $0x1ec] ss:$16 sps:$4 sm:$0xff]   ;;  %v17390_v33 = vld [vmem:[%s24472_s1 + $0xe80] ss:$8 sps:$4 sm:$0xff]  }
 0x386   : > { %v8698_v22 = vpop.f32.mrf.mxu0  ;;  %v8891_v45 = vpop.f32.mrf.mxu1  ;;  %11695 = vmatmul.mubr.bf16.gmra.mxu0 %v17626_v32  ;;  %11888 = vmatmul.mubr.bf16.gmra.mxu1 %v17627_v41  ;;  %v17393_v53 = vld [vmem:[%s24472_s1 + $0xf80] ss:$8 sps:$4 sm:$0xff]  }
 0x387   : > { %v21906_v44 = vadd.f32 %v8887_v29, %v8695_v57  ;;  %v8699_v49 = vadd.f32 %v8698_v22, %v21469_v24  ;;  %11704 = vmatprep.mubr.bf16.mxu0 %v17628_v3  ;;  %11897 = vmatprep.mubr.bf16.mxu1 %v17629_v50  ;;  %v17398_v29 = vld [vmem:[%s24472_s1 + $0x1074] ss:$8 sps:$4 sm:$0xff]   ;;  %v17630_v3 = vld [vmem:[%s17890_s22 + $0x1e0] ss:$16 sps:$4 sm:$0xff]   ;;  %v17631_v50 = vld [vmem:[%s17890_s22 + $0x1e8] ss:$16 sps:$4 sm:$0xff]  }
 0x388   : > { %v8700_v26 = vpop.f32.mrf.mxu0  ;;  %v8893_v6 = vpop.f32.mrf.mxu1  ;;  %12007 = vmatpush2.bf16.msra.mxu0 %v17380_v43  ;;  %12200 = vmatpush2.bf16.msra.mxu1 %v17383_v15  ;;  %v17401_v43 = vld [vmem:[%s24472_s1 + $0x1174] ss:$8 sps:$4 sm:$0xff]  }
 0x389   : > { %v21917_v48 = vadd.f32 %v8891_v45, %v8699_v49  ;;  %v8701_v24 = vadd.f32 %v8700_v26, %v21478_v23  ;;  %12008 = vmatprep.subr.bf16.mxu0 %v17392_v19  ;;  %12201 = vmatprep.subr.bf16.mxu1 %v17395_v37 }
 0x38a   : > { %v8702_v15 = vpop.f32.mrf.mxu0  ;;  %v8895_v57 = vpop.f32.mrf.mxu1 }
 0x38b   : > { %v21926_v22 = vadd.f32 %v8893_v6, %v8701_v24  ;;  %v8703_v45 = vadd.f32 %v8702_v15, %v21481_v34  ;;  %v17632_v6 = vld [vmem:[%s17890_s22 + $0x214] ss:$16 sps:$4 sm:$0xff]  }
 0x38c   : > { %v8704_v32 = vpop.f32.mrf.mxu0  ;;  %v8897_v23 = vpop.f32.mrf.mxu1  ;;  %12009 = vmatpush2.bf16.msra.mxu0 %v17390_v33  ;;  %12202 = vmatpush2.bf16.msra.mxu1 %v17393_v53  ;;  %v17633_v33 = vld [vmem:[%s17890_s22 + $0x21c] ss:$16 sps:$4 sm:$0xff]  }
 0x38d   : > { %v21929_v19 = vadd.f32 %v8895_v57, %v8703_v45  ;;  %v8705_v37 = vadd.f32 %v8704_v32, %v21486_v46  ;;  %12364 = vmatprep.subr.bf16.mxu0 %v17398_v29  ;;  %12557 = vmatprep.subr.bf16.mxu1 %v17401_v43  ;;  %v25330_v29 = vld [vmem:[#allocation6_spill] sm:$0xff]  ;;  %v25332_v32 = vld [vmem:[#allocation103_spill] sm:$0xff] }
 0x38e   : > { %v8934_v41 = vpop.f32.mrf.mxu0  ;;  %v9127_v49 = vpop.f32.mrf.mxu1  ;;  %11705 = vmatmul.mubr.bf16.gmra.mxu0 %v17630_v3  ;;  %11898 = vmatmul.mubr.bf16.gmra.mxu1 %v17631_v50  ;;  %v25334_v3 = vld [vmem:[#allocation104_spill] sm:$0xff] }
 0x38f   : > { %v21934_v26 = vadd.f32 %v8897_v23, %v8705_v37  ;;  %v8935_v34 = vadd.f32 %v8934_v41, %v21491_v52  ;;  %11714 = vmatprep.mubr.bf16.mxu0 %v17632_v6  ;;  %11907 = vmatprep.mubr.bf16.mxu1 %v17633_v33 }
 0x390   : > { %v8936_v53 = vpop.f32.mrf.mxu0  ;;  %v9129_v46 = vpop.f32.mrf.mxu1 }
 0x391   : > { %v21939_v24 = vadd.f32 %v9127_v49, %v8935_v34  ;;  %v8937_v43 = vadd.f32 %v8936_v53, %v25330_v29  ;;  %v17634_v49 = vld [vmem:[%s17890_s22 + $0x210] ss:$16 sps:$4 sm:$0xff]   ;;  %v17635_v34 = vld [vmem:[%s17890_s22 + $0x218] ss:$16 sps:$4 sm:$0xff]  }
 0x392   : > { %v8938_v15 = vpop.f32.mrf.mxu0  ;;  %v9131_v57 = vpop.f32.mrf.mxu1  ;;  %v25336_v29 = vld [vmem:[#allocation108_spill] sm:$0xff] }
 0x393   : > { %25329 = vst [vmem:[#allocation89_spill] sm:$0xff] %v21939_v24  ;;  %v21942_v45 = vadd.f32 %v9129_v46, %v8937_v43  ;;  %v8939_v52 = vadd.f32 %v8938_v15, %v25332_v32  ;;  %v17636_v43 = vld [vmem:[%s17890_s22 + $0x244] ss:$16 sps:$4 sm:$0xff]  }
 0x394   : > { %v8940_v23 = vpop.f32.mrf.mxu0  ;;  %v9133_v37 = vpop.f32.mrf.mxu1 }
 0x395   : > { %25331 = vst [vmem:[#allocation90_spill] sm:$0xff] %v21942_v45  ;;  %v21945_v41 = vadd.f32 %v9131_v57, %v8939_v52  ;;  %v8941_v50 = vadd.f32 %v8940_v23, %v25334_v3  ;;  %v17637_v45 = vld [vmem:[%s17890_s22 + $0x24c] ss:$16 sps:$4 sm:$0xff]  }
 0x396   : > { %v8944_v6 = vpop.f32.mrf.mxu0  ;;  %v9137_v33 = vpop.f32.mrf.mxu1  ;;  %11715 = vmatmul.mubr.bf16.gmra.mxu0 %v17634_v49  ;;  %11908 = vmatmul.mubr.bf16.gmra.mxu1 %v17635_v34  ;;  %v25338_v52 = vld [vmem:[#allocation110_spill] sm:$0xff] }
 0x397   : > { %25333 = vst [vmem:[#allocation134_spill] sm:$0xff] %v21945_v41  ;;  %v21950_v53 = vadd.f32 %v9133_v37, %v8941_v50  ;;  %v8945_v46 = vadd.f32 %v8944_v6, %v25336_v29  ;;  %11724 = vmatprep.mubr.bf16.mxu0 %v17636_v43  ;;  %11917 = vmatprep.mubr.bf16.mxu1 %v17637_v45  ;;  %v25340_v37 = vld [vmem:[#allocation111_spill] sm:$0xff]  ;;  %v25342_v45 = vld [vmem:[#allocation112_spill] sm:$0xff] }
 0x398   : > { %v8946_v15 = vpop.f32.mrf.mxu0  ;;  %v9139_v57 = vpop.f32.mrf.mxu1 }
 0x399   : > { %25335 = vst [vmem:[#allocation135_spill] sm:$0xff] %v21950_v53  ;;  %v21955_v32 = vadd.f32 %v9137_v33, %v8945_v46  ;;  %v8947_v23 = vadd.f32 %v8946_v15, %v25338_v52  ;;  %v17638_v33 = vld [vmem:[%s17890_s22 + $0x240] ss:$16 sps:$4 sm:$0xff]   ;;  %v17639_v46 = vld [vmem:[%s17890_s22 + $0x248] ss:$16 sps:$4 sm:$0xff]  }
 0x39a   : > { %v8948_v3 = vpop.f32.mrf.mxu0  ;;  %v9141_v49 = vpop.f32.mrf.mxu1  ;;  %v25344_v52 = vld [vmem:[#allocation115_spill] sm:$0xff] }
 0x39b   : > { %25337 = vst [vmem:[#allocation136_spill] sm:$0xff] %v21955_v32  ;;  %v21958_v34 = vadd.f32 %v9139_v57, %v8947_v23  ;;  %v8949_v50 = vadd.f32 %v8948_v3, %v25340_v37  ;;  %v17640_v23 = vld [vmem:[%s17890_s22 + $0x274] ss:$16 sps:$4 sm:$0xff]  }
 0x39c   : > { %v8950_v6 = vpop.f32.mrf.mxu0  ;;  %v9143_v29 = vpop.f32.mrf.mxu1 }
 0x39d   : > { %25339 = vst [vmem:[#allocation139_spill] sm:$0xff] %v21958_v34  ;;  %v21961_v43 = vadd.f32 %v9141_v49, %v8949_v50  ;;  %v8951_v53 = vadd.f32 %v8950_v6, %v25342_v45  ;;  %v17641_v34 = vld [vmem:[%s17890_s22 + $0x27c] ss:$16 sps:$4 sm:$0xff]  }
 0x39e   : > { %v8954_v41 = vpop.f32.mrf.mxu0  ;;  %v9147_v24 = vpop.f32.mrf.mxu1  ;;  %11725 = vmatmul.mubr.bf16.gmra.mxu0 %v17638_v33  ;;  %11918 = vmatmul.mubr.bf16.gmra.mxu1 %v17639_v46  ;;  %v25346_v50 = vld [vmem:[#allocation118_spill] sm:$0xff] }
 0x39f   : > { %25341 = vst [vmem:[#allocation142_spill] sm:$0xff] %v21961_v43  ;;  %v21966_v15 = vadd.f32 %v9143_v29, %v8951_v53  ;;  %v8955_v57 = vadd.f32 %v8954_v41, %v25344_v52  ;;  %11734 = vmatprep.mubr.bf16.mxu0 %v17640_v23  ;;  %11927 = vmatprep.mubr.bf16.mxu1 %v17641_v34  ;;  %v25348_v53 = vld [vmem:[#allocation119_spill] sm:$0xff]  ;;  %v25350_v34 = vld [vmem:[#allocation120_spill] sm:$0xff] }
 0x3a0   : > { %v8956_v3 = vpop.f32.mrf.mxu0  ;;  %v9149_v49 = vpop.f32.mrf.mxu1 }
 0x3a1   : > { %25343 = vst [vmem:[#allocation143_spill] sm:$0xff] %v21966_v15  ;;  %v21971_v37 = vadd.f32 %v9147_v24, %v8955_v57  ;;  %v8957_v6 = vadd.f32 %v8956_v3, %v25346_v50  ;;  %v17642_v24 = vld [vmem:[%s17890_s22 + $0x270] ss:$16 sps:$4 sm:$0xff]   ;;  %v17643_v57 = vld [vmem:[%s17890_s22 + $0x278] ss:$16 sps:$4 sm:$0xff]  }
 0x3a2   : > { %v8958_v45 = vpop.f32.mrf.mxu0  ;;  %v9151_v33 = vpop.f32.mrf.mxu1  ;;  %v25352_v50 = vld [vmem:[#allocation124_spill] sm:$0xff] }
 0x3a3   : > { %25345 = vst [vmem:[#allocation144_spill] sm:$0xff] %v21971_v37  ;;  %v21974_v46 = vadd.f32 %v9149_v49, %v8957_v6  ;;  %v8959_v41 = vadd.f32 %v8958_v45, %v25348_v53  ;;  %v17644_v6 = vld [vmem:[%s17890_s22 + $0x2a4] ss:$16 sps:$4 sm:$0xff]  }
 0x3a4   : > { %v8960_v29 = vpop.f32.mrf.mxu0  ;;  %v9153_v52 = vpop.f32.mrf.mxu1 }
 0x3a5   : > { %25347 = vst [vmem:[#allocation147_spill] sm:$0xff] %v21974_v46  ;;  %v21977_v23 = vadd.f32 %v9151_v33, %v8959_v41  ;;  %v8961_v15 = vadd.f32 %v8960_v29, %v25350_v34  ;;  %v17645_v46 = vld [vmem:[%s17890_s22 + $0x2ac] ss:$16 sps:$4 sm:$0xff]  }
 0x3a6   : > { %v8964_v43 = vpop.f32.mrf.mxu0  ;;  %v9157_v32 = vpop.f32.mrf.mxu1  ;;  %11735 = vmatmul.mubr.bf16.gmra.mxu0 %v17642_v24  ;;  %11928 = vmatmul.mubr.bf16.gmra.mxu1 %v17643_v57  ;;  %v25354_v41 = vld [vmem:[#allocation126_spill] sm:$0xff] }
 0x3a7   : > { %25349 = vst [vmem:[#allocation152_spill] sm:$0xff] %v21977_v23  ;;  %v21982_v3 = vadd.f32 %v9153_v52, %v8961_v15  ;;  %v8965_v49 = vadd.f32 %v8964_v43, %v25352_v50  ;;  %11744 = vmatprep.mubr.bf16.mxu0 %v17644_v6  ;;  %11937 = vmatprep.mubr.bf16.mxu1 %v17645_v46  ;;  %v25356_v15 = vld [vmem:[#allocation127_spill] sm:$0xff]  ;;  %v25358_v46 = vld [vmem:[#allocation128_spill] sm:$0xff] }
 0x3a8   : > { %v8966_v45 = vpop.f32.mrf.mxu0  ;;  %v9159_v33 = vpop.f32.mrf.mxu1 }
 0x3a9   : > { %25351 = vst [vmem:[#allocation21_spill] sm:$0xff] %v21982_v3  ;;  %v21987_v53 = vadd.f32 %v9157_v32, %v8965_v49  ;;  %v8967_v29 = vadd.f32 %v8966_v45, %v25354_v41  ;;  %v17646_v32 = vld [vmem:[%s17890_s22 + $0x2a0] ss:$16 sps:$4 sm:$0xff]   ;;  %v17647_v49 = vld [vmem:[%s17890_s22 + $0x2a8] ss:$16 sps:$4 sm:$0xff]  }
 0x3aa   : > { %v8968_v34 = vpop.f32.mrf.mxu0  ;;  %v9161_v24 = vpop.f32.mrf.mxu1  ;;  %v17648_v41 = vld [vmem:[%s17890_s22 + $0x2d4] ss:$16 sps:$4 sm:$0xff]  }
 0x3ab   : > { %25353 = vst [vmem:[#allocation23_spill] sm:$0xff] %v21987_v53  ;;  %v21990_v57 = vadd.f32 %v9159_v33, %v8967_v29  ;;  %v8969_v43 = vadd.f32 %v8968_v34, %v25356_v15  ;;  %v17649_v29 = vld [vmem:[%s17890_s22 + $0x2dc] ss:$16 sps:$4 sm:$0xff]   ;;  %v25523_v53 = vld [vmem:[#allocation155_spill] sm:$0xff] }
 0x3ac   : > { %v8970_v52 = vpop.f32.mrf.mxu0  ;;  %v9163_v50 = vpop.f32.mrf.mxu1 }
 0x3ad   : > { %25355 = vst [vmem:[#allocation20_spill] sm:$0xff] %v21990_v57  ;;  %v21993_v6 = vadd.f32 %v9161_v24, %v8969_v43  ;;  %v8971_v3 = vadd.f32 %v8970_v52, %v25358_v46  ;;  %v25516_v57 = vld [vmem:[#allocation151_spill] sm:$0xff] }
 0x3ae   : > { %v8974_v23 = vpop.f32.mrf.mxu0  ;;  %v9167_v37 = vpop.f32.mrf.mxu1  ;;  %11745 = vmatmul.mubr.bf16.gmra.mxu0 %v17646_v32  ;;  %11938 = vmatmul.mubr.bf16.gmra.mxu1 %v17647_v49 }
 0x3af   : > { %25357 = vst [vmem:[#allocation22_spill] sm:$0xff] %v21993_v6  ;;  %v21998_v45 = vadd.f32 %v9163_v50, %v8971_v3  ;;  %v8975_v33 = vadd.f32 %v8974_v23, %v21555_v42  ;;  %11754 = vmatprep.mubr.bf16.mxu0 %v17648_v41  ;;  %11947 = vmatprep.mubr.bf16.mxu1 %v17649_v29  ;;  %v25362_v3 = vld [vmem:[#allocation131_spill] sm:$0xff]  ;;  %v17651_v29 = vld [vmem:[%s17890_s22 + $0x2d8] ss:$16 sps:$4 sm:$0xff]  }
 0x3b0   : > { %v8976_v34 = vpop.f32.mrf.mxu0  ;;  %v9169_v24 = vpop.f32.mrf.mxu1  ;;  %v25515_v6 = vld [vmem:[#allocation150_spill] sm:$0xff] }
 0x3b1   : > { %25359 = vst [vmem:[#allocation87_spill] sm:$0xff] %v21998_v45  ;;  %v22003_v15 = vadd.f32 %v9167_v37, %v8975_v33  ;;  %v8977_v43 = vadd.f32 %v8976_v34, %v21558_v20  ;;  %v17650_v20 = vld [vmem:[%s17890_s22 + $0x2d0] ss:$16 sps:$4 sm:$0xff]  }
 0x3b2   : > { %v8978_v52 = vpop.f32.mrf.mxu0  ;;  %v9171_v46 = vpop.f32.mrf.mxu1 }
 0x3b3   : > { %25360 = vst [vmem:[#allocation88_spill] sm:$0xff] %v22003_v15  ;;  %v22006_v32 = vadd.f32 %v9169_v24, %v8977_v43  ;;  %v8979_v42 = vadd.f32 %v8978_v52, %v25362_v3  ;;  %v17652_v43 = vld [vmem:[%s17890_s22 + $0x304] ss:$16 sps:$4 sm:$0xff]   ;;  %v17653_v52 = vld [vmem:[%s17890_s22 + $0x30c] ss:$16 sps:$4 sm:$0xff]  }
 0x3b4   : > { %v8980_v23 = vpop.f32.mrf.mxu0  ;;  %v9173_v50 = vpop.f32.mrf.mxu1 }
 0x3b5   : > { %25361 = vst [vmem:[#allocation91_spill] sm:$0xff] %v22006_v32  ;;  %v22009_v49 = vadd.f32 %v9171_v46, %v8979_v42  ;;  %v8981_v41 = vadd.f32 %v8980_v23, %v21566_v8  ;;  %v22020_v46 = vld [vmem:[%s17890_s22 + $0x330] sm:$0xff]  ;;  %v22023_v42 = vld [vmem:[%s17890_s22 + $0x340] sm:$0xff]  ;;  %v22026_v23 = vld [vmem:[%s17890_s22 + $0x338] sm:$0xff] }
 0x3b6   : > { %v8984_v37 = vpop.f32.mrf.mxu0  ;;  %v9177_v33 = vpop.f32.mrf.mxu1  ;;  %11755 = vmatmul.mubr.bf16.gmra.mxu0 %v17650_v20  ;;  %11948 = vmatmul.mubr.bf16.gmra.mxu1 %v17651_v29  ;;  %v22029_v20 = vld [vmem:[%s17890_s22 + $0x348] sm:$0xff] }
 0x3b7   : > { %25363 = vst [vmem:[#allocation94_spill] sm:$0xff] %v22009_v49  ;;  %v22014_v34 = vadd.f32 %v9173_v50, %v8981_v41  ;;  %v8985_v24 = vadd.f32 %v8984_v37, %v21571_v39  ;;  %11764 = vmatprep.mubr.bf16.mxu0 %v17652_v43  ;;  %11957 = vmatprep.mubr.bf16.mxu1 %v17653_v52 }
 0x3b8   : > { %v8986_v8 = vpop.f32.mrf.mxu0  ;;  %v9179_v3 = vpop.f32.mrf.mxu1  ;;  %v16036_v52 = vcombine.high %v22020_v46, %v22023_v42 }
 0x3b9   : > { %25364 = vst [vmem:[#allocation95_spill] sm:$0xff] %v22014_v34  ;;  %v22031_v29 = vadd.f32 %v9177_v33, %v8985_v24  ;;  %v8987_v39 = vadd.f32 %v8986_v8, %v21574_v55  ;;  %v16038_v34 = vcombine.high %v22026_v23, %v22029_v20  ;;  %v17654_v8 = vld [vmem:[%s17890_s22 + $0x300] ss:$16 sps:$4 sm:$0xff]  }
 0x3ba   : > { %v8988_v50 = vpop.f32.mrf.mxu0  ;;  %v9181_v41 = vpop.f32.mrf.mxu1 }
 0x3bb   : > { %25365 = vst [vmem:[#allocation3_spill] sm:$0xff] %v22031_v29  ;;  %v22034_v37 = vadd.f32 %v9179_v3, %v8987_v39  ;;  %v8989_v43 = vadd.f32 %v8988_v50, %v21577_v14  ;;  %v17655_v3 = vld [vmem:[%s17890_s22 + $0x308] ss:$16 sps:$4 sm:$0xff]  }
 0x3bc   : > { %v8990_v49 = vpop.f32.mrf.mxu0  ;;  %v9183_v32 = vpop.f32.mrf.mxu1 }
 0x3bd   : > { %25366 = vst [vmem:[#allocation4_spill] sm:$0xff] %v22034_v37  ;;  %v22041_v15 = vadd.f32 %v9181_v41, %v8989_v43  ;;  %v8991_v33 = vadd.f32 %v8990_v49, %v21582_v38  ;;  %v16035_v49 = vcombine.low %v22020_v46, %v22023_v42 }
 0x3be   : > { %v8994_v24 = vpop.f32.mrf.mxu0  ;;  %v9187_v55 = vpop.f32.mrf.mxu1  ;;  %11765 = vmatmul.mubr.bf16.gmra.mxu0 %v17654_v8  ;;  %11958 = vmatmul.mubr.bf16.gmra.mxu1 %v17655_v3  ;;  %v16037_v8 = vcombine.low %v22026_v23, %v22029_v20 }
 0x3bf   : > { %25367 = vst [vmem:[#allocation96_spill] sm:$0xff] %v22041_v15  ;;  %v22046_v39 = vadd.f32 %v9183_v32, %v8991_v33  ;;  %v8995_v14 = vadd.f32 %v8994_v24, %v21587_v11  ;;  %11774 = vmatprep.mubr.bf16.mxu0 %v16036_v52  ;;  %11967 = vmatprep.mubr.bf16.mxu1 %v16038_v34 }
 0x3c0   : > { %v8996_v50 = vpop.f32.mrf.mxu0  ;;  %v9189_v37 = vpop.f32.mrf.mxu1 }
 0x3c1   : > { %25368 = vst [vmem:[#allocation99_spill] sm:$0xff] %v22046_v39  ;;  %v22049_v29 = vadd.f32 %v9187_v55, %v8995_v14  ;;  %v8997_v41 = vadd.f32 %v8996_v50, %v21590_v17  ;;  %v25373_v50 = vld [vmem:[#allocation24_spill] sm:$0xff]  ;;  %v25503_v39 = vld [vmem:[#allocation137_spill] sm:$0xff] }
 0x3c2   : > { %v8998_v43 = vpop.f32.mrf.mxu0  ;;  %v9191_v38 = vpop.f32.mrf.mxu1 }
 0x3c3   : > { %25369 = vst [vmem:[#allocation102_spill] sm:$0xff] %v22049_v29  ;;  %v22056_v32 = vadd.f32 %v9189_v37, %v8997_v41  ;;  %v8999_v11 = vadd.f32 %v8998_v43, %v21593_v5  ;;  %v25374_v37 = vld [vmem:[#allocation26_spill] sm:$0xff] }
 0x3c4   : > { %v9000_v52 = vpop.f32.mrf.mxu0  ;;  %v9193_v34 = vpop.f32.mrf.mxu1 }
 0x3c5   : > { %25370 = vst [vmem:[#allocation5_spill] sm:$0xff] %v22056_v32  ;;  %v22059_v33 = vadd.f32 %v9191_v38, %v8999_v11  ;;  %v9001_v24 = vadd.f32 %v9000_v52, %v21598_v36 }
 0x3c6   : > { %v9004_v55 = vpop.f32.mrf.mxu0  ;;  %v9197_v17 = vpop.f32.mrf.mxu1  ;;  %11775 = vmatmul.mubr.bf16.gmra.mxu0 %v16035_v49  ;;  %11968 = vmatmul.mubr.bf16.gmra.mxu1 %v16037_v8  ;;  %v25377_v49 = vld [vmem:[#allocation85_spill] sm:$0xff] }
 0x3c7   : > { %25371 = vst [vmem:[#allocation7_spill] sm:$0xff] %v22059_v33  ;;  %v22062_v3 = vadd.f32 %v9193_v34, %v9001_v24  ;;  %v9005_v14 = vadd.f32 %v9004_v55, %v21603_v18  ;;  %12010 = vmatprep.mubr.bf16.mxu0 %v25373_v50  ;;  %12203 = vmatprep.mubr.bf16.mxu1 %v25374_v37  ;;  %v17396_v18 = vld [vmem:[%s24472_s1 + $0x1070] ss:$8 sps:$4 sm:$0xff]   ;;  %v17404_v50 = vld [vmem:[%s24472_s1 + $0x1064] ss:$8 sps:$4 sm:$0xff]  }
 0x3c8   : > { %v9006_v41 = vpop.f32.mrf.mxu0  ;;  %v9199_v5 = vpop.f32.mrf.mxu1  ;;  %v17399_v34 = vld [vmem:[%s24472_s1 + $0x1170] ss:$8 sps:$4 sm:$0xff]   ;;  %v17407_v37 = vld [vmem:[%s24472_s1 + $0x1164] ss:$8 sps:$4 sm:$0xff]  }
 0x3c9   : > { %25372 = vst [vmem:[#allocation8_spill] sm:$0xff] %v22062_v3  ;;  %v22067_v43 = vadd.f32 %v9197_v17, %v9005_v14  ;;  %v9007_v38 = vadd.f32 %v9006_v41, %v21606_v4  ;;  %v25379_v14 = vld [vmem:[#allocation86_spill] sm:$0xff] }
 0x3ca   : > { %v9008_v11 = vpop.f32.mrf.mxu0  ;;  %v9201_v36 = vpop.f32.mrf.mxu1  ;;  %v25499_v33 = vld [vmem:[#allocation130_spill] sm:$0xff] }
 0x3cb   : > { %25375 = vst [vmem:[#allocation9_spill] sm:$0xff] %v22067_v43  ;;  %v22070_v52 = vadd.f32 %v9199_v5, %v9007_v38  ;;  %v9009_v8 = vadd.f32 %v9008_v11, %v25377_v49  ;;  %v25380_v38 = vld [vmem:[#allocation25_spill] sm:$0xff]  ;;  %v25381_v11 = vld [vmem:[#allocation27_spill] sm:$0xff] }
 0x3cc   : > { %v9010_v24 = vpop.f32.mrf.mxu0  ;;  %v9203_v55 = vpop.f32.mrf.mxu1  ;;  %v17408_v43 = vld [vmem:[%s24472_s1 + $0x1050] ss:$8 sps:$4 sm:$0xff]  }
 0x3cd   : > { %25376 = vst [vmem:[#allocation10_spill] sm:$0xff] %v22070_v52  ;;  %v22079_v17 = vadd.f32 %v9201_v36, %v9009_v8  ;;  %v9011_v4 = vadd.f32 %v9010_v24, %v25379_v14  ;;  %v17402_v8 = vld [vmem:[%s24472_s1 + $0x1060] ss:$8 sps:$4 sm:$0xff]  }
 0x3ce   : > { %v9014_v41 = vpop.f32.mrf.mxu0  ;;  %v9207_v5 = vpop.f32.mrf.mxu1  ;;  %12011 = vmatmul.mubr.bf16.vlgmr.msra.gmra.mxu0 %v25380_v38  ;;  %12204 = vmatmul.mubr.bf16.vlgmr.msra.gmra.mxu1 %v25381_v11  ;;  %v17405_v24 = vld [vmem:[%s24472_s1 + $0x1160] ss:$8 sps:$4 sm:$0xff]   ;;  %v25384_v38 = vld [vmem:[#allocation29_spill] sm:$0xff] }
 0x3cf   : > { %25378 = vst [vmem:[#allocation11_spill] sm:$0xff] %v22079_v17  ;;  %v22090_v49 = vadd.f32 %v9203_v55, %v9011_v4  ;;  %v9015_v36 = vadd.f32 %v9014_v41, %v21643_v47  ;;  %12365 = vmatpush1.bf16.msra.mxu0 %v17396_v18  ;;  %12558 = vmatpush1.bf16.msra.mxu1 %v17399_v34  ;;  %v25383_v52 = vld [vmem:[#allocation28_spill] sm:$0xff]  ;;  %v17410_v47 = vld [vmem:[%s24472_s1 + $0x1054] ss:$8 sps:$4 sm:$0xff]  }
 0x3d0   : > { %v9016_v14 = vpop.f32.mrf.mxu0  ;;  %v9209_v17 = vpop.f32.mrf.mxu1  ;;  %12020 = vmatprep.mubr.bf16.mxu0 %v25383_v52  ;;  %12213 = vmatprep.mubr.bf16.mxu1 %v25384_v38  ;;  %v17413_v18 = vld [vmem:[%s24472_s1 + $0x1154] ss:$8 sps:$4 sm:$0xff]  }
 0x3d1   : > { %25382 = vst [vmem:[#allocation12_spill] sm:$0xff] %v22090_v49  ;;  %v22107_v34 = vadd.f32 %v9207_v5, %v9015_v36  ;;  %v9017_v55 = vadd.f32 %v9016_v14, %v21646_v62  ;;  %12366 = vmatprep.subr.bf16.mxu0 %v17404_v50  ;;  %12559 = vmatprep.subr.bf16.mxu1 %v17407_v37  ;;  %v17411_v62 = vld [vmem:[%s24472_s1 + $0x1150] ss:$8 sps:$4 sm:$0xff]   ;;  %v17419_v37 = vld [vmem:[%s24472_s1 + $0x1144] ss:$8 sps:$4 sm:$0xff]  }
 0x3d2   : > { %v9018_v4 = vpop.f32.mrf.mxu0  ;;  %v9211_v41 = vpop.f32.mrf.mxu1 }
 0x3d3   : > { %25385 = vst [vmem:[#allocation13_spill] sm:$0xff] %v22107_v34  ;;  %v22110_v11 = vadd.f32 %v9209_v17, %v9017_v55  ;;  %v9019_v52 = vadd.f32 %v9018_v4, %v21655_v56  ;;  %12367 = vmatpush1.bf16.msra.mxu0 %v17402_v8  ;;  %12560 = vmatpush1.bf16.msra.mxu1 %v17405_v24  ;;  %v17416_v56 = vld [vmem:[%s24472_s1 + $0x1044] ss:$8 sps:$4 sm:$0xff]   ;;  %v25388_v8 = vld [vmem:[#allocation30_spill] sm:$0xff]  ;;  %v25493_v34 = vld [vmem:[#allocation121_spill] sm:$0xff] }
 0x3d4   : > { %v9020_v38 = vpop.f32.mrf.mxu0  ;;  %v9213_v49 = vpop.f32.mrf.mxu1  ;;  %12368 = vmatprep.subr.bf16.mxu0 %v17410_v47  ;;  %12561 = vmatprep.subr.bf16.mxu1 %v17413_v18  ;;  %v25389_v24 = vld [vmem:[#allocation31_spill] sm:$0xff]  ;;  %v25391_v18 = vld [vmem:[#allocation32_spill] sm:$0xff] }
 0x3d5   : > { %25386 = vst [vmem:[#allocation14_spill] sm:$0xff] %v22110_v11  ;;  %v22119_v50 = vadd.f32 %v9211_v41, %v9019_v52  ;;  %v9021_v17 = vadd.f32 %v9020_v38, %v21666_v27  ;;  %v25392_v27 = vld [vmem:[#allocation33_spill] sm:$0xff]  ;;  %v17414_v41 = vld [vmem:[%s24472_s1 + $0x1040] ss:$8 sps:$4 sm:$0xff]  }
 0x3d6   : > { %v9024_v5 = vpop.f32.mrf.mxu0  ;;  %v9217_v36 = vpop.f32.mrf.mxu1  ;;  %12021 = vmatmul.mubr.bf16.gmra.mxu0 %v25388_v8  ;;  %12214 = vmatmul.mubr.bf16.gmra.mxu1 %v25389_v24  ;;  %v17417_v52 = vld [vmem:[%s24472_s1 + $0x1140] ss:$8 sps:$4 sm:$0xff]   ;;  %v17422_v38 = vld [vmem:[%s24472_s1 + $0x1034] ss:$8 sps:$4 sm:$0xff]  }
 0x3d7   : > { %25387 = vst [vmem:[#allocation15_spill] sm:$0xff] %v22119_v50  ;;  %v22130_v14 = vadd.f32 %v9213_v49, %v9021_v17  ;;  %v9025_v47 = vadd.f32 %v9024_v5, %v21677_v40  ;;  %12030 = vmatprep.mubr.bf16.mxu0 %v25391_v18  ;;  %12223 = vmatprep.mubr.bf16.mxu1 %v25392_v27  ;;  %v17431_v18 = vld [vmem:[%s24472_s1 + $0x1124] ss:$8 sps:$4 sm:$0xff]   ;;  %v25491_v50 = vld [vmem:[#allocation117_spill] sm:$0xff] }
 0x3d8   : > { %v9026_v55 = vpop.f32.mrf.mxu0  ;;  %v9219_v4 = vpop.f32.mrf.mxu1  ;;  %12369 = vmatpush1.bf16.msra.mxu0 %v17408_v43  ;;  %12562 = vmatpush1.bf16.msra.mxu1 %v17411_v62  ;;  %v17425_v43 = vld [vmem:[%s24472_s1 + $0x1134] ss:$8 sps:$4 sm:$0xff]  }
 0x3d9   : > { %25390 = vst [vmem:[#allocation16_spill] sm:$0xff] %v22130_v14  ;;  %v22141_v49 = vadd.f32 %v9217_v36, %v9025_v47  ;;  %v9027_v40 = vadd.f32 %v9026_v55, %v21686_v30  ;;  %12370 = vmatprep.subr.bf16.mxu0 %v17416_v56  ;;  %12563 = vmatprep.subr.bf16.mxu1 %v17419_v37  ;;  %v17420_v30 = vld [vmem:[%s24472_s1 + $0x1030] ss:$8 sps:$4 sm:$0xff]  }
 0x3da   : > { %v9028_v62 = vpop.f32.mrf.mxu0  ;;  %v9221_v17 = vpop.f32.mrf.mxu1  ;;  %v17423_v56 = vld [vmem:[%s24472_s1 + $0x1130] ss:$8 sps:$4 sm:$0xff]  }
 0x3db   : > { %25393 = vst [vmem:[#allocation17_spill] sm:$0xff] %v22141_v49  ;;  %v22150_v5 = vadd.f32 %v9219_v4, %v9027_v40  ;;  %v9029_v8 = vadd.f32 %v9028_v62, %v21695_v1  ;;  %v17428_v1 = vld [vmem:[%s24472_s1 + $0x1024] ss:$8 sps:$4 sm:$0xff]   ;;  %v25396_v4 = vld [vmem:[#allocation34_spill] sm:$0xff]  ;;  %v25488_v14 = vld [vmem:[#allocation113_spill] sm:$0xff] }
 0x3dc   : > { %v9030_v36 = vpop.f32.mrf.mxu0  ;;  %v9223_v24 = vpop.f32.mrf.mxu1  ;;  %12371 = vmatpush1.bf16.msra.mxu0 %v17414_v41  ;;  %12564 = vmatpush1.bf16.msra.mxu1 %v17417_v52  ;;  %v25397_v41 = vld [vmem:[#allocation35_spill] sm:$0xff]  ;;  %v25399_v40 = vld [vmem:[#allocation36_spill] sm:$0xff] }
 0x3dd   : > { %25394 = vst [vmem:[#allocation18_spill] sm:$0xff] %v22150_v5  ;;  %v22159_v37 = vadd.f32 %v9221_v17, %v9029_v8  ;;  %v9031_v47 = vadd.f32 %v9030_v36, %v21706_v9  ;;  %12372 = vmatprep.subr.bf16.mxu0 %v17422_v38  ;;  %12565 = vmatprep.subr.bf16.mxu1 %v17425_v43  ;;  %v25400_v38 = vld [vmem:[#allocation37_spill] sm:$0xff]  ;;  %v17426_v17 = vld [vmem:[%s24472_s1 + $0x1020] ss:$8 sps:$4 sm:$0xff]  }
 0x3de   : > { %v9034_v27 = vpop.f32.mrf.mxu0  ;;  %v9227_v55 = vpop.f32.mrf.mxu1  ;;  %12031 = vmatmul.mubr.bf16.gmra.mxu0 %v25396_v4  ;;  %12224 = vmatmul.mubr.bf16.gmra.mxu1 %v25397_v41  ;;  %v17429_v8 = vld [vmem:[%s24472_s1 + $0x1120] ss:$8 sps:$4 sm:$0xff]  }
 0x3df   : > { %25395 = vst [vmem:[#allocation6_spill] sm:$0xff] %v22159_v37  ;;  %v22170_v52 = vadd.f32 %v9223_v24, %v9031_v47  ;;  %v9035_v9 = vadd.f32 %v9034_v27, %v21717_v31  ;;  %12040 = vmatprep.mubr.bf16.mxu0 %v25399_v40  ;;  %12233 = vmatprep.mubr.bf16.mxu1 %v25400_v38  ;;  %v17434_v24 = vld [vmem:[%s24472_s1 + $0x1014] ss:$8 sps:$4 sm:$0xff]   ;;  %v17443_v40 = vld [vmem:[%s24472_s1 + $0x1104] ss:$8 sps:$4 sm:$0xff]  }
 0x3e0   : > { %v9036_v43 = vpop.f32.mrf.mxu0  ;;  %v9229_v62 = vpop.f32.mrf.mxu1  ;;  %12373 = vmatpush1.bf16.msra.mxu0 %v17420_v30  ;;  %12566 = vmatpush1.bf16.msra.mxu1 %v17423_v56  ;;  %v17437_v30 = vld [vmem:[%s24472_s1 + $0x1114] ss:$8 sps:$4 sm:$0xff]  }
 0x3e1   : > { %25398 = vst [vmem:[#allocation103_spill] sm:$0xff] %v22170_v52  ;;  %v22181_v36 = vadd.f32 %v9227_v55, %v9035_v9  ;;  %v9037_v31 = vadd.f32 %v9036_v43, %v21726_v10  ;;  %12374 = vmatprep.subr.bf16.mxu0 %v17428_v1  ;;  %12567 = vmatprep.subr.bf16.mxu1 %v17431_v18  ;;  %v17432_v10 = vld [vmem:[%s24472_s1 + $0x1010] ss:$8 sps:$4 sm:$0xff]  }
 0x3e2   : > { %v9038_v56 = vpop.f32.mrf.mxu0  ;;  %v9231_v47 = vpop.f32.mrf.mxu1  ;;  %v17435_v1 = vld [vmem:[%s24472_s1 + $0x1110] ss:$8 sps:$4 sm:$0xff]  }
 0x3e3   : > { %25401 = vst [vmem:[#allocation104_spill] sm:$0xff] %v22181_v36  ;;  %v22190_v27 = vadd.f32 %v9229_v62, %v9037_v31  ;;  %v9039_v4 = vadd.f32 %v9038_v56, %v21735_v54  ;;  %v17440_v54 = vld [vmem:[%s24472_s1 + $0x1004] ss:$8 sps:$4 sm:$0xff]   ;;  %v25404_v62 = vld [vmem:[#allocation38_spill] sm:$0xff]  ;;  %v25483_v52 = vld [vmem:[#allocation105_spill] sm:$0xff] }
 0x3e4   : > { %v9040_v55 = vpop.f32.mrf.mxu0  ;;  %v9233_v41 = vpop.f32.mrf.mxu1  ;;  %12375 = vmatpush1.bf16.msra.mxu0 %v17426_v17  ;;  %12568 = vmatpush1.bf16.msra.mxu1 %v17429_v8  ;;  %v25405_v17 = vld [vmem:[#allocation39_spill] sm:$0xff]  ;;  %v25407_v31 = vld [vmem:[#allocation40_spill] sm:$0xff]  ;;  %v25486_v37 = vld [vmem:[#allocation109_spill] sm:$0xff] }
 0x3e5   : > { %25402 = vst [vmem:[#allocation108_spill] sm:$0xff] %v22190_v27  ;;  %v22199_v18 = vadd.f32 %v9231_v47, %v9039_v4  ;;  %v9041_v9 = vadd.f32 %v9040_v55, %v21746_v21  ;;  %12376 = vmatprep.subr.bf16.mxu0 %v17434_v24  ;;  %12569 = vmatprep.subr.bf16.mxu1 %v17437_v30  ;;  %v25408_v24 = vld [vmem:[#allocation42_spill] sm:$0xff]  ;;  %v17438_v47 = vld [vmem:[%s24472_s1 + $0x1000] ss:$8 sps:$4 sm:$0xff]  }
 0x3e6   : > { %v9044_v38 = vpop.f32.mrf.mxu0  ;;  %v9237_v43 = vpop.f32.mrf.mxu1  ;;  %12041 = vmatmul.mubr.bf16.gmra.mxu0 %v25404_v62  ;;  %12234 = vmatmul.mubr.bf16.gmra.mxu1 %v25405_v17  ;;  %v17441_v4 = vld [vmem:[%s24472_s1 + $0x1100] ss:$8 sps:$4 sm:$0xff]  }
 0x3e7   : > { %25403 = vst [vmem:[#allocation110_spill] sm:$0xff] %v22199_v18  ;;  %v22210_v8 = vadd.f32 %v9233_v41, %v9041_v9  ;;  %v9045_v21 = vadd.f32 %v9044_v38, %v21757_v35  ;;  %12050 = vmatprep.mubr.bf16.mxu0 %v25407_v31  ;;  %12243 = vmatprep.mubr.bf16.mxu1 %v25408_v24  ;;  %v17446_v41 = vld [vmem:[%s24472_s1 + $0x10f4] ss:$8 sps:$4 sm:$0xff]   ;;  %v17455_v31 = vld [vmem:[%s24472_s1 + $0x11e4] ss:$8 sps:$4 sm:$0xff]  }
 0x3e8   : > { %v9046_v30 = vpop.f32.mrf.mxu0  ;;  %v9239_v56 = vpop.f32.mrf.mxu1  ;;  %12377 = vmatpush1.bf16.msra.mxu0 %v17432_v10  ;;  %12570 = vmatpush1.bf16.msra.mxu1 %v17435_v1  ;;  %v17449_v10 = vld [vmem:[%s24472_s1 + $0x11f4] ss:$8 sps:$4 sm:$0xff]  }
 0x3e9   : > { %25406 = vst [vmem:[#allocation111_spill] sm:$0xff] %v22210_v8  ;;  %v22221_v55 = vadd.f32 %v9237_v43, %v9045_v21  ;;  %v9047_v35 = vadd.f32 %v9046_v30, %v21766_v16  ;;  %12378 = vmatprep.subr.bf16.mxu0 %v17440_v54  ;;  %12571 = vmatprep.subr.bf16.mxu1 %v17443_v40  ;;  %v17444_v16 = vld [vmem:[%s24472_s1 + $0x10f0] ss:$8 sps:$4 sm:$0xff]  }
 0x3ea   : > { %v9048_v1 = vpop.f32.mrf.mxu0  ;;  %v9241_v9 = vpop.f32.mrf.mxu1  ;;  %v17447_v54 = vld [vmem:[%s24472_s1 + $0x11f0] ss:$8 sps:$4 sm:$0xff]  }
 0x3eb   : > { %25409 = vst [vmem:[#allocation112_spill] sm:$0xff] %v22221_v55  ;;  %v22230_v38 = vadd.f32 %v9239_v56, %v9047_v35  ;;  %v9049_v62 = vadd.f32 %v9048_v1, %v21775_v58  ;;  %v17452_v58 = vld [vmem:[%s24472_s1 + $0x10e4] ss:$8 sps:$4 sm:$0xff]   ;;  %v25412_v56 = vld [vmem:[#allocation41_spill] sm:$0xff] }
 0x3ec   : > { %v9050_v43 = vpop.f32.mrf.mxu0  ;;  %v9243_v17 = vpop.f32.mrf.mxu1  ;;  %12379 = vmatpush1.bf16.msra.mxu0 %v17438_v47  ;;  %12572 = vmatpush1.bf16.msra.mxu1 %v17441_v4  ;;  %v25413_v47 = vld [vmem:[#allocation43_spill] sm:$0xff]  ;;  %v25415_v35 = vld [vmem:[#allocation44_spill] sm:$0xff] }
 0x3ed   : > { %25410 = vst [vmem:[#allocation115_spill] sm:$0xff] %v22230_v38  ;;  %v22239_v40 = vadd.f32 %v9241_v9, %v9049_v62  ;;  %v9051_v21 = vadd.f32 %v9050_v43, %v21786_v13  ;;  %12380 = vmatprep.subr.bf16.mxu0 %v17446_v41  ;;  %12573 = vmatprep.subr.bf16.mxu1 %v17449_v10  ;;  %v25416_v41 = vld [vmem:[#allocation46_spill] sm:$0xff]  ;;  %v17450_v9 = vld [vmem:[%s24472_s1 + $0x10e0] ss:$8 sps:$4 sm:$0xff]  }
 0x3ee   : > { %v9054_v24 = vpop.f32.mrf.mxu0  ;;  %v9247_v30 = vpop.f32.mrf.mxu1  ;;  %12051 = vmatmul.mubr.bf16.gmra.mxu0 %v25412_v56  ;;  %12244 = vmatmul.mubr.bf16.gmra.mxu1 %v25413_v47  ;;  %v17453_v62 = vld [vmem:[%s24472_s1 + $0x11e0] ss:$8 sps:$4 sm:$0xff]   ;;  %v25461_v38 = vld [vmem:[#allocation74_spill] sm:$0xff] }
 0x3ef   : > { %25411 = vst [vmem:[#allocation118_spill] sm:$0xff] %v22239_v40  ;;  %v22250_v4 = vadd.f32 %v9243_v17, %v9051_v21  ;;  %v9055_v13 = vadd.f32 %v9054_v24, %v21797_v7  ;;  %12060 = vmatprep.mubr.bf16.mxu0 %v25415_v35  ;;  %12253 = vmatprep.mubr.bf16.mxu1 %v25416_v41  ;;  %v17458_v17 = vld [vmem:[%s24472_s1 + $0x10d4] ss:$8 sps:$4 sm:$0xff]   ;;  %v17467_v35 = vld [vmem:[%s24472_s1 + $0x11c4] ss:$8 sps:$4 sm:$0xff]  }
 0x3f0   : > { %v9056_v10 = vpop.f32.mrf.mxu0  ;;  %v9249_v1 = vpop.f32.mrf.mxu1  ;;  %12381 = vmatpush2.bf16.msra.mxu0 %v17444_v16  ;;  %12574 = vmatpush2.bf16.msra.mxu1 %v17447_v54  ;;  %v17461_v16 = vld [vmem:[%s24472_s1 + $0x11d4] ss:$8 sps:$4 sm:$0xff]  }
 0x3f1   : > { %25414 = vst [vmem:[#allocation119_spill] sm:$0xff] %v22250_v4  ;;  %v22261_v43 = vadd.f32 %v9247_v30, %v9055_v13  ;;  %v9057_v7 = vadd.f32 %v9056_v10, %v21806_v60  ;;  %12382 = vmatprep.subr.bf16.mxu0 %v17452_v58  ;;  %12575 = vmatprep.subr.bf16.mxu1 %v17455_v31  ;;  %v17456_v60 = vld [vmem:[%s24472_s1 + $0x10d0] ss:$8 sps:$4 sm:$0xff]  }
 0x3f2   : > { %v9058_v54 = vpop.f32.mrf.mxu0  ;;  %v9251_v21 = vpop.f32.mrf.mxu1  ;;  %v17459_v58 = vld [vmem:[%s24472_s1 + $0x11d0] ss:$8 sps:$4 sm:$0xff]  }
 0x3f3   : > { %25417 = vst [vmem:[#allocation120_spill] sm:$0xff] %v22261_v43  ;;  %v22270_v24 = vadd.f32 %v9249_v1, %v9057_v7  ;;  %v9059_v56 = vadd.f32 %v9058_v54, %v21815_v12  ;;  %v17464_v12 = vld [vmem:[%s24472_s1 + $0x10c4] ss:$8 sps:$4 sm:$0xff]   ;;  %v25420_v1 = vld [vmem:[#allocation45_spill] sm:$0xff] }
 0x3f4   : > { %v9060_v30 = vpop.f32.mrf.mxu0  ;;  %v9253_v47 = vpop.f32.mrf.mxu1  ;;  %12383 = vmatpush2.bf16.msra.mxu0 %v17450_v9  ;;  %12576 = vmatpush2.bf16.msra.mxu1 %v17453_v62  ;;  %v25421_v9 = vld [vmem:[#allocation47_spill] sm:$0xff]  ;;  %v25423_v7 = vld [vmem:[#allocation48_spill] sm:$0xff] }
 0x3f5   : > { %25418 = vst [vmem:[#allocation124_spill] sm:$0xff] %v22270_v24  ;;  %v22279_v31 = vadd.f32 %v9251_v21, %v9059_v56  ;;  %v9061_v13 = vadd.f32 %v9060_v30, %v21826_v63  ;;  %12384 = vmatprep.subr.bf16.mxu0 %v17458_v17  ;;  %12577 = vmatprep.subr.bf16.mxu1 %v17461_v16  ;;  %v25424_v17 = vld [vmem:[#allocation50_spill] sm:$0xff]  ;;  %v17462_v21 = vld [vmem:[%s24472_s1 + $0x10c0] ss:$8 sps:$4 sm:$0xff]  }
 0x3f6   : > { %v9064_v41 = vpop.f32.mrf.mxu0  ;;  %v9257_v10 = vpop.f32.mrf.mxu1  ;;  %12061 = vmatmul.mubr.bf16.gmra.mxu0 %v25420_v1  ;;  %12254 = vmatmul.mubr.bf16.gmra.mxu1 %v25421_v9  ;;  %v17465_v56 = vld [vmem:[%s24472_s1 + $0x11c0] ss:$8 sps:$4 sm:$0xff]  }
 0x3f7   : > { %25419 = vst [vmem:[#allocation126_spill] sm:$0xff] %v22279_v31  ;;  %v22290_v62 = vadd.f32 %v9253_v47, %v9061_v13  ;;  %v9065_v63 = vadd.f32 %v9064_v41, %v21837_v51  ;;  %12070 = vmatprep.mubr.bf16.mxu0 %v25423_v7  ;;  %12263 = vmatprep.mubr.bf16.mxu1 %v25424_v17  ;;  %v17470_v47 = vld [vmem:[%s24472_s1 + $0x10b4] ss:$8 sps:$4 sm:$0xff]   ;;  %v17479_v7 = vld [vmem:[%s24472_s1 + $0x11a4] ss:$8 sps:$4 sm:$0xff]  }
 0x3f8   : > { %v9066_v16 = vpop.f32.mrf.mxu0  ;;  %v9259_v54 = vpop.f32.mrf.mxu1  ;;  %12385 = vmatpush2.bf16.msra.mxu0 %v17456_v60  ;;  %12578 = vmatpush2.bf16.msra.mxu1 %v17459_v58  ;;  %v17473_v60 = vld [vmem:[%s24472_s1 + $0x11b4] ss:$8 sps:$4 sm:$0xff]  }
 0x3f9   : > { %25422 = vst [vmem:[#allocation127_spill] sm:$0xff] %v22290_v62  ;;  %v22301_v30 = vadd.f32 %v9257_v10, %v9065_v63  ;;  %v9067_v51 = vadd.f32 %v9066_v16, %v21846_v28  ;;  %12386 = vmatprep.subr.bf16.mxu0 %v17464_v12  ;;  %12579 = vmatprep.subr.bf16.mxu1 %v17467_v35  ;;  %v17468_v28 = vld [vmem:[%s24472_s1 + $0x10b0] ss:$8 sps:$4 sm:$0xff]  }
 0x3fa   : > { %v9068_v58 = vpop.f32.mrf.mxu0  ;;  %v9261_v13 = vpop.f32.mrf.mxu1  ;;  %v17471_v12 = vld [vmem:[%s24472_s1 + $0x11b0] ss:$8 sps:$4 sm:$0xff]  }
 0x3fb   : > { %25425 = vst [vmem:[#allocation128_spill] sm:$0xff] %v22301_v30  ;;  %v22310_v41 = vadd.f32 %v9259_v54, %v9067_v51  ;;  %v9069_v1 = vadd.f32 %v9068_v58, %v21855_v0  ;;  %v17476_v0 = vld [vmem:[%s24472_s1 + $0x10a4] ss:$8 sps:$4 sm:$0xff]   ;;  %v25428_v54 = vld [vmem:[#allocation49_spill] sm:$0xff] }
 0x3fc   : > { %v9070_v10 = vpop.f32.mrf.mxu0  ;;  %v9263_v9 = vpop.f32.mrf.mxu1  ;;  %12387 = vmatpush2.bf16.msra.mxu0 %v17462_v21  ;;  %12580 = vmatpush2.bf16.msra.mxu1 %v17465_v56  ;;  %v25429_v21 = vld [vmem:[#allocation51_spill] sm:$0xff]  ;;  %v25431_v51 = vld [vmem:[#allocation52_spill] sm:$0xff] }
 0x3fd   : > { %25426 = vst [vmem:[#allocation131_spill] sm:$0xff] %v22310_v41  ;;  %v22319_v35 = vadd.f32 %v9261_v13, %v9069_v1  ;;  %v9071_v63 = vadd.f32 %v9070_v10, %v21866_v25  ;;  %12388 = vmatprep.subr.bf16.mxu0 %v17470_v47  ;;  %12581 = vmatprep.subr.bf16.mxu1 %v17473_v60  ;;  %v25432_v47 = vld [vmem:[#allocation54_spill] sm:$0xff]  ;;  %v17474_v13 = vld [vmem:[%s24472_s1 + $0x10a0] ss:$8 sps:$4 sm:$0xff]  }
 0x3fe   : > { %v9074_v17 = vpop.f32.mrf.mxu0  ;;  %v9267_v16 = vpop.f32.mrf.mxu1  ;;  %12071 = vmatmul.mubr.bf16.gmra.mxu0 %v25428_v54  ;;  %12264 = vmatmul.mubr.bf16.gmra.mxu1 %v25429_v21  ;;  %v17477_v1 = vld [vmem:[%s24472_s1 + $0x11a0] ss:$8 sps:$4 sm:$0xff]  }
 0x3ff   : > { %25427 = vst [vmem:[#allocation24_spill] sm:$0xff] %v22319_v35  ;;  %v22330_v56 = vadd.f32 %v9263_v9, %v9071_v63  ;;  %v9075_v25 = vadd.f32 %v9074_v17, %v21877_v2  ;;  %12080 = vmatprep.mubr.bf16.mxu0 %v25431_v51  ;;  %12273 = vmatprep.mubr.bf16.mxu1 %v25432_v47  ;;  %v17482_v9 = vld [vmem:[%s24472_s1 + $0x1094] ss:$8 sps:$4 sm:$0xff]   ;;  %v17491_v51 = vld [vmem:[%s24472_s1 + $0x1184] ss:$8 sps:$4 sm:$0xff]  }
 0x400   : > { %v9076_v60 = vpop.f32.mrf.mxu0  ;;  %v9269_v58 = vpop.f32.mrf.mxu1  ;;  %12389 = vmatpush2.bf16.msra.mxu0 %v17468_v28  ;;  %12582 = vmatpush2.bf16.msra.mxu1 %v17471_v12  ;;  %v17485_v28 = vld [vmem:[%s24472_s1 + $0x1194] ss:$8 sps:$4 sm:$0xff]  }
 0x401   : > { %25430 = vst [vmem:[#allocation26_spill] sm:$0xff] %v22330_v56  ;;  %v22341_v10 = vadd.f32 %v9267_v16, %v9075_v25  ;;  %v9077_v2 = vadd.f32 %v9076_v60, %v21886_v59  ;;  %12390 = vmatprep.subr.bf16.mxu0 %v17476_v0  ;;  %12583 = vmatprep.subr.bf16.mxu1 %v17479_v7  ;;  %v17480_v59 = vld [vmem:[%s24472_s1 + $0x1090] ss:$8 sps:$4 sm:$0xff]  }
 0x402   : > { %v9078_v12 = vpop.f32.mrf.mxu0  ;;  %v9271_v63 = vpop.f32.mrf.mxu1  ;;  %v17483_v0 = vld [vmem:[%s24472_s1 + $0x1190] ss:$8 sps:$4 sm:$0xff]  }
 0x403   : > { %25433 = vst [vmem:[#allocation85_spill] sm:$0xff] %v22341_v10  ;;  %v22350_v17 = vadd.f32 %v9269_v58, %v9077_v2  ;;  %v9079_v54 = vadd.f32 %v9078_v12, %v21895_v61  ;;  %v17488_v61 = vld [vmem:[%s24472_s1 + $0x1084] ss:$8 sps:$4 sm:$0xff]   ;;  %v25436_v58 = vld [vmem:[#allocation53_spill] sm:$0xff] }
 0x404   : > { %v9080_v16 = vpop.f32.mrf.mxu0  ;;  %v9273_v21 = vpop.f32.mrf.mxu1  ;;  %12391 = vmatpush2.bf16.msra.mxu0 %v17474_v13  ;;  %12584 = vmatpush2.bf16.msra.mxu1 %v17477_v1  ;;  %v25437_v13 = vld [vmem:[#allocation55_spill] sm:$0xff]  ;;  %v25439_v2 = vld [vmem:[#allocation56_spill] sm:$0xff] }
 0x405   : > { %25434 = vst [vmem:[#allocation86_spill] sm:$0xff] %v22350_v17  ;;  %v22359_v7 = vadd.f32 %v9271_v63, %v9079_v54  ;;  %v9081_v25 = vadd.f32 %v9080_v16, %v21906_v44  ;;  %12392 = vmatprep.subr.bf16.mxu0 %v17482_v9  ;;  %12585 = vmatprep.subr.bf16.mxu1 %v17485_v28  ;;  %v25440_v9 = vld [vmem:[#allocation57_spill] sm:$0xff]  ;;  %v17486_v63 = vld [vmem:[%s24472_s1 + $0x1080] ss:$8 sps:$4 sm:$0xff]   ;;  %v1568_v17 = vshrl.u32 %v22026_v23, 16 }
 0x406   : > { %v9084_v47 = vpop.f32.mrf.mxu0  ;;  %v9277_v60 = vpop.f32.mrf.mxu1  ;;  %12081 = vmatmul.mubr.bf16.gmra.mxu0 %v25436_v58  ;;  %12274 = vmatmul.mubr.bf16.gmra.mxu1 %v25437_v13  ;;  %v17489_v54 = vld [vmem:[%s24472_s1 + $0x1180] ss:$8 sps:$4 sm:$0xff]  }
 0x407   : > { %25435 = vst [vmem:[#allocation25_spill] sm:$0xff] %v22359_v7  ;;  %v22370_v1 = vadd.f32 %v9273_v21, %v9081_v25  ;;  %v9085_v44 = vadd.f32 %v9084_v47, %v21917_v48  ;;  %12090 = vmatprep.mubr.bf16.mxu0 %v25439_v2  ;;  %12283 = vmatprep.mubr.bf16.mxu1 %v25440_v9  ;;  %v25444_v9 = vld [vmem:[#allocation58_spill] sm:$0xff] }
 0x408   : > { %v9086_v28 = vpop.f32.mrf.mxu0  ;;  %v9279_v12 = vpop.f32.mrf.mxu1  ;;  %12393 = vmatpush2.bf16.msra.mxu0 %v17480_v59  ;;  %12586 = vmatpush2.bf16.msra.mxu1 %v17483_v0 }
 0x409   : > { %25438 = vst [vmem:[#allocation27_spill] sm:$0xff] %v22370_v1  ;;  %v22381_v16 = vadd.f32 %v9277_v60, %v9085_v44  ;;  %v9087_v48 = vadd.f32 %v9086_v28, %v21926_v22  ;;  %12394 = vmatprep.subr.bf16.mxu0 %v17488_v61  ;;  %12587 = vmatprep.subr.bf16.mxu1 %v17491_v51  ;;  %v25445_v22 = vld [vmem:[#allocation59_spill] sm:$0xff]  ;;  %v25447_v28 = vld [vmem:[#allocation60_spill] sm:$0xff] }
 0x40a   : > { %v9088_v21 = vpop.f32.mrf.mxu0  ;;  %v9281_v25 = vpop.f32.mrf.mxu1 }
 0x40b   : > { %25441 = vst [vmem:[#allocation28_spill] sm:$0xff] %v22381_v16  ;;  %v22384_v47 = vadd.f32 %v9279_v12, %v9087_v48  ;;  %v9089_v59 = vadd.f32 %v9088_v21, %v21929_v19  ;;  %v25448_v19 = vld [vmem:[#allocation61_spill] sm:$0xff] }
 0x40c   : > { %v9090_v0 = vpop.f32.mrf.mxu0  ;;  %v9283_v58 = vpop.f32.mrf.mxu1  ;;  %12395 = vmatpush2.bf16.msra.mxu0 %v17486_v63  ;;  %12588 = vmatpush2.bf16.msra.mxu1 %v17489_v54 }
 0x40d   : > { %25442 = vst [vmem:[#allocation29_spill] sm:$0xff] %v22384_v47  ;;  %v22387_v13 = vadd.f32 %v9281_v25, %v9089_v59  ;;  %v9091_v2 = vadd.f32 %v9090_v0, %v21934_v26 }
 0x40e   : > { %v11626_v60 = vpop.f32.mrf.mxu0  ;;  %v11819_v44 = vpop.f32.mrf.mxu1  ;;  %12091 = vmatmul.mubr.bf16.gmra.mxu0 %v25444_v9  ;;  %12284 = vmatmul.mubr.bf16.gmra.mxu1 %v25445_v22  ;;  %v25451_v22 = vld [vmem:[#allocation64_spill] sm:$0xff] }
 0x40f   : > { %25443 = vst [vmem:[#allocation30_spill] sm:$0xff] %v22387_v13  ;;  %v22392_v61 = vadd.f32 %v9283_v58, %v9091_v2  ;;  %v22394_v51 = vadd.f32 %v11819_v44, %v11626_v60  ;;  %12100 = vmatprep.mubr.bf16.mxu0 %v25447_v28  ;;  %12293 = vmatprep.mubr.bf16.mxu1 %v25448_v19  ;;  %v25449_v60 = vld [vmem:[#allocation62_spill] sm:$0xff]  ;;  %v25450_v44 = vld [vmem:[#allocation63_spill] sm:$0xff] }
 0x410   : > { %v11628_v12 = vpop.f32.mrf.mxu0  ;;  %v11821_v63 = vpop.f32.mrf.mxu1  ;;  %v25452_v28 = vld [vmem:[#allocation66_spill] sm:$0xff] }
 0x411   : > { %25446 = vst [vmem:[#allocation31_spill] sm:$0xff] %v22392_v61  ;;  %v22398_v54 = vadd.f32 %v11821_v63, %v11628_v12 }
 0x412   : > { %v11630_v48 = vpop.f32.mrf.mxu0  ;;  %v11823_v26 = vpop.f32.mrf.mxu1 }
 0x413   : > { %v22400_v21 = vadd.f32 %v11823_v26, %v11630_v48 }
 0x414   : > { %v11632_v25 = vpop.f32.mrf.mxu0  ;;  %v11825_v59 = vpop.f32.mrf.mxu1 }
 0x415   : > { %v22402_v0 = vadd.f32 %v11825_v59, %v11632_v25 }
 0x416   : > { %v11636_v58 = vpop.f32.mrf.mxu0  ;;  %v11829_v2 = vpop.f32.mrf.mxu1  ;;  %12101 = vmatmul.mubr.bf16.gmra.mxu0 %v25449_v60  ;;  %12294 = vmatmul.mubr.bf16.gmra.mxu1 %v25450_v44 }
 0x417   : > { %v22406_v9 = vadd.f32 %v11829_v2, %v11636_v58  ;;  %12110 = vmatprep.mubr.bf16.mxu0 %v25451_v22  ;;  %12303 = vmatprep.mubr.bf16.mxu1 %v25452_v28  ;;  %v25453_v58 = vld [vmem:[#allocation65_spill] sm:$0xff]  ;;  %v25454_v2 = vld [vmem:[#allocation67_spill] sm:$0xff] }
 0x418   : > { %v11638_v19 = vpop.f32.mrf.mxu0  ;;  %v11831_v12 = vpop.f32.mrf.mxu1  ;;  %v25455_v28 = vld [vmem:[#allocation69_spill] sm:$0xff] }
 0x419   : > { %v22410_v63 = vadd.f32 %v11831_v12, %v11638_v19  ;;  %v25456_v19 = vld [vmem:[#allocation70_spill] sm:$0xff] }
 0x41a   : > { %v11640_v48 = vpop.f32.mrf.mxu0  ;;  %v11833_v26 = vpop.f32.mrf.mxu1 }
 0x41b   : > { %v22412_v25 = vadd.f32 %v11833_v26, %v11640_v48 }
 0x41c   : > { %v11642_v59 = vpop.f32.mrf.mxu0  ;;  %v11835_v61 = vpop.f32.mrf.mxu1 }
 0x41d   : > { %v22414_v13 = vadd.f32 %v11835_v61, %v11642_v59 }
 0x41e   : > { %v11646_v60 = vpop.f32.mrf.mxu0  ;;  %v11839_v44 = vpop.f32.mrf.mxu1  ;;  %12111 = vmatmul.mubr.bf16.gmra.mxu0 %v25453_v58  ;;  %12304 = vmatmul.mubr.bf16.gmra.mxu1 %v25454_v2 }
 0x41f   : > { %v22418_v22 = vadd.f32 %v11839_v44, %v11646_v60  ;;  %12120 = vmatprep.mubr.bf16.mxu0 %v25455_v28  ;;  %12313 = vmatprep.mubr.bf16.mxu1 %v25456_v19  ;;  %v25457_v60 = vld [vmem:[#allocation68_spill] sm:$0xff]  ;;  %v25458_v44 = vld [vmem:[#allocation71_spill] sm:$0xff]  ;;  %v1554_v28 = vshrl.u32 %v22020_v46, 16 }
 0x420   : > { %v11648_v12 = vpop.f32.mrf.mxu0  ;;  %v11841_v47 = vpop.f32.mrf.mxu1 }
 0x421   : > { %v22422_v48 = vadd.f32 %v11841_v47, %v11648_v12  ;;  %v25459_v47 = vld [vmem:[#allocation72_spill] sm:$0xff]  ;;  %v25460_v12 = vld [vmem:[#allocation73_spill] sm:$0xff]  ;;  %v1556_v10 = vrot.slane %v1554_v28, 4  ;;  %v25462_v28 = vld [vmem:[#allocation75_spill] sm:$0xff] }
 0x422   : > { %v11650_v26 = vpop.f32.mrf.mxu0  ;;  %v11843_v16 = vpop.f32.mrf.mxu1 }
 0x423   : > { %v22424_v61 = vadd.f32 %v11843_v16, %v11650_v26  ;;  %v1557_v16 = vshll.u32 %v22020_v46, 16  ;;  %v1563_v26 = vshll.u32 %v22023_v42, 16 }
 0x424   : > { %v11652_v59 = vpop.f32.mrf.mxu0  ;;  %v11845_v1 = vpop.f32.mrf.mxu1 }
 0x425   : > { %v22426_v7 = vadd.f32 %v11845_v1, %v11652_v59  ;;  %v1581_v1 = vshrl.u32 %v22023_v42, 16  ;;  %v17494_v59 = vld [vmem:[%s24475_s4 + $0x74] ss:$8 sps:$4 sm:$0xff]   ;;  %v1559_v35 = vrot.slane %v1557_v16, 5  ;;  %v1565_v41 = vrot.slane %v1563_v26, 5  ;;  %v25463_v16 = vld [vmem:[#allocation76_spill] sm:$0xff] }
 0x426   : > { %v11656_v58 = vpop.f32.mrf.mxu0  ;;  %v11849_v2 = vpop.f32.mrf.mxu1  ;;  %12121 = vmatmul.mubr.bf16.gmra.mxu0 %v25457_v60  ;;  %12314 = vmatmul.mubr.bf16.gmra.mxu1 %v25458_v44  ;;  %v25464_v26 = vld [vmem:[#allocation77_spill] sm:$0xff] }
 0x427   : > { %v22431_v19 = vadd.f32 %v11849_v2, %v11656_v58  ;;  %12130 = vmatprep.mubr.bf16.mxu0 %v25459_v47  ;;  %12323 = vmatprep.mubr.bf16.mxu1 %v25460_v12  ;;  %v1571_v58 = vshll.u32 %v22026_v23, 16  ;;  %v1577_v2 = vshll.u32 %v22029_v20, 16  ;;  %v1591_v47 = vshrl.u32 %v22029_v20, 16 }
 0x428   : > { %v11658_v60 = vpop.f32.mrf.mxu0  ;;  %v11851_v44 = vpop.f32.mrf.mxu1  ;;  %13254 = vmatprep.subr.bf16.mxu0 %v17494_v59  ;;  %v1583_v30 = vrot.slane %v1581_v1, 4  ;;  %v1570_v23 = vrot.slane %v1568_v17, 4  ;;  %v1560_v17 = vor.u32 %v1559_v35, %v1556_v10 }
 0x429   : > { %v22445_v12 = vadd.f32 %v11851_v44, %v11658_v60  ;;  %v1573_v24 = vrot.slane %v1571_v58, 5  ;;  %v1579_v43 = vrot.slane %v1577_v2, 5  ;;  %v1593_v4 = vrot.slane %v1591_v47, 4  ;;  %v732_v60 = vld [vmem:[%s17890_s22 + $0x350] sm:$0x11] }
 0x42a   : > { %v11660_v46 = vpop.f32.mrf.mxu0  ;;  %v11853_v42 = vpop.f32.mrf.mxu1  ;;  %v733_v44 = vld [vmem:[%s17890_s22 + $0x358] sm:$0x11]  ;;  %v1584_v1 = vor.u32 %v1583_v30, %v1565_v41 }
 0x42b   : > { %v22447_v56 = vadd.f32 %v11853_v42, %v11660_v46  ;;  %v1594_v47 = vor.u32 %v1593_v4, %v1579_v43  ;;  %v1597_v42 = vshll.u32 %v733_v44, 16  ;;  %v25466_v4 = vld [vmem:[#allocation78_spill] sm:$0xff] }
 0x42c   : > { %v11662_v62 = vpop.f32.mrf.mxu0  ;;  %v11855_v31 = vpop.f32.mrf.mxu1 }
 0x42d   : > { %v22449_v20 = vadd.f32 %v11855_v31, %v11662_v62  ;;  %v1587_v31 = vshll.u32 %v732_v60, 16  ;;  %v1574_v62 = vor.u32 %v1573_v24, %v1570_v23  ;;  %v1595_v35 = vrot.slane %v1594_v47, 4  ;;  %v25467_v23 = vld [vmem:[#allocation79_spill] sm:$0xff] }
 0x42e   : > { %v11666_v59 = vpop.f32.mrf.mxu0  ;;  %v11859_v40 = vpop.f32.mrf.mxu1  ;;  %12131 = vmatmul.mubr.bf16.gmra.mxu0 %v25461_v38  ;;  %12324 = vmatmul.mubr.bf16.gmra.mxu1 %v25462_v28  ;;  %v1599_v30 = vrot.slane %v1597_v42, 5 }
 0x42f   : > { %v22455_v46 = vadd.f32 %v11859_v40, %v11666_v59  ;;  %12140 = vmatprep.mubr.bf16.mxu0 %v25463_v16  ;;  %12333 = vmatprep.mubr.bf16.mxu1 %v25464_v26  ;;  %v1561_v40 = vrot.slane %v1560_v17, 4  ;;  %v1585_v59 = vrot.slane %v1584_v1, 4  ;;  %v1589_v27 = vrot.slane %v1587_v31, 5  ;;  %v25469_v17 = vld [vmem:[#allocation81_spill] sm:$0xff] }
 0x430   : > { %v11668_v58 = vpop.f32.mrf.mxu0  ;;  %v11861_v2 = vpop.f32.mrf.mxu1  ;;  %v1575_v26 = vrot.slane %v1574_v62, 4  ;;  %v1600_v42 = vsel %vm18366_vm2, %v1595_v35, %v1599_v30 }
 0x431   : > { %v22459_v55 = vadd.f32 %v11861_v2, %v11668_v58  ;;  %v1566_v31 = vsel %vm18366_vm2, %v1561_v40, %v1565_v41  ;;  %v1590_v62 = vsel %vm18366_vm2, %v1585_v59, %v1589_v27  ;;  %v25472_v59 = vld [vmem:[#allocation83_spill] sm:$0xff] }
 0x432   : > { %v11670_v8 = vpop.f32.mrf.mxu0  ;;  %v11863_v38 = vpop.f32.mrf.mxu1  ;;  %v1580_v47 = vsel %vm18366_vm2, %v1575_v26, %v1579_v43  ;;  %v25473_v43 = vld [vmem:[#allocation84_spill] sm:$0xff]  ;;  %v16039_v2 = vcombine.low %v1566_v31, %v1590_v62 }
 0x433   : > { %v22461_v18 = vadd.f32 %v11863_v38, %v11670_v8  ;;  %v25468_v8 = vld [vmem:[#allocation80_spill] sm:$0xff] }
 0x434   : > { %v11672_v28 = vpop.f32.mrf.mxu0  ;;  %v11865_v16 = vpop.f32.mrf.mxu1 }
 0x435   : > { %v22463_v10 = vadd.f32 %v11865_v16, %v11672_v28 }
 0x436   : > { %v11676_v60 = vpop.f32.mrf.mxu0  ;;  %v11869_v24 = vpop.f32.mrf.mxu1  ;;  %12141 = vmatmul.mubr.bf16.gmra.mxu0 %v25466_v4  ;;  %12334 = vmatmul.mubr.bf16.gmra.mxu1 %v25467_v23  ;;  %v16042_v4 = vcombine.high %v1580_v47, %v1600_v42 }
 0x437   : > { %25465 = vst [vmem:[#allocation32_spill] sm:$0xff] %v22463_v10  ;;  %v22467_v44 = vadd.f32 %v11869_v24, %v11676_v60  ;;  %12150 = vmatprep.mubr.bf16.mxu0 %v25468_v8  ;;  %12343 = vmatprep.mubr.bf16.mxu1 %v25469_v17  ;;  %v16040_v24 = vcombine.high %v1566_v31, %v1590_v62 }
 0x438   : > { %v11678_v1 = vpop.f32.mrf.mxu0  ;;  %v11871_v58 = vpop.f32.mrf.mxu1 }
 0x439   : > { %v22479_v38 = vadd.f32 %v11871_v58, %v11678_v1 }
 0x43a   : > { %v11680_v28 = vpop.f32.mrf.mxu0  ;;  %v11873_v16 = vpop.f32.mrf.mxu1 }
 0x43b   : > { %v22481_v60 = vadd.f32 %v11873_v16, %v11680_v28  ;;  %v16041_v28 = vcombine.low %v1580_v47, %v1600_v42 }
 0x43c   : > { %v11682_v23 = vpop.f32.mrf.mxu0  ;;  %v11875_v8 = vpop.f32.mrf.mxu1 }
 0x43d   : > { %v22483_v41 = vadd.f32 %v11875_v8, %v11682_v23 }
 0x43e   : > { %v11686_v40 = vpop.f32.mrf.mxu0  ;;  %v11879_v27 = vpop.f32.mrf.mxu1  ;;  %12151 = vmatmul.mubr.bf16.gmra.mxu0 %v25472_v59  ;;  %12344 = vmatmul.mubr.bf16.gmra.mxu1 %v25473_v43 }
 0x43f   : > { %25471 = vst [vmem:[#allocation33_spill] sm:$0xff] %v22483_v41  ;;  %v22487_v26 = vadd.f32 %v11879_v27, %v11686_v40  ;;  %12160 = vmatprep.mubr.bf16.mxu0 %v16040_v24  ;;  %12353 = vmatprep.mubr.bf16.mxu1 %v16042_v4  ;;  %v25475_v4 = vld [vmem:[#allocation92_spill] sm:$0xff]  ;;  %v25476_v40 = vld [vmem:[#allocation93_spill] sm:$0xff]  ;;  %v25509_v41 = vld [vmem:[#allocation146_spill] sm:$0xff] }
 0x440   : > { %v11688_v35 = vpop.f32.mrf.mxu0  ;;  %v11881_v30 = vpop.f32.mrf.mxu1 }
 0x441   : > { %v22489_v17 = vadd.f32 %v11881_v30, %v11688_v35 }
 0x442   : > { %v11690_v1 = vpop.f32.mrf.mxu0  ;;  %v11883_v58 = vpop.f32.mrf.mxu1 }
 0x443   : > { %v22491_v16 = vadd.f32 %v11883_v58, %v11690_v1  ;;  %v17492_v58 = vld [vmem:[%s24475_s4 + $0x70] ss:$8 sps:$4 sm:$0xff]  }
 0x444   : > { %v11692_v23 = vpop.f32.mrf.mxu0  ;;  %v11885_v8 = vpop.f32.mrf.mxu1 }
 0x445   : > { %v22493_v36 = vadd.f32 %v11885_v8, %v11692_v23 }
 0x446   : > { %v11696_v59 = vpop.f32.mrf.mxu0  ;;  %v11889_v43 = vpop.f32.mrf.mxu1  ;;  %12161 = vmatmul.mubr.bf16.gmra.mxu0 %v16039_v2  ;;  %12354 = vmatmul.mubr.bf16.gmra.mxu1 %v16041_v28  ;;  %v17497_v28 = vld [vmem:[%s24475_s4 + $0x64] ss:$8 sps:$4 sm:$0xff]  }
 0x447   : > { %25474 = vst [vmem:[#allocation34_spill] sm:$0xff] %v22493_v36  ;;  %v22495_v24 = vadd.f32 %v11889_v43, %v11696_v59  ;;  %12396 = vmatprep.mubr.bf16.mxu0 %v25475_v4  ;;  %12589 = vmatprep.mubr.bf16.mxu1 %v25476_v40  ;;  %v25478_v59 = vld [vmem:[#allocation97_spill] sm:$0xff]  ;;  %v25479_v43 = vld [vmem:[#allocation98_spill] sm:$0xff]  ;;  %v25480_v40 = vld [vmem:[#allocation100_spill] sm:$0xff] }
 0x448   : > { %v11698_v27 = vpop.f32.mrf.mxu0  ;;  %v11891_v35 = vpop.f32.mrf.mxu1  ;;  %v25508_v36 = vld [vmem:[#allocation145_spill] sm:$0xff] }
 0x449   : > { %v22499_v31 = vadd.f32 %v11891_v35, %v11698_v27  ;;  %v25481_v27 = vld [vmem:[#allocation101_spill] sm:$0xff] }
 0x44a   : > { %v11700_v62 = vpop.f32.mrf.mxu0  ;;  %v11893_v47 = vpop.f32.mrf.mxu1 }
 0x44b   : > { %v22501_v42 = vadd.f32 %v11893_v47, %v11700_v62  ;;  %v17495_v47 = vld [vmem:[%s24475_s4 + $0x60] ss:$8 sps:$4 sm:$0xff]  }
 0x44c   : > { %v11702_v30 = vpop.f32.mrf.mxu0  ;;  %v11895_v1 = vpop.f32.mrf.mxu1 }
 0x44d   : > { %v22506_v2 = vadd.f32 %v11895_v1, %v11702_v30  ;;  %v17500_v1 = vld [vmem:[%s24475_s4 + $0x54] ss:$8 sps:$4 sm:$0xff]  }
 0x44e   : > { %v11706_v23 = vpop.f32.mrf.mxu0  ;;  %v11899_v8 = vpop.f32.mrf.mxu1  ;;  %12397 = vmatmul.mubr.bf16.vlgmr.msra.gmra.mxu0 %v25478_v59  ;;  %12590 = vmatmul.mubr.bf16.vlgmr.msra.gmra.mxu1 %v25479_v43 }
 0x44f   : > { %25477 = vst [vmem:[#allocation35_spill] sm:$0xff] %v22506_v2  ;;  %v22513_v4 = vadd.f32 %v11899_v8, %v11706_v23  ;;  %12406 = vmatprep.mubr.bf16.mxu0 %v25480_v40  ;;  %12599 = vmatprep.mubr.bf16.mxu1 %v25481_v27 }
 0x450   : > { %v11708_v35 = vpop.f32.mrf.mxu0  ;;  %v11901_v62 = vpop.f32.mrf.mxu1  ;;  %13255 = vmatpush1.bf16.msra.mxu0 %v17492_v58  ;;  %v17498_v58 = vld [vmem:[%s24475_s4 + $0x50] ss:$8 sps:$4 sm:$0xff]  }
 0x451   : > { %v22520_v30 = vadd.f32 %v11901_v62, %v11708_v35  ;;  %13256 = vmatprep.subr.bf16.mxu0 %v17497_v28  ;;  %v17503_v28 = vld [vmem:[%s24475_s4 + $0x44] ss:$8 sps:$4 sm:$0xff]  }
 0x452   : > { %v11710_v23 = vpop.f32.mrf.mxu0  ;;  %v11903_v8 = vpop.f32.mrf.mxu1 }
 0x453   : > { %v22525_v59 = vadd.f32 %v11903_v8, %v11710_v23  ;;  %v25484_v23 = vld [vmem:[#allocation106_spill] sm:$0xff] }
 0x454   : > { %v11712_v43 = vpop.f32.mrf.mxu0  ;;  %v11905_v40 = vpop.f32.mrf.mxu1  ;;  %13257 = vmatpush1.bf16.msra.mxu0 %v17495_v47  ;;  %v25485_v47 = vld [vmem:[#allocation107_spill] sm:$0xff] }
 0x455   : > { %v22530_v27 = vadd.f32 %v11905_v40, %v11712_v43  ;;  %13258 = vmatprep.subr.bf16.mxu0 %v17500_v1  ;;  %v17501_v1 = vld [vmem:[%s24475_s4 + $0x40] ss:$8 sps:$4 sm:$0xff]  }
 0x456   : > { %v11716_v35 = vpop.f32.mrf.mxu0  ;;  %v11909_v62 = vpop.f32.mrf.mxu1  ;;  %12407 = vmatmul.mubr.bf16.gmra.mxu0 %v25483_v52  ;;  %12600 = vmatmul.mubr.bf16.gmra.mxu1 %v25484_v23  ;;  %v17506_v52 = vld [vmem:[%s24475_s4 + $0x34] ss:$8 sps:$4 sm:$0xff]  }
 0x457   : > { %25482 = vst [vmem:[#allocation36_spill] sm:$0xff] %v22530_v27  ;;  %v22537_v8 = vadd.f32 %v11909_v62, %v11716_v35  ;;  %12416 = vmatprep.mubr.bf16.mxu0 %v25485_v47  ;;  %12609 = vmatprep.mubr.bf16.mxu1 %v25486_v37  ;;  %v25496_v27 = vld [vmem:[#allocation125_spill] sm:$0xff] }
 0x458   : > { %v11718_v5 = vpop.f32.mrf.mxu0  ;;  %v11911_v43 = vpop.f32.mrf.mxu1  ;;  %13259 = vmatpush1.bf16.msra.mxu0 %v17498_v58  ;;  %v17504_v58 = vld [vmem:[%s24475_s4 + $0x30] ss:$8 sps:$4 sm:$0xff]  }
 0x459   : > { %v22544_v40 = vadd.f32 %v11911_v43, %v11718_v5  ;;  %13260 = vmatprep.subr.bf16.mxu0 %v17503_v28  ;;  %v17509_v5 = vld [vmem:[%s24475_s4 + $0x24] ss:$8 sps:$4 sm:$0xff]  }
 0x45a   : > { %v11720_v35 = vpop.f32.mrf.mxu0  ;;  %v11913_v62 = vpop.f32.mrf.mxu1 }
 0x45b   : > { %v22549_v23 = vadd.f32 %v11913_v62, %v11720_v35  ;;  %v25489_v35 = vld [vmem:[#allocation114_spill] sm:$0xff] }
 0x45c   : > { %v11722_v47 = vpop.f32.mrf.mxu0  ;;  %v11915_v37 = vpop.f32.mrf.mxu1  ;;  %13261 = vmatpush1.bf16.msra.mxu0 %v17501_v1  ;;  %v25490_v1 = vld [vmem:[#allocation116_spill] sm:$0xff] }
 0x45d   : > { %v22554_v49 = vadd.f32 %v11915_v37, %v11722_v47  ;;  %13262 = vmatprep.subr.bf16.mxu0 %v17506_v52  ;;  %v17507_v52 = vld [vmem:[%s24475_s4 + $0x20] ss:$8 sps:$4 sm:$0xff]  }
 0x45e   : > { %v11726_v28 = vpop.f32.mrf.mxu0  ;;  %v11919_v43 = vpop.f32.mrf.mxu1  ;;  %12417 = vmatmul.mubr.bf16.gmra.mxu0 %v25488_v14  ;;  %12610 = vmatmul.mubr.bf16.gmra.mxu1 %v25489_v35  ;;  %v17512_v14 = vld [vmem:[%s24475_s4 + $0x14] ss:$8 sps:$4 sm:$0xff]  }
 0x45f   : > { %25487 = vst [vmem:[#allocation37_spill] sm:$0xff] %v22554_v49  ;;  %v22561_v62 = vadd.f32 %v11919_v43, %v11726_v28  ;;  %12426 = vmatprep.mubr.bf16.mxu0 %v25490_v1  ;;  %12619 = vmatprep.mubr.bf16.mxu1 %v25491_v50 }
 0x460   : > { %v11728_v11 = vpop.f32.mrf.mxu0  ;;  %v11921_v47 = vpop.f32.mrf.mxu1  ;;  %13263 = vmatpush1.bf16.msra.mxu0 %v17504_v58  ;;  %v17510_v58 = vld [vmem:[%s24475_s4 + $0x10] ss:$8 sps:$4 sm:$0xff]  }
 0x461   : > { %v22568_v37 = vadd.f32 %v11921_v47, %v11728_v11  ;;  %13264 = vmatprep.subr.bf16.mxu0 %v17509_v5  ;;  %v17515_v11 = vld [vmem:[%s24475_s4 + $0x4] ss:$8 sps:$4 sm:$0xff]  }
 0x462   : > { %v11730_v28 = vpop.f32.mrf.mxu0  ;;  %v11923_v43 = vpop.f32.mrf.mxu1 }
 0x463   : > { %v22573_v35 = vadd.f32 %v11923_v43, %v11730_v28  ;;  %v25494_v28 = vld [vmem:[#allocation122_spill] sm:$0xff] }
 0x464   : > { %v11732_v1 = vpop.f32.mrf.mxu0  ;;  %v11925_v50 = vpop.f32.mrf.mxu1  ;;  %13265 = vmatpush1.bf16.msra.mxu0 %v17507_v52  ;;  %v25495_v52 = vld [vmem:[#allocation123_spill] sm:$0xff] }
 0x465   : > { %v22578_v49 = vadd.f32 %v11925_v50, %v11732_v1  ;;  %13266 = vmatprep.subr.bf16.mxu0 %v17512_v14  ;;  %v17513_v14 = vld [vmem:[%s24475_s4] ss:$8 sps:$4 sm:$0xff]  }
 0x466   : > { %v11736_v5 = vpop.f32.mrf.mxu0  ;;  %v11929_v47 = vpop.f32.mrf.mxu1  ;;  %12427 = vmatmul.mubr.bf16.gmra.mxu0 %v25493_v34  ;;  %12620 = vmatmul.mubr.bf16.gmra.mxu1 %v25494_v28  ;;  %v17518_v34 = vld [vmem:[%s24475_s4 + $0xf4] ss:$8 sps:$4 sm:$0xff]  }
 0x467   : > { %25492 = vst [vmem:[#allocation38_spill] sm:$0xff] %v22578_v49  ;;  %v22585_v43 = vadd.f32 %v11929_v47, %v11736_v5  ;;  %12436 = vmatprep.mubr.bf16.mxu0 %v25495_v52  ;;  %12629 = vmatprep.mubr.bf16.mxu1 %v25496_v27 }
 0x468   : > { %v11738_v3 = vpop.f32.mrf.mxu0  ;;  %v11931_v1 = vpop.f32.mrf.mxu1  ;;  %13267 = vmatpush1.bf16.msra.mxu0 %v17510_v58  ;;  %v17516_v58 = vld [vmem:[%s24475_s4 + $0xf0] ss:$8 sps:$4 sm:$0xff]  }
 0x469   : > { %v22592_v50 = vadd.f32 %v11931_v1, %v11738_v3  ;;  %13268 = vmatprep.subr.bf16.mxu0 %v17515_v11  ;;  %v25498_v1 = vld [vmem:[#allocation129_spill] sm:$0xff] }
 0x46a   : > { %v11740_v5 = vpop.f32.mrf.mxu0  ;;  %v11933_v47 = vpop.f32.mrf.mxu1 }
 0x46b   : > { %v22597_v28 = vadd.f32 %v11933_v47, %v11740_v5  ;;  %v25500_v5 = vld [vmem:[#allocation132_spill] sm:$0xff]  ;;  %v25501_v47 = vld [vmem:[#allocation133_spill] sm:$0xff] }
 0x46c   : > { %v11742_v52 = vpop.f32.mrf.mxu0  ;;  %v11935_v27 = vpop.f32.mrf.mxu1  ;;  %13269 = vmatpush1.bf16.msra.mxu0 %v17513_v14  ;;  %v17521_v14 = vld [vmem:[%s24475_s4 + $0xe4] ss:$8 sps:$4 sm:$0xff]  }
 0x46d   : > { %v22602_v49 = vadd.f32 %v11935_v27, %v11742_v52  ;;  %13270 = vmatprep.subr.bf16.mxu0 %v17518_v34  ;;  %v17519_v34 = vld [vmem:[%s24475_s4 + $0xe0] ss:$8 sps:$4 sm:$0xff]  }
 0x46e   : > { %v11746_v3 = vpop.f32.mrf.mxu0  ;;  %v11939_v11 = vpop.f32.mrf.mxu1  ;;  %12437 = vmatmul.mubr.bf16.gmra.mxu0 %v25498_v1  ;;  %12630 = vmatmul.mubr.bf16.gmra.mxu1 %v25499_v33 }
 0x46f   : > { %25497 = vst [vmem:[#allocation39_spill] sm:$0xff] %v22602_v49  ;;  %v22606_v32 = vadd.f32 %v11939_v11, %v11746_v3  ;;  %12446 = vmatprep.mubr.bf16.mxu0 %v25500_v5  ;;  %12639 = vmatprep.mubr.bf16.mxu1 %v25501_v47 }
 0x470   : > { %v11748_v2 = vpop.f32.mrf.mxu0  ;;  %v11941_v52 = vpop.f32.mrf.mxu1  ;;  %13271 = vmatpush2.bf16.msra.mxu0 %v17516_v58  ;;  %v25504_v58 = vld [vmem:[#allocation138_spill] sm:$0xff] }
 0x471   : > { %v22616_v27 = vadd.f32 %v11941_v52, %v11748_v2  ;;  %13272 = vmatprep.subr.bf16.mxu0 %v17521_v14  ;;  %v25505_v2 = vld [vmem:[#allocation140_spill] sm:$0xff]  ;;  %v25506_v14 = vld [vmem:[#allocation141_spill] sm:$0xff] }
 0x472   : > { %v11750_v33 = vpop.f32.mrf.mxu0  ;;  %v11943_v3 = vpop.f32.mrf.mxu1  ;;  %v17522_v52 = vld [vmem:[%s24475_s4 + $0xd0] ss:$8 sps:$4 sm:$0xff]  }
 0x473   : > { %v22618_v11 = vadd.f32 %v11943_v3, %v11750_v33 }
 0x474   : > { %v11752_v1 = vpop.f32.mrf.mxu0  ;;  %v11945_v5 = vpop.f32.mrf.mxu1  ;;  %13273 = vmatpush2.bf16.msra.mxu0 %v17519_v34  ;;  %v17524_v34 = vld [vmem:[%s24475_s4 + $0xd4] ss:$8 sps:$4 sm:$0xff]  }
 0x475   : > { %v22620_v47 = vadd.f32 %v11945_v5, %v11752_v1  ;;  %13274 = vmatprep.subr.bf16.mxu0 %v17524_v34  ;;  %v25511_v34 = vld [vmem:[#allocation149_spill] sm:$0xff] }
 0x476   : > { %v11756_v49 = vpop.f32.mrf.mxu0  ;;  %v11949_v29 = vpop.f32.mrf.mxu1  ;;  %12447 = vmatmul.mubr.bf16.gmra.mxu0 %v25503_v39  ;;  %12640 = vmatmul.mubr.bf16.gmra.mxu1 %v25504_v58 }
 0x477   : > { %25502 = vst [vmem:[#allocation40_spill] sm:$0xff] %v22620_v47  ;;  %v22624_v15 = vadd.f32 %v11949_v29, %v11756_v49  ;;  %12456 = vmatprep.mubr.bf16.mxu0 %v25505_v2  ;;  %12649 = vmatprep.mubr.bf16.mxu1 %v25506_v14 }
 0x478   : > { %v11758_v33 = vpop.f32.mrf.mxu0  ;;  %v11951_v3 = vpop.f32.mrf.mxu1  ;;  %13275 = vmatpush2.bf16.msra.mxu0 %v17522_v52  ;;  %v17525_v52 = vld [vmem:[%s24475_s4 + $0xc0] ss:$8 sps:$4 sm:$0xff]  }
 0x479   : > { %v22634_v1 = vadd.f32 %v11951_v3, %v11758_v33  ;;  %v25510_v33 = vld [vmem:[#allocation148_spill] sm:$0xff] }
 0x47a   : > { %v11760_v39 = vpop.f32.mrf.mxu0  ;;  %v11953_v29 = vpop.f32.mrf.mxu1  ;;  %v17527_v3 = vld [vmem:[%s24475_s4 + $0xc4] ss:$8 sps:$4 sm:$0xff]  }
 0x47b   : > { %v22636_v49 = vadd.f32 %v11953_v29, %v11760_v39  ;;  %13276 = vmatprep.subr.bf16.mxu0 %v17527_v3  ;;  %v25519_v3 = vld [vmem:[#allocation154_spill] sm:$0xff] }
 0x47c   : > { %v11762_v5 = vpop.f32.mrf.mxu0  ;;  %v11955_v58 = vpop.f32.mrf.mxu1  ;;  %13277 = vmatpush2.bf16.msra.mxu0 %v17525_v52  ;;  %v17528_v52 = vld [vmem:[%s24475_s4 + $0xb0] ss:$8 sps:$4 sm:$0xff]  }
 0x47d   : > { %v22638_v2 = vadd.f32 %v11955_v58, %v11762_v5 }
 0x47e   : > { %v11766_v14 = vpop.f32.mrf.mxu0  ;;  %v11959_v47 = vpop.f32.mrf.mxu1  ;;  %12457 = vmatmul.mubr.bf16.gmra.mxu0 %v25508_v36  ;;  %12650 = vmatmul.mubr.bf16.gmra.mxu1 %v25509_v41 }
 0x47f   : > { %25507 = vst [vmem:[#allocation42_spill] sm:$0xff] %v22638_v2  ;;  %v22642_v45 = vadd.f32 %v11959_v47, %v11766_v14  ;;  %12466 = vmatprep.mubr.bf16.mxu0 %v25510_v33  ;;  %12659 = vmatprep.mubr.bf16.mxu1 %v25511_v34 }
 0x480   : > { %v11768_v39 = vpop.f32.mrf.mxu0  ;;  %v11961_v29 = vpop.f32.mrf.mxu1 }
 0x481   : > { %v22652_v5 = vadd.f32 %v11961_v29, %v11768_v39  ;;  %v25518_v39 = vld [vmem:[#allocation153_spill] sm:$0xff] }
 0x482   : > { %v11770_v36 = vpop.f32.mrf.mxu0  ;;  %v11963_v41 = vpop.f32.mrf.mxu1  ;;  %v17530_v29 = vld [vmem:[%s24475_s4 + $0xb4] ss:$8 sps:$4 sm:$0xff]  }
 0x483   : > { %25512 = vst [vmem:[#allocation41_spill] sm:$0xff] %v22652_v5  ;;  %v22654_v47 = vadd.f32 %v11963_v41, %v11770_v36  ;;  %13278 = vmatprep.subr.bf16.mxu0 %v17530_v29  ;;  %v25526_v29 = vld [vmem:[#allocation158_spill] sm:$0xff] }
 0x484   : > { %v11772_v58 = vpop.f32.mrf.mxu0  ;;  %v11965_v14 = vpop.f32.mrf.mxu1  ;;  %13279 = vmatpush2.bf16.msra.mxu0 %v17528_v52  ;;  %v17531_v52 = vld [vmem:[%s24475_s4 + $0xa0] ss:$8 sps:$4 sm:$0xff]  }
 0x485   : > { %25513 = vst [vmem:[#allocation43_spill] sm:$0xff] %v22654_v47  ;;  %v22656_v33 = vadd.f32 %v11965_v14, %v11772_v58 }
 0x486   : > { %v11776_v34 = vpop.f32.mrf.mxu0  ;;  %v11969_v2 = vpop.f32.mrf.mxu1  ;;  %12467 = vmatmul.mubr.bf16.gmra.mxu0 %v25515_v6  ;;  %12660 = vmatmul.mubr.bf16.gmra.mxu1 %v25516_v57 }
 0x487   : > { %25514 = vst [vmem:[#allocation44_spill] sm:$0xff] %v22656_v33  ;;  %v22660_v10 = vadd.f32 %v11969_v2, %v11776_v34  ;;  %12476 = vmatprep.mubr.bf16.mxu0 %v25518_v39  ;;  %12669 = vmatprep.mubr.bf16.mxu1 %v25519_v3 }
 0x488   : > { %v11778_v36 = vpop.f32.mrf.mxu0  ;;  %v11971_v41 = vpop.f32.mrf.mxu1 }
 0x489   : > { %25517 = vst [vmem:[#allocation46_spill] sm:$0xff] %v22660_v10  ;;  %v22670_v58 = vadd.f32 %v11971_v41, %v11778_v36  ;;  %v25524_v10 = vld [vmem:[#allocation156_spill] sm:$0xff]  ;;  %v25525_v36 = vld [vmem:[#allocation157_spill] sm:$0xff] }
 0x48a   : > { %v11780_v57 = vpop.f32.mrf.mxu0  ;;  %v11973_v6 = vpop.f32.mrf.mxu1  ;;  %v17533_v41 = vld [vmem:[%s24475_s4 + $0xa4] ss:$8 sps:$4 sm:$0xff]  }
 0x48b   : > { %25520 = vst [vmem:[#allocation45_spill] sm:$0xff] %v22670_v58  ;;  %v22672_v2 = vadd.f32 %v11973_v6, %v11780_v57  ;;  %13280 = vmatprep.subr.bf16.mxu0 %v17533_v41  ;;  %v25529_v41 = vld [vmem:[#allocation161_spill] sm:$0xff] }
 0x48c   : > { %v11782_v14 = vpop.f32.mrf.mxu0  ;;  %v11975_v34 = vpop.f32.mrf.mxu1  ;;  %13281 = vmatpush2.bf16.msra.mxu0 %v17531_v52 }
 0x48d   : > { %25521 = vst [vmem:[#allocation47_spill] sm:$0xff] %v22672_v2  ;;  %v22674_v39 = vadd.f32 %v11975_v34, %v11782_v14 }
 0x48e   : > { %v12012_v3 = vpop.f32.mrf.mxu0  ;;  %v12205_v33 = vpop.f32.mrf.mxu1  ;;  %12477 = vmatmul.mubr.bf16.gmra.mxu0 %v25523_v53  ;;  %12670 = vmatmul.mubr.bf16.gmra.mxu1 %v25524_v10 }
 0x48f   : > { %25522 = vst [vmem:[#allocation48_spill] sm:$0xff] %v22674_v39  ;;  %v12013_v47 = vadd.f32 %v12012_v3, %v22394_v51  ;;  %12486 = vmatprep.mubr.bf16.mxu0 %v25525_v36  ;;  %12679 = vmatprep.mubr.bf16.mxu1 %v25526_v29 }
 0x490   : > { %v12014_v57 = vpop.f32.mrf.mxu0  ;;  %v12207_v6 = vpop.f32.mrf.mxu1 }
 0x491   : > { %v22687_v14 = vadd.f32 %v12205_v33, %v12013_v47  ;;  %v12015_v53 = vadd.f32 %v12014_v57, %v22398_v54  ;;  %v25527_v47 = vld [vmem:[#allocation159_spill] sm:$0xff]  ;;  %v25528_v33 = vld [vmem:[#allocation160_spill] sm:$0xff]  ;;  %v25530_v57 = vld [vmem:[#allocation162_spill] sm:$0xff] }
 0x492   : > { %v12016_v51 = vpop.f32.mrf.mxu0  ;;  %v12209_v10 = vpop.f32.mrf.mxu1 }
 0x493   : > { %v22690_v34 = vadd.f32 %v12207_v6, %v12015_v53  ;;  %v12017_v3 = vadd.f32 %v12016_v51, %v22400_v21 }
 0x494   : > { %v12018_v36 = vpop.f32.mrf.mxu0  ;;  %v12211_v29 = vpop.f32.mrf.mxu1 }
 0x495   : > { %v22693_v39 = vadd.f32 %v12209_v10, %v12017_v3  ;;  %v12019_v2 = vadd.f32 %v12018_v36, %v22402_v0  ;;  %v17536_v3 = vld [vmem:[%s24475_s4 + $0x94] ss:$8 sps:$4 sm:$0xff]  }
 0x496   : > { %v12022_v58 = vpop.f32.mrf.mxu0  ;;  %v12215_v5 = vpop.f32.mrf.mxu1  ;;  %12487 = vmatmul.mubr.bf16.gmra.mxu0 %v25527_v47  ;;  %12680 = vmatmul.mubr.bf16.gmra.mxu1 %v25528_v33 }
 0x497   : > { %v22698_v54 = vadd.f32 %v12211_v29, %v12019_v2  ;;  %v12023_v52 = vadd.f32 %v12022_v58, %v22406_v9  ;;  %12496 = vmatprep.mubr.bf16.mxu0 %v25529_v41  ;;  %12689 = vmatprep.mubr.bf16.mxu1 %v25530_v57  ;;  %v17534_v58 = vld [vmem:[%s24475_s4 + $0x90] ss:$8 sps:$4 sm:$0xff]   ;;  %v25532_v41 = vld [vmem:[#allocation164_spill] sm:$0xff] }
 0x498   : > { %v12024_v21 = vpop.f32.mrf.mxu0  ;;  %v12217_v6 = vpop.f32.mrf.mxu1  ;;  %13282 = vmatprep.subr.bf16.mxu0 %v17536_v3 }
 0x499   : > { %v22703_v53 = vadd.f32 %v12215_v5, %v12023_v52  ;;  %v12025_v0 = vadd.f32 %v12024_v21, %v22410_v63  ;;  %13283 = vmatpush2.bf16.msra.mxu0 %v17534_v58  ;;  %v25531_v52 = vld [vmem:[#allocation163_spill] sm:$0xff]  ;;  %v25533_v21 = vld [vmem:[#allocation165_spill] sm:$0xff] }
 0x49a   : > { %v12026_v51 = vpop.f32.mrf.mxu0  ;;  %v12219_v10 = vpop.f32.mrf.mxu1 }
 0x49b   : > { %v22709_v2 = vadd.f32 %v12217_v6, %v12025_v0  ;;  %v12027_v9 = vadd.f32 %v12026_v51, %v22412_v25  ;;  %v25534_v6 = vld [vmem:[#allocation166_spill] sm:$0xff]  ;;  %v17539_v0 = vld [vmem:[%s24475_s4 + $0x84] ss:$8 sps:$4 sm:$0xff]  }
 0x49c   : > { %v12028_v36 = vpop.f32.mrf.mxu0  ;;  %v12221_v29 = vpop.f32.mrf.mxu1  ;;  %13284 = vmatprep.subr.bf16.mxu0 %v17539_v0 }
 0x49d   : > { %v22715_v5 = vadd.f32 %v12219_v10, %v12027_v9  ;;  %v12029_v63 = vadd.f32 %v12028_v36, %v22414_v13  ;;  %v17537_v10 = vld [vmem:[%s24475_s4 + $0x80] ss:$8 sps:$4 sm:$0xff]  }
 0x49e   : > { %v12032_v47 = vpop.f32.mrf.mxu0  ;;  %v12225_v33 = vpop.f32.mrf.mxu1  ;;  %12497 = vmatmul.mubr.bf16.gmra.mxu0 %v25531_v52  ;;  %12690 = vmatmul.mubr.bf16.gmra.mxu1 %v25532_v41 }
 0x49f   : > { %v22720_v57 = vadd.f32 %v12221_v29, %v12029_v63  ;;  %v12033_v25 = vadd.f32 %v12032_v47, %v22418_v22  ;;  %12506 = vmatprep.mubr.bf16.mxu0 %v25533_v21  ;;  %12699 = vmatprep.mubr.bf16.mxu1 %v25534_v6 }
 0x4a0   : > { %v12034_v13 = vpop.f32.mrf.mxu0  ;;  %v12227_v51 = vpop.f32.mrf.mxu1  ;;  %13285 = vmatpush2.bf16.msra.mxu0 %v17537_v10 }
 0x4a1   : > { %v22731_v3 = vadd.f32 %v12225_v33, %v12033_v25  ;;  %v12035_v9 = vadd.f32 %v12034_v13, %v22422_v48  ;;  %v25535_v33 = vld [vmem:[#allocation167_spill] sm:$0xff]  ;;  %v25536_v25 = vld [vmem:[#allocation168_spill] sm:$0xff]  ;;  %v25537_v13 = vld [vmem:[#allocation169_spill] sm:$0xff] }
 0x4a2   : > { %v12036_v22 = vpop.f32.mrf.mxu0  ;;  %v12229_v58 = vpop.f32.mrf.mxu1 }
 0x4a3   : > { %v22734_v36 = vadd.f32 %v12227_v51, %v12035_v9  ;;  %v12037_v29 = vadd.f32 %v12036_v22, %v22424_v61  ;;  %v25538_v61 = vld [vmem:[#allocation170_spill] sm:$0xff] }
 0x4a4   : > { %v12038_v63 = vpop.f32.mrf.mxu0  ;;  %v12231_v47 = vpop.f32.mrf.mxu1 }
 0x4a5   : > { %v22737_v52 = vadd.f32 %v12229_v58, %v12037_v29  ;;  %v12039_v41 = vadd.f32 %v12038_v63, %v22426_v7 }
 0x4a6   : > { %v12042_v21 = vpop.f32.mrf.mxu0  ;;  %v12235_v6 = vpop.f32.mrf.mxu1  ;;  %12507 = vmatmul.mubr.bf16.gmra.mxu0 %v25535_v33  ;;  %12700 = vmatmul.mubr.bf16.gmra.mxu1 %v25536_v25  ;;  %v1850_v25 = vld [vmem:[%s17890_s22 + $0x348] sm:$0xff] }
 0x4a7   : > { %v22742_v48 = vadd.f32 %v12231_v47, %v12039_v41  ;;  %v12043_v0 = vadd.f32 %v12042_v21, %v22431_v19  ;;  %12516 = vmatprep.mubr.bf16.mxu0 %v25537_v13  ;;  %12709 = vmatprep.mubr.bf16.mxu1 %v25538_v61  ;;  %v1849_v19 = vld [vmem:[%s17890_s22 + $0x340] sm:$0xff]  ;;  %v25542_v13 = vld [vmem:[#allocation172_spill] sm:$0xff] }
 0x4a8   : > { %v12044_v51 = vpop.f32.mrf.mxu0  ;;  %v12237_v10 = vpop.f32.mrf.mxu1 }
 0x4a9   : > { %v22747_v9 = vadd.f32 %v12235_v6, %v12043_v0  ;;  %v12045_v7 = vadd.f32 %v12044_v51, %v22445_v12  ;;  %v25541_v12 = vld [vmem:[#allocation171_spill] sm:$0xff]  ;;  %v25544_v51 = vld [vmem:[#allocation173_spill] sm:$0xff] }
 0x4aa   : > { %v12046_v22 = vpop.f32.mrf.mxu0  ;;  %v12239_v58 = vpop.f32.mrf.mxu1 }
 0x4ab   : > { %v22750_v29 = vadd.f32 %v12237_v10, %v12045_v7  ;;  %v12047_v63 = vadd.f32 %v12046_v22, %v22447_v56  ;;  %v25545_v10 = vld [vmem:[#allocation174_spill] sm:$0xff]  ;;  %v2204_v7 = vrot.slane %v1849_v19, 5 }
 0x4ac   : > { %v12048_v47 = vpop.f32.mrf.mxu0  ;;  %v12241_v41 = vpop.f32.mrf.mxu1 }
 0x4ad   : > { %25539 = vst [vmem:[#allocation50_spill] sm:$0xff] %v22750_v29  ;;  %v22754_v21 = vadd.f32 %v12239_v58, %v12047_v63  ;;  %v12049_v33 = vadd.f32 %v12048_v47, %v22449_v20  ;;  %v1847_v58 = vld [vmem:[%s17890_s22 + $0x330] sm:$0xee]  ;;  %v2208_v63 = vrot.slane %v1850_v25, 5  ;;  %v25553_v29 = vld [vmem:[#allocation176_spill] sm:$0xff] }
 0x4ae   : > { %v12052_v6 = vpop.f32.mrf.mxu0  ;;  %v12245_v0 = vpop.f32.mrf.mxu1  ;;  %12517 = vmatmul.mubr.bf16.gmra.mxu0 %v25541_v12  ;;  %12710 = vmatmul.mubr.bf16.gmra.mxu1 %v25542_v13  ;;  %v1851_v13 = vld [vmem:[%s17890_s22 + $0x350] sm:$0x11] }
 0x4af   : > { %25540 = vst [vmem:[#allocation49_spill] sm:$0xff] %v22754_v21  ;;  %v22760_v61 = vadd.f32 %v12241_v41, %v12049_v33  ;;  %v12053_v56 = vadd.f32 %v12052_v6, %v22455_v46  ;;  %12526 = vmatprep.mubr.bf16.mxu0 %v25544_v51  ;;  %12719 = vmatprep.mubr.bf16.mxu1 %v25545_v10  ;;  %v1848_v41 = vld [vmem:[%s17890_s22 + $0x338] sm:$0xee]  ;;  %v1852_v33 = vld [vmem:[%s17890_s22 + $0x358] sm:$0x11]  ;;  %v14701_v51 = vrot.slane %v1847_v58, 9 }
 0x4b0   : > { %v12054_v20 = vpop.f32.mrf.mxu0  ;;  %v22765_v22 = vpop.f32.mrf.mxu1  ;;  %v2210_v10 = vrot.slane %v2204_v7, 4  ;;  %v14702_v25 = vrot.slane %v1848_v41, 9  ;;  %v25555_v58 = vld [vmem:[#allocation178_spill] sm:$0xff] }
 0x4b1   : > { %25543 = vst [vmem:[#allocation51_spill] sm:$0xff] %v22760_v61  ;;  %25546 = vst [vmem:[#allocation52_spill] sm:$0xff] %v22765_v22  ;;  %v22768_v47 = vadd.f32 %v12245_v0, %v12053_v56  ;;  %v22771_v12 = vadd.f32 %v12054_v20, %v22459_v55  ;;  %v2211_v22 = vrot.slane %v1851_v13, 5  ;;  %v2213_v0 = vrot.slane %v2208_v63, 4 }
 0x4b2   : > { %v12056_v61 = vpop.f32.mrf.mxu0  ;;  %v12249_v46 = vpop.f32.mrf.mxu1  ;;  %v2214_v56 = vrot.slane %v1852_v33, 5  ;;  %v2205_v41 = vsel %vm19212_vm5, %v14701_v51, %v2204_v7 }
 0x4b3   : > { %25547 = vst [vmem:[#allocation54_spill] sm:$0xff] %v22768_v47  ;;  %25548 = vst [vmem:[#allocation53_spill] sm:$0xff] %v22771_v12  ;;  %v12057_v6 = vadd.f32 %v12056_v61, %v22461_v18  ;;  %v25552_v12 = vld [vmem:[#allocation175_spill] sm:$0xff]  ;;  %v25554_v61 = vld [vmem:[#allocation177_spill] sm:$0xff]  ;;  %v2212_v33 = vsel %vm19212_vm5, %v2210_v10, %v2211_v22 }
 0x4b4   : > { %v22777_v19 = vpop.f32.mrf.mxu0  ;;  %v22779_v21 = vpop.f32.mrf.mxu1  ;;  %v16044_v7 = vcombine.high %v2205_v41, %v2212_v33 }
 0x4b5   : > { %25549 = vst [vmem:[#allocation55_spill] sm:$0xff] %v22777_v19  ;;  %25550 = vst [vmem:[#allocation56_spill] sm:$0xff] %v22779_v21  ;;  %v22781_v47 = vadd.f32 %v12249_v46, %v12057_v6  ;;  %v2209_v46 = vsel %vm19212_vm5, %v14702_v25, %v2208_v63 }
 0x4b6   : > { %v12062_v55 = vpop.f32.mrf.mxu0  ;;  %v12255_v20 = vpop.f32.mrf.mxu1  ;;  %12527 = vmatmul.mubr.bf16.gmra.mxu0 %v25552_v12  ;;  %12720 = vmatmul.mubr.bf16.gmra.mxu1 %v25553_v29  ;;  %v2215_v29 = vsel %vm19212_vm5, %v2213_v0, %v2214_v56  ;;  %v25557_v0 = vld [vmem:[#allocation179_spill] sm:$0xff]  ;;  %v25558_v56 = vld [vmem:[#allocation180_spill] sm:$0xff] }
 0x4b7   : > { %25551 = vst [vmem:[#allocation57_spill] sm:$0xff] %v22781_v47  ;;  %v12063_v18 = vadd.f32 %v12062_v55, %v22467_v44  ;;  %12536 = vmatprep.mubr.bf16.mxu0 %v25554_v61  ;;  %12729 = vmatprep.mubr.bf16.mxu1 %v25555_v58  ;;  %v16046_v51 = vcombine.high %v2209_v46, %v2215_v29 }
 0x4b8   : > { %v12064_v19 = vpop.f32.mrf.mxu0  ;;  %v12257_v21 = vpop.f32.mrf.mxu1 }
 0x4b9   : > { %v22796_v12 = vadd.f32 %v12255_v20, %v12063_v18  ;;  %v12065_v44 = vadd.f32 %v12064_v19, %v22479_v38 }
 0x4ba   : > { %v12066_v6 = vpop.f32.mrf.mxu0  ;;  %v12259_v55 = vpop.f32.mrf.mxu1 }
 0x4bb   : > { %v22799_v61 = vadd.f32 %v12257_v21, %v12065_v44  ;;  %v12067_v58 = vadd.f32 %v12066_v6, %v22481_v60  ;;  %v16043_v44 = vcombine.low %v2205_v41, %v2212_v33  ;;  %v16045_v6 = vcombine.low %v2209_v46, %v2215_v29 }
 0x4bc   : > { %v22802_v47 = vpop.f32.mrf.mxu0  ;;  %v22804_v22 = vpop.f32.mrf.mxu1 }
 0x4bd   : > { %v22806_v63 = vadd.f32 %v12259_v55, %v12067_v58 }
 0x4be   : > { %v12072_v10 = vpop.f32.mrf.mxu0  ;;  %v12265_v25 = vpop.f32.mrf.mxu1  ;;  %12537 = vmatmul.mubr.bf16.gmra.mxu0 %v25557_v0  ;;  %12730 = vmatmul.mubr.bf16.gmra.mxu1 %v25558_v56 }
 0x4bf   : > { %v12073_v38 = vadd.f32 %v12072_v10, %v22487_v26  ;;  %12546 = vmatprep.mubr.bf16.mxu0 %v16044_v7  ;;  %12739 = vmatprep.mubr.bf16.mxu1 %v16046_v51 }
 0x4c0   : > { %v12074_v21 = vpop.f32.mrf.mxu0  ;;  %v12267_v60 = vpop.f32.mrf.mxu1 }
 0x4c1   : > { %v22811_v19 = vadd.f32 %v12265_v25, %v12073_v38  ;;  %v12075_v20 = vadd.f32 %v12074_v21, %v22489_v17 }
 0x4c2   : > { %v12076_v18 = vpop.f32.mrf.mxu0  ;;  %v12269_v13 = vpop.f32.mrf.mxu1 }
 0x4c3   : > { %v22814_v55 = vadd.f32 %v12267_v60, %v12075_v20  ;;  %v12077_v58 = vadd.f32 %v12076_v18, %v22491_v16 }
 0x4c4   : > { %v22817_v0 = vpop.f32.mrf.mxu0  ;;  %v22819_v56 = vpop.f32.mrf.mxu1 }
 0x4c5   : > { %v22821_v26 = vadd.f32 %v12269_v13, %v12077_v58 }
 0x4c6   : > { %v12082_v7 = vpop.f32.mrf.mxu0  ;;  %v12275_v51 = vpop.f32.mrf.mxu1  ;;  %12547 = vmatmul.mubr.bf16.gmra.mxu0 %v16043_v44  ;;  %12740 = vmatmul.mubr.bf16.gmra.mxu1 %v16045_v6 }
 0x4c7   : > { %v12083_v17 = vadd.f32 %v12082_v7, %v22495_v24 }
 0x4c8   : > { %v12084_v10 = vpop.f32.mrf.mxu0  ;;  %v12277_v25 = vpop.f32.mrf.mxu1 }
 0x4c9   : > { %v22824_v41 = vadd.f32 %v12275_v51, %v12083_v17  ;;  %v12085_v33 = vadd.f32 %v12084_v10, %v22499_v31 }
 0x4ca   : > { %v12086_v46 = vpop.f32.mrf.mxu0  ;;  %v12279_v16 = vpop.f32.mrf.mxu1 }
 0x4cb   : > { %v22827_v29 = vadd.f32 %v12277_v25, %v12085_v33  ;;  %v12087_v38 = vadd.f32 %v12086_v46, %v22501_v42 }
 0x4cc   : > { %v22830_v21 = vpop.f32.mrf.mxu0  ;;  %v22832_v60 = vpop.f32.mrf.mxu1 }
 0x4cd   : > { %v22834_v20 = vadd.f32 %v12279_v16, %v12087_v38 }
 0x4ce   : > { %v12092_v18 = vpop.f32.mrf.mxu0  ;;  %v12285_v24 = vpop.f32.mrf.mxu1 }
 0x4cf   : > { %v12093_v13 = vadd.f32 %v12092_v18, %v22513_v4 }
 0x4d0   : > { %v12094_v44 = vpop.f32.mrf.mxu0  ;;  %v12287_v6 = vpop.f32.mrf.mxu1 }
 0x4d1   : > { %v22837_v58 = vadd.f32 %v12285_v24, %v12093_v13  ;;  %v12095_v31 = vadd.f32 %v12094_v44, %v22520_v30 }
 0x4d2   : > { %v12096_v7 = vpop.f32.mrf.mxu0  ;;  %v12289_v51 = vpop.f32.mrf.mxu1 }
 0x4d3   : > { %v22840_v17 = vadd.f32 %v12287_v6, %v12095_v31  ;;  %v12097_v42 = vadd.f32 %v12096_v7, %v22525_v59 }
 0x4d4   : > { %v22843_v10 = vpop.f32.mrf.mxu0  ;;  %v22845_v25 = vpop.f32.mrf.mxu1 }
 0x4d5   : > { %v22847_v33 = vadd.f32 %v12289_v51, %v12097_v42 }
 0x4d6   : > { %v12102_v46 = vpop.f32.mrf.mxu0  ;;  %v12295_v4 = vpop.f32.mrf.mxu1 }
 0x4d7   : > { %v12103_v16 = vadd.f32 %v12102_v46, %v22537_v8 }
 0x4d8   : > { %v12104_v38 = vpop.f32.mrf.mxu0  ;;  %v12297_v18 = vpop.f32.mrf.mxu1 }
 0x4d9   : > { %v22850_v24 = vadd.f32 %v12295_v4, %v12103_v16  ;;  %v12105_v30 = vadd.f32 %v12104_v38, %v22544_v40 }
 0x4da   : > { %v12106_v13 = vpop.f32.mrf.mxu0  ;;  %v12299_v44 = vpop.f32.mrf.mxu1 }
 0x4db   : > { %25559 = vst [vmem:[#allocation58_spill] sm:$0xff] %v22850_v24  ;;  %v22853_v6 = vadd.f32 %v12297_v18, %v12105_v30  ;;  %v12107_v59 = vadd.f32 %v12106_v13, %v22549_v23 }
 0x4dc   : > { %v22856_v31 = vpop.f32.mrf.mxu0  ;;  %v22858_v7 = vpop.f32.mrf.mxu1 }
 0x4dd   : > { %v22860_v51 = vadd.f32 %v12299_v44, %v12107_v59 }
 0x4de   : > { %v12112_v42 = vpop.f32.mrf.mxu0  ;;  %v12305_v8 = vpop.f32.mrf.mxu1 }
 0x4df   : > { %25560 = vst [vmem:[#allocation59_spill] sm:$0xff] %v22860_v51  ;;  %v12113_v46 = vadd.f32 %v12112_v42, %v22561_v62 }
 0x4e0   : > { %v12114_v4 = vpop.f32.mrf.mxu0  ;;  %v12307_v16 = vpop.f32.mrf.mxu1 }
 0x4e1   : > { %v22863_v24 = vadd.f32 %v12305_v8, %v12113_v46  ;;  %v12115_v40 = vadd.f32 %v12114_v4, %v22568_v37 }
 0x4e2   : > { %v12116_v38 = vpop.f32.mrf.mxu0  ;;  %v12309_v18 = vpop.f32.mrf.mxu1 }
 0x4e3   : > { %25561 = vst [vmem:[#allocation60_spill] sm:$0xff] %v22863_v24  ;;  %v22866_v30 = vadd.f32 %v12307_v16, %v12115_v40  ;;  %v12117_v23 = vadd.f32 %v12116_v38, %v22573_v35 }
 0x4e4   : > { %v22869_v13 = vpop.f32.mrf.mxu0  ;;  %v22871_v44 = vpop.f32.mrf.mxu1 }
 0x4e5   : > { %v22873_v59 = vadd.f32 %v12309_v18, %v12117_v23 }
 0x4e6   : > { %v12122_v51 = vpop.f32.mrf.mxu0  ;;  %v12315_v62 = vpop.f32.mrf.mxu1 }
 0x4e7   : > { %25562 = vst [vmem:[#allocation61_spill] sm:$0xff] %v22873_v59  ;;  %v12123_v42 = vadd.f32 %v12122_v51, %v22585_v43 }
 0x4e8   : > { %v12124_v8 = vpop.f32.mrf.mxu0  ;;  %v12317_v46 = vpop.f32.mrf.mxu1 }
 0x4e9   : > { %v22876_v24 = vadd.f32 %v12315_v62, %v12123_v42  ;;  %v12125_v37 = vadd.f32 %v12124_v8, %v22592_v50 }
 0x4ea   : > { %v12126_v4 = vpop.f32.mrf.mxu0  ;;  %v12319_v16 = vpop.f32.mrf.mxu1 }
 0x4eb   : > { %25563 = vst [vmem:[#allocation62_spill] sm:$0xff] %v22876_v24  ;;  %v22879_v40 = vadd.f32 %v12317_v46, %v12125_v37  ;;  %v12127_v35 = vadd.f32 %v12126_v4, %v22597_v28 }
 0x4ec   : > { %v22882_v38 = vpop.f32.mrf.mxu0  ;;  %v22884_v18 = vpop.f32.mrf.mxu1 }
 0x4ed   : > { %25564 = vst [vmem:[#allocation63_spill] sm:$0xff] %v22884_v18  ;;  %v22886_v23 = vadd.f32 %v12319_v16, %v12127_v35 }
 0x4ee   : > { %v12132_v59 = vpop.f32.mrf.mxu0  ;;  %v12325_v43 = vpop.f32.mrf.mxu1 }
 0x4ef   : > { %25565 = vst [vmem:[#allocation64_spill] sm:$0xff] %v22886_v23  ;;  %v12133_v51 = vadd.f32 %v12132_v59, %v22606_v32 }
 0x4f0   : > { %v12134_v62 = vpop.f32.mrf.mxu0  ;;  %v12327_v42 = vpop.f32.mrf.mxu1 }
 0x4f1   : > { %v22889_v24 = vadd.f32 %v12325_v43, %v12133_v51  ;;  %v12135_v50 = vadd.f32 %v12134_v62, %v22616_v27 }
 0x4f2   : > { %v12136_v8 = vpop.f32.mrf.mxu0  ;;  %v12329_v46 = vpop.f32.mrf.mxu1 }
 0x4f3   : > { %25566 = vst [vmem:[#allocation66_spill] sm:$0xff] %v22889_v24  ;;  %v22892_v37 = vadd.f32 %v12327_v42, %v12135_v50  ;;  %v12137_v28 = vadd.f32 %v12136_v8, %v22618_v11 }
 0x4f4   : > { %v22895_v4 = vpop.f32.mrf.mxu0  ;;  %v22897_v16 = vpop.f32.mrf.mxu1 }
 0x4f5   : > { %25567 = vst [vmem:[#allocation65_spill] sm:$0xff] %v22892_v37  ;;  %25568 = vst [vmem:[#allocation67_spill] sm:$0xff] %v22895_v4  ;;  %v22899_v35 = vadd.f32 %v12329_v46, %v12137_v28 }
 0x4f6   : > { %25569 = vst [vmem:[#allocation69_spill] sm:$0xff] %v22897_v16  ;;  %v12142_v23 = vpop.f32.mrf.mxu0  ;;  %v12335_v32 = vpop.f32.mrf.mxu1  ;;  %v25594_v16 = vld [vmem:[#allocation90_spill] sm:$0xff] }
 0x4f7   : > { %25570 = vst [vmem:[#allocation70_spill] sm:$0xff] %v22899_v35  ;;  %v12143_v59 = vadd.f32 %v12142_v23, %v22624_v15 }
 0x4f8   : > { %v12144_v43 = vpop.f32.mrf.mxu0  ;;  %v12337_v51 = vpop.f32.mrf.mxu1 }
 0x4f9   : > { %v22902_v24 = vadd.f32 %v12335_v32, %v12143_v59  ;;  %v12145_v27 = vadd.f32 %v12144_v43, %v22634_v1  ;;  %v25577_v1 = vld [vmem:[#allocation41_spill] sm:$0xff] }
 0x4fa   : > { %v12146_v62 = vpop.f32.mrf.mxu0  ;;  %v12339_v42 = vpop.f32.mrf.mxu1 }
 0x4fb   : > { %25571 = vst [vmem:[#allocation68_spill] sm:$0xff] %v22902_v24  ;;  %v22905_v50 = vadd.f32 %v12337_v51, %v12145_v27  ;;  %v12147_v11 = vadd.f32 %v12146_v62, %v22636_v49  ;;  %v25579_v49 = vld [vmem:[#allocation43_spill] sm:$0xff] }
 0x4fc   : > { %v22908_v8 = vpop.f32.mrf.mxu0  ;;  %v22910_v46 = vpop.f32.mrf.mxu1 }
 0x4fd   : > { %25572 = vst [vmem:[#allocation71_spill] sm:$0xff] %v22905_v50  ;;  %25573 = vst [vmem:[#allocation72_spill] sm:$0xff] %v22908_v8  ;;  %v22912_v28 = vadd.f32 %v12339_v42, %v12147_v11 }
 0x4fe   : > { %25574 = vst [vmem:[#allocation73_spill] sm:$0xff] %v22910_v46  ;;  %v12152_v35 = vpop.f32.mrf.mxu0  ;;  %v12345_v15 = vpop.f32.mrf.mxu1  ;;  %v25583_v46 = vld [vmem:[#allocation46_spill] sm:$0xff] }
 0x4ff   : > { %25575 = vst [vmem:[#allocation74_spill] sm:$0xff] %v22912_v28  ;;  %v12153_v23 = vadd.f32 %v12152_v35, %v22642_v45  ;;  %v12816_v28 = vlaneseq }
 0x500   : > { %v12154_v32 = vpop.f32.mrf.mxu0  ;;  %v12347_v59 = vpop.f32.mrf.mxu1 }
 0x501   : > { %v22915_v24 = vadd.f32 %v12345_v15, %v12153_v23  ;;  %v12155_v43 = vadd.f32 %v12154_v32, %v25577_v1  ;;  %v25585_v1 = vld [vmem:[#allocation45_spill] sm:$0xff] }
 0x502   : > { %v12156_v51 = vpop.f32.mrf.mxu0  ;;  %v12349_v27 = vpop.f32.mrf.mxu1 }
 0x503   : > { %25576 = vst [vmem:[#allocation75_spill] sm:$0xff] %v22915_v24  ;;  %v22918_v50 = vadd.f32 %v12347_v59, %v12155_v43  ;;  %v12157_v62 = vadd.f32 %v12156_v51, %v25579_v49  ;;  %v12817_v43 = vshrl.u32 %v12816_v28, 7  ;;  %v12814_v28 = vld [vmem:[%s24473_s2] sm:$0x3] }
 0x504   : > { %v22921_v8 = vpop.f32.mrf.mxu0  ;;  %v22923_v42 = vpop.f32.mrf.mxu1 }
 0x505   : > { %25578 = vst [vmem:[#allocation76_spill] sm:$0xff] %v22918_v50  ;;  %25580 = vst [vmem:[#allocation77_spill] sm:$0xff] %v22921_v8  ;;  %v22925_v11 = vadd.f32 %v12349_v27, %v12157_v62  ;;  %v25587_v8 = vld [vmem:[#allocation47_spill] sm:$0xff] }
 0x506   : > { %25581 = vst [vmem:[#allocation78_spill] sm:$0xff] %v22923_v42  ;;  %v12162_v45 = vpop.f32.mrf.mxu0  ;;  %v12355_v35 = vpop.f32.mrf.mxu1 }
 0x507   : > { %25582 = vst [vmem:[#allocation79_spill] sm:$0xff] %v22925_v11  ;;  %v12163_v15 = vadd.f32 %v12162_v45, %v25583_v46  ;;  %v22940_v46 = vsub.s32 0, %v12817_v43 }
 0x508   : > { %v12164_v23 = vpop.f32.mrf.mxu0  ;;  %v12357_v24 = vpop.f32.mrf.mxu1 }
 0x509   : > { %v22928_v32 = vadd.f32 %v12355_v35, %v12163_v15  ;;  %v12165_v59 = vadd.f32 %v12164_v23, %v25585_v1  ;;  %25591 = vst [vmem:[#allocation92_spill] sm:$0xff] %v22940_v46  ;;  %v22946_v1 = vsub.s32 1, %v12817_v43 }
 0x50a   : > { %v12166_v50 = vpop.f32.mrf.mxu0  ;;  %v12359_v51 = vpop.f32.mrf.mxu1 }
 0x50b   : > { %25584 = vst [vmem:[#allocation80_spill] sm:$0xff] %v22928_v32  ;;  %v22931_v49 = vadd.f32 %v12357_v24, %v12165_v59  ;;  %v12167_v42 = vadd.f32 %v12166_v50, %v25587_v8  ;;  %25592 = vst [vmem:[#allocation93_spill] sm:$0xff] %v22946_v1  ;;  %v22949_v8 = vrot.slane %v12814_v28, %v22940_v46 }
 0x50c   : > { %v22934_v27 = vpop.f32.mrf.mxu0  ;;  %v22936_v62 = vpop.f32.mrf.mxu1 }
 0x50d   : > { %25586 = vst [vmem:[#allocation81_spill] sm:$0xff] %v22931_v49  ;;  %25588 = vst [vmem:[#allocation19_spill] sm:$0xff] %v22934_v27  ;;  %v22938_v11 = vadd.f32 %v12359_v51, %v12167_v42  ;;  %v12890_v42 = vld [vmem:[%s24474_s3] sm:$0x3] }
 0x50e   : > { %25589 = vst [vmem:[#allocation83_spill] sm:$0xff] %v22936_v62  ;;  %v12398_v45 = vpop.f32.mrf.mxu0  ;;  %v12591_v35 = vpop.f32.mrf.mxu1  ;;  %v25593_v62 = vld [vmem:[#allocation89_spill] sm:$0xff]  ;;  %v22958_v43 = vrot.slane %v12890_v42, %v22940_v46 }
 0x50f   : > { %25590 = vst [vmem:[#allocation84_spill] sm:$0xff] %v22938_v11  ;;  %v12399_v15 = vadd.f32 %v12398_v45, %v22687_v14  ;;  %v22961_v45 = vrot.slane %v12814_v28, %v22946_v1 }
 0x510   : > { %v12400_v24 = vpop.f32.mrf.mxu0  ;;  %v12593_v23 = vpop.f32.mrf.mxu1 }
 0x511   : > { %v12592_v50 = vadd.f32 %v12591_v35, %v12399_v15  ;;  %v12401_v59 = vadd.f32 %v12400_v24, %v22690_v34 }
 0x512   : > { %v12402_v51 = vpop.f32.mrf.mxu0  ;;  %v12595_v11 = vpop.f32.mrf.mxu1 }
 0x513   : > { %v12750_v49 = vadd.f32 %v12592_v50, %v25593_v62  ;;  %v12594_v32 = vadd.f32 %v12593_v23, %v12401_v59  ;;  %v12403_v14 = vadd.f32 %v12402_v51, %v22693_v39  ;;  %v25595_v23 = vld [vmem:[#allocation134_spill] sm:$0xff] }
 0x514   : > { %v12404_v35 = vpop.f32.mrf.mxu0  ;;  %v12597_v15 = vpop.f32.mrf.mxu1 }
 0x515   : > { %v12826_v27 = vmul.f32 %v22949_v8, %v12750_v49  ;;  %v12751_v37 = vadd.f32 %v12594_v32, %v25594_v16  ;;  %v12596_v34 = vadd.f32 %v12595_v11, %v12403_v14  ;;  %v12405_v24 = vadd.f32 %v12404_v35, %v22698_v54  ;;  %v25596_v11 = vld [vmem:[#allocation135_spill] sm:$0xff] }
 0x516   : > { %v12408_v4 = vpop.f32.mrf.mxu0  ;;  %v12601_v62 = vpop.f32.mrf.mxu1  ;;  %v22971_v49 = vrot.slane %v12890_v42, %v22946_v1 }
 0x517   : > { %v12752_v50 = vadd.f32 %v12596_v34, %v25595_v23  ;;  %v12598_v39 = vadd.f32 %v12597_v15, %v12405_v24  ;;  %v12902_v59 = vadd.f32 %v22958_v43, %v12826_v27  ;;  %v12827_v51 = vmul.f32 %v22961_v45, %v12751_v37  ;;  %v25597_v24 = vld [vmem:[#allocation136_spill] sm:$0xff] }
 0x518   : > { %v12409_v28 = vadd.f32 %v12408_v4, %v22703_v53  ;;  %v12410_v46 = vpop.f32.mrf.mxu0  ;;  %v12603_v18 = vpop.f32.mrf.mxu1 }
 0x519   : > { %v12828_v16 = vmul.f32 %v22949_v8, %v12752_v50  ;;  %v12753_v54 = vadd.f32 %v12598_v39, %v25596_v11  ;;  %v12411_v32 = vadd.f32 %v12410_v46, %v22709_v2  ;;  %v12966_v4 = vmax.f32 %v12902_v59, 0.0  ;;  %v25598_v11 = vld [vmem:[#allocation139_spill] sm:$0xff]  ;;  %v25599_v59 = vld [vmem:[#allocation142_spill] sm:$0xff] }
 0x51a   : > { %v12602_v14 = vadd.f32 %v12601_v62, %v12409_v28  ;;  %v12412_v35 = vpop.f32.mrf.mxu0  ;;  %v12605_v15 = vpop.f32.mrf.mxu1  ;;  %v12903_v50 = vadd.f32 %v22971_v49, %v12827_v51 }
 0x51b   : > { %v12904_v27 = vadd.f32 %v22958_v43, %v12828_v16  ;;  %v12829_v37 = vmul.f32 %v22961_v45, %v12753_v54  ;;  %v12604_v34 = vadd.f32 %v12603_v18, %v12411_v32  ;;  %v12413_v53 = vadd.f32 %v12412_v35, %v22715_v5 }
 0x51c   : > { %v12754_v42 = vadd.f32 %v12602_v14, %v25597_v24  ;;  %v12414_v23 = vpop.f32.mrf.mxu0  ;;  %v12607_v1 = vpop.f32.mrf.mxu1 }
 0x51d   : > { %v12968_v39 = vmax.f32 %v12904_v27, 0.0  ;;  %v12755_v2 = vadd.f32 %v12604_v34, %v25598_v11  ;;  %v12606_v46 = vadd.f32 %v12605_v15, %v12413_v53  ;;  %v12415_v62 = vadd.f32 %v12414_v23, %v22720_v57  ;;  %v25600_v53 = vld [vmem:[#allocation143_spill] sm:$0xff] }
 0x51e   : > { %v12830_v28 = vmul.f32 %v22949_v8, %v12754_v42  ;;  %v12418_v16 = vpop.f32.mrf.mxu0  ;;  %v12611_v54 = vpop.f32.mrf.mxu1  ;;  %v12905_v18 = vadd.f32 %v22971_v49, %v12829_v37  ;;  %v12967_v34 = vmax.f32 %v12903_v50, 0.0 }
 0x51f   : > { %v13030_v5 = vpack.c.bf16 %v12968_v39, %v12966_v4  ;;  %v12756_v32 = vadd.f32 %v12606_v46, %v25599_v59  ;;  %v12608_v14 = vadd.f32 %v12607_v1, %v12415_v62  ;;  %v12831_v35 = vmul.f32 %v22961_v45, %v12755_v2  ;;  %v25601_v62 = vld [vmem:[#allocation144_spill] sm:$0xff] }
 0x520   : > { %v12419_v51 = vadd.f32 %v12418_v16, %v22731_v3  ;;  %v12420_v27 = vpop.f32.mrf.mxu0  ;;  %v12613_v24 = vpop.f32.mrf.mxu1  ;;  %v12969_v15 = vmax.f32 %v12905_v18, 0.0  ;;  %v12906_v37 = vadd.f32 %v22958_v43, %v12830_v28  ;;  %v25602_v28 = vld [vmem:[#allocation147_spill] sm:$0xff] }
 0x521   : > { %v12832_v57 = vmul.f32 %v22949_v8, %v12756_v32  ;;  %v12757_v42 = vadd.f32 %v12608_v14, %v25600_v53  ;;  %v12421_v23 = vadd.f32 %v12420_v27, %v22734_v36  ;;  %v12907_v36 = vadd.f32 %v22971_v49, %v12831_v35 }
 0x522   : > { %v12612_v4 = vadd.f32 %v12611_v54, %v12419_v51  ;;  %v12422_v39 = vpop.f32.mrf.mxu0  ;;  %v12615_v11 = vpop.f32.mrf.mxu1  ;;  %v13031_v1 = vpack.c.bf16 %v12969_v15, %v12967_v34  ;;  %v12970_v27 = vmax.f32 %v12906_v37, 0.0  ;;  %v25604_v37 = vld [vmem:[#allocation21_spill] sm:$0xff] }
 0x523   : > { %v12908_v2 = vadd.f32 %v22958_v43, %v12832_v57  ;;  %v12833_v3 = vmul.f32 %v22961_v45, %v12757_v42  ;;  %v12614_v46 = vadd.f32 %v12613_v24, %v12421_v23  ;;  %v12423_v50 = vadd.f32 %v12422_v39, %v22737_v52  ;;  %v25603_v57 = vld [vmem:[#allocation152_spill] sm:$0xff] }
 0x524   : > { %v12758_v16 = vadd.f32 %v12612_v4, %v25601_v62  ;;  %13286 = vmatprep.mubr.bf16.mxu0 %v13031_v1  ;;  %v12424_v18 = vpop.f32.mrf.mxu0  ;;  %v12617_v59 = vpop.f32.mrf.mxu1 }
 0x525   : > { %v12972_v32 = vmax.f32 %v12908_v2, 0.0  ;;  %v12759_v54 = vadd.f32 %v12614_v46, %v25602_v28  ;;  %v12616_v14 = vadd.f32 %v12615_v11, %v12423_v50  ;;  %v12425_v51 = vadd.f32 %v12424_v18, %v22742_v48  ;;  %13287 = vmatmul.mubr.bf16.vlgmr.msra.gmra.mxu0 %v13030_v5  ;;  %v25605_v50 = vld [vmem:[#allocation50_spill] sm:$0xff] }
 0x526   : > { %v12834_v34 = vmul.f32 %v22949_v8, %v12758_v16  ;;  %v12428_v24 = vpop.f32.mrf.mxu0  ;;  %v12621_v15 = vpop.f32.mrf.mxu1  ;;  %v12909_v52 = vadd.f32 %v22971_v49, %v12833_v3  ;;  %v12971_v11 = vmax.f32 %v12907_v36, 0.0 }
 0x527   : > { %v12760_v53 = vadd.f32 %v12616_v14, %v25603_v57  ;;  %v12618_v42 = vadd.f32 %v12617_v59, %v12425_v51  ;;  %v12429_v23 = vadd.f32 %v12428_v24, %v22747_v9  ;;  %v12835_v35 = vmul.f32 %v22961_v45, %v12759_v54  ;;  %v25606_v54 = vld [vmem:[#allocation23_spill] sm:$0xff] }
 0x528   : > { %v12430_v4 = vpop.f32.mrf.mxu0  ;;  %v12623_v39 = vpop.f32.mrf.mxu1  ;;  %v12973_v1 = vmax.f32 %v12909_v52, 0.0  ;;  %v13032_v48 = vpack.c.bf16 %v12972_v32, %v12970_v27  ;;  %v12910_v3 = vadd.f32 %v22958_v43, %v12834_v34  ;;  %v25607_v32 = vld [vmem:[#allocation49_spill] sm:$0xff]  ;;  %v25608_v52 = vld [vmem:[#allocation32_spill] sm:$0xff]  ;;  %v25609_v57 = vld [vmem:[#allocation55_spill] sm:$0xff] }
 0x529   : > { %v12836_v5 = vmul.f32 %v22949_v8, %v12760_v53  ;;  %v12761_v2 = vadd.f32 %v12618_v42, %v25604_v37  ;;  %v12622_v46 = vadd.f32 %v12621_v15, %v12429_v23  ;;  %v12431_v62 = vadd.f32 %v12430_v4, %v25605_v50  ;;  %v25610_v42 = vld [vmem:[#allocation20_spill] sm:$0xff]  ;;  %v25611_v4 = vld [vmem:[#allocation51_spill] sm:$0xff]  ;;  %v25612_v50 = vld [vmem:[#allocation53_spill] sm:$0xff] }
 0x52a   : > { %v12432_v16 = vpop.f32.mrf.mxu0  ;;  %v12625_v18 = vpop.f32.mrf.mxu1  ;;  %v13033_v59 = vpack.c.bf16 %v12973_v1, %v12971_v11  ;;  %v12911_v15 = vadd.f32 %v22971_v49, %v12835_v35  ;;  %v12059_v34 = vadd.f32 %v25609_v57, %v25608_v52  ;;  %v12974_v1 = vmax.f32 %v12910_v3, 0.0  ;;  %v25617_v57 = vld [vmem:[#allocation87_spill] sm:$0xff] }
 0x52b   : > { %v12912_v9 = vadd.f32 %v22958_v43, %v12836_v5  ;;  %v12837_v28 = vmul.f32 %v22961_v45, %v12761_v2  ;;  %v12762_v36 = vadd.f32 %v12622_v46, %v25606_v54  ;;  %v12624_v14 = vadd.f32 %v12623_v39, %v12431_v62  ;;  %v25613_v62 = vld [vmem:[#allocation52_spill] sm:$0xff] }
 0x52c   : > { %v12433_v51 = vadd.f32 %v12432_v16, %v25607_v32  ;;  %13296 = vmatprep.mubr.bf16.mxu0 %v13033_v59  ;;  %v12434_v27 = vpop.f32.mrf.mxu0  ;;  %v12627_v24 = vpop.f32.mrf.mxu1  ;;  %v12248_v35 = vadd.f32 %v25613_v62, %v25612_v50  ;;  %v12975_v3 = vmax.f32 %v12911_v15, 0.0  ;;  %v25618_v15 = vld [vmem:[#allocation88_spill] sm:$0xff] }
 0x52d   : > { %v12976_v53 = vmax.f32 %v12912_v9, 0.0  ;;  %v12763_v23 = vadd.f32 %v12624_v14, %v25610_v42  ;;  %v12435_v11 = vadd.f32 %v12434_v27, %v25611_v4  ;;  %13297 = vmatmul.mubr.bf16.gmra.mxu0 %v13032_v48  ;;  %v12838_v5 = vmul.f32 %v22949_v8, %v12762_v36  ;;  %v25614_v9 = vld [vmem:[#allocation54_spill] sm:$0xff] }
 0x52e   : > { %v12626_v39 = vadd.f32 %v12625_v18, %v12433_v51  ;;  %v12438_v37 = vpop.f32.mrf.mxu0  ;;  %v12631_v2 = vpop.f32.mrf.mxu1  ;;  %v12913_v46 = vadd.f32 %v22971_v49, %v12837_v28  ;;  %v25615_v14 = vld [vmem:[#allocation22_spill] sm:$0xff]  ;;  %v25616_v18 = vld [vmem:[#allocation56_spill] sm:$0xff] }
 0x52f   : > { %v12839_v16 = vmul.f32 %v22961_v45, %v12763_v23  ;;  %v12628_v59 = vadd.f32 %v12627_v24, %v12435_v11  ;;  %v12439_v54 = vadd.f32 %v12438_v37, %v25614_v9  ;;  %v13034_v36 = vpack.c.bf16 %v12976_v53, %v12974_v1  ;;  %v25619_v1 = vld [vmem:[#allocation57_spill] sm:$0xff] }
 0x530   : > { %v12764_v32 = vadd.f32 %v12626_v39, %v25615_v14  ;;  %v12440_v27 = vpop.f32.mrf.mxu0  ;;  %v12633_v48 = vpop.f32.mrf.mxu1  ;;  %v12977_v52 = vmax.f32 %v12913_v46, 0.0  ;;  %v12252_v51 = vadd.f32 %v25616_v18, %v12059_v34  ;;  %v12914_v50 = vadd.f32 %v22958_v43, %v12838_v5  ;;  %v25620_v5 = vld [vmem:[#allocation33_spill] sm:$0xff] }
 0x531   : > { %v12765_v42 = vadd.f32 %v12628_v59, %v25617_v57  ;;  %v12632_v28 = vadd.f32 %v12631_v2, %v12439_v54  ;;  %v12441_v4 = vadd.f32 %v12440_v27, %v12248_v35  ;;  %v12915_v39 = vadd.f32 %v22971_v49, %v12839_v16  ;;  %v25621_v54 = vld [vmem:[#allocation91_spill] sm:$0xff] }
 0x532   : > { %v12840_v23 = vmul.f32 %v22949_v8, %v12764_v32  ;;  %v12442_v24 = vpop.f32.mrf.mxu0  ;;  %v12635_v11 = vpop.f32.mrf.mxu1  ;;  %v13035_v37 = vpack.c.bf16 %v12977_v52, %v12975_v3  ;;  %v12069_v9 = vadd.f32 %v22802_v47, %v25620_v5  ;;  %v12978_v16 = vmax.f32 %v12914_v50, 0.0 }
 0x533   : > { %v12841_v62 = vmul.f32 %v22961_v45, %v12765_v42  ;;  %v12766_v46 = vadd.f32 %v12632_v28, %v25618_v15  ;;  %v12634_v53 = vadd.f32 %v12633_v48, %v12441_v4  ;;  %v12443_v34 = vadd.f32 %v12442_v24, %v25619_v1  ;;  %v25622_v42 = vld [vmem:[#allocation94_spill] sm:$0xff]  ;;  %v25623_v15 = vld [vmem:[#allocation95_spill] sm:$0xff] }
 0x534   : > { %v12916_v59 = vadd.f32 %v22958_v43, %v12840_v23  ;;  %13306 = vmatprep.mubr.bf16.mxu0 %v13035_v37  ;;  %v12444_v2 = vpop.f32.mrf.mxu0  ;;  %v12637_v35 = vpop.f32.mrf.mxu1  ;;  %v12979_v23 = vmax.f32 %v12915_v39, 0.0 }
 0x535   : > { %v12767_v14 = vadd.f32 %v12634_v53, %v25621_v54  ;;  %v12636_v32 = vadd.f32 %v12635_v11, %v12443_v34  ;;  %v12445_v27 = vadd.f32 %v12444_v2, %v12252_v51  ;;  %13307 = vmatmul.mubr.bf16.gmra.mxu0 %v13034_v36  ;;  %v12842_v52 = vmul.f32 %v22949_v8, %v12766_v46 }
 0x536   : > { %v12980_v3 = vmax.f32 %v12916_v59, 0.0  ;;  %v12448_v48 = vpop.f32.mrf.mxu0  ;;  %v12641_v18 = vpop.f32.mrf.mxu1  ;;  %v12917_v57 = vadd.f32 %v22971_v49, %v12841_v62  ;;  %v12262_v62 = vadd.f32 %v22804_v22, %v12069_v9 }
 0x537   : > { %v12768_v28 = vadd.f32 %v12636_v32, %v25622_v42  ;;  %v12638_v4 = vadd.f32 %v12637_v35, %v12445_v27  ;;  %v12843_v24 = vmul.f32 %v22961_v45, %v12767_v14  ;;  %v12449_v47 = vadd.f32 %v12448_v48, %v22796_v12  ;;  %v25624_v14 = vld [vmem:[#allocation3_spill] sm:$0xff] }
 0x538   : > { %v12450_v37 = vpop.f32.mrf.mxu0  ;;  %v12643_v11 = vpop.f32.mrf.mxu1  ;;  %v12981_v51 = vmax.f32 %v12917_v57, 0.0  ;;  %v13036_v36 = vpack.c.bf16 %v12980_v3, %v12978_v16  ;;  %v12918_v1 = vadd.f32 %v22958_v43, %v12842_v52  ;;  %v25625_v16 = vld [vmem:[#allocation4_spill] sm:$0xff] }
 0x539   : > { %v12844_v50 = vmul.f32 %v22949_v8, %v12768_v28  ;;  %v12769_v46 = vadd.f32 %v12638_v4, %v25623_v15  ;;  %v12451_v53 = vadd.f32 %v12450_v37, %v22799_v61  ;;  %v12642_v34 = vadd.f32 %v12641_v18, %v12449_v47  ;;  %v25626_v18 = vld [vmem:[#allocation34_spill] sm:$0xff]  ;;  %v25627_v47 = vld [vmem:[#allocation96_spill] sm:$0xff] }
 0x53a   : > { %v12452_v39 = vpop.f32.mrf.mxu0  ;;  %v12645_v59 = vpop.f32.mrf.mxu1  ;;  %v13037_v2 = vpack.c.bf16 %v12981_v51, %v12979_v23  ;;  %v12919_v22 = vadd.f32 %v22971_v49, %v12843_v24  ;;  %v12079_v57 = vadd.f32 %v22817_v0, %v25626_v18  ;;  %v12982_v42 = vmax.f32 %v12918_v1, 0.0 }
 0x53b   : > { %v12920_v12 = vadd.f32 %v22958_v43, %v12844_v50  ;;  %v12845_v35 = vmul.f32 %v22961_v45, %v12769_v46  ;;  %v12644_v5 = vadd.f32 %v12643_v11, %v12451_v53  ;;  %v12453_v54 = vadd.f32 %v12452_v39, %v22806_v63 }
 0x53c   : > { %v12770_v32 = vadd.f32 %v12642_v34, %v25624_v14  ;;  %13316 = vmatprep.mubr.bf16.mxu0 %v13037_v2  ;;  %v12454_v27 = vpop.f32.mrf.mxu0  ;;  %v12647_v61 = vpop.f32.mrf.mxu1  ;;  %v25629_v14 = vld [vmem:[#allocation102_spill] sm:$0xff] }
 0x53d   : > { %v12984_v9 = vmax.f32 %v12920_v12, 0.0  ;;  %v12771_v3 = vadd.f32 %v12644_v5, %v25625_v16  ;;  %v12646_v52 = vadd.f32 %v12645_v59, %v12453_v54  ;;  %v12455_v48 = vadd.f32 %v12454_v27, %v12262_v62  ;;  %13317 = vmatmul.mubr.bf16.gmra.mxu0 %v13036_v36  ;;  %v25628_v62 = vld [vmem:[#allocation99_spill] sm:$0xff] }
 0x53e   : > { %v12846_v28 = vmul.f32 %v22949_v8, %v12770_v32  ;;  %v12458_v63 = vpop.f32.mrf.mxu0  ;;  %v12651_v4 = vpop.f32.mrf.mxu1  ;;  %v12921_v23 = vadd.f32 %v22971_v49, %v12845_v35  ;;  %v12983_v36 = vmax.f32 %v12919_v22, 0.0  ;;  %v12272_v59 = vadd.f32 %v22819_v56, %v12079_v57  ;;  %v25630_v56 = vld [vmem:[#allocation35_spill] sm:$0xff] }
 0x53f   : > { %v12772_v37 = vadd.f32 %v12646_v52, %v25627_v47  ;;  %v12648_v11 = vadd.f32 %v12647_v61, %v12455_v48  ;;  %v12459_v24 = vadd.f32 %v12458_v63, %v22811_v19  ;;  %v12847_v51 = vmul.f32 %v22961_v45, %v12771_v3  ;;  %v25631_v52 = vld [vmem:[#allocation5_spill] sm:$0xff] }
 0x540   : > { %v12460_v50 = vpop.f32.mrf.mxu0  ;;  %v12653_v15 = vpop.f32.mrf.mxu1  ;;  %v12985_v46 = vmax.f32 %v12921_v23, 0.0  ;;  %v13038_v53 = vpack.c.bf16 %v12984_v9, %v12982_v42  ;;  %v12922_v2 = vadd.f32 %v22958_v43, %v12846_v28  ;;  %v12089_v16 = vadd.f32 %v22830_v21, %v25630_v56 }
 0x541   : > { %v12848_v0 = vmul.f32 %v22949_v8, %v12772_v37  ;;  %v12773_v1 = vadd.f32 %v12648_v11, %v25628_v62  ;;  %v12652_v34 = vadd.f32 %v12651_v4, %v12459_v24  ;;  %v12461_v39 = vadd.f32 %v12460_v50, %v22814_v55  ;;  %v25632_v11 = vld [vmem:[#allocation7_spill] sm:$0xff] }
 0x542   : > { %v12462_v12 = vpop.f32.mrf.mxu0  ;;  %v12655_v19 = vpop.f32.mrf.mxu1  ;;  %v13039_v35 = vpack.c.bf16 %v12985_v46, %v12983_v36  ;;  %v12923_v55 = vadd.f32 %v22971_v49, %v12847_v51  ;;  %v12986_v57 = vmax.f32 %v12922_v2, 0.0  ;;  %v12282_v46 = vadd.f32 %v22832_v60, %v12089_v16 }
 0x543   : > { %v12924_v5 = vadd.f32 %v22958_v43, %v12848_v0  ;;  %v12849_v54 = vmul.f32 %v22961_v45, %v12773_v1  ;;  %v12774_v32 = vadd.f32 %v12652_v34, %v25629_v14  ;;  %v12654_v27 = vadd.f32 %v12653_v15, %v12461_v39 }
 0x544   : > { %v12463_v61 = vadd.f32 %v12462_v12, %v22821_v26  ;;  %13326 = vmatprep.mubr.bf16.mxu0 %v13039_v35  ;;  %v12464_v22 = vpop.f32.mrf.mxu0  ;;  %v12657_v9 = vpop.f32.mrf.mxu1  ;;  %v12987_v50 = vmax.f32 %v12923_v55, 0.0  ;;  %v25634_v35 = vld [vmem:[#allocation9_spill] sm:$0xff] }
 0x545   : > { %v12988_v3 = vmax.f32 %v12924_v5, 0.0  ;;  %v12775_v48 = vadd.f32 %v12654_v27, %v25631_v52  ;;  %v12465_v18 = vadd.f32 %v12464_v22, %v12272_v59  ;;  %13327 = vmatmul.mubr.bf16.gmra.mxu0 %v13038_v53  ;;  %v12850_v42 = vmul.f32 %v22949_v8, %v12774_v32  ;;  %v25633_v53 = vld [vmem:[#allocation8_spill] sm:$0xff]  ;;  %v25636_v22 = vld [vmem:[#allocation10_spill] sm:$0xff] }
 0x546   : > { %v12656_v28 = vadd.f32 %v12655_v19, %v12463_v61  ;;  %v12468_v63 = vpop.f32.mrf.mxu0  ;;  %v12661_v4 = vpop.f32.mrf.mxu1  ;;  %v12925_v26 = vadd.f32 %v22971_v49, %v12849_v54  ;;  %v25635_v27 = vld [vmem:[#allocation36_spill] sm:$0xff] }
 0x547   : > { %v12851_v23 = vmul.f32 %v22961_v45, %v12775_v48  ;;  %v12658_v47 = vadd.f32 %v12657_v9, %v12465_v18  ;;  %v12469_v37 = vadd.f32 %v12468_v63, %v22824_v41  ;;  %v13040_v36 = vpack.c.bf16 %v12988_v3, %v12986_v57  ;;  %v25637_v57 = vld [vmem:[#allocation11_spill] sm:$0xff] }
 0x548   : > { %v12776_v21 = vadd.f32 %v12656_v28, %v25632_v11  ;;  %v12470_v24 = vpop.f32.mrf.mxu0  ;;  %v12663_v51 = vpop.f32.mrf.mxu1  ;;  %v12989_v15 = vmax.f32 %v12925_v26, 0.0  ;;  %v12926_v34 = vadd.f32 %v22958_v43, %v12850_v42  ;;  %v12099_v61 = vadd.f32 %v22843_v10, %v25635_v27 }
 0x549   : > { %v12777_v0 = vadd.f32 %v12658_v47, %v25633_v53  ;;  %v12662_v62 = vadd.f32 %v12661_v4, %v12469_v37  ;;  %v12471_v1 = vadd.f32 %v12470_v24, %v22827_v29  ;;  %v12927_v12 = vadd.f32 %v22971_v49, %v12851_v23 }
 0x54a   : > { %v12852_v39 = vmul.f32 %v22949_v8, %v12776_v21  ;;  %v12472_v59 = vpop.f32.mrf.mxu0  ;;  %v12665_v41 = vpop.f32.mrf.mxu1  ;;  %v13041_v2 = vpack.c.bf16 %v12989_v15, %v12987_v50  ;;  %v12990_v16 = vmax.f32 %v12926_v34, 0.0  ;;  %v25638_v21 = vld [vmem:[#allocation12_spill] sm:$0xff]  ;;  %v12292_v50 = vadd.f32 %v22845_v25, %v12099_v61  ;;  %v25642_v61 = vld [vmem:[#allocation15_spill] sm:$0xff] }
 0x54b   : > { %v12853_v19 = vmul.f32 %v22961_v45, %v12777_v0  ;;  %v12778_v5 = vadd.f32 %v12662_v62, %v25634_v35  ;;  %v12664_v54 = vadd.f32 %v12663_v51, %v12471_v1  ;;  %v12473_v60 = vadd.f32 %v12472_v59, %v22834_v20 }
 0x54c   : > { %v12928_v14 = vadd.f32 %v22958_v43, %v12852_v39  ;;  %13336 = vmatprep.mubr.bf16.mxu0 %v13041_v2  ;;  %v12474_v29 = vpop.f32.mrf.mxu0  ;;  %v12667_v32 = vpop.f32.mrf.mxu1  ;;  %v12991_v63 = vmax.f32 %v12927_v12, 0.0  ;;  %v25639_v39 = vld [vmem:[#allocation13_spill] sm:$0xff]  ;;  %v25640_v12 = vld [vmem:[#allocation14_spill] sm:$0xff] }
 0x54d   : > { %v12779_v9 = vadd.f32 %v12664_v54, %v25636_v22  ;;  %v12666_v55 = vadd.f32 %v12665_v41, %v12473_v60  ;;  %v12475_v56 = vadd.f32 %v12474_v29, %v12282_v46  ;;  %13337 = vmatmul.mubr.bf16.gmra.mxu0 %v13040_v36  ;;  %v12854_v52 = vmul.f32 %v22949_v8, %v12778_v5  ;;  %v25641_v54 = vld [vmem:[#allocation37_spill] sm:$0xff] }
 0x54e   : > { %v12992_v3 = vmax.f32 %v12928_v14, 0.0  ;;  %v12478_v48 = vpop.f32.mrf.mxu0  ;;  %v12671_v18 = vpop.f32.mrf.mxu1  ;;  %v12929_v20 = vadd.f32 %v22971_v49, %v12853_v19  ;;  %v12109_v60 = vadd.f32 %v22856_v31, %v25641_v54 }
 0x54f   : > { %v12780_v42 = vadd.f32 %v12666_v55, %v25637_v57  ;;  %v12668_v28 = vadd.f32 %v12667_v32, %v12475_v56  ;;  %v12855_v4 = vmul.f32 %v22961_v45, %v12779_v9  ;;  %v12479_v10 = vadd.f32 %v12478_v48, %v22837_v58  ;;  %v25643_v55 = vld [vmem:[#allocation58_spill] sm:$0xff]  ;;  %v25644_v57 = vld [vmem:[#allocation16_spill] sm:$0xff] }
 0x550   : > { %v12480_v26 = vpop.f32.mrf.mxu0  ;;  %v12673_v23 = vpop.f32.mrf.mxu1  ;;  %v12993_v47 = vmax.f32 %v12929_v20, 0.0  ;;  %v13042_v37 = vpack.c.bf16 %v12992_v3, %v12990_v16  ;;  %v12930_v15 = vadd.f32 %v22958_v43, %v12854_v52 }
 0x551   : > { %v12856_v11 = vmul.f32 %v22949_v8, %v12780_v42  ;;  %v12781_v24 = vadd.f32 %v12668_v28, %v25638_v21  ;;  %v12481_v51 = vadd.f32 %v12480_v26, %v22840_v17  ;;  %v12672_v36 = vadd.f32 %v12671_v18, %v12479_v10  ;;  %v25645_v21 = vld [vmem:[#allocation17_spill] sm:$0xff] }
 0x552   : > { %v12482_v46 = vpop.f32.mrf.mxu0  ;;  %v12675_v53 = vpop.f32.mrf.mxu1  ;;  %v13043_v0 = vpack.c.bf16 %v12993_v47, %v12991_v63  ;;  %v12931_v25 = vadd.f32 %v22971_v49, %v12855_v4  ;;  %v12994_v14 = vmax.f32 %v12930_v15, 0.0  ;;  %v12302_v4 = vadd.f32 %v22858_v7, %v12109_v60  ;;  %v25647_v7 = vld [vmem:[#allocation38_spill] sm:$0xff] }
 0x553   : > { %v12932_v58 = vadd.f32 %v22958_v43, %v12856_v11  ;;  %v12857_v62 = vmul.f32 %v22961_v45, %v12781_v24  ;;  %v12674_v1 = vadd.f32 %v12673_v23, %v12481_v51  ;;  %v12483_v34 = vadd.f32 %v12482_v46, %v22847_v33 }
 0x554   : > { %v12782_v59 = vadd.f32 %v12672_v36, %v25639_v39  ;;  %13346 = vmatprep.mubr.bf16.mxu0 %v13043_v0  ;;  %v12484_v41 = vpop.f32.mrf.mxu0  ;;  %v12677_v17 = vpop.f32.mrf.mxu1  ;;  %v12995_v48 = vmax.f32 %v12931_v25, 0.0 }
 0x555   : > { %v12996_v2 = vmax.f32 %v12932_v58, 0.0  ;;  %v12783_v19 = vadd.f32 %v12674_v1, %v25640_v12  ;;  %v12676_v35 = vadd.f32 %v12675_v53, %v12483_v34  ;;  %v12485_v5 = vadd.f32 %v12484_v41, %v12292_v50  ;;  %13347 = vmatmul.mubr.bf16.gmra.mxu0 %v13042_v37  ;;  %v25646_v50 = vld [vmem:[#allocation59_spill] sm:$0xff]  ;;  %v25648_v58 = vld [vmem:[#allocation18_spill] sm:$0xff] }
 0x556   : > { %v12858_v29 = vmul.f32 %v22949_v8, %v12782_v59  ;;  %v12488_v33 = vpop.f32.mrf.mxu0  ;;  %v12681_v32 = vpop.f32.mrf.mxu1  ;;  %v12933_v27 = vadd.f32 %v22971_v49, %v12857_v62  ;;  %v12119_v53 = vadd.f32 %v22869_v13, %v25647_v7 }
 0x557   : > { %v12784_v22 = vadd.f32 %v12676_v35, %v25642_v61  ;;  %v12678_v9 = vadd.f32 %v12677_v17, %v12485_v5  ;;  %v12489_v56 = vadd.f32 %v12488_v33, %v25643_v55  ;;  %v12859_v16 = vmul.f32 %v22961_v45, %v12783_v19  ;;  %v25649_v19 = vld [vmem:[#allocation60_spill] sm:$0xff]  ;;  %v25650_v5 = vld [vmem:[#allocation6_spill] sm:$0xff] }
 0x558   : > { %v12490_v3 = vpop.f32.mrf.mxu0  ;;  %v12683_v52 = vpop.f32.mrf.mxu1  ;;  %v12997_v18 = vmax.f32 %v12933_v27, 0.0  ;;  %v13044_v20 = vpack.c.bf16 %v12996_v2, %v12994_v14  ;;  %v12934_v10 = vadd.f32 %v22958_v43, %v12858_v29  ;;  %v25651_v27 = vld [vmem:[#allocation103_spill] sm:$0xff] }
 0x559   : > { %v12860_v31 = vmul.f32 %v22949_v8, %v12784_v22  ;;  %v12785_v42 = vadd.f32 %v12678_v9, %v25644_v57  ;;  %v12682_v28 = vadd.f32 %v12681_v32, %v12489_v56  ;;  %v12491_v63 = vadd.f32 %v12490_v3, %v22853_v6 }
 0x55a   : > { %v12492_v26 = vpop.f32.mrf.mxu0  ;;  %v12685_v23 = vpop.f32.mrf.mxu1  ;;  %v13045_v47 = vpack.c.bf16 %v12997_v18, %v12995_v48  ;;  %v12935_v6 = vadd.f32 %v22971_v49, %v12859_v16  ;;  %v12998_v34 = vmax.f32 %v12934_v10, 0.0  ;;  %v12312_v32 = vadd.f32 %v22871_v44, %v12119_v53  ;;  %v25653_v44 = vld [vmem:[#allocation61_spill] sm:$0xff] }
 0x55b   : > { %v12936_v37 = vadd.f32 %v22958_v43, %v12860_v31  ;;  %v12861_v11 = vmul.f32 %v22961_v45, %v12785_v42  ;;  %v12786_v24 = vadd.f32 %v12682_v28, %v25645_v21  ;;  %v12684_v51 = vadd.f32 %v12683_v52, %v12491_v63 }
 0x55c   : > { %v12493_v15 = vadd.f32 %v12492_v26, %v25646_v50  ;;  %13356 = vmatprep.mubr.bf16.mxu0 %v13045_v47  ;;  %v12494_v36 = vpop.f32.mrf.mxu0  ;;  %v12687_v46 = vpop.f32.mrf.mxu1  ;;  %v12999_v14 = vmax.f32 %v12935_v6, 0.0  ;;  %v25655_v26 = vld [vmem:[#allocation108_spill] sm:$0xff] }
 0x55d   : > { %v13000_v0 = vmax.f32 %v12936_v37, 0.0  ;;  %v12787_v62 = vadd.f32 %v12684_v51, %v25648_v58  ;;  %v12495_v1 = vadd.f32 %v12494_v36, %v12302_v4  ;;  %13357 = vmatmul.mubr.bf16.gmra.mxu0 %v13044_v20  ;;  %v12862_v39 = vmul.f32 %v22949_v8, %v12786_v24  ;;  %v25652_v20 = vld [vmem:[#allocation104_spill] sm:$0xff]  ;;  %v25654_v4 = vld [vmem:[#allocation39_spill] sm:$0xff]  ;;  %v25656_v36 = vld [vmem:[#allocation110_spill] sm:$0xff] }
 0x55e   : > { %v12686_v59 = vadd.f32 %v12685_v23, %v12493_v15  ;;  %v12498_v41 = vpop.f32.mrf.mxu0  ;;  %v12691_v17 = vpop.f32.mrf.mxu1  ;;  %v12937_v25 = vadd.f32 %v22971_v49, %v12861_v11  ;;  %v12129_v10 = vadd.f32 %v22882_v38, %v25654_v4  ;;  %v25657_v38 = vld [vmem:[#allocation62_spill] sm:$0xff] }
 0x55f   : > { %v12863_v2 = vmul.f32 %v22961_v45, %v12787_v62  ;;  %v12688_v12 = vadd.f32 %v12687_v46, %v12495_v1  ;;  %v12499_v35 = vadd.f32 %v12498_v41, %v25649_v19  ;;  %v13046_v33 = vpack.c.bf16 %v13000_v0, %v12998_v34 }
 0x560   : > { %v12788_v13 = vadd.f32 %v12686_v59, %v25650_v5  ;;  %v12500_v54 = vpop.f32.mrf.mxu0  ;;  %v12693_v60 = vpop.f32.mrf.mxu1  ;;  %v13001_v29 = vmax.f32 %v12937_v25, 0.0  ;;  %v12938_v55 = vadd.f32 %v22958_v43, %v12862_v39  ;;  %v25658_v59 = vld [vmem:[#allocation111_spill] sm:$0xff] }
 0x561   : > { %v12789_v61 = vadd.f32 %v12688_v12, %v25651_v27  ;;  %v12692_v22 = vadd.f32 %v12691_v17, %v12499_v35  ;;  %v12501_v9 = vadd.f32 %v12500_v54, %v22866_v30  ;;  %v12939_v48 = vadd.f32 %v22971_v49, %v12863_v2  ;;  %v25659_v25 = vld [vmem:[#allocation63_spill] sm:$0xff] }
 0x562   : > { %v12864_v56 = vmul.f32 %v22949_v8, %v12788_v13  ;;  %v12502_v16 = vpop.f32.mrf.mxu0  ;;  %v12695_v3 = vpop.f32.mrf.mxu1  ;;  %v13047_v52 = vpack.c.bf16 %v13001_v29, %v12999_v14  ;;  %v13002_v11 = vmax.f32 %v12938_v55, 0.0  ;;  %v12322_v2 = vadd.f32 %v25659_v25, %v12129_v10  ;;  %v25660_v29 = vld [vmem:[#allocation64_spill] sm:$0xff]  ;;  %v25662_v55 = vld [vmem:[#allocation115_spill] sm:$0xff]  ;;  %v25666_v10 = vld [vmem:[#allocation66_spill] sm:$0xff] }
 0x563   : > { %v12865_v18 = vmul.f32 %v22961_v45, %v12789_v61  ;;  %v12790_v31 = vadd.f32 %v12692_v22, %v25652_v20  ;;  %v12694_v57 = vadd.f32 %v12693_v60, %v12501_v9  ;;  %v12503_v42 = vadd.f32 %v12502_v16, %v25653_v44 }
 0x564   : > { %v12940_v28 = vadd.f32 %v22958_v43, %v12864_v56  ;;  %13366 = vmatprep.mubr.bf16.mxu0 %v13047_v52  ;;  %v12504_v30 = vpop.f32.mrf.mxu0  ;;  %v12697_v63 = vpop.f32.mrf.mxu1  ;;  %v13003_v7 = vmax.f32 %v12939_v48, 0.0  ;;  %v25663_v52 = vld [vmem:[#allocation40_spill] sm:$0xff]  ;;  %v25664_v48 = vld [vmem:[#allocation67_spill] sm:$0xff] }
 0x565   : > { %v12791_v23 = vadd.f32 %v12694_v57, %v25655_v26  ;;  %v12696_v47 = vadd.f32 %v12695_v3, %v12503_v42  ;;  %v12505_v37 = vadd.f32 %v12504_v30, %v12312_v32  ;;  %13367 = vmatmul.mubr.bf16.gmra.mxu0 %v13046_v33  ;;  %v12866_v24 = vmul.f32 %v22949_v8, %v12790_v31  ;;  %v25661_v32 = vld [vmem:[#allocation112_spill] sm:$0xff]  ;;  %v25665_v30 = vld [vmem:[#allocation118_spill] sm:$0xff] }
 0x566   : > { %v13004_v21 = vmax.f32 %v12940_v28, 0.0  ;;  %v12508_v51 = vpop.f32.mrf.mxu0  ;;  %v12701_v50 = vpop.f32.mrf.mxu1  ;;  %v12941_v15 = vadd.f32 %v22971_v49, %v12865_v18  ;;  %v12139_v18 = vadd.f32 %v25664_v48, %v25663_v52 }
 0x567   : > { %v12792_v46 = vadd.f32 %v12696_v47, %v25656_v36  ;;  %v12698_v6 = vadd.f32 %v12697_v63, %v12505_v37  ;;  %v12867_v53 = vmul.f32 %v22961_v45, %v12791_v23  ;;  %v12509_v0 = vadd.f32 %v12508_v51, %v25657_v38  ;;  %v25667_v51 = vld [vmem:[#allocation119_spill] sm:$0xff]  ;;  %v25668_v36 = vld [vmem:[#allocation65_spill] sm:$0xff] }
 0x568   : > { %v12510_v58 = vpop.f32.mrf.mxu0  ;;  %v12703_v62 = vpop.f32.mrf.mxu1  ;;  %v13005_v1 = vmax.f32 %v12941_v15, 0.0  ;;  %v13048_v34 = vpack.c.bf16 %v13004_v21, %v13002_v11  ;;  %v12942_v12 = vadd.f32 %v22958_v43, %v12866_v24 }
 0x569   : > { %v12868_v39 = vmul.f32 %v22949_v8, %v12792_v46  ;;  %v12793_v41 = vadd.f32 %v12698_v6, %v25658_v59  ;;  %v12511_v17 = vadd.f32 %v12510_v58, %v22879_v40  ;;  %v12702_v19 = vadd.f32 %v12701_v50, %v12509_v0  ;;  %v25669_v6 = vld [vmem:[#allocation69_spill] sm:$0xff] }
 0x56a   : > { %v12512_v35 = vpop.f32.mrf.mxu0  ;;  %v12705_v5 = vpop.f32.mrf.mxu1  ;;  %v13049_v13 = vpack.c.bf16 %v13005_v1, %v13003_v7  ;;  %v12943_v22 = vadd.f32 %v22971_v49, %v12867_v53  ;;  %v13006_v20 = vmax.f32 %v12942_v12, 0.0  ;;  %v12332_v7 = vadd.f32 %v25669_v6, %v12139_v18 }
 0x56b   : > { %v12944_v54 = vadd.f32 %v22958_v43, %v12868_v39  ;;  %v12869_v60 = vmul.f32 %v22961_v45, %v12793_v41  ;;  %v12704_v14 = vadd.f32 %v12703_v62, %v12511_v17  ;;  %v12513_v33 = vadd.f32 %v12512_v35, %v25660_v29  ;;  %v25670_v39 = vld [vmem:[#allocation120_spill] sm:$0xff]  ;;  %v25671_v17 = vld [vmem:[#allocation70_spill] sm:$0xff] }
 0x56c   : > { %v12794_v27 = vadd.f32 %v12702_v19, %v25661_v32  ;;  %13376 = vmatprep.mubr.bf16.mxu0 %v13049_v13  ;;  %v12514_v61 = vpop.f32.mrf.mxu0  ;;  %v12707_v40 = vpop.f32.mrf.mxu1  ;;  %v13007_v37 = vmax.f32 %v12943_v22, 0.0  ;;  %v25672_v19 = vld [vmem:[#allocation42_spill] sm:$0xff]  ;;  %v25673_v35 = vld [vmem:[#allocation72_spill] sm:$0xff] }
 0x56d   : > { %v13008_v9 = vmax.f32 %v12944_v54, 0.0  ;;  %v12795_v56 = vadd.f32 %v12704_v14, %v25662_v55  ;;  %v12706_v16 = vadd.f32 %v12705_v5, %v12513_v33  ;;  %v12515_v3 = vadd.f32 %v12514_v61, %v12322_v2  ;;  %13377 = vmatmul.mubr.bf16.gmra.mxu0 %v13048_v34  ;;  %v25674_v54 = vld [vmem:[#allocation124_spill] sm:$0xff] }
 0x56e   : > { %v12870_v31 = vmul.f32 %v22949_v8, %v12794_v27  ;;  %v12518_v57 = vpop.f32.mrf.mxu0  ;;  %v12711_v44 = vpop.f32.mrf.mxu1  ;;  %v12945_v42 = vadd.f32 %v22971_v49, %v12869_v60  ;;  %v12149_v5 = vadd.f32 %v25673_v35, %v25672_v19  ;;  %v25685_v19 = vld [vmem:[#allocation24_spill] sm:$0xff] }
 0x56f   : > { %v12871_v28 = vmul.f32 %v22961_v45, %v12795_v56  ;;  %v12796_v63 = vadd.f32 %v12706_v16, %v25665_v30  ;;  %v12708_v4 = vadd.f32 %v12707_v40, %v12515_v3  ;;  %v12519_v26 = vadd.f32 %v12518_v57, %v25666_v10  ;;  %v25676_v3 = vld [vmem:[#allocation126_spill] sm:$0xff]  ;;  %v25677_v57 = vld [vmem:[#allocation127_spill] sm:$0xff] }
 0x570   : > { %v12520_v23 = vpop.f32.mrf.mxu0  ;;  %v12713_v47 = vpop.f32.mrf.mxu1  ;;  %v13009_v11 = vmax.f32 %v12945_v42, 0.0  ;;  %v13050_v21 = vpack.c.bf16 %v13008_v9, %v13006_v20  ;;  %v12946_v53 = vadd.f32 %v22958_v43, %v12870_v31  ;;  %v25675_v9 = vld [vmem:[#allocation68_spill] sm:$0xff] }
 0x571   : > { %v12872_v24 = vmul.f32 %v22949_v8, %v12796_v63  ;;  %v12797_v50 = vadd.f32 %v12708_v4, %v25667_v51  ;;  %v12712_v15 = vadd.f32 %v12711_v44, %v12519_v26  ;;  %v12521_v46 = vadd.f32 %v12520_v23, %v25668_v36  ;;  %v25679_v63 = vld [vmem:[#allocation73_spill] sm:$0xff] }
 0x572   : > { %v12522_v38 = vpop.f32.mrf.mxu0  ;;  %v12715_v0 = vpop.f32.mrf.mxu1  ;;  %v13051_v58 = vpack.c.bf16 %v13009_v11, %v13007_v37  ;;  %v12947_v62 = vadd.f32 %v22971_v49, %v12871_v28  ;;  %v13010_v29 = vmax.f32 %v12946_v53, 0.0  ;;  %v25678_v28 = vld [vmem:[#allocation71_spill] sm:$0xff]  ;;  %v12342_v4 = vadd.f32 %v25679_v63, %v12149_v5  ;;  %v25682_v53 = vld [vmem:[#allocation44_spill] sm:$0xff] }
 0x573   : > { %v12948_v1 = vadd.f32 %v22958_v43, %v12872_v24  ;;  %v12873_v34 = vmul.f32 %v22961_v45, %v12797_v50  ;;  %v12798_v59 = vadd.f32 %v12712_v15, %v25670_v39  ;;  %v12714_v41 = vadd.f32 %v12713_v47, %v12521_v46  ;;  %v25681_v50 = vld [vmem:[#allocation74_spill] sm:$0xff] }
 0x574   : > { %v12523_v25 = vadd.f32 %v12522_v38, %v25671_v17  ;;  %13386 = vmatprep.mubr.bf16.mxu0 %v13051_v58  ;;  %v12524_v2 = vpop.f32.mrf.mxu0  ;;  %v12717_v12 = vpop.f32.mrf.mxu1  ;;  %v13011_v56 = vmax.f32 %v12947_v62, 0.0  ;;  %v25683_v38 = vld [vmem:[#allocation77_spill] sm:$0xff]  ;;  %v25684_v58 = vld [vmem:[#allocation131_spill] sm:$0xff] }
 0x575   : > { %v13012_v13 = vmax.f32 %v12948_v1, 0.0  ;;  %v12799_v60 = vadd.f32 %v12714_v41, %v25674_v54  ;;  %v12525_v14 = vadd.f32 %v12524_v2, %v12332_v7  ;;  %13387 = vmatmul.mubr.bf16.gmra.mxu0 %v13050_v21  ;;  %v12874_v33 = vmul.f32 %v22949_v8, %v12798_v59  ;;  %v25680_v21 = vld [vmem:[#allocation128_spill] sm:$0xff] }
 0x576   : > { %v12716_v32 = vadd.f32 %v12715_v0, %v12523_v25  ;;  %v12528_v27 = vpop.f32.mrf.mxu0  ;;  %v12721_v61 = vpop.f32.mrf.mxu1  ;;  %v12949_v40 = vadd.f32 %v22971_v49, %v12873_v34  ;;  %v12159_v0 = vadd.f32 %v25683_v38, %v25682_v53  ;;  %v25695_v38 = vld [vmem:[#allocation25_spill] sm:$0xff] }
 0x577   : > { %v12718_v22 = vadd.f32 %v12717_v12, %v12525_v14  ;;  %v12529_v55 = vadd.f32 %v12528_v27, %v25675_v9  ;;  %v12875_v16 = vmul.f32 %v22961_v45, %v12799_v60  ;;  %v13052_v31 = vpack.c.bf16 %v13012_v13, %v13010_v29  ;;  %v25686_v13 = vld [vmem:[#allocation75_spill] sm:$0xff]  ;;  %v25687_v27 = vld [vmem:[#allocation78_spill] sm:$0xff] }
 0x578   : > { %v12800_v52 = vadd.f32 %v12716_v32, %v25676_v3  ;;  %v12530_v48 = vpop.f32.mrf.mxu0  ;;  %v12723_v18 = vpop.f32.mrf.mxu1  ;;  %v13013_v20 = vmax.f32 %v12949_v40, 0.0  ;;  %v12950_v10 = vadd.f32 %v22958_v43, %v12874_v33 }
 0x579   : > { %v12801_v44 = vadd.f32 %v12718_v22, %v25677_v57  ;;  %v12722_v42 = vadd.f32 %v12721_v61, %v12529_v55  ;;  %v12531_v30 = vadd.f32 %v12530_v48, %v25678_v28  ;;  %v12951_v7 = vadd.f32 %v22971_v49, %v12875_v16  ;;  %v25688_v22 = vld [vmem:[#allocation26_spill] sm:$0xff]  ;;  %v25689_v55 = vld [vmem:[#allocation76_spill] sm:$0xff] }
 0x57a   : > { %v12876_v26 = vmul.f32 %v22949_v8, %v12800_v52  ;;  %v12532_v23 = vpop.f32.mrf.mxu0  ;;  %v12725_v47 = vpop.f32.mrf.mxu1  ;;  %v13053_v37 = vpack.c.bf16 %v13013_v20, %v13011_v56  ;;  %v13014_v39 = vmax.f32 %v12950_v10, 0.0  ;;  %v12352_v61 = vadd.f32 %v25687_v27, %v12159_v0  ;;  %v13755_v57 = vld [vmem:[%s24478_s7 + $0x78] sm:$0xff]  ;;  %v13770_v27 = vld [vmem:[%s24478_s7 + $0xf0] sm:$0xff] }
 0x57b   : > { %v12877_v11 = vmul.f32 %v22961_v45, %v12801_v44  ;;  %v12802_v24 = vadd.f32 %v12722_v42, %v25680_v21  ;;  %v12724_v51 = vadd.f32 %v12723_v18, %v12531_v30  ;;  %v12533_v15 = vadd.f32 %v12532_v23, %v25681_v50  ;;  %v25690_v30 = vld [vmem:[#allocation79_spill] sm:$0xff] }
 0x57c   : > { %v12952_v36 = vadd.f32 %v22958_v43, %v12876_v26  ;;  %13396 = vmatprep.mubr.bf16.mxu0 %v13053_v37  ;;  %v12534_v46 = vpop.f32.mrf.mxu0  ;;  %v12727_v6 = vpop.f32.mrf.mxu1  ;;  %v13015_v29 = vmax.f32 %v12951_v7, 0.0  ;;  %v25692_v37 = vld [vmem:[#allocation86_spill] sm:$0xff]  ;;  %v25694_v50 = vld [vmem:[#allocation19_spill] sm:$0xff] }
 0x57d   : > { %v12803_v62 = vadd.f32 %v12724_v51, %v25684_v58  ;;  %v12726_v1 = vadd.f32 %v12725_v47, %v12533_v15  ;;  %v12535_v34 = vadd.f32 %v12534_v46, %v12342_v4  ;;  %13397 = vmatmul.mubr.bf16.gmra.mxu0 %v13052_v31  ;;  %v12878_v41 = vmul.f32 %v22949_v8, %v12802_v24  ;;  %v13771_v31 = vld [vmem:[%s24478_s7 + $0xf8] sm:$0xff]  ;;  %v25691_v4 = vld [vmem:[#allocation85_spill] sm:$0xff]  ;;  %v25693_v51 = vld [vmem:[#allocation48_spill] sm:$0xff] }
 0x57e   : > { %v13016_v59 = vmax.f32 %v12952_v36, 0.0  ;;  %v12538_v17 = vpop.f32.mrf.mxu0  ;;  %v12731_v25 = vpop.f32.mrf.mxu1  ;;  %v12953_v2 = vadd.f32 %v22971_v49, %v12877_v11  ;;  %16357 = vmatprep.subr.mxu1 %v13771_v31  ;;  %v12169_v15 = vadd.f32 %v25694_v50, %v25693_v51  ;;  %v25702_v31 = vld [vmem:[#allocation29_spill] sm:$0xff] }
 0x57f   : > { %v12879_v12 = vmul.f32 %v22961_v45, %v12803_v62  ;;  %v12804_v35 = vadd.f32 %v12726_v1, %v25685_v19  ;;  %v12728_v5 = vadd.f32 %v12727_v6, %v12535_v34  ;;  %v12539_v54 = vadd.f32 %v12538_v17, %v25686_v13  ;;  %16358 = vmatpush3.msra.mxu1 %v13755_v57  ;;  %v25696_v62 = vld [vmem:[#allocation80_spill] sm:$0xff]  ;;  %v25697_v19 = vld [vmem:[#allocation27_spill] sm:$0xff]  ;;  %v25698_v13 = vld [vmem:[#allocation81_spill] sm:$0xff] }
 0x580   : > { %v12540_v60 = vpop.f32.mrf.mxu0  ;;  %v12733_v14 = vpop.f32.mrf.mxu1  ;;  %v13017_v33 = vmax.f32 %v12953_v2, 0.0  ;;  %v13054_v32 = vpack.c.bf16 %v13016_v59, %v13014_v39  ;;  %v12954_v16 = vadd.f32 %v22958_v43, %v12878_v41  ;;  %16359 = vmatprep.subr.mxu1 %v13770_v27 }
 0x581   : > { %v12880_v40 = vmul.f32 %v22949_v8, %v12804_v35  ;;  %v12805_v9 = vadd.f32 %v12728_v5, %v25688_v22  ;;  %v12541_v56 = vadd.f32 %v12540_v60, %v25689_v55  ;;  %v12732_v3 = vadd.f32 %v12731_v25, %v12539_v54  ;;  %v25699_v60 = vld [vmem:[#allocation83_spill] sm:$0xff] }
 0x582   : > { %v12542_v52 = vpop.f32.mrf.mxu0  ;;  %v12735_v48 = vpop.f32.mrf.mxu1  ;;  %v13055_v18 = vpack.c.bf16 %v13017_v33, %v13015_v29  ;;  %v12955_v20 = vadd.f32 %v22971_v49, %v12879_v12  ;;  %v13018_v36 = vmax.f32 %v12954_v16, 0.0  ;;  %v25701_v16 = vld [vmem:[#allocation84_spill] sm:$0xff] }
 0x583   : > { %v12956_v44 = vadd.f32 %v22958_v43, %v12880_v40  ;;  %v12881_v42 = vmul.f32 %v22961_v45, %v12805_v9  ;;  %v12734_v28 = vadd.f32 %v12733_v14, %v12541_v56  ;;  %v12543_v63 = vadd.f32 %v12542_v52, %v25690_v30  ;;  %v25700_v9 = vld [vmem:[#allocation28_spill] sm:$0xff] }
 0x584   : > { %v12806_v10 = vadd.f32 %v12732_v3, %v25691_v4  ;;  %13406 = vmatprep.mubr.bf16.mxu0 %v13055_v18  ;;  %v12544_v26 = vpop.f32.mrf.mxu0  ;;  %v12737_v23 = vpop.f32.mrf.mxu1  ;;  %v13019_v34 = vmax.f32 %v12955_v20, 0.0  ;;  %v12362_v14 = vadd.f32 %v25699_v60, %v12169_v15  ;;  %v13745_v60 = vld [vmem:[%s24478_s7 + $0x28] sm:$0xff] }
 0x585   : > { %v13020_v47 = vmax.f32 %v12956_v44, 0.0  ;;  %v12807_v11 = vadd.f32 %v12734_v28, %v25692_v37  ;;  %v12736_v21 = vadd.f32 %v12735_v48, %v12543_v63  ;;  %v12545_v24 = vadd.f32 %v12544_v26, %v12352_v61  ;;  %13407 = vmatmul.mubr.bf16.gmra.mxu0 %v13054_v32  ;;  %v13754_v61 = vld [vmem:[%s24478_s7 + $0x70] sm:$0xff] }
 0x586   : > { %v12882_v46 = vmul.f32 %v22949_v8, %v12806_v10  ;;  %v12548_v6 = vpop.f32.mrf.mxu0  ;;  %v12741_v7 = vpop.f32.mrf.mxu1  ;;  %v12957_v53 = vadd.f32 %v22971_v49, %v12881_v42  ;;  %16360 = vmatpush3.msra.mxu1 %v13754_v61 }
 0x587   : > { %v12808_v0 = vadd.f32 %v12736_v21, %v25695_v38  ;;  %v12738_v58 = vadd.f32 %v12737_v23, %v12545_v24  ;;  %v12549_v1 = vadd.f32 %v12548_v6, %v25696_v62  ;;  %v12883_v59 = vmul.f32 %v22961_v45, %v12807_v11  ;;  %v25703_v23 = vld [vmem:[#allocation30_spill] sm:$0xff]  ;;  %v25704_v21 = vld [vmem:[#allocation31_spill] sm:$0xff] }
 0x588   : > { %v12958_v39 = vadd.f32 %v22958_v43, %v12882_v46  ;;  %v12550_v41 = vpop.f32.mrf.mxu0  ;;  %v12743_v17 = vpop.f32.mrf.mxu1  ;;  %v13021_v25 = vmax.f32 %v12957_v53, 0.0  ;;  %v13056_v2 = vpack.c.bf16 %v13020_v47, %v13018_v36  ;;  %v13769_v36 = vld [vmem:[%s24478_s7 + $0xe8] sm:$0xff] }
 0x589   : > { %v12884_v12 = vmul.f32 %v22949_v8, %v12808_v0  ;;  %v12809_v35 = vadd.f32 %v12738_v58, %v25697_v19  ;;  %v12742_v5 = vadd.f32 %v12741_v7, %v12549_v1  ;;  %v12551_v54 = vadd.f32 %v12550_v41, %v25698_v13  ;;  %v13753_v46 = vld [vmem:[%s24478_s7 + $0x68] sm:$0xff]  ;;  %16361 = vmatprep.subr.mxu1 %v13769_v36  ;;  %v13750_v41 = vld [vmem:[%s24478_s7 + $0x50] sm:$0xff]  ;;  %v13763_v19 = vld [vmem:[%s24478_s7 + $0xb8] sm:$0xff] }
 0x58a   : > { %v12552_v29 = vpop.f32.mrf.mxu0  ;;  %v12745_v33 = vpop.f32.mrf.mxu1  ;;  %v13057_v32 = vpack.c.bf16 %v13021_v25, %v13019_v34  ;;  %v12959_v48 = vadd.f32 %v22971_v49, %v12883_v59  ;;  %v13022_v18 = vmax.f32 %v12958_v39, 0.0  ;;  %16362 = vmatpush3.msra.mxu1 %v13753_v46  ;;  %v13752_v39 = vld [vmem:[%s24478_s7 + $0x60] sm:$0xff]  ;;  %v13766_v59 = vld [vmem:[%s24478_s7 + $0xd0] sm:$0xff]  ;;  %v13749_v25 = vld [vmem:[%s24478_s7 + $0x48] sm:$0xff] }
 0x58b   : > { %v12960_v40 = vadd.f32 %v22958_v43, %v12884_v12  ;;  %v12885_v22 = vmul.f32 %v22961_v45, %v12809_v35  ;;  %v12810_v55 = vadd.f32 %v12742_v5, %v25700_v9  ;;  %v12744_v56 = vadd.f32 %v12743_v17, %v12551_v54  ;;  %v13765_v17 = vld [vmem:[%s24478_s7 + $0xc8] sm:$0xff]  ;;  %v13748_v12 = vld [vmem:[%s24478_s7 + $0x40] sm:$0xff]  ;;  %v13747_v35 = vld [vmem:[%s24478_s7 + $0x38] sm:$0xff] }
 0x58c   : > { %v12553_v3 = vadd.f32 %v12552_v29, %v25701_v16  ;;  %13416 = vmatprep.mubr.bf16.mxu0 %v13057_v32  ;;  %v12554_v52 = vpop.f32.mrf.mxu0  ;;  %v12747_v30 = vpop.f32.mrf.mxu1  ;;  %v13023_v37 = vmax.f32 %v12959_v48, 0.0  ;;  %v13762_v5 = vld [vmem:[%s24478_s7 + $0xb0] sm:$0xff]  ;;  %v13761_v54 = vld [vmem:[%s24478_s7 + $0xa8] sm:$0xff]  ;;  %v13744_v29 = vld [vmem:[%s24478_s7 + $0x20] sm:$0xff] }
 0x58d   : > { %v13024_v20 = vmax.f32 %v12960_v40, 0.0  ;;  %v12811_v57 = vadd.f32 %v12744_v56, %v25702_v31  ;;  %v12555_v44 = vadd.f32 %v12554_v52, %v12362_v14  ;;  %13417 = vmatmul.mubr.bf16.gmra.mxu0 %v13056_v2  ;;  %v12886_v42 = vmul.f32 %v22949_v8, %v12810_v55  ;;  %v13764_v2 = vld [vmem:[%s24478_s7 + $0xc0] sm:$0xff]  ;;  %v13746_v13 = vld [vmem:[%s24478_s7 + $0x30] sm:$0xff]  ;;  %v13743_v32 = vld [vmem:[%s24478_s7 + $0x18] sm:$0xff] }
 0x58e   : > { %v12746_v28 = vadd.f32 %v12745_v33, %v12553_v3  ;;  %v12961_v63 = vadd.f32 %v22971_v49, %v12885_v22  ;;  %v13760_v14 = vld [vmem:[%s24478_s7 + $0xa0] sm:$0xff]  ;;  %v13759_v33 = vld [vmem:[%s24478_s7 + $0x98] sm:$0xff]  ;;  %v13758_v3 = vld [vmem:[%s24478_s7 + $0x90] sm:$0xff] }
 0x58f   : > { %v12887_v4 = vmul.f32 %v22961_v45, %v12811_v57  ;;  %v12748_v10 = vadd.f32 %v12747_v30, %v12555_v44  ;;  %v13058_v26 = vpack.c.bf16 %v13024_v20, %v13022_v18  ;;  %v12962_v51 = vadd.f32 %v22958_v43, %v12886_v42  ;;  %v13742_v48 = vld [vmem:[%s24478_s7 + $0x10] sm:$0xff]  ;;  %v13757_v18 = vld [vmem:[%s24478_s7 + $0x88] sm:$0xff]  ;;  %v13756_v31 = vld [vmem:[%s24478_s7 + $0x80] sm:$0xff] }
 0x590   : > { %v12812_v47 = vadd.f32 %v12746_v28, %v25703_v23  ;;  %v13025_v11 = vmax.f32 %v12961_v63, 0.0  ;;  %v13741_v20 = vld [vmem:[%s24478_s7 + $0x8] sm:$0xff]  ;;  %v13740_v44 = vld [vmem:[%s24478_s7] sm:$0xff] }
 0x591   : > { %v12813_v24 = vadd.f32 %v12748_v10, %v25704_v21  ;;  %v12963_v7 = vadd.f32 %v22971_v49, %v12887_v4  ;;  %v13026_v38 = vmax.f32 %v12962_v51, 0.0  ;;  %v13447_v51 = vld [vmem:[%s24476_s5] sm:$0x3]  ;;  %v25705_v36 = vld [vmem:[#allocation92_spill] sm:$0xff] }
 0x592   : > { %v12888_v50 = vmul.f32 %v22949_v8, %v12812_v47  ;;  %v13059_v15 = vpack.c.bf16 %v13025_v11, %v13023_v37  ;;  %v23363_v46 = vrot.slane %v13447_v51, %v25705_v36 }
 0x593   : > { %v12889_v6 = vmul.f32 %v22961_v45, %v12813_v24  ;;  %v13027_v58 = vmax.f32 %v12963_v7, 0.0  ;;  %v13768_v45 = vld [vmem:[%s24478_s7 + $0xe0] sm:$0xff] }
 0x594   : > { %v12964_v53 = vadd.f32 %v22958_v43, %v12888_v50  ;;  %13426 = vmatprep.mubr.bf16.mxu0 %v13059_v15  ;;  %16363 = vmatprep.subr.mxu1 %v13768_v45  ;;  %v13767_v43 = vld [vmem:[%s24478_s7 + $0xd8] sm:$0xff] }
 0x595   : > { %13427 = vmatmul.mubr.bf16.gmra.mxu0 %v13058_v26  ;;  %v12965_v8 = vadd.f32 %v22971_v49, %v12889_v6  ;;  %16364 = vmatpush3.msra.mxu1 %v13752_v39  ;;  %v13751_v49 = vld [vmem:[%s24478_s7 + $0x58] sm:$0xff]  ;;  %v13523_v6 = vld [vmem:[%s24477_s6] sm:$0x3] }
 0x596   : > { %v13028_v0 = vmax.f32 %v12964_v53, 0.0  ;;  %16365 = vmatprep.subr.mxu1 %v13767_v43  ;;  %v25706_v53 = vld [vmem:[#allocation93_spill] sm:$0xff] }
 0x597   : > { %v13029_v62 = vmax.f32 %v12965_v8, 0.0  ;;  %16366 = vmatpush3.msra.mxu1 %v13751_v49  ;;  %v23371_v8 = vrot.slane %v13447_v51, %v25706_v53  ;;  %v23386_v43 = vrot.slane %v13523_v6, %v25706_v53 }
 0x598   : > { %v13060_v1 = vpack.c.bf16 %v13028_v0, %v13026_v38  ;;  %16367 = vmatprep.subr.mxu1 %v13766_v59 }
 0x599   : > { %v13061_v34 = vpack.c.bf16 %v13029_v62, %v13027_v58  ;;  %16368 = vmatpush3.msra.mxu1 %v13750_v41  ;;  %v23378_v62 = vrot.slane %v13523_v6, %v25705_v36 }
 0x59a   : > { %16369 = vmatprep.subr.mxu1 %v13765_v17 }
 0x59b   : > { %13436 = vmatprep.mubr.bf16.mxu0 %v13061_v34  ;;  %16370 = vmatpush3.msra.mxu1 %v13749_v25 }
 0x59c   : > { %16371 = vmatprep.subr.mxu1 %v13764_v2 }
 0x59d   : > { %13437 = vmatmul.mubr.bf16.gmra.mxu0 %v13060_v1  ;;  %16372 = vmatpush3.msra.mxu1 %v13748_v12 }
 0x59e   : > { %16373 = vmatprep.subr.mxu1 %v13763_v19 }
 0x59f   : > { %16374 = vmatpush3.msra.mxu1 %v13747_v35 }
 0x5a0   : > { %16375 = vmatprep.subr.mxu1 %v13762_v5 }
 0x5a1   : > { %16376 = vmatpush3.msra.mxu1 %v13746_v13 }
 0x5a2   : > { %16377 = vmatprep.subr.mxu1 %v13761_v54 }
 0x5a3   : > { %16378 = vmatpush3.msra.mxu1 %v13745_v60 }
 0x5a4   : > { %16379 = vmatprep.subr.mxu1 %v13760_v14 }
 0x5a5   : > { %16380 = vmatpush3.msra.mxu1 %v13744_v29 }
 0x5a6   : > { %16381 = vmatprep.subr.mxu1 %v13759_v33 }
 0x5a7   : > { %16382 = vmatpush3.msra.mxu1 %v13743_v32 }
 0x5a8   : > { %16383 = vmatprep.subr.mxu1 %v13758_v3 }
 0x5a9   : > { %16384 = vmatpush3.msra.mxu1 %v13742_v48 }
 0x5aa   : > { %16385 = vmatprep.subr.mxu1 %v13757_v18 }
 0x5ab   : > { %16386 = vmatpush3.msra.mxu1 %v13741_v20 }
 0x5ac   : > { %16387 = vmatprep.subr.mxu1 %v13756_v31 }
 0x5ad   : > { %16388 = vmatpush3.msra.mxu1 %v13740_v44 }
 0x5e5   : > { %v13288_v27 = vpop.f32.mrf.mxu0 }
 0x5e6   : > { %v13459_v58 = vmul.f32 %v23363_v46, %v13288_v27 }
 0x5e7   : > { %v13290_v61 = vpop.f32.mrf.mxu0 }
 0x5e8   : > { %v13460_v39 = vmul.f32 %v23371_v8, %v13290_v61  ;;  %v23396_v25 = vadd.f32 %v23378_v62, %v13459_v58 }
 0x5e9   : > { %v13292_v40 = vpop.f32.mrf.mxu0 }
 0x5ea   : > { %v13461_v38 = vmul.f32 %v23363_v46, %v13292_v40  ;;  %v23409_v13 = vadd.f32 %v23386_v43, %v13460_v39  ;;  %v24784_v32 = vmax.f32 %v23396_v25, 0.0 }
 0x5eb   : > { %v13294_v22 = vpop.f32.mrf.mxu0 }
 0x5ec   : > { %v13462_v1 = vmul.f32 %v23371_v8, %v13294_v22  ;;  %v23389_v49 = vadd.f32 %v23378_v62, %v13461_v38 }
 0x5ed   : > { %v13298_v9 = vpop.f32.mrf.mxu0 }
 0x5ee   : > { %v13463_v34 = vmul.f32 %v23363_v46, %v13298_v9  ;;  %v23399_v2 = vadd.f32 %v23386_v43, %v13462_v1  ;;  %v24781_v54 = vmax.f32 %v23389_v49, 0.0 }
 0x5ef   : > { %v13300_v55 = vpop.f32.mrf.mxu0 }
 0x5f0   : > { %v13464_v59 = vmul.f32 %v23371_v8, %v13300_v55  ;;  %v23402_v12 = vadd.f32 %v23378_v62, %v13463_v34  ;;  %v24767_v61 = vmax.f32 %v23399_v2, 0.0 }
 0x5f1   : > { %v13302_v56 = vpop.f32.mrf.mxu0 }
 0x5f2   : > { %v13465_v41 = vmul.f32 %v23363_v46, %v13302_v56  ;;  %v23413_v60 = vadd.f32 %v23386_v43, %v13464_v59  ;;  %v24778_v40 = vmax.f32 %v23402_v12, 0.0  ;;  %v24768_v56 = vmax.f32 %v23409_v13, 0.0 }
 0x5f3   : > { %v13304_v16 = vpop.f32.mrf.mxu0 }
 0x5f4   : > { %v13466_v19 = vmul.f32 %v23371_v8, %v13304_v16  ;;  %v23416_v14 = vadd.f32 %v23378_v62, %v13465_v41  ;;  %v24766_v48 = vmax.f32 %v23413_v60, 0.0 }
 0x5f5   : > { %v13308_v52 = vpop.f32.mrf.mxu0 }
 0x5f6   : > { %v13467_v35 = vmul.f32 %v23363_v46, %v13308_v52  ;;  %v23426_v22 = vadd.f32 %v23386_v43, %v13466_v19  ;;  %v13663_v52 = vadd.f32 %v24781_v54, %v24784_v32  ;;  %v24777_v18 = vmax.f32 %v23416_v14, 0.0 }
 0x5f7   : > { %v13310_v57 = vpop.f32.mrf.mxu0 }
 0x5f8   : > { %v13468_v29 = vmul.f32 %v23371_v8, %v13310_v57  ;;  %v23429_v9 = vadd.f32 %v23378_v62, %v13467_v35  ;;  %v24764_v51 = vmax.f32 %v23426_v22, 0.0 }
 0x5f9   : > { %v13312_v42 = vpop.f32.mrf.mxu0 }
 0x5fa   : > { %v13469_v27 = vmul.f32 %v23363_v46, %v13312_v42  ;;  %v23443_v20 = vadd.f32 %v23386_v43, %v13468_v29  ;;  %v24774_v6 = vmax.f32 %v23429_v9, 0.0 }
 0x5fb   : > { %v13314_v28 = vpop.f32.mrf.mxu0 }
 0x5fc   : > { %v13470_v16 = vmul.f32 %v23371_v8, %v13314_v28  ;;  %v23448_v57 = vadd.f32 %v23378_v62, %v13469_v27  ;;  %v13700_v28 = vadd.f32 %v24767_v61, %v24768_v56  ;;  %v24765_v59 = vmax.f32 %v23443_v20, 0.0 }
 0x5fd   : > { %v13318_v30 = vpop.f32.mrf.mxu0 }
 0x5fe   : > { %v13471_v3 = vmul.f32 %v23363_v46, %v13318_v30  ;;  %v13664_v30 = vadd.f32 %v13663_v52, %v24778_v40  ;;  %v23463_v58 = vadd.f32 %v23386_v43, %v13470_v16  ;;  %v13701_v34 = vadd.f32 %v13700_v28, %v24766_v48 }
 0x5ff   : > { %v13320_v63 = vpop.f32.mrf.mxu0  ;;  %v24771_v19 = vmax.f32 %v23448_v57, 0.0 }
 0x600   : > { %v13472_v44 = vmul.f32 %v23371_v8, %v13320_v63  ;;  %v23466_v63 = vadd.f32 %v23378_v62, %v13471_v3  ;;  %v13665_v39 = vadd.f32 %v13664_v30, %v24777_v18  ;;  %v13702_v29 = vadd.f32 %v13701_v34, %v24764_v51 }
 0x601   : > { %v13322_v4 = vpop.f32.mrf.mxu0  ;;  %v24769_v52 = vmax.f32 %v23463_v58, 0.0 }
 0x602   : > { %v13473_v42 = vmul.f32 %v23363_v46, %v13322_v4  ;;  %v23481_v35 = vadd.f32 %v23386_v43, %v13472_v44  ;;  %v13666_v27 = vadd.f32 %v13665_v39, %v24774_v6  ;;  %v24770_v44 = vmax.f32 %v23466_v63, 0.0 }
 0x603   : > { %v23339_v10 = vpop.f32.mrf.mxu0  ;;  %v13703_v28 = vadd.f32 %v13702_v29, %v24765_v59 }
 0x604   : > { %v13474_v4 = vmul.f32 %v23371_v8, %v23339_v10  ;;  %v23484_v10 = vadd.f32 %v23378_v62, %v13473_v42  ;;  %v13667_v39 = vadd.f32 %v13666_v27, %v24771_v19 }
 0x605   : > { %v23341_v26 = vpop.f32.mrf.mxu0  ;;  %v13704_v27 = vadd.f32 %v13703_v28, %v24769_v52 }
 0x606   : > { %v13475_v1 = vmul.f32 %v23363_v46, %v23341_v26  ;;  %v23499_v42 = vadd.f32 %v23386_v43, %v13474_v4  ;;  %v24772_v4 = vmax.f32 %v23481_v35, 0.0  ;;  %v24773_v51 = vmax.f32 %v23484_v10, 0.0 }
 0x607   : > { %v23343_v23 = vpop.f32.mrf.mxu0  ;;  %v13668_v48 = vadd.f32 %v13667_v39, %v24770_v44 }
 0x608   : > { %v13476_v26 = vmul.f32 %v23371_v8, %v23343_v23  ;;  %v23502_v23 = vadd.f32 %v23378_v62, %v13475_v1  ;;  %v13705_v39 = vadd.f32 %v13704_v27, %v24772_v4 }
 0x609   : > { %v23345_v47 = vpop.f32.mrf.mxu0  ;;  %v13669_v52 = vadd.f32 %v13668_v48, %v24773_v51 }
 0x60a   : > { %v13477_v16 = vmul.f32 %v23363_v46, %v23345_v47  ;;  %v23517_v1 = vadd.f32 %v23386_v43, %v13476_v26  ;;  %v24775_v26 = vmax.f32 %v23499_v42, 0.0  ;;  %v24776_v61 = vmax.f32 %v23502_v23, 0.0 }
 0x60b   : > { %v23347_v37 = vpop.f32.mrf.mxu0 }
 0x60c   : > { %v13478_v30 = vmul.f32 %v23371_v8, %v23347_v37  ;;  %v23520_v29 = vadd.f32 %v23378_v62, %v13477_v16  ;;  %v13706_v27 = vadd.f32 %v13705_v39, %v24775_v26  ;;  %v13670_v48 = vadd.f32 %v13669_v52, %v24776_v61 }
 0x60d   : > { %v23349_v11 = vpop.f32.mrf.mxu0 }
 0x60e   : > { %v13479_v47 = vmul.f32 %v23363_v46, %v23349_v11  ;;  %v23535_v16 = vadd.f32 %v23386_v43, %v13478_v30  ;;  %v24779_v30 = vmax.f32 %v23517_v1, 0.0  ;;  %v24780_v44 = vmax.f32 %v23520_v29, 0.0 }
 0x60f   : > { %v23351_v21 = vpop.f32.mrf.mxu0 }
 0x610   : > { %v13480_v37 = vmul.f32 %v23371_v8, %v23351_v21  ;;  %25707 = vst [vmem:[#allocation97_spill] sm:$0xff] %v23535_v16  ;;  %v23538_v21 = vadd.f32 %v23378_v62, %v13479_v47  ;;  %v13707_v39 = vadd.f32 %v13706_v27, %v24779_v30  ;;  %v13671_v26 = vadd.f32 %v13670_v48, %v24780_v44 }
 0x611   : > { %v23353_v24 = vpop.f32.mrf.mxu0 }
 0x612   : > { %v13481_v11 = vmul.f32 %v23363_v46, %v23353_v24  ;;  %v23553_v47 = vadd.f32 %v23386_v43, %v13480_v37  ;;  %v24782_v37 = vmax.f32 %v23535_v16, 0.0  ;;  %v24783_v51 = vmax.f32 %v23538_v21, 0.0 }
 0x613   : > { %v23358_v50 = vpop.f32.mrf.mxu0 }
 0x614   : > { %v13482_v24 = vmul.f32 %v23371_v8, %v23358_v50  ;;  %25708 = vst [vmem:[#allocation98_spill] sm:$0xff] %v23553_v47  ;;  %v23556_v50 = vadd.f32 %v23378_v62, %v13481_v11  ;;  %v24785_v61 = vmax.f32 %v23553_v47, 0.0  ;;  %v13708_v27 = vadd.f32 %v13707_v39, %v24782_v37 }
 0x615   : > { %v23360_v15 = vpop.f32.mrf.mxu0  ;;  %v13672_v48 = vadd.f32 %v13671_v26, %v24783_v51 }
 0x616   : > { %v13483_v56 = vmul.f32 %v23363_v46, %v23360_v15  ;;  %v23571_v11 = vadd.f32 %v23386_v43, %v13482_v24  ;;  %v24786_v24 = vmax.f32 %v23556_v50, 0.0  ;;  %v13709_v26 = vadd.f32 %v13708_v27, %v24785_v61 }
 0x617   : > { %v23368_v7 = vpop.f32.mrf.mxu0 }
 0x618   : > { %v13484_v15 = vmul.f32 %v23371_v8, %v23368_v7  ;;  %25709 = vst [vmem:[#allocation100_spill] sm:$0xff] %v23571_v11  ;;  %v23574_v7 = vadd.f32 %v23378_v62, %v13483_v56  ;;  %v24787_v30 = vmax.f32 %v23571_v11, 0.0  ;;  %v13673_v39 = vadd.f32 %v13672_v48, %v24786_v24 }
 0x619   : > { %v23374_v0 = vpop.f32.mrf.mxu0 }
 0x61a   : > { %v13485_v4 = vmul.f32 %v23363_v46, %v23374_v0  ;;  %v23587_v56 = vadd.f32 %v23386_v43, %v13484_v15  ;;  %v24788_v15 = vmax.f32 %v23574_v7, 0.0 }
 0x61b   : > { %v23382_v45 = vpop.f32.mrf.mxu0 }
 0x61c   : > { %v13486_v52 = vmul.f32 %v23371_v8, %v23382_v45  ;;  %25710 = vst [vmem:[#allocation101_spill] sm:$0xff] %v23587_v56  ;;  %v23590_v40 = vadd.f32 %v23378_v62, %v13485_v4  ;;  %v24789_v37 = vmax.f32 %v23587_v56, 0.0  ;;  %v13674_v27 = vadd.f32 %v13673_v39, %v24788_v15 }
 0x61d   : > { %v23393_v17 = vpop.f32.mrf.mxu0 }
 0x61e   : > { %v13487_v0 = vmul.f32 %v23363_v46, %v23393_v17  ;;  %v23603_v4 = vadd.f32 %v23386_v43, %v13486_v52 }
 0x61f   : > { %v23406_v5 = vpop.f32.mrf.mxu0 }
 0x620   : > { %v13488_v45 = vmul.f32 %v23371_v8, %v23406_v5  ;;  %25711 = vst [vmem:[#allocation105_spill] sm:$0xff] %v23603_v4  ;;  %v23606_v54 = vadd.f32 %v23378_v62, %v13487_v0 }
 0x621   : > { %v23419_v33 = vpop.f32.mrf.mxu0 }
 0x622   : > { %v13489_v17 = vmul.f32 %v23363_v46, %v23419_v33  ;;  %v23619_v0 = vadd.f32 %v23386_v43, %v13488_v45 }
 0x623   : > { %v23431_v55 = vpop.f32.mrf.mxu0 }
 0x624   : > { %v13490_v5 = vmul.f32 %v23371_v8, %v23431_v55  ;;  %25712 = vst [vmem:[#allocation106_spill] sm:$0xff] %v23619_v0  ;;  %v23622_v32 = vadd.f32 %v23378_v62, %v13489_v17 }
 0x625   : > { %v23445_v31 = vpop.f32.mrf.mxu0 }
 0x626   : > { %v13491_v33 = vmul.f32 %v23363_v46, %v23445_v31  ;;  %v13710_v31 = vadd.f32 %v13709_v26, %v24787_v30  ;;  %v23635_v17 = vadd.f32 %v23386_v43, %v13490_v5  ;;  %v25714_v30 = vmax.f32 %v23590_v40, 0.0 }
 0x627   : > { %v23460_v38 = vpop.f32.mrf.mxu0 }
 0x628   : > { %v13492_v55 = vmul.f32 %v23371_v8, %v23460_v38  ;;  %25713 = vst [vmem:[#allocation107_spill] sm:$0xff] %v23635_v17  ;;  %v23638_v52 = vadd.f32 %v23378_v62, %v13491_v33  ;;  %v13711_v38 = vadd.f32 %v13710_v31, %v24789_v37  ;;  %v13675_v15 = vadd.f32 %v13674_v27, %v25714_v30 }
 0x629   : > { %v23477_v41 = vpop.f32.mrf.mxu0  ;;  %v25716_v37 = vmax.f32 %v23603_v4, 0.0  ;;  %v25717_v27 = vmax.f32 %v23606_v54, 0.0  ;;  %v25722_v11 = vmax.f32 %v23635_v17, 0.0 }
 0x62a   : > { %v13493_v48 = vmul.f32 %v23363_v46, %v23477_v41  ;;  %v23651_v33 = vadd.f32 %v23386_v43, %v13492_v55 }
 0x62b   : > { %v23494_v3 = vpop.f32.mrf.mxu0  ;;  %v13712_v30 = vadd.f32 %v13711_v38, %v25716_v37  ;;  %v13676_v45 = vadd.f32 %v13675_v15, %v25717_v27  ;;  %v25719_v37 = vmax.f32 %v23619_v0, 0.0  ;;  %v25720_v15 = vmax.f32 %v23622_v32, 0.0 }
 0x62c   : > { %v13494_v26 = vmul.f32 %v23371_v8, %v23494_v3  ;;  %25715 = vst [vmem:[#allocation109_spill] sm:$0xff] %v23651_v33  ;;  %v23654_v24 = vadd.f32 %v23378_v62, %v13493_v48  ;;  %v24795_v55 = vmax.f32 %v23651_v33, 0.0 }
 0x62d   : > { %v23510_v34 = vpop.f32.mrf.mxu0  ;;  %v13713_v38 = vadd.f32 %v13712_v30, %v25719_v37  ;;  %v13677_v27 = vadd.f32 %v13676_v45, %v25720_v15  ;;  %v25723_v30 = vmax.f32 %v23638_v52, 0.0 }
 0x62e   : > { %v13495_v41 = vmul.f32 %v23363_v46, %v23510_v34  ;;  %v23667_v48 = vadd.f32 %v23386_v43, %v13494_v26 }
 0x62f   : > { %v23526_v59 = vpop.f32.mrf.mxu0  ;;  %v13714_v0 = vadd.f32 %v13713_v38, %v25722_v11  ;;  %v13678_v37 = vadd.f32 %v13677_v27, %v25723_v30 }
 0x630   : > { %v13496_v3 = vmul.f32 %v23371_v8, %v23526_v59  ;;  %25718 = vst [vmem:[#allocation113_spill] sm:$0xff] %v23667_v48  ;;  %v23670_v56 = vadd.f32 %v23378_v62, %v13495_v41 }
 0x631   : > { %v23544_v28 = vpop.f32.mrf.mxu0  ;;  %v13715_v17 = vadd.f32 %v13714_v0, %v24795_v55 }
 0x632   : > { %v13497_v34 = vmul.f32 %v23363_v46, %v23544_v28  ;;  %v23682_v5 = vadd.f32 %v23386_v43, %v13496_v3 }
 0x633   : > { %v23560_v19 = vpop.f32.mrf.mxu0 }
 0x634   : > { %v13498_v59 = vmul.f32 %v23371_v8, %v23560_v19  ;;  %25721 = vst [vmem:[#allocation114_spill] sm:$0xff] %v23682_v5  ;;  %v23685_v41 = vadd.f32 %v23378_v62, %v13497_v34 }
 0x635   : > { %v13388_v6 = vpop.f32.mrf.mxu0 }
 0x636   : > { %v13499_v28 = vmul.f32 %v23363_v46, %v13388_v6  ;;  %v23696_v3 = vadd.f32 %v23386_v43, %v13498_v59 }
 0x637   : > { %v13390_v18 = vpop.f32.mrf.mxu0 }
 0x638   : > { %v13500_v19 = vmul.f32 %v23371_v8, %v13390_v18  ;;  %25724 = vst [vmem:[#allocation116_spill] sm:$0xff] %v23696_v3  ;;  %v23699_v34 = vadd.f32 %v23378_v62, %v13499_v28 }
 0x639   : > { %v13392_v44 = vpop.f32.mrf.mxu0 }
 0x63a   : > { %v13501_v45 = vmul.f32 %v23363_v46, %v13392_v44  ;;  %v25725_v44 = vmax.f32 %v23654_v24, 0.0  ;;  %v23710_v59 = vadd.f32 %v23386_v43, %v13500_v19 }
 0x63b   : > { %v13394_v51 = vpop.f32.mrf.mxu0 }
 0x63c   : > { %v13502_v11 = vmul.f32 %v23371_v8, %v13394_v51  ;;  %v13679_v27 = vadd.f32 %v13678_v37, %v25725_v44  ;;  %25726 = vst [vmem:[#allocation117_spill] sm:$0xff] %v23710_v59  ;;  %v23713_v15 = vadd.f32 %v23378_v62, %v13501_v45  ;;  %v25728_v37 = vmax.f32 %v23670_v56, 0.0 }
 0x63d   : > { %v13398_v61 = vpop.f32.mrf.mxu0 }
 0x63e   : > { %v13503_v38 = vmul.f32 %v23363_v46, %v13398_v61  ;;  %v25727_v61 = vmax.f32 %v23667_v48, 0.0  ;;  %v13680_v44 = vadd.f32 %v13679_v27, %v25728_v37  ;;  %v23724_v33 = vadd.f32 %v23386_v43, %v13502_v11 }
 0x63f   : > { %v13400_v39 = vpop.f32.mrf.mxu0  ;;  %v25731_v27 = vmax.f32 %v23685_v41, 0.0 }
 0x640   : > { %v13504_v0 = vmul.f32 %v23371_v8, %v13400_v39  ;;  %v13716_v55 = vadd.f32 %v13715_v17, %v25727_v61  ;;  %25729 = vst [vmem:[#allocation121_spill] sm:$0xff] %v23724_v33  ;;  %v23727_v45 = vadd.f32 %v23378_v62, %v13503_v38  ;;  %v25730_v17 = vmax.f32 %v23682_v5, 0.0 }
 0x641   : > { %v13402_v31 = vpop.f32.mrf.mxu0  ;;  %v13681_v37 = vadd.f32 %v13680_v44, %v25731_v27 }
 0x642   : > { %v13505_v51 = vmul.f32 %v23363_v46, %v13402_v31  ;;  %v13717_v61 = vadd.f32 %v13716_v55, %v25730_v17  ;;  %v23738_v11 = vadd.f32 %v23386_v43, %v13504_v0  ;;  %v25734_v55 = vmax.f32 %v23699_v34, 0.0 }
 0x643   : > { %v13404_v4 = vpop.f32.mrf.mxu0 }
 0x644   : > { %v13506_v39 = vmul.f32 %v23371_v8, %v13404_v4  ;;  %25732 = vst [vmem:[#allocation122_spill] sm:$0xff] %v23738_v11  ;;  %v23741_v38 = vadd.f32 %v23378_v62, %v13505_v51  ;;  %v13682_v17 = vadd.f32 %v13681_v37, %v25734_v55  ;;  %v25742_v47 = vmax.f32 %v23738_v11, 0.0 }
 0x645   : > { %v13408_v6 = vpop.f32.mrf.mxu0 }
 0x646   : > { %v13507_v31 = vmul.f32 %v23363_v46, %v13408_v6  ;;  %v25733_v6 = vmax.f32 %v23696_v3, 0.0  ;;  %v23752_v0 = vadd.f32 %v23386_v43, %v13506_v39 }
 0x647   : > { %v13410_v18 = vpop.f32.mrf.mxu0 }
 0x648   : > { %v13508_v4 = vmul.f32 %v23371_v8, %v13410_v18  ;;  %v13718_v5 = vadd.f32 %v13717_v61, %v25733_v6  ;;  %25735 = vst [vmem:[#allocation123_spill] sm:$0xff] %v23752_v0  ;;  %v23755_v51 = vadd.f32 %v23378_v62, %v13507_v31  ;;  %v25736_v18 = vmax.f32 %v23710_v59, 0.0 }
 0x649   : > { %v13412_v28 = vpop.f32.mrf.mxu0  ;;  %v24805_v30 = vmax.f32 %v23752_v0, 0.0 }
 0x64a   : > { %v13509_v44 = vmul.f32 %v23363_v46, %v13412_v28  ;;  %v13719_v3 = vadd.f32 %v13718_v5, %v25736_v18  ;;  %v25737_v28 = vmax.f32 %v23713_v15, 0.0  ;;  %v23766_v39 = vadd.f32 %v23386_v43, %v13508_v4 }
 0x64b   : > { %v13414_v19 = vpop.f32.mrf.mxu0 }
 0x64c   : > { %v13510_v61 = vmul.f32 %v23371_v8, %v13414_v19  ;;  %v13683_v55 = vadd.f32 %v13682_v17, %v25737_v28  ;;  %25738 = vst [vmem:[#allocation125_spill] sm:$0xff] %v23766_v39  ;;  %v23769_v31 = vadd.f32 %v23378_v62, %v13509_v44  ;;  %v25740_v17 = vmax.f32 %v23727_v45, 0.0 }
 0x64d   : > { %v13418_v26 = vpop.f32.mrf.mxu0 }
 0x64e   : > { %v13511_v37 = vmul.f32 %v23363_v46, %v13418_v26  ;;  %v25739_v26 = vmax.f32 %v23724_v33, 0.0  ;;  %v13684_v28 = vadd.f32 %v13683_v55, %v25740_v17  ;;  %v23780_v4 = vadd.f32 %v23386_v43, %v13510_v61 }
 0x64f   : > { %v13420_v27 = vpop.f32.mrf.mxu0  ;;  %v24806_v55 = vmax.f32 %v23766_v39, 0.0 }
 0x650   : > { %v13512_v5 = vmul.f32 %v23371_v8, %v13420_v27  ;;  %v13720_v59 = vadd.f32 %v13719_v3, %v25739_v26  ;;  %25741 = vst [vmem:[#allocation129_spill] sm:$0xff] %v23780_v4  ;;  %v23783_v44 = vadd.f32 %v23378_v62, %v13511_v37  ;;  %v25743_v3 = vmax.f32 %v23741_v38, 0.0 }
 0x651   : > { %v13422_v6 = vpop.f32.mrf.mxu0 }
 0x652   : > { %v13513_v19 = vmul.f32 %v23363_v46, %v13422_v6  ;;  %v13721_v33 = vadd.f32 %v13720_v59, %v25742_v47  ;;  %v13685_v26 = vadd.f32 %v13684_v28, %v25743_v3  ;;  %v23794_v61 = vadd.f32 %v23386_v43, %v13512_v5 }
 0x653   : > { %v13424_v18 = vpop.f32.mrf.mxu0  ;;  %v25745_v47 = vmax.f32 %v23755_v51, 0.0 }
 0x654   : > { %v13514_v27 = vmul.f32 %v23371_v8, %v13424_v18  ;;  %25744 = vst [vmem:[#allocation130_spill] sm:$0xff] %v23794_v61  ;;  %v23797_v37 = vadd.f32 %v23378_v62, %v13513_v19  ;;  %v13722_v11 = vadd.f32 %v13721_v33, %v24805_v30 }
 0x655   : > { %v13428_v6 = vpop.f32.mrf.mxu0  ;;  %v13686_v59 = vadd.f32 %v13685_v26, %v25745_v47  ;;  %v25747_v26 = vmax.f32 %v23769_v31, 0.0 }
 0x656   : > { %v13515_v17 = vmul.f32 %v23363_v46, %v13428_v6  ;;  %v23807_v48 = vadd.f32 %v23386_v43, %v13514_v27  ;;  %v13723_v0 = vadd.f32 %v13722_v11, %v24806_v55  ;;  %v25749_v11 = vmax.f32 %v23780_v4, 0.0 }
 0x657   : > { %v13430_v18 = vpop.f32.mrf.mxu0  ;;  %v13687_v47 = vadd.f32 %v13686_v59, %v25747_v26 }
 0x658   : > { %v13516_v28 = vmul.f32 %v23371_v8, %v13430_v18  ;;  %25746 = vst [vmem:[#allocation132_spill] sm:$0xff] %v23807_v48  ;;  %v23810_v5 = vadd.f32 %v23378_v62, %v13515_v17  ;;  %v13724_v55 = vadd.f32 %v13723_v0, %v25749_v11  ;;  %v24812_v59 = vmax.f32 %v23807_v48, 0.0 }
 0x659   : > { %v13432_v19 = vpop.f32.mrf.mxu0 }
 0x65a   : > { %v13517_v33 = vmul.f32 %v23363_v46, %v13432_v19  ;;  %v23820_v6 = vadd.f32 %v23386_v43, %v13516_v28  ;;  %v25750_v19 = vmax.f32 %v23783_v44, 0.0 }
 0x65b   : > { %v13434_v27 = vpop.f32.mrf.mxu0 }
 0x65c   : > { %25748 = vst [vmem:[#allocation133_spill] sm:$0xff] %v23820_v6  ;;  %v23823_v17 = vadd.f32 %v23378_v62, %v13517_v33  ;;  %v13518_v3 = vmul.f32 %v23371_v8, %v13434_v27  ;;  %v13688_v39 = vadd.f32 %v13687_v47, %v25750_v19  ;;  %v25752_v33 = vmax.f32 %v23794_v61, 0.0 }
 0x65d   : > { %v13438_v30 = vpop.f32.mrf.mxu0  ;;  %v25753_v27 = vmax.f32 %v23797_v37, 0.0  ;;  %v24814_v0 = vmax.f32 %v23820_v6, 0.0 }
 0x65e   : > { %v23833_v28 = vadd.f32 %v23386_v43, %v13518_v3  ;;  %v13519_v18 = vmul.f32 %v23363_v46, %v13438_v30  ;;  %v13725_v16 = vadd.f32 %v13724_v55, %v25752_v33  ;;  %v25754_v30 = vmax.f32 %v23810_v5, 0.0 }
 0x65f   : > { %v13689_v4 = vadd.f32 %v13688_v39, %v25753_v27  ;;  %v13440_v11 = vpop.f32.mrf.mxu0  ;;  %v25756_v48 = vmax.f32 %v23823_v17, 0.0 }
 0x660   : > { %25751 = vst [vmem:[#allocation137_spill] sm:$0xff] %v23833_v28  ;;  %v23843_v19 = vadd.f32 %v23378_v62, %v13519_v18  ;;  %v13520_v26 = vmul.f32 %v23371_v8, %v13440_v11  ;;  %v13726_v3 = vadd.f32 %v13725_v16, %v24812_v59  ;;  %v24813_v33 = vmax.f32 %v23833_v28, 0.0 }
 0x661   : > { %v13690_v61 = vadd.f32 %v13689_v4, %v25754_v30  ;;  %v13442_v55 = vpop.f32.mrf.mxu0 }
 0x662   : > { %v24815_v39 = vmax.f32 %v23843_v19, 0.0  ;;  %v23853_v27 = vadd.f32 %v23386_v43, %v13520_v26  ;;  %v13521_v47 = vmul.f32 %v23363_v46, %v13442_v55  ;;  %v13727_v18 = vadd.f32 %v13726_v3, %v24814_v0 }
 0x663   : > { %v13444_v11 = vpop.f32.mrf.mxu0  ;;  %v13691_v16 = vadd.f32 %v13690_v61, %v25756_v48 }
 0x664   : > { %25755 = vst [vmem:[#allocation138_spill] sm:$0xff] %v23853_v27  ;;  %v24818_v59 = vmax.f32 %v23853_v27, 0.0  ;;  %v23862_v4 = vadd.f32 %v23378_v62, %v13521_v47  ;;  %v13522_v30 = vmul.f32 %v23371_v8, %v13444_v11  ;;  %v13728_v26 = vadd.f32 %v13727_v18, %v24813_v33 }
 0x665   : > { %v13692_v46 = vadd.f32 %v13691_v16, %v24815_v39 }
 0x666   : > { %v13661_v55 = vmax.f32 %v23862_v4, 0.0  ;;  %v23871_v3 = vadd.f32 %v23386_v43, %v13522_v30  ;;  %v13729_v48 = vadd.f32 %v13728_v26, %v24818_v59  ;;  %v25805_v4 = vmax.f32 %v23443_v20, 0.0  ;;  %v25810_v20 = vld [vmem:[#allocation97_spill] sm:$0xff] }
 0x668   : > { %v13693_v62 = vadd.f32 %v13692_v46, %v13661_v55  ;;  %v24820_v61 = vmax.f32 %v23871_v3, 0.0  ;;  %v13847_v46 = vld [vmem:[%s24480_s9 + $0x18] sm:$0xff] }
 0x669   : > { %13892 = vmatprep.subr.mxu1 %v13847_v46  ;;  %v17547_v46 = vld [vmem:[%s24482_s11 + $0x20] sm:$0xff]  }
 0x66a   : > { %v13694_v8 = vrot.slane %v13693_v62, 4  ;;  %v13730_v47 = vadd.f32 %v13729_v48, %v24820_v61  ;;  %v13846_v48 = vld [vmem:[%s24480_s9 + $0x10] sm:$0xff]  ;;  %v25835_v61 = vld [vmem:[#allocation116_spill] sm:$0xff] }
 0x66c   : > { %v13695_v18 = vadd.f32 %v13694_v8, %v13693_v62  ;;  %v13731_v11 = vrot.slane %v13730_v47, 4 }
 0x66e   : > { %v13696_v16 = vrot.slane %v13695_v18, 2  ;;  %v13732_v33 = vadd.f32 %v13731_v11, %v13730_v47  ;;  %v17540_v47 = vld [vmem:[%s24482_s11 + $0x78] sm:$0xff]   ;;  %v17542_v11 = vld [vmem:[%s24482_s11 + $0x70] sm:$0xff]  }
 0x66f   : > { %16392 = vmatprep.subr.bf16.mxu0 %v17540_v47 }
 0x670   : > { %v13697_v0 = vadd.f32 %v13696_v16, %v13695_v18  ;;  %v13733_v39 = vrot.slane %v13732_v33, 2  ;;  %v17541_v18 = vld [vmem:[%s24482_s11 + $0x38] sm:$0xff]   ;;  %v17543_v16 = vld [vmem:[%s24482_s11 + $0x30] sm:$0xff]  }
 0x671   : > { %16393 = vmatpush3.bf16.msra.mxu0 %v17541_v18 }
 0x672   : > { %v13698_v43 = vrot.slane %v13697_v0, 1  ;;  %v13734_v30 = vadd.f32 %v13733_v39, %v13732_v33  ;;  %v13845_v33 = vld [vmem:[%s24480_s9 + $0x8] sm:$0xff]  ;;  %16394 = vmatprep.subr.bf16.mxu0 %v17542_v11 }
 0x674   : > { %v13735_v28 = vrot.slane %v13734_v30, 1  ;;  %v13699_v27 = vadd.f32 %v13698_v43, %v13697_v0  ;;  %v13772_v0 = vld [vmem:[%s24479_s8] sm:$0x1]  ;;  %v17544_v43 = vld [vmem:[%s24482_s11 + $0x68] sm:$0xff]  }
 0x675   : > { %16395 = vmatpush3.bf16.msra.mxu0 %v17543_v16 }
 0x676   : > { %v13736_v26 = vadd.f32 %v13735_v28, %v13734_v30  ;;  %v13738_v6 = vmul.f32 0.00390625, %v13699_v27  ;;  %v17545_v30 = vld [vmem:[%s24482_s11 + $0x28] sm:$0xff]   ;;  %16396 = vmatprep.subr.bf16.mxu0 %v17544_v43 }
 0x678   : > { %v13739_v59 = vmul.f32 0.00390625, %v13736_v26  ;;  %v17546_v26 = vld [vmem:[%s24482_s11 + $0x60] sm:$0xff]  }
 0x679   : > { %16397 = vmatpush3.bf16.msra.mxu0 %v17545_v30 }
 0x67a   : > { %13837 = vmatprep.mubr.f32.mxu1 %v13739_v59  ;;  %v13844_v59 = vld [vmem:[%s24480_s9] sm:$0xff]  ;;  %16398 = vmatprep.subr.bf16.mxu0 %v17546_v26 }
 0x67b   : > { %13838 = vmatmul.mubr.f32.vlgmr.msra.gmra.mxu1 %v13738_v6  ;;  %v17664_v6 = vmov 0.0  }
 0x67c   : > { %13893 = vmatpush1.msra.mxu1 %v13846_v48  ;;  %13928 = vmatprep.mubr.f32.mxu1 %v17664_v6  ;;  %v17548_v48 = vld [vmem:[%s24482_s11 + $0x58] sm:$0xff]   ;;  %v17551_v6 = vld [vmem:[%s24482_s11 + $0x10] sm:$0xff]  }
 0x67d   : > { %13894 = vmatprep.subr.mxu1 %v13845_v33  ;;  %16399 = vmatpush3.bf16.msra.mxu0 %v17547_v46  ;;  %v17549_v33 = vld [vmem:[%s24482_s11 + $0x18] sm:$0xff]  }
 0x67e   : > { %13895 = vmatpush1.msra.mxu1 %v13844_v59  ;;  %16400 = vmatprep.subr.bf16.mxu0 %v17548_v48  ;;  %v17550_v59 = vld [vmem:[%s24482_s11 + $0x50] sm:$0xff]  }
 0x67f   : > { %16504 = vmatprep.subr.bf16.mxu1 %v17540_v47 }
 0x681   : > { %16401 = vmatpush3.bf16.msra.mxu0 %v17549_v33 }
 0x682   : > { %16402 = vmatprep.subr.bf16.mxu0 %v17550_v59 }
 0x685   : > { %16403 = vmatpush3.bf16.msra.mxu0 %v17551_v6 }
 0x73b   : > { %v16389_v28 = vpop.f32.mrf.mxu1 }
 0x73d   : > { %v16390_v39 = vpop.f32.mrf.mxu1 }
 0x73e   : > { %v16391_v27 = vadd.f32 %v16390_v39, %v16389_v28  ;;  %v17552_v28 = vld [vmem:[%s24482_s11 + $0x48] sm:$0xff]   ;;  %v17554_v39 = vld [vmem:[%s24482_s11 + $0x40] sm:$0xff]  }
 0x73f   : > { %16404 = vmatprep.subr.bf16.mxu0 %v17552_v28 }
 0x740   : > { %v13840_v62 = vadd.f32 %v16391_v27, %v13772_v0  ;;  %v17553_v0 = vld [vmem:[%s24482_s11 + $0x8] sm:$0xff]   ;;  %v17555_v27 = vld [vmem:[%s24482_s11] sm:$0xff]  }
 0x741   : > { %16405 = vmatpush3.bf16.msra.mxu0 %v17553_v0 }
 0x742   : > { %v13843_v8 = vmax.f32 %v13840_v62, 0.0  ;;  %16406 = vmatprep.subr.bf16.mxu0 %v17554_v39  ;;  %v13848_v62 = vld [vmem:[%s24481_s10] sm:$0x3] }
 0x743   : > { %v13857_v47 = vrot.slane %v13848_v62, %v25706_v53  ;;  %v25757_v53 = vmax.f32 %v23396_v25, 0.0  ;;  %v25762_v25 = vmax.f32 %v23448_v57, 0.0  ;;  %v25771_v57 = vmax.f32 %v23538_v21, 0.0 }
 0x744   : > { %16271 = vmatmul.mubr.msk.f32.vlgmr.msra.gmra.mxu1 %vm13860_vm6, %v13843_v8  ;;  %v13853_v8 = vrot.slane %v13848_v62, %v25705_v36  ;;  %v25758_v62 = vmax.f32 %v23389_v49, 0.0  ;;  %v25763_v49 = vmax.f32 %v23466_v63, 0.0  ;;  %v25772_v63 = vmax.f32 %v23556_v50, 0.0 }
 0x745   : > { %16512 = vmatpush3.bf16.msra.mxu1 %v17541_v18  ;;  %16407 = vmatpush3.bf16.msra.mxu0 %v17555_v27  ;;  %v25779_v21 = vmax.f32 %v23622_v32, 0.0  ;;  %v25780_v50 = vmax.f32 %v23638_v52, 0.0  ;;  %v25788_v32 = vmax.f32 %v23699_v34, 0.0  ;;  %v25790_v52 = vmax.f32 %v23713_v15, 0.0 }
 0x746   : > { %16505 = vmatprep.subr.bf16.mxu1 %v17542_v11  ;;  %v25795_v15 = vmax.f32 %v23783_v44, 0.0 }
 0x749   : > { %16513 = vmatpush3.bf16.msra.mxu1 %v17543_v16 }
 0x74a   : > { %16506 = vmatprep.subr.bf16.mxu1 %v17544_v43 }
 0x74d   : > { %16514 = vmatpush3.bf16.msra.mxu1 %v17545_v30 }
 0x74e   : > { %16507 = vmatprep.subr.bf16.mxu1 %v17546_v26 }
 0x751   : > { %16515 = vmatpush3.bf16.msra.mxu1 %v17547_v46 }
 0x752   : > { %16508 = vmatprep.subr.bf16.mxu1 %v17548_v48 }
 0x755   : > { %16516 = vmatpush3.bf16.msra.mxu1 %v17549_v33 }
 0x756   : > { %16509 = vmatprep.subr.bf16.mxu1 %v17550_v59 }
 0x759   : > { %16517 = vmatpush3.bf16.msra.mxu1 %v17551_v6 }
 0x75a   : > { %16510 = vmatprep.subr.bf16.mxu1 %v17552_v28 }
 0x75d   : > { %16518 = vmatpush3.bf16.msra.mxu1 %v17553_v0 }
 0x75e   : > { %16511 = vmatprep.subr.bf16.mxu1 %v17554_v39 }
 0x761   : > { %16519 = vmatpush3.bf16.msra.mxu1 %v17555_v27 }
 0x804   : > { %v13930_v18 = vpop.f32.mrf.mxu1 }
 0x805   : > { %v13931_v11 = vadd.f32 %v13930_v18, %v13853_v8 }
 0x806   : > { %v13932_v16 = vpop.f32.mrf.mxu1 }
 0x807   : > { %v13935_v43 = vsub.f32 0.0, %v13931_v11  ;;  %v13933_v30 = vadd.f32 %v13932_v16, %v13857_v47  ;;  %v25759_v47 = vmax.f32 %v23402_v12, 0.0  ;;  %v25760_v11 = vmax.f32 %v23416_v14, 0.0 }
 0x808   : > { %v25765_v12 = vmax.f32 %v23484_v10, 0.0  ;;  %v25767_v14 = vmax.f32 %v23502_v23, 0.0  ;;  %v25773_v10 = vmax.f32 %v23574_v7, 0.0  ;;  %v25775_v23 = vmax.f32 %v23590_v40, 0.0 }
 0x809   : > { %v13937_v26 = vmul.f32 1.442695, %v13935_v43  ;;  %v13936_v46 = vsub.f32 0.0, %v13933_v30  ;;  %v25761_v43 = vmax.f32 %v23429_v9, 0.0  ;;  %v25769_v9 = vmax.f32 %v23520_v29, 0.0 }
 0x80a   : > { %v25777_v29 = vmax.f32 %v23606_v54, 0.0  ;;  %v25782_v7 = vmax.f32 %v23654_v24, 0.0  ;;  %v25784_v40 = vmax.f32 %v23670_v56, 0.0  ;;  %v25786_v54 = vmax.f32 %v23685_v41, 0.0 }
 0x80b   : > { %17556 = vpow2.f32 %v13937_v26  ;;  %v13939_v48 = vmul.f32 1.442695, %v13936_v46  ;;  %v25791_v24 = vmax.f32 %v23727_v45, 0.0  ;;  %v25792_v56 = vmax.f32 %v23741_v38, 0.0 }
 0x80c   : > { %v25793_v41 = vmax.f32 %v23755_v51, 0.0  ;;  %v25797_v45 = vmax.f32 %v23797_v37, 0.0  ;;  %v25798_v38 = vmax.f32 %v23810_v5, 0.0  ;;  %v25799_v51 = vmax.f32 %v23823_v17, 0.0 }
 0x80d   : > { %17558 = vpow2.f32 %v13939_v48  ;;  %v25801_v37 = vmax.f32 %v23409_v13, 0.0  ;;  %v25802_v5 = vmax.f32 %v23399_v2, 0.0  ;;  %v25803_v17 = vmax.f32 %v23413_v60, 0.0 }
 0x80e   : > { %v25806_v13 = vmax.f32 %v23463_v58, 0.0  ;;  %v25807_v2 = vmax.f32 %v23481_v35, 0.0  ;;  %v25808_v60 = vmax.f32 %v23499_v42, 0.0  ;;  %v25812_v58 = vld [vmem:[#allocation98_spill] sm:$0xff]  ;;  %v25814_v35 = vld [vmem:[#allocation100_spill] sm:$0xff] }
 0x818   : > { %v17557_v33 = vpop.eup %17556 }
 0x819   : > { %v13941_v59 = vadd.f32 1.0, %v17557_v33 }
 0x81a   : > { %v17559_v6 = vpop.eup %17558 }
 0x81b   : > { %17560 = vrcp.f32 %v13941_v59  ;;  %v13942_v28 = vadd.f32 1.0, %v17559_v6 }
 0x81d   : > { %17562 = vrcp.f32 %v13942_v28 }
 0x828   : > { %v17561_v0 = vpop.eup %17560 }
 0x829   : > { %v13948_v39 = vrot.slane %v17561_v0, %v25705_v36 }
 0x82a   : > { %v17563_v6 = vpop.eup %17562 }
 0x82b   : > { %v23951_v27 = vmul.f32 %v13948_v39, %v25757_v53  ;;  %v23955_v8 = vmul.f32 %v13948_v39, %v25758_v62  ;;  %v23959_v18 = vmul.f32 %v13948_v39, %v25759_v47  ;;  %v23963_v16 = vmul.f32 %v13948_v39, %v25760_v11 }
 0x82c   : > { %v23967_v30 = vmul.f32 %v13948_v39, %v25761_v43  ;;  %v23971_v26 = vmul.f32 %v13948_v39, %v25762_v25  ;;  %v23975_v46 = vmul.f32 %v13948_v39, %v25763_v49  ;;  %v23979_v48 = vmul.f32 %v13948_v39, %v25765_v12 }
 0x82d   : > { %v23983_v33 = vmul.f32 %v13948_v39, %v25767_v14  ;;  %v23987_v59 = vmul.f32 %v13948_v39, %v25769_v9  ;;  %v23991_v28 = vmul.f32 %v13948_v39, %v25771_v57  ;;  %v23995_v0 = vmul.f32 %v13948_v39, %v25772_v63 }
 0x82e   : > { %25764 = vst [vmem:[#allocation140_spill] sm:$0xff] %v23975_v46  ;;  %25766 = vst [vmem:[#allocation141_spill] sm:$0xff] %v23979_v48  ;;  %v23999_v53 = vmul.f32 %v13948_v39, %v25773_v10  ;;  %v24003_v62 = vmul.f32 %v13948_v39, %v25775_v23  ;;  %v24007_v47 = vmul.f32 %v13948_v39, %v25777_v29  ;;  %v25794_v23 = vmax.f32 %v23769_v31, 0.0 }
 0x82f   : > { %25768 = vst [vmem:[#allocation145_spill] sm:$0xff] %v23983_v33  ;;  %25770 = vst [vmem:[#allocation146_spill] sm:$0xff] %v23987_v59  ;;  %v24011_v11 = vmul.f32 %v13948_v39, %v25779_v21  ;;  %v24015_v43 = vmul.f32 %v13948_v39, %v25780_v50  ;;  %v24019_v25 = vmul.f32 %v13948_v39, %v25782_v7 }
 0x830   : > { %25774 = vst [vmem:[#allocation148_spill] sm:$0xff] %v23999_v53  ;;  %25776 = vst [vmem:[#allocation149_spill] sm:$0xff] %v24003_v62  ;;  %v24023_v49 = vmul.f32 %v13948_v39, %v25784_v40  ;;  %v24027_v12 = vmul.f32 %v13948_v39, %v25786_v54  ;;  %v24031_v14 = vmul.f32 %v13948_v39, %v25788_v32 }
 0x831   : > { %25778 = vst [vmem:[#allocation150_spill] sm:$0xff] %v24007_v47  ;;  %25781 = vst [vmem:[#allocation151_spill] sm:$0xff] %v24015_v43  ;;  %v24035_v9 = vmul.f32 %v13948_v39, %v25790_v52  ;;  %v24039_v57 = vmul.f32 %v13948_v39, %v25791_v24  ;;  %v24043_v63 = vmul.f32 %v13948_v39, %v25792_v56 }
 0x832   : > { %25783 = vst [vmem:[#allocation153_spill] sm:$0xff] %v24019_v25  ;;  %25785 = vst [vmem:[#allocation154_spill] sm:$0xff] %v24023_v49  ;;  %v24047_v10 = vmul.f32 %v13948_v39, %v25793_v41  ;;  %v13952_v34 = vrot.slane %v17563_v6, %v25705_v36  ;;  %v24052_v29 = vmul.f32 %v13948_v39, %v25794_v23  ;;  %v25800_v36 = vmax.f32 %v23843_v19, 0.0  ;;  %v25855_v25 = vld [vmem:[#allocation130_spill] sm:$0xff] }
 0x833   : > { %25787 = vst [vmem:[#allocation155_spill] sm:$0xff] %v24027_v12  ;;  %25789 = vst [vmem:[#allocation156_spill] sm:$0xff] %v24031_v14  ;;  %v24056_v21 = vmul.f32 %v13948_v39, %v25795_v15  ;;  %v24060_v50 = vmul.f32 %v13948_v39, %v25797_v45  ;;  %v24064_v7 = vmul.f32 %v13948_v39, %v25798_v38  ;;  %v25804_v19 = vmax.f32 %v23426_v22, 0.0 }
 0x834   : > { %v24068_v40 = vmul.f32 %v13948_v39, %v25799_v51  ;;  %v24072_v31 = vmul.f32 %v13948_v39, %v25800_v36  ;;  %v24076_v44 = vmul.f32 %v13948_v39, %v13661_v55  ;;  %v24080_v6 = vmul.f32 %v13952_v34, %v25801_v37  ;;  %v25816_v37 = vld [vmem:[#allocation101_spill] sm:$0xff] }
 0x835   : > { %25796 = vst [vmem:[#allocation157_spill] sm:$0xff] %v24056_v21  ;;  %v24084_v54 = vmul.f32 %v13952_v34, %v25802_v5  ;;  %v24088_v32 = vmul.f32 %v13952_v34, %v25803_v17  ;;  %v24092_v52 = vmul.f32 %v13952_v34, %v25804_v19  ;;  %v24096_v55 = vmul.f32 %v13952_v34, %v25805_v4  ;;  %v25819_v17 = vld [vmem:[#allocation105_spill] sm:$0xff]  ;;  %v25822_v4 = vld [vmem:[#allocation106_spill] sm:$0xff] }
 0x836   : > { %v24100_v39 = vmul.f32 %v13952_v34, %v25806_v13  ;;  %v24104_v24 = vmul.f32 %v13952_v34, %v25807_v2  ;;  %v24108_v56 = vmul.f32 %v13952_v34, %v25808_v60  ;;  %v25809_v22 = vmax.f32 %v23517_v1, 0.0  ;;  %v25824_v60 = vld [vmem:[#allocation107_spill] sm:$0xff] }
 0x837   : > { %v25811_v23 = vmax.f32 %v25810_v20, 0.0  ;;  %v25813_v45 = vmax.f32 %v25812_v58, 0.0  ;;  %v25815_v51 = vmax.f32 %v25814_v35, 0.0  ;;  %v25817_v42 = vmax.f32 %v25816_v37, 0.0  ;;  %v25829_v35 = vld [vmem:[#allocation113_spill] sm:$0xff] }
 0x838   : > { %v24112_v41 = vmul.f32 %v13952_v34, %v25809_v22  ;;  %v25820_v1 = vmax.f32 %v25819_v17, 0.0  ;;  %v25823_v13 = vmax.f32 %v25822_v4, 0.0  ;;  %v25825_v22 = vmax.f32 %v25824_v60, 0.0  ;;  %v25838_v60 = vld [vmem:[#allocation117_spill] sm:$0xff] }
 0x839   : > { %v24116_v15 = vmul.f32 %v13952_v34, %v25811_v23  ;;  %v24120_v38 = vmul.f32 %v13952_v34, %v25813_v45  ;;  %v24124_v36 = vmul.f32 %v13952_v34, %v25815_v51  ;;  %v24128_v5 = vmul.f32 %v13952_v34, %v25817_v42  ;;  %v25826_v23 = vld [vmem:[#allocation109_spill] sm:$0xff]  ;;  %v25832_v42 = vld [vmem:[#allocation114_spill] sm:$0xff] }
 0x83a   : > { %v24132_v19 = vmul.f32 %v13952_v34, %v25820_v1  ;;  %v24136_v2 = vmul.f32 %v13952_v34, %v25823_v13  ;;  %v24140_v20 = vmul.f32 %v13952_v34, %v25825_v22  ;;  %v25827_v58 = vmax.f32 %v25826_v23, 0.0  ;;  %v25841_v23 = vld [vmem:[#allocation121_spill] sm:$0xff] }
 0x83b   : > { %25818 = vst [vmem:[#allocation158_spill] sm:$0xff] %v24128_v5  ;;  %v25830_v51 = vmax.f32 %v25829_v35, 0.0  ;;  %v25833_v17 = vmax.f32 %v25832_v42, 0.0  ;;  %v25836_v4 = vmax.f32 %v25835_v61, 0.0  ;;  %v25839_v22 = vmax.f32 %v25838_v60, 0.0  ;;  %v25844_v35 = vld [vmem:[#allocation122_spill] sm:$0xff] }
 0x83c   : > { %25821 = vst [vmem:[#allocation159_spill] sm:$0xff] %v24132_v19  ;;  %v24144_v45 = vmul.f32 %v13952_v34, %v25827_v58  ;;  %v25842_v58 = vmax.f32 %v25841_v23, 0.0  ;;  %v25847_v42 = vld [vmem:[#allocation123_spill] sm:$0xff]  ;;  %v25850_v61 = vld [vmem:[#allocation125_spill] sm:$0xff]  ;;  %v25856_v23 = vmax.f32 %v25855_v25, 0.0  ;;  %v25865_v25 = vmax.f32 %v23871_v3, 0.0 }
 0x83d   : > { %v24148_v37 = vmul.f32 %v13952_v34, %v25830_v51  ;;  %v24152_v1 = vmul.f32 %v13952_v34, %v25833_v17  ;;  %v24156_v13 = vmul.f32 %v13952_v34, %v25836_v4  ;;  %v24160_v12 = vmul.f32 %v13952_v34, %v25839_v22  ;;  %v25853_v60 = vld [vmem:[#allocation129_spill] sm:$0xff] }
 0x83e   : > { %25828 = vst [vmem:[#allocation160_spill] sm:$0xff] %v24144_v45  ;;  %v24165_v49 = vmul.f32 %v13952_v34, %v25842_v58  ;;  %v25845_v51 = vmax.f32 %v25844_v35, 0.0  ;;  %v25848_v17 = vmax.f32 %v25847_v42, 0.0  ;;  %v25851_v4 = vmax.f32 %v25850_v61, 0.0 }
 0x83f   : > { %25831 = vst [vmem:[#allocation161_spill] sm:$0xff] %v24148_v37  ;;  %25834 = vst [vmem:[#allocation162_spill] sm:$0xff] %v24152_v1  ;;  %v25854_v22 = vmax.f32 %v25853_v60, 0.0  ;;  %v24185_v58 = vmul.f32 %v13952_v34, %v25856_v23  ;;  %v24205_v23 = vmul.f32 %v13952_v34, %v25865_v25  ;;  %v16329_v25 = vpack.c.bf16 %v24096_v55, %v23967_v30 }
 0x840   : > { %25837 = vst [vmem:[#allocation163_spill] sm:$0xff] %v24156_v13  ;;  %25840 = vst [vmem:[#allocation164_spill] sm:$0xff] %v24160_v12  ;;  %v24169_v37 = vmul.f32 %v13952_v34, %v25845_v51  ;;  %v24173_v1 = vmul.f32 %v13952_v34, %v25848_v17  ;;  %v24177_v13 = vmul.f32 %v13952_v34, %v25851_v4 }
 0x841   : > { %25843 = vst [vmem:[#allocation165_spill] sm:$0xff] %v24165_v49  ;;  %v24181_v12 = vmul.f32 %v13952_v34, %v25854_v22  ;;  %v25857_v49 = vld [vmem:[#allocation132_spill] sm:$0xff]  ;;  %v16332_v3 = vpack.c.bf16 %v24108_v56, %v23979_v48  ;;  %v16337_v48 = vpack.c.bf16 %v24128_v5, %v23999_v53  ;;  %14213 = vst [vmem:[%s24214_s27 + $0x20] sm:$0xff] %v16329_v25 }
 0x842   : > { %25846 = vst [vmem:[#allocation166_spill] sm:$0xff] %v24169_v37  ;;  %25849 = vst [vmem:[#allocation167_spill] sm:$0xff] %v24173_v1  ;;  %v25858_v35 = vmax.f32 %v25857_v49, 0.0  ;;  %v25859_v37 = vld [vmem:[#allocation133_spill] sm:$0xff]  ;;  %v16335_v49 = vpack.c.bf16 %v24120_v38, %v23991_v28 }
 0x843   : > { %25852 = vst [vmem:[#allocation168_spill] sm:$0xff] %v24177_v13  ;;  %v25860_v42 = vmax.f32 %v25859_v37, 0.0  ;;  %v25861_v1 = vld [vmem:[#allocation137_spill] sm:$0xff]  ;;  %v25863_v13 = vld [vmem:[#allocation138_spill] sm:$0xff]  ;;  %v16334_v37 = vpack.c.bf16 %v24116_v15, %v23987_v59  ;;  %v16339_v59 = vpack.c.bf16 %v24136_v2, %v24007_v47  ;;  %14216 = vst [vmem:[%s24214_s27 + $0x38] sm:$0xff] %v16332_v3 }
 0x844   : > { %v24189_v51 = vmul.f32 %v13952_v34, %v25858_v35  ;;  %v25862_v61 = vmax.f32 %v25861_v1, 0.0  ;;  %v25864_v60 = vmax.f32 %v25863_v13, 0.0  ;;  %v16325_v35 = vpack.c.bf16 %v24080_v6, %v23951_v27  ;;  %14219 = vst [vmem:[%s24214_s27 + $0x50] sm:$0xff] %v16335_v49  ;;  %14221 = vst [vmem:[%s24214_s27 + $0x60] sm:$0xff] %v16337_v48 }
 0x845   : > { %v24193_v17 = vmul.f32 %v13952_v34, %v25860_v42  ;;  %v16326_v42 = vpack.c.bf16 %v24084_v54, %v23955_v8  ;;  %v16330_v13 = vpack.c.bf16 %v24100_v39, %v23971_v26  ;;  %v16333_v1 = vpack.c.bf16 %v24112_v41, %v23983_v33  ;;  %14218 = vst [vmem:[%s24214_s27 + $0x48] sm:$0xff] %v16334_v37 }
 0x846   : > { %v24197_v4 = vmul.f32 %v13952_v34, %v25862_v61  ;;  %v24201_v22 = vmul.f32 %v13952_v34, %v25864_v60  ;;  %v16327_v61 = vpack.c.bf16 %v24088_v32, %v23959_v18  ;;  %v16328_v60 = vpack.c.bf16 %v24092_v52, %v23963_v16  ;;  %14209 = vst [vmem:[%s24214_s27] sm:$0xff] %v16325_v35  ;;  %v25867_v53 = vld [vmem:[#allocation161_spill] sm:$0xff]  ;;  %v25869_v5 = vld [vmem:[#allocation162_spill] sm:$0xff] }
 0x847   : > { %v16331_v34 = vpack.c.bf16 %v24104_v24, %v23975_v46  ;;  %14210 = vst [vmem:[%s24214_s27 + $0x8] sm:$0xff] %v16326_v42  ;;  %v16336_v46 = vpack.c.bf16 %v24124_v36, %v23995_v0  ;;  %v16338_v33 = vpack.c.bf16 %v24132_v19, %v24003_v62  ;;  %14214 = vst [vmem:[%s24214_s27 + $0x28] sm:$0xff] %v16330_v13  ;;  %v25868_v19 = vld [vmem:[#allocation154_spill] sm:$0xff]  ;;  %v25871_v13 = vld [vmem:[#allocation163_spill] sm:$0xff] }
 0x848   : > { %14211 = vst [vmem:[%s24214_s27 + $0x10] sm:$0xff] %v16327_v61  ;;  %14212 = vst [vmem:[%s24214_s27 + $0x18] sm:$0xff] %v16328_v60  ;;  %v16340_v35 = vpack.c.bf16 %v24140_v20, %v24011_v11  ;;  %v16341_v42 = vpack.c.bf16 %v24144_v45, %v24015_v43  ;;  %v25866_v61 = vld [vmem:[#allocation153_spill] sm:$0xff]  ;;  %v16343_v47 = vpack.c.bf16 %v25869_v5, %v25868_v19  ;;  %v25872_v25 = vld [vmem:[#allocation164_spill] sm:$0xff] }
 0x849   : > { %14215 = vst [vmem:[%s24214_s27 + $0x30] sm:$0xff] %v16331_v34  ;;  %v16342_v62 = vpack.c.bf16 %v25867_v53, %v25866_v61  ;;  %14217 = vst [vmem:[%s24214_s27 + $0x40] sm:$0xff] %v16333_v1  ;;  %v25870_v34 = vld [vmem:[#allocation155_spill] sm:$0xff]  ;;  %v16345_v43 = vpack.c.bf16 %v25872_v25, %v24031_v14  ;;  %v25873_v45 = vld [vmem:[#allocation165_spill] sm:$0xff]  ;;  %v16350_v14 = vpack.c.bf16 %v24181_v12, %v24052_v29 }
 0x84a   : > { %v16344_v60 = vpack.c.bf16 %v25871_v13, %v25870_v34  ;;  %v16346_v61 = vpack.c.bf16 %v25873_v45, %v24035_v9  ;;  %v25874_v53 = vld [vmem:[#allocation166_spill] sm:$0xff]  ;;  %14220 = vst [vmem:[%s24214_s27 + $0x58] sm:$0xff] %v16336_v46  ;;  %14222 = vst [vmem:[%s24214_s27 + $0x68] sm:$0xff] %v16338_v33  ;;  %v25875_v49 = vld [vmem:[#allocation167_spill] sm:$0xff]  ;;  %v16351_v46 = vpack.c.bf16 %v24185_v58, %v24056_v21 }
 0x84b   : > { %v16347_v19 = vpack.c.bf16 %v25874_v53, %v24039_v57  ;;  %14223 = vst [vmem:[%s24214_s27 + $0x70] sm:$0xff] %v16339_v59  ;;  %v16348_v37 = vpack.c.bf16 %v25875_v49, %v24043_v63  ;;  %v25876_v1 = vld [vmem:[#allocation168_spill] sm:$0xff]  ;;  %14224 = vst [vmem:[%s24214_s27 + $0x78] sm:$0xff] %v16340_v35  ;;  %v16352_v48 = vpack.c.bf16 %v24189_v51, %v24060_v50 }
 0x84c   : > { %v16349_v3 = vpack.c.bf16 %v25876_v1, %v24047_v10  ;;  %14225 = vst [vmem:[%s24214_s27 + $0x80] sm:$0xff] %v16341_v42  ;;  %14226 = vst [vmem:[%s24214_s27 + $0x88] sm:$0xff] %v16342_v62  ;;  %v16353_v33 = vpack.c.bf16 %v24193_v17, %v24064_v7  ;;  %v16354_v59 = vpack.c.bf16 %v24197_v4, %v24068_v40 }
 0x84d   : > { %14227 = vst [vmem:[%s24214_s27 + $0x90] sm:$0xff] %v16343_v47  ;;  %v16355_v21 = vpack.c.bf16 %v24201_v22, %v24072_v31  ;;  %14228 = vst [vmem:[%s24214_s27 + $0x98] sm:$0xff] %v16344_v60  ;;  %v16356_v62 = vpack.c.bf16 %v24205_v23, %v24076_v44  ;;  %v14018_v47 = vpack.c.bf16 %v24084_v54, %v24080_v6 }
 0x84e   : > { %14229 = vst [vmem:[%s24214_s27 + $0xa0] sm:$0xff] %v16345_v43  ;;  %14230 = vst [vmem:[%s24214_s27 + $0xa8] sm:$0xff] %v16346_v61  ;;  %v14022_v35 = vpack.c.bf16 %v24100_v39, %v24096_v55  ;;  %v14017_v42 = vpack.c.bf16 %v23955_v8, %v23951_v27  ;;  %v14021_v43 = vpack.c.bf16 %v23971_v26, %v23967_v30  ;;  %v25879_v55 = vld [vmem:[#allocation145_spill] sm:$0xff]  ;;  %v25880_v39 = vld [vmem:[#allocation146_spill] sm:$0xff] }
 0x84f   : > { %14231 = vst [vmem:[%s24214_s27 + $0xb0] sm:$0xff] %v16347_v19  ;;  %14232 = vst [vmem:[%s24214_s27 + $0xb8] sm:$0xff] %v16348_v37  ;;  %14408 = vmatprep.mubr.bf16.mxu0 %v14018_v47  ;;  %v14024_v6 = vpack.c.bf16 %v24108_v56, %v24104_v24  ;;  %v14040_v27 = vpack.c.bf16 %v25875_v49, %v25874_v53  ;;  %v14042_v8 = vpack.c.bf16 %v24181_v12, %v25876_v1  ;;  %v25882_v19 = vld [vmem:[#allocation159_spill] sm:$0xff]  ;;  %v25890_v49 = vld [vmem:[#allocation154_spill] sm:$0xff] }
 0x850   : > { %14233 = vst [vmem:[%s24214_s27 + $0xc0] sm:$0xff] %v16349_v3  ;;  %14234 = vst [vmem:[%s24214_s27 + $0xc8] sm:$0xff] %v16350_v14  ;;  %14424 = vmatprep.mubr.bf16.mxu1 %v14022_v35  ;;  %v14020_v14 = vpack.c.bf16 %v24092_v52, %v24088_v32  ;;  %14409 = vmatmul.mubr.bf16.vlgmr.msra.gmra.mxu0 %v14017_v42  ;;  %v14044_v30 = vpack.c.bf16 %v24189_v51, %v24185_v58  ;;  %v25877_v32 = vld [vmem:[#allocation140_spill] sm:$0xff]  ;;  %v25878_v52 = vld [vmem:[#allocation141_spill] sm:$0xff] }
 0x851   : > { %14235 = vst [vmem:[%s24214_s27 + $0xd0] sm:$0xff] %v16351_v46  ;;  %14236 = vst [vmem:[%s24214_s27 + $0xd8] sm:$0xff] %v16352_v48  ;;  %14425 = vmatmul.mubr.bf16.vlgmr.msra.gmra.mxu1 %v14021_v43  ;;  %v14046_v26 = vpack.c.bf16 %v24197_v4, %v24193_v17  ;;  %v14019_v54 = vpack.c.bf16 %v23963_v16, %v23959_v18  ;;  %v14023_v53 = vpack.c.bf16 %v25878_v52, %v25877_v32  ;;  %v25881_v16 = vld [vmem:[#allocation158_spill] sm:$0xff] }
 0x852   : > { %14237 = vst [vmem:[%s24214_s27 + $0xe0] sm:$0xff] %v16353_v33  ;;  %14238 = vst [vmem:[%s24214_s27 + $0xe8] sm:$0xff] %v16354_v59  ;;  %14416 = vmatprep.mubr.bf16.mxu0 %v14020_v14  ;;  %14432 = vmatprep.mubr.bf16.mxu1 %v14024_v6  ;;  %v14026_v12 = vpack.c.bf16 %v24116_v15, %v24112_v41  ;;  %v14025_v24 = vpack.c.bf16 %v25880_v39, %v25879_v55  ;;  %v25883_v41 = vld [vmem:[#allocation148_spill] sm:$0xff]  ;;  %v25884_v15 = vld [vmem:[#allocation149_spill] sm:$0xff] }
 0x853   : > { %14239 = vst [vmem:[%s24214_s27 + $0xf0] sm:$0xff] %v16355_v21  ;;  %14240 = vst [vmem:[%s24214_s27 + $0xf8] sm:$0xff] %v16356_v62  ;;  %v14048_v21 = vpack.c.bf16 %v24205_v23, %v24201_v22  ;;  %v14028_v56 = vpack.c.bf16 %v24124_v36, %v24120_v38  ;;  %v14027_v18 = vpack.c.bf16 %v23995_v0, %v23991_v28  ;;  %v25885_v4 = vld [vmem:[#allocation150_spill] sm:$0xff]  ;;  %v25886_v36 = vld [vmem:[#allocation160_spill] sm:$0xff] }
 0x854   : > { %v14030_v58 = vpack.c.bf16 %v25882_v19, %v25881_v16  ;;  %v14029_v51 = vpack.c.bf16 %v25884_v15, %v25883_v41  ;;  %v14032_v17 = vpack.c.bf16 %v24140_v20, %v24136_v2  ;;  %v14031_v38 = vpack.c.bf16 %v24011_v11, %v25885_v4  ;;  %v25887_v22 = vld [vmem:[#allocation161_spill] sm:$0xff]  ;;  %v25888_v28 = vld [vmem:[#allocation151_spill] sm:$0xff]  ;;  %v25891_v11 = vld [vmem:[#allocation156_spill] sm:$0xff] }
 0x855   : > { %v14034_v23 = vpack.c.bf16 %v25887_v22, %v25886_v36  ;;  %v25889_v0 = vld [vmem:[#allocation153_spill] sm:$0xff]  ;;  %v14036_v60 = vpack.c.bf16 %v25871_v13, %v25869_v5  ;;  %v14035_v2 = vpack.c.bf16 %v25870_v34, %v25890_v49  ;;  %v14038_v20 = vpack.c.bf16 %v25873_v45, %v25872_v25 }
 0x856   : > { %v14033_v61 = vpack.c.bf16 %v25889_v0, %v25888_v28  ;;  %v25892_v37 = vpack.c.bf16 %v24035_v9, %v25891_v11  ;;  %v25893_v1 = vpack.c.bf16 %v24043_v63, %v24039_v57  ;;  %v25894_v5 = vpack.c.bf16 %v24052_v29, %v24047_v10  ;;  %v25895_v45 = vld [vmem:[#allocation157_spill] sm:$0xff]  ;;  %v24395_v10 = vld [vmem:[%s24483_s12] ss:$0 sm:$0xff] }
 0x857   : > { %v25896_v34 = vpack.c.bf16 %v24060_v50, %v25895_v45  ;;  %v25897_v9 = vpack.c.bf16 %v24068_v40, %v24064_v7  ;;  %v25898_v57 = vpack.c.bf16 %v24076_v44, %v24072_v31 }
 0x858   : > { %14417 = vmatmul.mubr.bf16.gmra.mxu0 %v14019_v54 }
 0x859   : > { %14433 = vmatmul.mubr.bf16.gmra.mxu1 %v14023_v53 }
 0x85a   : > { %14440 = vmatprep.mubr.bf16.mxu1 %v14026_v12 }
 0x861   : > { %14441 = vmatmul.mubr.bf16.gmra.mxu1 %v14025_v24 }
 0x862   : > { %14448 = vmatprep.mubr.bf16.mxu1 %v14028_v56 }
 0x869   : > { %14449 = vmatmul.mubr.bf16.gmra.mxu1 %v14027_v18 }
 0x86a   : > { %14456 = vmatprep.mubr.bf16.mxu1 %v14030_v58 }
 0x871   : > { %14457 = vmatmul.mubr.bf16.gmra.mxu1 %v14029_v51 }
 0x872   : > { %14464 = vmatprep.mubr.bf16.mxu1 %v14032_v17 }
 0x879   : > { %14465 = vmatmul.mubr.bf16.gmra.mxu1 %v14031_v38 }
 0x87a   : > { %14472 = vmatprep.mubr.bf16.mxu1 %v14034_v23 }
 0x881   : > { %14473 = vmatmul.mubr.bf16.gmra.mxu1 %v14033_v61 }
 0x882   : > { %14480 = vmatprep.mubr.bf16.mxu1 %v14036_v60 }
 0x889   : > { %14481 = vmatmul.mubr.bf16.gmra.mxu1 %v14035_v2 }
 0x88a   : > { %14488 = vmatprep.mubr.bf16.mxu1 %v14038_v20 }
 0x891   : > { %14489 = vmatmul.mubr.bf16.gmra.mxu1 %v25892_v37 }
 0x892   : > { %14496 = vmatprep.mubr.bf16.mxu1 %v14040_v27 }
 0x899   : > { %14497 = vmatmul.mubr.bf16.gmra.mxu1 %v25893_v1 }
 0x89a   : > { %14504 = vmatprep.mubr.bf16.mxu1 %v14042_v8 }
 0x8a1   : > { %14505 = vmatmul.mubr.bf16.gmra.mxu1 %v25894_v5 }
 0x8a2   : > { %14512 = vmatprep.mubr.bf16.mxu1 %v14044_v30 }
 0x8a9   : > { %14513 = vmatmul.mubr.bf16.gmra.mxu1 %v25896_v34 }
 0x8aa   : > { %14520 = vmatprep.mubr.bf16.mxu1 %v14046_v26 }
 0x8b1   : > { %14521 = vmatmul.mubr.bf16.gmra.mxu1 %v25897_v9 }
 0x8b2   : > { %14528 = vmatprep.mubr.bf16.mxu1 %v14048_v21 }
 0x8b9   : > { %14529 = vmatmul.mubr.bf16.gmra.mxu1 %v25898_v57 }
 0x910   : > { %v16408_v63 = vpop.f32.mrf.mxu0 }
 0x911   : > { %v16420_v13 = vpop.f32.mrf.mxu1 }
 0x912   : > { %v16409_v29 = vpop.f32.mrf.mxu0 }
 0x913   : > { %v16421_v50 = vpop.f32.mrf.mxu1  ;;  %v16410_v25 = vadd.f32 %v16409_v29, %v16408_v63 }
 0x914   : > { %v16422_v3 = vadd.f32 %v16421_v50, %v16420_v13  ;;  %v16411_v7 = vpop.f32.mrf.mxu0 }
 0x915   : > { %v16423_v40 = vpop.f32.mrf.mxu1  ;;  %v14411_v31 = vadd.f32 %v16410_v25, %v24395_v10 }
 0x916   : > { %v14427_v44 = vadd.f32 %v16422_v3, %v24395_v10  ;;  %v16412_v46 = vpop.f32.mrf.mxu0 }
 0x917   : > { %v16424_v48 = vpop.f32.mrf.mxu1  ;;  %14537 = vst [vmem:[%s24402_s17] sm:$0xff] %v14411_v31  ;;  %v16413_v33 = vadd.f32 %v16412_v46, %v16411_v7 }
 0x918   : > { %14541 = vst [vmem:[%s24402_s17 + $0x20] sm:$0xff] %v14427_v44  ;;  %v16425_v59 = vadd.f32 %v16424_v48, %v16423_v40  ;;  %v16414_v62 = vpop.f32.mrf.mxu0 }
 0x919   : > { %v16426_v47 = vpop.f32.mrf.mxu1  ;;  %v14414_v35 = vadd.f32 %v16413_v33, %v24395_v10 }
 0x91a   : > { %v14430_v42 = vadd.f32 %v16425_v59, %v24395_v10  ;;  %v16415_v43 = vpop.f32.mrf.mxu0 }
 0x91b   : > { %v16427_v14 = vpop.f32.mrf.mxu1  ;;  %14538 = vst [vmem:[%s24402_s17 + $0x8] sm:$0xff] %v14414_v35  ;;  %v16416_v6 = vadd.f32 %v16415_v43, %v16414_v62 }
 0x91c   : > { %14542 = vst [vmem:[%s24402_s17 + $0x28] sm:$0xff] %v14430_v42  ;;  %v16428_v27 = vadd.f32 %v16427_v14, %v16426_v47  ;;  %v16417_v8 = vpop.f32.mrf.mxu0 }
 0x91d   : > { %v16429_v30 = vpop.f32.mrf.mxu1  ;;  %v14419_v26 = vadd.f32 %v16416_v6, %v24395_v10 }
 0x91e   : > { %v14435_v21 = vadd.f32 %v16428_v27, %v24395_v10  ;;  %v16418_v54 = vpop.f32.mrf.mxu0 }
 0x91f   : > { %v16430_v32 = vpop.f32.mrf.mxu1  ;;  %14539 = vst [vmem:[%s24402_s17 + $0x10] sm:$0xff] %v14419_v26  ;;  %v16419_v52 = vadd.f32 %v16418_v54, %v16417_v8 }
 0x920   : > { %14543 = vst [vmem:[%s24402_s17 + $0x30] sm:$0xff] %v14435_v21  ;;  %v16431_v53 = vadd.f32 %v16430_v32, %v16429_v30 }
 0x921   : > { %v16432_v12 = vpop.f32.mrf.mxu1  ;;  %v14422_v55 = vadd.f32 %v16419_v52, %v24395_v10 }
 0x922   : > { %v14438_v39 = vadd.f32 %v16431_v53, %v24395_v10 }
 0x923   : > { %v16433_v24 = vpop.f32.mrf.mxu1  ;;  %14540 = vst [vmem:[%s24402_s17 + $0x18] sm:$0xff] %v14422_v55 }
 0x924   : > { %14544 = vst [vmem:[%s24402_s17 + $0x38] sm:$0xff] %v14438_v39  ;;  %v16434_v56 = vadd.f32 %v16433_v24, %v16432_v12 }
 0x925   : > { %v16435_v18 = vpop.f32.mrf.mxu1 }
 0x926   : > { %v14443_v16 = vadd.f32 %v16434_v56, %v24395_v10 }
 0x927   : > { %v16436_v19 = vpop.f32.mrf.mxu1 }
 0x928   : > { %14545 = vst [vmem:[%s24402_s17 + $0x40] sm:$0xff] %v14443_v16  ;;  %v16437_v58 = vadd.f32 %v16436_v19, %v16435_v18 }
 0x929   : > { %v16438_v41 = vpop.f32.mrf.mxu1 }
 0x92a   : > { %v14446_v15 = vadd.f32 %v16437_v58, %v24395_v10 }
 0x92b   : > { %v16439_v51 = vpop.f32.mrf.mxu1 }
 0x92c   : > { %14546 = vst [vmem:[%s24402_s17 + $0x48] sm:$0xff] %v14446_v15  ;;  %v16440_v17 = vadd.f32 %v16439_v51, %v16438_v41 }
 0x92d   : > { %v16441_v4 = vpop.f32.mrf.mxu1 }
 0x92e   : > { %v14451_v38 = vadd.f32 %v16440_v17, %v24395_v10 }
 0x92f   : > { %v16442_v36 = vpop.f32.mrf.mxu1 }
 0x930   : > { %14547 = vst [vmem:[%s24402_s17 + $0x50] sm:$0xff] %v14451_v38  ;;  %v16443_v22 = vadd.f32 %v16442_v36, %v16441_v4 }
 0x931   : > { %v16444_v23 = vpop.f32.mrf.mxu1 }
 0x932   : > { %v14454_v28 = vadd.f32 %v16443_v22, %v24395_v10 }
 0x933   : > { %v16445_v0 = vpop.f32.mrf.mxu1 }
 0x934   : > { %14548 = vst [vmem:[%s24402_s17 + $0x58] sm:$0xff] %v14454_v28  ;;  %v16446_v61 = vadd.f32 %v16445_v0, %v16444_v23 }
 0x935   : > { %v16447_v60 = vpop.f32.mrf.mxu1 }
 0x936   : > { %v14459_v49 = vadd.f32 %v16446_v61, %v24395_v10 }
 0x937   : > { %v16448_v2 = vpop.f32.mrf.mxu1 }
 0x938   : > { %14549 = vst [vmem:[%s24402_s17 + $0x60] sm:$0xff] %v14459_v49  ;;  %v16449_v20 = vadd.f32 %v16448_v2, %v16447_v60 }
 0x939   : > { %v16450_v11 = vpop.f32.mrf.mxu1 }
 0x93a   : > { %v14462_v37 = vadd.f32 %v16449_v20, %v24395_v10 }
 0x93b   : > { %v16451_v1 = vpop.f32.mrf.mxu1 }
 0x93c   : > { %14550 = vst [vmem:[%s24402_s17 + $0x68] sm:$0xff] %v14462_v37  ;;  %v16452_v5 = vadd.f32 %v16451_v1, %v16450_v11 }
 0x93d   : > { %v16453_v45 = vpop.f32.mrf.mxu1 }
 0x93e   : > { %v14467_v34 = vadd.f32 %v16452_v5, %v24395_v10 }
 0x93f   : > { %v16454_v9 = vpop.f32.mrf.mxu1 }
 0x940   : > { %14551 = vst [vmem:[%s24402_s17 + $0x70] sm:$0xff] %v14467_v34  ;;  %v16455_v57 = vadd.f32 %v16454_v9, %v16453_v45 }
 0x941   : > { %v16456_v63 = vpop.f32.mrf.mxu1 }
 0x942   : > { %v14470_v13 = vadd.f32 %v16455_v57, %v24395_v10 }
 0x943   : > { %v16457_v29 = vpop.f32.mrf.mxu1 }
 0x944   : > { %14552 = vst [vmem:[%s24402_s17 + $0x78] sm:$0xff] %v14470_v13  ;;  %v16458_v50 = vadd.f32 %v16457_v29, %v16456_v63 }
 0x945   : > { %v16459_v25 = vpop.f32.mrf.mxu1 }
 0x946   : > { %v14475_v3 = vadd.f32 %v16458_v50, %v24395_v10 }
 0x947   : > { %v16460_v7 = vpop.f32.mrf.mxu1 }
 0x948   : > { %14553 = vst [vmem:[%s24402_s17 + $0x80] sm:$0xff] %v14475_v3  ;;  %v16461_v40 = vadd.f32 %v16460_v7, %v16459_v25 }
 0x949   : > { %v16462_v31 = vpop.f32.mrf.mxu1 }
 0x94a   : > { %v14478_v44 = vadd.f32 %v16461_v40, %v24395_v10 }
 0x94b   : > { %v16463_v46 = vpop.f32.mrf.mxu1 }
 0x94c   : > { %14554 = vst [vmem:[%s24402_s17 + $0x88] sm:$0xff] %v14478_v44  ;;  %v16464_v48 = vadd.f32 %v16463_v46, %v16462_v31 }
 0x94d   : > { %v16465_v33 = vpop.f32.mrf.mxu1 }
 0x94e   : > { %v14483_v59 = vadd.f32 %v16464_v48, %v24395_v10 }
 0x94f   : > { %v16466_v62 = vpop.f32.mrf.mxu1 }
 0x950   : > { %14555 = vst [vmem:[%s24402_s17 + $0x90] sm:$0xff] %v14483_v59  ;;  %v16467_v47 = vadd.f32 %v16466_v62, %v16465_v33 }
 0x951   : > { %v16468_v35 = vpop.f32.mrf.mxu1 }
 0x952   : > { %v14486_v42 = vadd.f32 %v16467_v47, %v24395_v10 }
 0x953   : > { %v16469_v43 = vpop.f32.mrf.mxu1 }
 0x954   : > { %14556 = vst [vmem:[%s24402_s17 + $0x98] sm:$0xff] %v14486_v42  ;;  %v16470_v14 = vadd.f32 %v16469_v43, %v16468_v35 }
 0x955   : > { %v16471_v6 = vpop.f32.mrf.mxu1 }
 0x956   : > { %v14491_v27 = vadd.f32 %v16470_v14, %v24395_v10 }
 0x957   : > { %v16472_v8 = vpop.f32.mrf.mxu1 }
 0x958   : > { %14557 = vst [vmem:[%s24402_s17 + $0xa0] sm:$0xff] %v14491_v27  ;;  %v16473_v30 = vadd.f32 %v16472_v8, %v16471_v6 }
 0x959   : > { %v16474_v26 = vpop.f32.mrf.mxu1 }
 0x95a   : > { %v14494_v21 = vadd.f32 %v16473_v30, %v24395_v10 }
 0x95b   : > { %v16475_v54 = vpop.f32.mrf.mxu1 }
 0x95c   : > { %14558 = vst [vmem:[%s24402_s17 + $0xa8] sm:$0xff] %v14494_v21  ;;  %v16476_v32 = vadd.f32 %v16475_v54, %v16474_v26 }
 0x95d   : > { %v16477_v52 = vpop.f32.mrf.mxu1 }
 0x95e   : > { %v14499_v53 = vadd.f32 %v16476_v32, %v24395_v10 }
 0x95f   : > { %v16478_v12 = vpop.f32.mrf.mxu1 }
 0x960   : > { %14559 = vst [vmem:[%s24402_s17 + $0xb0] sm:$0xff] %v14499_v53  ;;  %v16479_v55 = vadd.f32 %v16478_v12, %v16477_v52 }
 0x961   : > { %v16480_v39 = vpop.f32.mrf.mxu1 }
 0x962   : > { %v14502_v24 = vadd.f32 %v16479_v55, %v24395_v10 }
 0x963   : > { %v16481_v56 = vpop.f32.mrf.mxu1 }
 0x964   : > { %14560 = vst [vmem:[%s24402_s17 + $0xb8] sm:$0xff] %v14502_v24  ;;  %v16482_v18 = vadd.f32 %v16481_v56, %v16480_v39 }
 0x965   : > { %v16483_v16 = vpop.f32.mrf.mxu1 }
 0x966   : > { %v14507_v19 = vadd.f32 %v16482_v18, %v24395_v10 }
 0x967   : > { %v16484_v58 = vpop.f32.mrf.mxu1 }
 0x968   : > { %14561 = vst [vmem:[%s24402_s17 + $0xc0] sm:$0xff] %v14507_v19  ;;  %v16485_v41 = vadd.f32 %v16484_v58, %v16483_v16 }
 0x969   : > { %v16486_v15 = vpop.f32.mrf.mxu1 }
 0x96a   : > { %v14510_v51 = vadd.f32 %v16485_v41, %v24395_v10 }
 0x96b   : > { %v16487_v17 = vpop.f32.mrf.mxu1 }
 0x96c   : > { %14562 = vst [vmem:[%s24402_s17 + $0xc8] sm:$0xff] %v14510_v51  ;;  %v16488_v4 = vadd.f32 %v16487_v17, %v16486_v15 }
 0x96d   : > { %v16489_v38 = vpop.f32.mrf.mxu1 }
 0x96e   : > { %v14515_v36 = vadd.f32 %v16488_v4, %v24395_v10 }
 0x96f   : > { %v16490_v22 = vpop.f32.mrf.mxu1 }
 0x970   : > { %14563 = vst [vmem:[%s24402_s17 + $0xd0] sm:$0xff] %v14515_v36  ;;  %v16491_v23 = vadd.f32 %v16490_v22, %v16489_v38 }
 0x971   : > { %v16492_v28 = vpop.f32.mrf.mxu1 }
 0x972   : > { %v14518_v0 = vadd.f32 %v16491_v23, %v24395_v10 }
 0x973   : > { %v16493_v61 = vpop.f32.mrf.mxu1 }
 0x974   : > { %14564 = vst [vmem:[%s24402_s17 + $0xd8] sm:$0xff] %v14518_v0  ;;  %v16494_v60 = vadd.f32 %v16493_v61, %v16492_v28 }
 0x975   : > { %v16495_v49 = vpop.f32.mrf.mxu1 }
 0x976   : > { %v14523_v2 = vadd.f32 %v16494_v60, %v24395_v10 }
 0x977   : > { %v16496_v20 = vpop.f32.mrf.mxu1 }
 0x978   : > { %14565 = vst [vmem:[%s24402_s17 + $0xe0] sm:$0xff] %v14523_v2  ;;  %v16497_v11 = vadd.f32 %v16496_v20, %v16495_v49 }
 0x979   : > { %v16498_v37 = vpop.f32.mrf.mxu1 }
 0x97a   : > { %v14526_v1 = vadd.f32 %v16497_v11, %v24395_v10 }
 0x97b   : > { %v16499_v5 = vpop.f32.mrf.mxu1 }
 0x97c   : > { %14566 = vst [vmem:[%s24402_s17 + $0xe8] sm:$0xff] %v14526_v1  ;;  %v16500_v45 = vadd.f32 %v16499_v5, %v16498_v37 }
 0x97d   : > { %v16501_v34 = vpop.f32.mrf.mxu1 }
 0x97e   : > { %v14531_v9 = vadd.f32 %v16500_v45, %v24395_v10 }
 0x97f   : > { %v16502_v57 = vpop.f32.mrf.mxu1 }
 0x980   : > { %14567 = vst [vmem:[%s24402_s17 + $0xf0] sm:$0xff] %v14531_v9  ;;  %v16503_v63 = vadd.f32 %v16502_v57, %v16501_v34 }
 0x982   : > { %v14534_v13 = vadd.f32 %v16503_v63, %v24395_v10 }
 0x984   : > { %14568 = vst [vmem:[%s24402_s17 + $0xf8] sm:$0xff] %v14534_v13 }
 0x985 PF: > { %s25_s29 = sadd.s32 1, %s17662_s29  }
 0x986   : > { %p22_p4 = scmp.ge.s32.totalorder %s25_s29, 4  }
 0x988   :  { %24 = sbr.rel (!%p22_p4) target bundleno = 1 (0x1), region = 118 }

</bundles_post_ra>
